<compile_context>
chip_gen: v6e
topology: v6e:2x2x1
jax: 0.10.0
libtpu: 0.0.40
codegen_flags: <defaults>
</compile_context>

<pallas_src>
import functools

import jax
import jax.numpy as jnp
from jax.experimental import pallas as pl
from jax.experimental.pallas import tpu as pltpu


def _round_up(x, m):
    return (x + m - 1) // m * m


_TM_TARGET = 256  # rows per grid step (keeps >=2 steps on the biggest layers for v7x)


# ----------------------------------------------------------------------------
# Pallas kernel: fused matmul + shift + (optional residual) + activation
# ----------------------------------------------------------------------------
def _fused_matmul_kernel(*refs, act, has_res):
    """o = act(x @ w + t [+ r]) for one M-tile. bf16 operands, f32 accumulate/epilogue."""
    if has_res:
        x_ref, w_ref, t_ref, r_ref, o_ref = refs
    else:
        x_ref, w_ref, t_ref, o_ref = refs
    y = jnp.dot(x_ref[...], w_ref[...], preferred_element_type=jnp.float32)
    y = y + t_ref[...]
    if has_res:
        y = y + r_ref[...]
    if act == "relu":
        y = jnp.maximum(y, 0.0)
    elif act == "tanh":
        y = jnp.tanh(y)
    o_ref[...] = y


def fused_matmul(x, w, t, act, residual=None, n_out=None):
    """act(x @ w + t [+ residual]); x:[M,K] f32, w:[K,Np] bf16, t:[1,Np] f32 -> [M,n_out]."""
    M, K = x.shape
    Kw, Np = w.shape
    assert K == Kw, (K, Kw)
    n_out = Np if n_out is None else n_out

    # Pad M to 16 (bf16 sublane packing), split into <=~256-row tiles.
    Mp0 = _round_up(M, 16)
    nb = -(-Mp0 // _TM_TARGET)
    tm = _round_up(-(-Mp0 // nb), 16)
    Mp = nb * tm

    xp = jnp.pad(x, ((0, Mp - M), (0, 0))).astype(jnp.bfloat16)

    in_specs = [
        pl.BlockSpec((tm, K), lambda i: (i, 0)),
        pl.BlockSpec((K, Np), lambda i: (0, 0)),
        pl.BlockSpec((1, Np), lambda i: (0, 0)),
    ]
    args = [xp, w, t]
    if residual is not None:
        rp = jnp.pad(residual.astype(jnp.float32),
                     ((0, Mp - residual.shape[0]), (0, Np - residual.shape[1])))
        in_specs.append(pl.BlockSpec((tm, Np), lambda i: (i, 0)))
        args.append(rp)

    out = pl.pallas_call(
        functools.partial(_fused_matmul_kernel, act=act, has_res=residual is not None),
        out_shape=jax.ShapeDtypeStruct((Mp, Np), jnp.float32),
        grid=(nb,),
        in_specs=in_specs,
        out_specs=pl.BlockSpec((tm, Np), lambda i: (i, 0)),
        compiler_params=pltpu.CompilerParams(dimension_semantics=("parallel",)),
    )(*args)
    return out[:M, :n_out]


# ----------------------------------------------------------------------------
# Conv lowering glue (im2col in plain JAX; matmul + epilogue in Pallas)
# ----------------------------------------------------------------------------
def _im2col(x, k, pad):
    """x: NHWC -> patches [B*Ho*Wo, k*k*C] in (ky, kx, c) order (stride 1)."""
    B, H, W, C = x.shape
    xp = jnp.pad(x, ((0, 0), (pad, pad), (pad, pad), (0, 0))) if pad else x
    Ho = H + 2 * pad - k + 1
    Wo = W + 2 * pad - k + 1
    cols = [xp[:, ky:ky + Ho, kx:kx + Wo, :] for ky in range(k) for kx in range(k)]
    patches = jnp.concatenate(cols, axis=-1)
    return patches.reshape(B * Ho * Wo, k * k * C), Ho, Wo


def conv2d(x, w, t, act, k, pad, residual=None, n_out=None):
    """NHWC conv (stride 1) with pre-folded weights; optional fused residual add."""
    patches, Ho, Wo = _im2col(x, k, pad)
    y = fused_matmul(patches, w, t, act, residual=residual, n_out=n_out)
    return y.reshape(x.shape[0], Ho, Wo, -1)


def conv_transpose_s2(x, w, t, act):
    """PyTorch ConvTranspose2d(k=4, stride=2, padding=1) via 4-phase sub-pixel convs.

    w is [4*C_in, 4*C_out]: the four 2x2 phase sub-kernels concatenated along N
    (built in _prep_convtranspose_s2). A single k=2/pad=1 im2col feeds all phases.
    """
    B, H, W, _ = x.shape
    C_out = w.shape[1] // 4
    patches, Hp, Wp = _im2col(x, 2, 1)                    # Hp = H+1, Wp = W+1
    y = fused_matmul(patches, w, t, act)                  # [B*Hp*Wp, 4*C_out]
    y = y.reshape(B, Hp, Wp, 4, C_out)
    # Interleave phases: out[b, 2i+py, 2j+px, c] = y[b, i+py, j+px, 2*py+px, c]
    rows = []
    for py in (0, 1):
        cols = [y[:, py:py + H, px:px + W, 2 * py + px, :] for px in (0, 1)]
        rows.append(jnp.stack(cols, axis=3))              # [B, H, W, 2, C]
    z = jnp.stack(rows, axis=2)                           # [B, H, 2, W, 2, C]
    return z.reshape(B, 2 * H, 2 * W, C_out)


# ----------------------------------------------------------------------------
# One-time parameter preparation (runs eagerly at init, NOT per forward)
# ----------------------------------------------------------------------------
def _bn_affine(gamma, beta, mean, var, eps=1e-5):
    scale = gamma / jnp.sqrt(var + eps)
    shift = beta - mean * scale
    return scale, shift


def _prep_dense(w2d, bias, scale, shift):
    """Fold BN scale into weight columns and bias into shift; pad N to 128; bf16 weights."""
    K, N = w2d.shape
    wf = w2d * scale[None, :]
    tf = bias * scale + shift
    Np = _round_up(N, 128)
    if Np != N:
        wf = jnp.pad(wf, ((0, 0), (0, Np - N)))
        tf = jnp.pad(tf, (0, Np - N))
    return wf.astype(jnp.bfloat16), tf.reshape(1, Np).astype(jnp.float32)


def _prep_fc(w, bias, scale, shift):
    # Permute fc columns so the matmul directly emits NHWC order:
    # new col (h*4+w)*256+c  <-  old col c*16+h*4+w   (PyTorch view(-1,256,4,4) is NCHW)
    perm = jnp.arange(256 * 4 * 4).reshape(256, 4, 4).transpose(1, 2, 0).reshape(-1)
    return _prep_dense(w[:, perm], bias[perm], scale[perm], shift[perm])


def _prep_conv(w_oihw, bias, scale, shift):
    C_out, C_in, k, _ = w_oihw.shape
    w2d = jnp.transpose(w_oihw, (2, 3, 1, 0)).reshape(k * k * C_in, C_out)  # (ky,kx,ci) x co
    return _prep_dense(w2d, bias, scale, shift)


def _prep_convtranspose_s1(w_iohw, bias, scale, shift):
    # stride=1, padding=0 ConvTranspose == ordinary conv with spatially flipped kernel, pad=k-1.
    C_in, C_out, k, _ = w_iohw.shape
    w2d = jnp.transpose(jnp.flip(w_iohw, axis=(2, 3)), (2, 3, 0, 1)).reshape(k * k * C_in, C_out)
    return _prep_dense(w2d, bias, scale, shift)


def _prep_convtranspose_s2(w_iohw, bias, scale, shift):
    # stride=2, padding=1, k=4 ConvTranspose -> four 2x2 sub-pixel convs (no structural zeros).
    # Even output rows/cols use taps (3,1); odd rows/cols use taps (2,0) (window order).
    C_in, C_out, k, _ = w_iohw.shape
    assert k == 4
    taps = (jnp.array([3, 1]), jnp.array([2, 0]))
    blocks = []
    for py in (0, 1):
        for px in (0, 1):
            sub = w_iohw[:, :, taps[py], :][:, :, :, taps[px]]        # [Cin, Cout, 2, 2]
            sub = jnp.transpose(sub, (2, 3, 0, 1)).reshape(4 * C_in, C_out)
            blocks.append(sub * scale[None, :])
    w2d = jnp.concatenate(blocks, axis=1)                             # [4*Cin, 4*Cout]
    tvec = jnp.tile(bias * scale + shift, 4)                          # phase-major, ch-minor
    return w2d.astype(jnp.bfloat16), tvec.reshape(1, w2d.shape[1]).astype(jnp.float32)


def init_params(key):
    ks = iter(jax.random.split(key, 24))
    nrm = lambda k, s, sc=0.05: sc * jax.random.normal(k, s, jnp.float32)

    def bn(k, c):
        k1, k2 = jax.random.split(k)
        gamma = 1.0 + 0.1 * jax.random.normal(k1, (c,), jnp.float32)
        beta = 0.1 * jax.random.normal(k2, (c,), jnp.float32)
        return _bn_affine(gamma, beta, jnp.zeros((c,), jnp.float32),
                          jnp.ones((c,), jnp.float32))

    p = {}
    s, t = bn(next(ks), 4 * 4 * 256)
    p["fc"] = _prep_fc(nrm(next(ks), (256, 4 * 4 * 256)), nrm(next(ks), (4 * 4 * 256,)), s, t)

    s, t = bn(next(ks), 256)
    p["res1"] = _prep_conv(nrm(next(ks), (256, 256, 3, 3)), nrm(next(ks), (256,)), s, t)
    s, t = bn(next(ks), 256)
    p["res2"] = _prep_conv(nrm(next(ks), (256, 256, 3, 3)), nrm(next(ks), (256,)), s, t)

    s, t = bn(next(ks), 128)
    p["up1"] = _prep_convtranspose_s1(nrm(next(ks), (256, 128, 4, 4)), nrm(next(ks), (128,)), s, t)
    s, t = bn(next(ks), 64)
    p["up2"] = _prep_convtranspose_s2(nrm(next(ks), (128, 64, 4, 4)), nrm(next(ks), (64,)), s, t)
    s, t = bn(next(ks), 32)
    p["up3"] = _prep_convtranspose_s2(nrm(next(ks), (64, 32, 4, 4)), nrm(next(ks), (32,)), s, t)

    p["out"] = _prep_conv(nrm(next(ks), (1, 32, 3, 3)), nrm(next(ks), (1,)),
                          jnp.ones((1,), jnp.float32), jnp.zeros((1,), jnp.float32))
    return p


# ----------------------------------------------------------------------------
# Forward pass (eval semantics: dropout = identity, BN = folded running stats)
# ----------------------------------------------------------------------------
def generator_forward(x, p):
    B = x.shape[0]

    # fc -> BN1d -> ReLU; fc columns pre-permuted so output is already NHWC-ordered.
    h = fused_matmul(x, *p["fc"], act="relu")                    # [B, 4096]
    h = h.reshape(B, 4, 4, 256)                                  # NHWC

    # ResidualBlock: relu(bn2(conv2(relu(bn1(conv1(h))))) + h); add fused into conv2.
    identity = h.reshape(B * 4 * 4, 256)
    h1 = conv2d(h, *p["res1"], act="relu", k=3, pad=1)
    h = conv2d(h1, *p["res2"], act="relu", k=3, pad=1, residual=identity)  # [B,4,4,256]

    # Upsample stack.
    h = conv2d(h, *p["up1"], act="relu", k=4, pad=3)             # ConvT(s=1,p=0): [B,7,7,128]
    h = conv_transpose_s2(h, *p["up2"], act="relu")              # [B,14,14,64]
    h = conv_transpose_s2(h, *p["up3"], act="relu")              # [B,28,28,32]

    # final Conv2d(32 -> 1, k=3, p=1) + Tanh (no BN)
    h = conv2d(h, *p["out"], act="tanh", k=3, pad=1, n_out=1)    # [B,28,28,1]
    return h.transpose(0, 3, 1, 2)                               # NCHW [B,1,28,28]


if __name__ == "__main__":
    key = jax.random.PRNGKey(0)
    pk, xk = jax.random.split(key)
    params = init_params(pk)                       # one-time weight prep, outside jit
    x = jax.random.normal(xk, (2, 256), jnp.float32)   # Generator latent input

    fwd = jax.jit(generator_forward)
    out = jax.block_until_ready(fwd(x, params))

    assert out.shape == (2, 1, 28, 28), out.shape
    assert bool(jnp.all(jnp.isfinite(out)))
    assert bool(jnp.all(jnp.abs(out) <= 1.0 + 1e-6))   # tanh range
    print("KERNEL_OK")
</pallas_src>

<mosaic_0001>
module attributes {stable_mosaic.version = 11 : i64} {
  func.func @_fused_matmul_kernel(%arg0: i32, %arg1: memref<16x256xbf16, #tpu.memory_space<vmem>>, %arg2: memref<256x4096xbf16, #tpu.memory_space<vmem>>, %arg3: memref<1x4096xf32, #tpu.memory_space<vmem>>, %arg4: memref<16x4096xf32, #tpu.memory_space<vmem>>) attributes {dimension_semantics = [#tpu.dimension_semantics<parallel>], iteration_bounds = array<i64: 1>, scalar_prefetch = 0 : i64, scratch_operands = 0 : i64, tpu.core_type = #tpu.core_type<tc>, window_params = [{transform_indices = @transform_0, window_bounds = array<i64: 16, 256>}, {pipeline_mode = #tpu.pipeline_mode<synchronous>, transform_indices = @transform_1, window_bounds = array<i64: 256, 4096>}, {pipeline_mode = #tpu.pipeline_mode<synchronous>, transform_indices = @transform_2, window_bounds = array<i64: 1, 4096>}, {transform_indices = @transform_3, window_bounds = array<i64: 16, 4096>}]} {
    %c0 = arith.constant 0 : index
    %c0_0 = arith.constant 0 : index
    %0 = vector.load %arg1[%c0, %c0_0] : memref<16x256xbf16, #tpu.memory_space<vmem>>, vector<16x256xbf16>
    %c0_1 = arith.constant 0 : index
    %c0_2 = arith.constant 0 : index
    %1 = vector.load %arg2[%c0_1, %c0_2] : memref<256x4096xbf16, #tpu.memory_space<vmem>>, vector<256x4096xbf16>
    %cst = arith.constant dense<0.000000e+00> : vector<16x4096xf32>
    %2 = tpu.matmul %0, %1, %cst {dimension_numbers = #tpu.dot_dimension_numbers<[1], [0], [0], [1], [0, 0, 1, 1], [], []>} : vector<16x256xbf16>, vector<256x4096xbf16>, vector<16x4096xf32> -> vector<16x4096xf32>
    %c0_3 = arith.constant 0 : index
    %c0_4 = arith.constant 0 : index
    %3 = vector.load %arg3[%c0_3, %c0_4] : memref<1x4096xf32, #tpu.memory_space<vmem>>, vector<1x4096xf32>
    %4 = vector.broadcast %3 : vector<1x4096xf32> to vector<16x4096xf32>
    %5 = arith.addf %2, %4 : vector<16x4096xf32>
    %cst_5 = arith.constant 0.000000e+00 : f32
    %6 = vector.broadcast %cst_5 : f32 to vector<16x4096xf32>
    %7 = arith.maximumf %5, %6 : vector<16x4096xf32>
    %c0_6 = arith.constant 0 : index
    %c0_7 = arith.constant 0 : index
    %8 = vector.load %arg4[%c0_6, %c0_7] : memref<16x4096xf32, #tpu.memory_space<vmem>>, vector<16x4096xf32>
    tpu.vector_store %arg4[%c0_6, %c0_7], %7 {strides = array<i32>} : memref<16x4096xf32, #tpu.memory_space<vmem>>, vector<16x4096xf32>,
    return
  }
  func.func @transform_0(%arg0: i32) -> (i32, i32) {
    %c0_i32 = arith.constant 0 : i32
    %c0_i32_0 = arith.constant 0 : i32
    return %arg0, %c0_i32 : i32, i32
  }
  func.func @transform_1(%arg0: i32) -> (i32, i32) {
    %c0_i32 = arith.constant 0 : i32
    %c0_i32_0 = arith.constant 0 : i32
    %c0_i32_1 = arith.constant 0 : i32
    return %c0_i32, %c0_i32_0 : i32, i32
  }
  func.func @transform_2(%arg0: i32) -> (i32, i32) {
    %c0_i32 = arith.constant 0 : i32
    %c0_i32_0 = arith.constant 0 : i32
    %c0_i32_1 = arith.constant 0 : i32
    return %c0_i32, %c0_i32_0 : i32, i32
  }
  func.func @transform_3(%arg0: i32) -> (i32, i32) {
    %c0_i32 = arith.constant 0 : i32
    %c0_i32_0 = arith.constant 0 : i32
    return %arg0, %c0_i32 : i32, i32
  }
}

module attributes {stable_mosaic.version = 11 : i64} {
  func.func @_fused_matmul_kernel(%arg0: i32, %arg1: memref<32x2304xbf16, #tpu.memory_space<vmem>>, %arg2: memref<2304x256xbf16, #tpu.memory_space<vmem>>, %arg3: memref<1x256xf32, #tpu.memory_space<vmem>>, %arg4: memref<32x256xf32, #tpu.memory_space<vmem>>) attributes {dimension_semantics = [#tpu.dimension_semantics<parallel>], iteration_bounds = array<i64: 1>, scalar_prefetch = 0 : i64, scratch_operands = 0 : i64, tpu.core_type = #tpu.core_type<tc>, window_params = [{transform_indices = @transform_0, window_bounds = array<i64: 32, 2304>}, {pipeline_mode = #tpu.pipeline_mode<synchronous>, transform_indices = @transform_1, window_bounds = array<i64: 2304, 256>}, {pipeline_mode = #tpu.pipeline_mode<synchronous>, transform_indices = @transform_2, window_bounds = array<i64: 1, 256>}, {transform_indices = @transform_3, window_bounds = array<i64: 32, 256>}]} {
    %c0 = arith.constant 0 : index
    %c0_0 = arith.constant 0 : index
    %0 = vector.load %arg1[%c0, %c0_0] : memref<32x2304xbf16, #tpu.memory_space<vmem>>, vector<32x2304xbf16>
    %c0_1 = arith.constant 0 : index
    %c0_2 = arith.constant 0 : index
    %1 = vector.load %arg2[%c0_1, %c0_2] : memref<2304x256xbf16, #tpu.memory_space<vmem>>, vector<2304x256xbf16>
    %cst = arith.constant dense<0.000000e+00> : vector<32x256xf32>
    %2 = tpu.matmul %0, %1, %cst {dimension_numbers = #tpu.dot_dimension_numbers<[1], [0], [0], [1], [0, 0, 1, 1], [], []>} : vector<32x2304xbf16>, vector<2304x256xbf16>, vector<32x256xf32> -> vector<32x256xf32>
    %c0_3 = arith.constant 0 : index
    %c0_4 = arith.constant 0 : index
    %3 = vector.load %arg3[%c0_3, %c0_4] : memref<1x256xf32, #tpu.memory_space<vmem>>, vector<1x256xf32>
    %4 = vector.broadcast %3 : vector<1x256xf32> to vector<32x256xf32>
    %5 = arith.addf %2, %4 : vector<32x256xf32>
    %cst_5 = arith.constant 0.000000e+00 : f32
    %6 = vector.broadcast %cst_5 : f32 to vector<32x256xf32>
    %7 = arith.maximumf %5, %6 : vector<32x256xf32>
    %c0_6 = arith.constant 0 : index
    %c0_7 = arith.constant 0 : index
    %8 = vector.load %arg4[%c0_6, %c0_7] : memref<32x256xf32, #tpu.memory_space<vmem>>, vector<32x256xf32>
    tpu.vector_store %arg4[%c0_6, %c0_7], %7 {strides = array<i32>} : memref<32x256xf32, #tpu.memory_space<vmem>>, vector<32x256xf32>,
    return
  }
  func.func @transform_0(%arg0: i32) -> (i32, i32) {
    %c0_i32 = arith.constant 0 : i32
    %c0_i32_0 = arith.constant 0 : i32
    return %arg0, %c0_i32 : i32, i32
  }
  func.func @transform_1(%arg0: i32) -> (i32, i32) {
    %c0_i32 = arith.constant 0 : i32
    %c0_i32_0 = arith.constant 0 : i32
    %c0_i32_1 = arith.constant 0 : i32
    return %c0_i32, %c0_i32_0 : i32, i32
  }
  func.func @transform_2(%arg0: i32) -> (i32, i32) {
    %c0_i32 = arith.constant 0 : i32
    %c0_i32_0 = arith.constant 0 : i32
    %c0_i32_1 = arith.constant 0 : i32
    return %c0_i32, %c0_i32_0 : i32, i32
  }
  func.func @transform_3(%arg0: i32) -> (i32, i32) {
    %c0_i32 = arith.constant 0 : i32
    %c0_i32_0 = arith.constant 0 : i32
    return %arg0, %c0_i32 : i32, i32
  }
}

module attributes {stable_mosaic.version = 11 : i64} {
  func.func @_fused_matmul_kernel(%arg0: i32, %arg1: memref<32x2304xbf16, #tpu.memory_space<vmem>>, %arg2: memref<2304x256xbf16, #tpu.memory_space<vmem>>, %arg3: memref<1x256xf32, #tpu.memory_space<vmem>>, %arg4: memref<32x256xf32, #tpu.memory_space<vmem>>, %arg5: memref<32x256xf32, #tpu.memory_space<vmem>>) attributes {dimension_semantics = [#tpu.dimension_semantics<parallel>], iteration_bounds = array<i64: 1>, scalar_prefetch = 0 : i64, scratch_operands = 0 : i64, tpu.core_type = #tpu.core_type<tc>, window_params = [{transform_indices = @transform_0, window_bounds = array<i64: 32, 2304>}, {pipeline_mode = #tpu.pipeline_mode<synchronous>, transform_indices = @transform_1, window_bounds = array<i64: 2304, 256>}, {pipeline_mode = #tpu.pipeline_mode<synchronous>, transform_indices = @transform_2, window_bounds = array<i64: 1, 256>}, {transform_indices = @transform_3, window_bounds = array<i64: 32, 256>}, {transform_indices = @transform_4, window_bounds = array<i64: 32, 256>}]} {
    %c0 = arith.constant 0 : index
    %c0_0 = arith.constant 0 : index
    %0 = vector.load %arg1[%c0, %c0_0] : memref<32x2304xbf16, #tpu.memory_space<vmem>>, vector<32x2304xbf16>
    %c0_1 = arith.constant 0 : index
    %c0_2 = arith.constant 0 : index
    %1 = vector.load %arg2[%c0_1, %c0_2] : memref<2304x256xbf16, #tpu.memory_space<vmem>>, vector<2304x256xbf16>
    %cst = arith.constant dense<0.000000e+00> : vector<32x256xf32>
    %2 = tpu.matmul %0, %1, %cst {dimension_numbers = #tpu.dot_dimension_numbers<[1], [0], [0], [1], [0, 0, 1, 1], [], []>} : vector<32x2304xbf16>, vector<2304x256xbf16>, vector<32x256xf32> -> vector<32x256xf32>
    %c0_3 = arith.constant 0 : index
    %c0_4 = arith.constant 0 : index
    %3 = vector.load %arg3[%c0_3, %c0_4] : memref<1x256xf32, #tpu.memory_space<vmem>>, vector<1x256xf32>
    %4 = vector.broadcast %3 : vector<1x256xf32> to vector<32x256xf32>
    %5 = arith.addf %2, %4 : vector<32x256xf32>
    %c0_5 = arith.constant 0 : index
    %c0_6 = arith.constant 0 : index
    %6 = vector.load %arg4[%c0_5, %c0_6] : memref<32x256xf32, #tpu.memory_space<vmem>>, vector<32x256xf32>
    %7 = arith.addf %5, %6 : vector<32x256xf32>
    %cst_7 = arith.constant 0.000000e+00 : f32
    %8 = vector.broadcast %cst_7 : f32 to vector<32x256xf32>
    %9 = arith.maximumf %7, %8 : vector<32x256xf32>
    %c0_8 = arith.constant 0 : index
    %c0_9 = arith.constant 0 : index
    %10 = vector.load %arg5[%c0_8, %c0_9] : memref<32x256xf32, #tpu.memory_space<vmem>>, vector<32x256xf32>
    tpu.vector_store %arg5[%c0_8, %c0_9], %9 {strides = array<i32>} : memref<32x256xf32, #tpu.memory_space<vmem>>, vector<32x256xf32>,
    return
  }
  func.func @transform_0(%arg0: i32) -> (i32, i32) {
    %c0_i32 = arith.constant 0 : i32
    %c0_i32_0 = arith.constant 0 : i32
    return %arg0, %c0_i32 : i32, i32
  }
  func.func @transform_1(%arg0: i32) -> (i32, i32) {
    %c0_i32 = arith.constant 0 : i32
    %c0_i32_0 = arith.constant 0 : i32
    %c0_i32_1 = arith.constant 0 : i32
    return %c0_i32, %c0_i32_0 : i32, i32
  }
  func.func @transform_2(%arg0: i32) -> (i32, i32) {
    %c0_i32 = arith.constant 0 : i32
    %c0_i32_0 = arith.constant 0 : i32
    %c0_i32_1 = arith.constant 0 : i32
    return %c0_i32, %c0_i32_0 : i32, i32
  }
  func.func @transform_3(%arg0: i32) -> (i32, i32) {
    %c0_i32 = arith.constant 0 : i32
    %c0_i32_0 = arith.constant 0 : i32
    return %arg0, %c0_i32 : i32, i32
  }
  func.func @transform_4(%arg0: i32) -> (i32, i32) {
    %c0_i32 = arith.constant 0 : i32
    %c0_i32_0 = arith.constant 0 : i32
    return %arg0, %c0_i32 : i32, i32
  }
}

module attributes {stable_mosaic.version = 11 : i64} {
  func.func @_fused_matmul_kernel(%arg0: i32, %arg1: memref<112x4096xbf16, #tpu.memory_space<vmem>>, %arg2: memref<4096x128xbf16, #tpu.memory_space<vmem>>, %arg3: memref<1x128xf32, #tpu.memory_space<vmem>>, %arg4: memref<112x128xf32, #tpu.memory_space<vmem>>) attributes {dimension_semantics = [#tpu.dimension_semantics<parallel>], iteration_bounds = array<i64: 1>, scalar_prefetch = 0 : i64, scratch_operands = 0 : i64, tpu.core_type = #tpu.core_type<tc>, window_params = [{transform_indices = @transform_0, window_bounds = array<i64: 112, 4096>}, {pipeline_mode = #tpu.pipeline_mode<synchronous>, transform_indices = @transform_1, window_bounds = array<i64: 4096, 128>}, {pipeline_mode = #tpu.pipeline_mode<synchronous>, transform_indices = @transform_2, window_bounds = array<i64: 1, 128>}, {transform_indices = @transform_3, window_bounds = array<i64: 112, 128>}]} {
    %c0 = arith.constant 0 : index
    %c0_0 = arith.constant 0 : index
    %0 = vector.load %arg1[%c0, %c0_0] : memref<112x4096xbf16, #tpu.memory_space<vmem>>, vector<112x4096xbf16>
    %c0_1 = arith.constant 0 : index
    %c0_2 = arith.constant 0 : index
    %1 = vector.load %arg2[%c0_1, %c0_2] : memref<4096x128xbf16, #tpu.memory_space<vmem>>, vector<4096x128xbf16>
    %cst = arith.constant dense<0.000000e+00> : vector<112x128xf32>
    %2 = tpu.matmul %0, %1, %cst {dimension_numbers = #tpu.dot_dimension_numbers<[1], [0], [0], [1], [0, 0, 1, 1], [], []>} : vector<112x4096xbf16>, vector<4096x128xbf16>, vector<112x128xf32> -> vector<112x128xf32>
    %c0_3 = arith.constant 0 : index
    %c0_4 = arith.constant 0 : index
    %3 = vector.load %arg3[%c0_3, %c0_4] : memref<1x128xf32, #tpu.memory_space<vmem>>, vector<1x128xf32>
    %4 = vector.broadcast %3 : vector<1x128xf32> to vector<112x128xf32>
    %5 = arith.addf %2, %4 : vector<112x128xf32>
    %cst_5 = arith.constant 0.000000e+00 : f32
    %6 = vector.broadcast %cst_5 : f32 to vector<112x128xf32>
    %7 = arith.maximumf %5, %6 : vector<112x128xf32>
    %c0_6 = arith.constant 0 : index
    %c0_7 = arith.constant 0 : index
    %8 = vector.load %arg4[%c0_6, %c0_7] : memref<112x128xf32, #tpu.memory_space<vmem>>, vector<112x128xf32>
    tpu.vector_store %arg4[%c0_6, %c0_7], %7 {strides = array<i32>} : memref<112x128xf32, #tpu.memory_space<vmem>>, vector<112x128xf32>,
    return
  }
  func.func @transform_0(%arg0: i32) -> (i32, i32) {
    %c0_i32 = arith.constant 0 : i32
    %c0_i32_0 = arith.constant 0 : i32
    return %arg0, %c0_i32 : i32, i32
  }
  func.func @transform_1(%arg0: i32) -> (i32, i32) {
    %c0_i32 = arith.constant 0 : i32
    %c0_i32_0 = arith.constant 0 : i32
    %c0_i32_1 = arith.constant 0 : i32
    return %c0_i32, %c0_i32_0 : i32, i32
  }
  func.func @transform_2(%arg0: i32) -> (i32, i32) {
    %c0_i32 = arith.constant 0 : i32
    %c0_i32_0 = arith.constant 0 : i32
    %c0_i32_1 = arith.constant 0 : i32
    return %c0_i32, %c0_i32_0 : i32, i32
  }
  func.func @transform_3(%arg0: i32) -> (i32, i32) {
    %c0_i32 = arith.constant 0 : i32
    %c0_i32_0 = arith.constant 0 : i32
    return %arg0, %c0_i32 : i32, i32
  }
}

module attributes {stable_mosaic.version = 11 : i64} {
  func.func @_fused_matmul_kernel(%arg0: i32, %arg1: memref<128x512xbf16, #tpu.memory_space<vmem>>, %arg2: memref<512x256xbf16, #tpu.memory_space<vmem>>, %arg3: memref<1x256xf32, #tpu.memory_space<vmem>>, %arg4: memref<128x256xf32, #tpu.memory_space<vmem>>) attributes {dimension_semantics = [#tpu.dimension_semantics<parallel>], iteration_bounds = array<i64: 1>, scalar_prefetch = 0 : i64, scratch_operands = 0 : i64, tpu.core_type = #tpu.core_type<tc>, window_params = [{transform_indices = @transform_0, window_bounds = array<i64: 128, 512>}, {pipeline_mode = #tpu.pipeline_mode<synchronous>, transform_indices = @transform_1, window_bounds = array<i64: 512, 256>}, {pipeline_mode = #tpu.pipeline_mode<synchronous>, transform_indices = @transform_2, window_bounds = array<i64: 1, 256>}, {transform_indices = @transform_3, window_bounds = array<i64: 128, 256>}]} {
    %c0 = arith.constant 0 : index
    %c0_0 = arith.constant 0 : index
    %0 = vector.load %arg1[%c0, %c0_0] : memref<128x512xbf16, #tpu.memory_space<vmem>>, vector<128x512xbf16>
    %c0_1 = arith.constant 0 : index
    %c0_2 = arith.constant 0 : index
    %1 = vector.load %arg2[%c0_1, %c0_2] : memref<512x256xbf16, #tpu.memory_space<vmem>>, vector<512x256xbf16>
    %cst = arith.constant dense<0.000000e+00> : vector<128x256xf32>
    %2 = tpu.matmul %0, %1, %cst {dimension_numbers = #tpu.dot_dimension_numbers<[1], [0], [0], [1], [0, 0, 1, 1], [], []>} : vector<128x512xbf16>, vector<512x256xbf16>, vector<128x256xf32> -> vector<128x256xf32>
    %c0_3 = arith.constant 0 : index
    %c0_4 = arith.constant 0 : index
    %3 = vector.load %arg3[%c0_3, %c0_4] : memref<1x256xf32, #tpu.memory_space<vmem>>, vector<1x256xf32>
    %4 = vector.broadcast %3 : vector<1x256xf32> to vector<128x256xf32>
    %5 = arith.addf %2, %4 : vector<128x256xf32>
    %cst_5 = arith.constant 0.000000e+00 : f32
    %6 = vector.broadcast %cst_5 : f32 to vector<128x256xf32>
    %7 = arith.maximumf %5, %6 : vector<128x256xf32>
    %c0_6 = arith.constant 0 : index
    %c0_7 = arith.constant 0 : index
    %8 = vector.load %arg4[%c0_6, %c0_7] : memref<128x256xf32, #tpu.memory_space<vmem>>, vector<128x256xf32>
    tpu.vector_store %arg4[%c0_6, %c0_7], %7 {strides = array<i32>} : memref<128x256xf32, #tpu.memory_space<vmem>>, vector<128x256xf32>,
    return
  }
  func.func @transform_0(%arg0: i32) -> (i32, i32) {
    %c0_i32 = arith.constant 0 : i32
    %c0_i32_0 = arith.constant 0 : i32
    return %arg0, %c0_i32 : i32, i32
  }
  func.func @transform_1(%arg0: i32) -> (i32, i32) {
    %c0_i32 = arith.constant 0 : i32
    %c0_i32_0 = arith.constant 0 : i32
    %c0_i32_1 = arith.constant 0 : i32
    return %c0_i32, %c0_i32_0 : i32, i32
  }
  func.func @transform_2(%arg0: i32) -> (i32, i32) {
    %c0_i32 = arith.constant 0 : i32
    %c0_i32_0 = arith.constant 0 : i32
    %c0_i32_1 = arith.constant 0 : i32
    return %c0_i32, %c0_i32_0 : i32, i32
  }
  func.func @transform_3(%arg0: i32) -> (i32, i32) {
    %c0_i32 = arith.constant 0 : i32
    %c0_i32_0 = arith.constant 0 : i32
    return %arg0, %c0_i32 : i32, i32
  }
}

module attributes {stable_mosaic.version = 11 : i64} {
  func.func @_fused_matmul_kernel(%arg0: i32, %arg1: memref<240x256xbf16, #tpu.memory_space<vmem>>, %arg2: memref<256x128xbf16, #tpu.memory_space<vmem>>, %arg3: memref<1x128xf32, #tpu.memory_space<vmem>>, %arg4: memref<240x128xf32, #tpu.memory_space<vmem>>) attributes {dimension_semantics = [#tpu.dimension_semantics<parallel>], iteration_bounds = array<i64: 2>, scalar_prefetch = 0 : i64, scratch_operands = 0 : i64, tpu.core_type = #tpu.core_type<tc>, window_params = [{transform_indices = @transform_0, window_bounds = array<i64: 240, 256>}, {pipeline_mode = #tpu.pipeline_mode<synchronous>, transform_indices = @transform_1, window_bounds = array<i64: 256, 128>}, {pipeline_mode = #tpu.pipeline_mode<synchronous>, transform_indices = @transform_2, window_bounds = array<i64: 1, 128>}, {transform_indices = @transform_3, window_bounds = array<i64: 240, 128>}]} {
    %c0 = arith.constant 0 : index
    %c0_0 = arith.constant 0 : index
    %0 = vector.load %arg1[%c0, %c0_0] : memref<240x256xbf16, #tpu.memory_space<vmem>>, vector<240x256xbf16>
    %c0_1 = arith.constant 0 : index
    %c0_2 = arith.constant 0 : index
    %1 = vector.load %arg2[%c0_1, %c0_2] : memref<256x128xbf16, #tpu.memory_space<vmem>>, vector<256x128xbf16>
    %cst = arith.constant dense<0.000000e+00> : vector<240x128xf32>
    %2 = tpu.matmul %0, %1, %cst {dimension_numbers = #tpu.dot_dimension_numbers<[1], [0], [0], [1], [0, 0, 1, 1], [], []>} : vector<240x256xbf16>, vector<256x128xbf16>, vector<240x128xf32> -> vector<240x128xf32>
    %c0_3 = arith.constant 0 : index
    %c0_4 = arith.constant 0 : index
    %3 = vector.load %arg3[%c0_3, %c0_4] : memref<1x128xf32, #tpu.memory_space<vmem>>, vector<1x128xf32>
    %4 = vector.broadcast %3 : vector<1x128xf32> to vector<240x128xf32>
    %5 = arith.addf %2, %4 : vector<240x128xf32>
    %cst_5 = arith.constant 0.000000e+00 : f32
    %6 = vector.broadcast %cst_5 : f32 to vector<240x128xf32>
    %7 = arith.maximumf %5, %6 : vector<240x128xf32>
    %c0_6 = arith.constant 0 : index
    %c0_7 = arith.constant 0 : index
    %8 = vector.load %arg4[%c0_6, %c0_7] : memref<240x128xf32, #tpu.memory_space<vmem>>, vector<240x128xf32>
    tpu.vector_store %arg4[%c0_6, %c0_7], %7 {strides = array<i32>} : memref<240x128xf32, #tpu.memory_space<vmem>>, vector<240x128xf32>,
    return
  }
  func.func @transform_0(%arg0: i32) -> (i32, i32) {
    %c0_i32 = arith.constant 0 : i32
    %c0_i32_0 = arith.constant 0 : i32
    return %arg0, %c0_i32 : i32, i32
  }
  func.func @transform_1(%arg0: i32) -> (i32, i32) {
    %c0_i32 = arith.constant 0 : i32
    %c0_i32_0 = arith.constant 0 : i32
    %c0_i32_1 = arith.constant 0 : i32
    return %c0_i32, %c0_i32_0 : i32, i32
  }
  func.func @transform_2(%arg0: i32) -> (i32, i32) {
    %c0_i32 = arith.constant 0 : i32
    %c0_i32_0 = arith.constant 0 : i32
    %c0_i32_1 = arith.constant 0 : i32
    return %c0_i32, %c0_i32_0 : i32, i32
  }
  func.func @transform_3(%arg0: i32) -> (i32, i32) {
    %c0_i32 = arith.constant 0 : i32
    %c0_i32_0 = arith.constant 0 : i32
    return %arg0, %c0_i32 : i32, i32
  }
}

module attributes {stable_mosaic.version = 11 : i64} {
  func.func @_fused_matmul_kernel(%arg0: i32, %arg1: memref<224x288xbf16, #tpu.memory_space<vmem>>, %arg2: memref<288x128xbf16, #tpu.memory_space<vmem>>, %arg3: memref<1x128xf32, #tpu.memory_space<vmem>>, %arg4: memref<224x128xf32, #tpu.memory_space<vmem>>) attributes {dimension_semantics = [#tpu.dimension_semantics<parallel>], iteration_bounds = array<i64: 7>, scalar_prefetch = 0 : i64, scratch_operands = 0 : i64, tpu.core_type = #tpu.core_type<tc>, window_params = [{transform_indices = @transform_0, window_bounds = array<i64: 224, 288>}, {pipeline_mode = #tpu.pipeline_mode<synchronous>, transform_indices = @transform_1, window_bounds = array<i64: 288, 128>}, {pipeline_mode = #tpu.pipeline_mode<synchronous>, transform_indices = @transform_2, window_bounds = array<i64: 1, 128>}, {transform_indices = @transform_3, window_bounds = array<i64: 224, 128>}]} {
    %c0 = arith.constant 0 : index
    %c0_0 = arith.constant 0 : index
    %0 = vector.load %arg1[%c0, %c0_0] : memref<224x288xbf16, #tpu.memory_space<vmem>>, vector<224x288xbf16>
    %c0_1 = arith.constant 0 : index
    %c0_2 = arith.constant 0 : index
    %1 = vector.load %arg2[%c0_1, %c0_2] : memref<288x128xbf16, #tpu.memory_space<vmem>>, vector<288x128xbf16>
    %cst = arith.constant dense<0.000000e+00> : vector<224x128xf32>
    %2 = tpu.matmul %0, %1, %cst {dimension_numbers = #tpu.dot_dimension_numbers<[1], [0], [0], [1], [0, 0, 1, 1], [], []>} : vector<224x288xbf16>, vector<288x128xbf16>, vector<224x128xf32> -> vector<224x128xf32>
    %c0_3 = arith.constant 0 : index
    %c0_4 = arith.constant 0 : index
    %3 = vector.load %arg3[%c0_3, %c0_4] : memref<1x128xf32, #tpu.memory_space<vmem>>, vector<1x128xf32>
    %4 = vector.broadcast %3 : vector<1x128xf32> to vector<224x128xf32>
    %5 = arith.addf %2, %4 : vector<224x128xf32>
    %6 = math.tanh %5 : vector<224x128xf32>
    %c0_5 = arith.constant 0 : index
    %c0_6 = arith.constant 0 : index
    %7 = vector.load %arg4[%c0_5, %c0_6] : memref<224x128xf32, #tpu.memory_space<vmem>>, vector<224x128xf32>
    tpu.vector_store %arg4[%c0_5, %c0_6], %6 {strides = array<i32>} : memref<224x128xf32, #tpu.memory_space<vmem>>, vector<224x128xf32>,
    return
  }
  func.func @transform_0(%arg0: i32) -> (i32, i32) {
    %c0_i32 = arith.constant 0 : i32
    %c0_i32_0 = arith.constant 0 : i32
    return %arg0, %c0_i32 : i32, i32
  }
  func.func @transform_1(%arg0: i32) -> (i32, i32) {
    %c0_i32 = arith.constant 0 : i32
    %c0_i32_0 = arith.constant 0 : i32
    %c0_i32_1 = arith.constant 0 : i32
    return %c0_i32, %c0_i32_0 : i32, i32
  }
  func.func @transform_2(%arg0: i32) -> (i32, i32) {
    %c0_i32 = arith.constant 0 : i32
    %c0_i32_0 = arith.constant 0 : i32
    %c0_i32_1 = arith.constant 0 : i32
    return %c0_i32, %c0_i32_0 : i32, i32
  }
  func.func @transform_3(%arg0: i32) -> (i32, i32) {
    %c0_i32 = arith.constant 0 : i32
    %c0_i32_0 = arith.constant 0 : i32
    return %arg0, %c0_i32 : i32, i32
  }
}

</mosaic_0001>

<bundles_post_ra>
// kernel: generator_forward.9
= control target key start
LH: loop header
LB: loop body
LE: loop exit
PB: predicated region body
PF: predicated region fallthrough
CT: control target
= control target key end

     0   :  { %s4487_s1 = inlined_call_operand.vmem [shape: bf16[2304,256], index: 1, kind: input, shape index: {}]   ;;  %s4488_s0 = inlined_call_operand.vmem [shape: bf16[32,2304], index: 0, kind: input, shape index: {}]   ;;  %s4489_s2 = inlined_call_operand.vmem [shape: f32[1,256], index: 2, kind: input, shape index: {}]   ;;  %s4490_s3 = inlined_call_operand.vmem [shape: f32[32,256], index: 3, kind: input, shape index: {}]   ;;  %s4491_s4 = inlined_call_operand.vmem [shape: f32[32,256], index: 4, kind: output, shape index: {}]  }
   0x1   :  { %v2842_v0 = vld [vmem:[%s4487_s1 + $0x74] ss:$8 sps:$4 sm:$0xff]   ;;  %v2846_v2 = vld [vmem:[%s4487_s1 + $0x70] ss:$8 sps:$4 sm:$0xff]   ;;  %v2848_v4 = vld [vmem:[%s4487_s1 + $0x64] ss:$8 sps:$4 sm:$0xff]  }
   0x2   :  { %v2844_v1 = vld [vmem:[%s4487_s1 + $0x174] ss:$8 sps:$4 sm:$0xff]   ;;  %1973 = vmatprep.subr.bf16.mxu0 %v2842_v0  ;;  %v2847_v3 = vld [vmem:[%s4487_s1 + $0x170] ss:$8 sps:$4 sm:$0xff]   ;;  %v2850_v5 = vld [vmem:[%s4487_s1 + $0x164] ss:$8 sps:$4 sm:$0xff]  }
   0x3   :  { %2026 = vmatprep.subr.bf16.mxu1 %v2844_v1  ;;  %1974 = vmatpush1.bf16.msra.mxu0 %v2846_v2  ;;  %v2852_v6 = vld [vmem:[%s4487_s1 + $0x60] ss:$8 sps:$4 sm:$0xff]   ;;  %v2854_v8 = vld [vmem:[%s4487_s1 + $0x54] ss:$8 sps:$4 sm:$0xff]   ;;  %v2858_v10 = vld [vmem:[%s4487_s1 + $0x50] ss:$8 sps:$4 sm:$0xff]  }
   0x4   :  { %2027 = vmatpush1.bf16.msra.mxu1 %v2847_v3  ;;  %1975 = vmatprep.subr.bf16.mxu0 %v2848_v4  ;;  %v2853_v7 = vld [vmem:[%s4487_s1 + $0x160] ss:$8 sps:$4 sm:$0xff]   ;;  %v2856_v9 = vld [vmem:[%s4487_s1 + $0x154] ss:$8 sps:$4 sm:$0xff]   ;;  %v2859_v11 = vld [vmem:[%s4487_s1 + $0x150] ss:$8 sps:$4 sm:$0xff]  }
   0x5   :  { %2028 = vmatprep.subr.bf16.mxu1 %v2850_v5  ;;  %v2860_v12 = vld [vmem:[%s4487_s1 + $0x44] ss:$8 sps:$4 sm:$0xff]   ;;  %v2864_v14 = vld [vmem:[%s4487_s1 + $0x40] ss:$8 sps:$4 sm:$0xff]   ;;  %v2866_v16 = vld [vmem:[%s4487_s1 + $0x34] ss:$8 sps:$4 sm:$0xff]  }
   0x6   :  { %v2862_v13 = vld [vmem:[%s4487_s1 + $0x144] ss:$8 sps:$4 sm:$0xff]   ;;  %v2865_v15 = vld [vmem:[%s4487_s1 + $0x140] ss:$8 sps:$4 sm:$0xff]   ;;  %v2868_v17 = vld [vmem:[%s4487_s1 + $0x134] ss:$8 sps:$4 sm:$0xff]  }
   0x7   :  { %1976 = vmatpush1.bf16.msra.mxu0 %v2852_v6  ;;  %v2870_v18 = vld [vmem:[%s4487_s1 + $0x30] ss:$8 sps:$4 sm:$0xff]   ;;  %v2872_v20 = vld [vmem:[%s4487_s1 + $0x24] ss:$8 sps:$4 sm:$0xff]   ;;  %v2876_v22 = vld [vmem:[%s4487_s1 + $0x20] ss:$8 sps:$4 sm:$0xff]  }
   0x8   :  { %2029 = vmatpush1.bf16.msra.mxu1 %v2853_v7  ;;  %1977 = vmatprep.subr.bf16.mxu0 %v2854_v8  ;;  %v2871_v19 = vld [vmem:[%s4487_s1 + $0x130] ss:$8 sps:$4 sm:$0xff]   ;;  %v2874_v21 = vld [vmem:[%s4487_s1 + $0x124] ss:$8 sps:$4 sm:$0xff]   ;;  %v2877_v23 = vld [vmem:[%s4487_s1 + $0x120] ss:$8 sps:$4 sm:$0xff]  }
   0x9   :  { %2030 = vmatprep.subr.bf16.mxu1 %v2856_v9  ;;  %v2878_v24 = vld [vmem:[%s4487_s1 + $0x14] ss:$8 sps:$4 sm:$0xff]   ;;  %v2882_v26 = vld [vmem:[%s4487_s1 + $0x10] ss:$8 sps:$4 sm:$0xff]   ;;  %v2884_v28 = vld [vmem:[%s4487_s1 + $0x4] ss:$8 sps:$4 sm:$0xff]  }
   0xa   :  { %v2880_v25 = vld [vmem:[%s4487_s1 + $0x114] ss:$8 sps:$4 sm:$0xff]   ;;  %v2883_v27 = vld [vmem:[%s4487_s1 + $0x110] ss:$8 sps:$4 sm:$0xff]   ;;  %v2886_v29 = vld [vmem:[%s4487_s1 + $0x104] ss:$8 sps:$4 sm:$0xff]  }
   0xb   :  { %1978 = vmatpush1.bf16.msra.mxu0 %v2858_v10  ;;  %v2888_v30 = vld [vmem:[%s4487_s1] ss:$8 sps:$4 sm:$0xff]   ;;  %v2890_v32 = vld [vmem:[%s4487_s1 + $0xf4] ss:$8 sps:$4 sm:$0xff]   ;;  %v2894_v34 = vld [vmem:[%s4487_s1 + $0xf0] ss:$8 sps:$4 sm:$0xff]  }
   0xc   :  { %2031 = vmatpush1.bf16.msra.mxu1 %v2859_v11  ;;  %1979 = vmatprep.subr.bf16.mxu0 %v2860_v12  ;;  %v2889_v31 = vld [vmem:[%s4487_s1 + $0x100] ss:$8 sps:$4 sm:$0xff]   ;;  %v2892_v33 = vld [vmem:[%s4487_s1 + $0x1f4] ss:$8 sps:$4 sm:$0xff]   ;;  %v2895_v35 = vld [vmem:[%s4487_s1 + $0x1f0] ss:$8 sps:$4 sm:$0xff]  }
   0xd   :  { %2032 = vmatprep.subr.bf16.mxu1 %v2862_v13  ;;  %v2896_v36 = vld [vmem:[%s4487_s1 + $0xe4] ss:$8 sps:$4 sm:$0xff]   ;;  %v2900_v38 = vld [vmem:[%s4487_s1 + $0xe0] ss:$8 sps:$4 sm:$0xff]   ;;  %v2902_v40 = vld [vmem:[%s4487_s1 + $0xd4] ss:$8 sps:$4 sm:$0xff]  }
   0xe   :  { %v2898_v37 = vld [vmem:[%s4487_s1 + $0x1e4] ss:$8 sps:$4 sm:$0xff]   ;;  %v2901_v39 = vld [vmem:[%s4487_s1 + $0x1e0] ss:$8 sps:$4 sm:$0xff]   ;;  %v2904_v41 = vld [vmem:[%s4487_s1 + $0x1d4] ss:$8 sps:$4 sm:$0xff]  }
   0xf   :  { %1980 = vmatpush1.bf16.msra.mxu0 %v2864_v14  ;;  %v2906_v42 = vld [vmem:[%s4487_s1 + $0xd0] ss:$8 sps:$4 sm:$0xff]   ;;  %v2908_v44 = vld [vmem:[%s4487_s1 + $0xc4] ss:$8 sps:$4 sm:$0xff]   ;;  %v2912_v46 = vld [vmem:[%s4487_s1 + $0xc0] ss:$8 sps:$4 sm:$0xff]  }
  0x10   :  { %2033 = vmatpush1.bf16.msra.mxu1 %v2865_v15  ;;  %1981 = vmatprep.subr.bf16.mxu0 %v2866_v16  ;;  %v2907_v43 = vld [vmem:[%s4487_s1 + $0x1d0] ss:$8 sps:$4 sm:$0xff]   ;;  %v2910_v45 = vld [vmem:[%s4487_s1 + $0x1c4] ss:$8 sps:$4 sm:$0xff]   ;;  %v2913_v47 = vld [vmem:[%s4487_s1 + $0x1c0] ss:$8 sps:$4 sm:$0xff]  }
  0x11   :  { %2034 = vmatprep.subr.bf16.mxu1 %v2868_v17  ;;  %v2914_v48 = vld [vmem:[%s4487_s1 + $0xb4] ss:$8 sps:$4 sm:$0xff]   ;;  %v2940_v49 = vld [vmem:[%s4488_s0 + $0x4] ss:$72 sps:$4 sm:$0xff]   ;;  %v2918_v52 = vld [vmem:[%s4487_s1 + $0xb0] ss:$8 sps:$4 sm:$0xff]  }
  0x12   :  { %v2916_v50 = vld [vmem:[%s4487_s1 + $0x1b4] ss:$8 sps:$4 sm:$0xff]   ;;  %2005 = vmatprep.mubr.bf16.mxu0 %v2940_v49  ;;  %v2919_v53 = vld [vmem:[%s4487_s1 + $0x1b0] ss:$8 sps:$4 sm:$0xff]   ;;  %v2920_v54 = vld [vmem:[%s4487_s1 + $0xa4] ss:$8 sps:$4 sm:$0xff]  }
  0x13   :  { %1982 = vmatpush1.bf16.msra.mxu0 %v2870_v18  ;;  %v2943_v51 = vld [vmem:[%s4488_s0 + $0xc] ss:$72 sps:$4 sm:$0xff]   ;;  %v2924_v56 = vld [vmem:[%s4487_s1 + $0xa0] ss:$8 sps:$4 sm:$0xff]   ;;  %v2930_v60 = vld [vmem:[%s4487_s1 + $0x90] ss:$8 sps:$4 sm:$0xff]  }
  0x14   :  { %2035 = vmatpush1.bf16.msra.mxu1 %v2871_v19  ;;  %1983 = vmatprep.subr.bf16.mxu0 %v2872_v20  ;;  %v2922_v55 = vld [vmem:[%s4487_s1 + $0x1a4] ss:$8 sps:$4 sm:$0xff]   ;;  %v2925_v57 = vld [vmem:[%s4487_s1 + $0x1a0] ss:$8 sps:$4 sm:$0xff]   ;;  %v2926_v58 = vld [vmem:[%s4487_s1 + $0x94] ss:$8 sps:$4 sm:$0xff]  }
  0x15   :  { %2036 = vmatprep.subr.bf16.mxu1 %v2874_v21  ;;  %2058 = vmatprep.mubr.bf16.mxu1 %v2943_v51  ;;  %v2928_v59 = vld [vmem:[%s4487_s1 + $0x194] ss:$8 sps:$4 sm:$0xff]   ;;  %v2931_v61 = vld [vmem:[%s4487_s1 + $0x190] ss:$8 sps:$4 sm:$0xff]   ;;  %v2932_v62 = vld [vmem:[%s4487_s1 + $0x84] ss:$8 sps:$4 sm:$0xff]  }
  0x16   :  { %v2934_v63 = vld [vmem:[%s4487_s1 + $0x184] ss:$8 sps:$4 sm:$0xff]   ;;  %v2936_v0 = vld [vmem:[%s4487_s1 + $0x80] ss:$8 sps:$4 sm:$0xff]   ;;  %v2946_v2 = vld [vmem:[%s4487_s1 + $0x274] ss:$8 sps:$4 sm:$0xff]  }
  0x17   :  { %1984 = vmatpush1.bf16.msra.mxu0 %v2876_v22  ;;  %v2937_v1 = vld [vmem:[%s4487_s1 + $0x180] ss:$8 sps:$4 sm:$0xff]   ;;  %v2949_v3 = vld [vmem:[%s4487_s1 + $0x374] ss:$8 sps:$4 sm:$0xff]   ;;  %v2944_v6 = vld [vmem:[%s4487_s1 + $0x270] ss:$8 sps:$4 sm:$0xff]  }
  0x18   :  { %2037 = vmatpush1.bf16.msra.mxu1 %v2877_v23  ;;  %1985 = vmatprep.subr.bf16.mxu0 %v2878_v24  ;;  %v2938_v4 = vld [vmem:[%s4488_s0] ss:$72 sps:$4 sm:$0xff]   ;;  %v2947_v7 = vld [vmem:[%s4487_s1 + $0x370] ss:$8 sps:$4 sm:$0xff]   ;;  %v2952_v8 = vld [vmem:[%s4487_s1 + $0x264] ss:$8 sps:$4 sm:$0xff]  }
  0x19   :  { %2038 = vmatprep.subr.bf16.mxu1 %v2880_v25  ;;  %v2941_v5 = vld [vmem:[%s4488_s0 + $0x8] ss:$72 sps:$4 sm:$0xff]   ;;  %v2955_v9 = vld [vmem:[%s4487_s1 + $0x364] ss:$8 sps:$4 sm:$0xff]   ;;  %v2958_v12 = vld [vmem:[%s4487_s1 + $0x254] ss:$8 sps:$4 sm:$0xff]  }
  0x1a   :  { %v2950_v10 = vld [vmem:[%s4487_s1 + $0x260] ss:$8 sps:$4 sm:$0xff]   ;;  %v2961_v13 = vld [vmem:[%s4487_s1 + $0x354] ss:$8 sps:$4 sm:$0xff]   ;;  %v2956_v14 = vld [vmem:[%s4487_s1 + $0x250] ss:$8 sps:$4 sm:$0xff]  }
  0x1b   :  { %1986 = vmatpush1.bf16.msra.mxu0 %v2882_v26  ;;  %v2953_v11 = vld [vmem:[%s4487_s1 + $0x360] ss:$8 sps:$4 sm:$0xff]   ;;  %v2959_v15 = vld [vmem:[%s4487_s1 + $0x350] ss:$8 sps:$4 sm:$0xff]   ;;  %v2964_v16 = vld [vmem:[%s4487_s1 + $0x244] ss:$8 sps:$4 sm:$0xff]  }
  0x1c   :  { %2039 = vmatpush1.bf16.msra.mxu1 %v2883_v27  ;;  %1987 = vmatprep.subr.bf16.mxu0 %v2884_v28  ;;  %v2967_v17 = vld [vmem:[%s4487_s1 + $0x344] ss:$8 sps:$4 sm:$0xff]   ;;  %v2962_v18 = vld [vmem:[%s4487_s1 + $0x240] ss:$8 sps:$4 sm:$0xff]   ;;  %v2970_v20 = vld [vmem:[%s4487_s1 + $0x234] ss:$8 sps:$4 sm:$0xff]  }
  0x1d   :  { %2040 = vmatprep.subr.bf16.mxu1 %v2886_v29  ;;  %v2965_v19 = vld [vmem:[%s4487_s1 + $0x340] ss:$8 sps:$4 sm:$0xff]   ;;  %v2973_v21 = vld [vmem:[%s4487_s1 + $0x334] ss:$8 sps:$4 sm:$0xff]   ;;  %v2968_v23 = vld [vmem:[%s4487_s1 + $0x230] ss:$8 sps:$4 sm:$0xff]  }
  0x1e   :  { %v3016_v22 = vld [vmem:[%s4488_s0 + $0x94] ss:$72 sps:$4 sm:$0xff]   ;;  %v2971_v24 = vld [vmem:[%s4487_s1 + $0x330] ss:$8 sps:$4 sm:$0xff]   ;;  %v2976_v25 = vld [vmem:[%s4487_s1 + $0x224] ss:$8 sps:$4 sm:$0xff]  }
  0x1f   :  { %1988 = vmatpush1.bf16.msra.mxu0 %v2888_v30  ;;  %v2979_v26 = vld [vmem:[%s4487_s1 + $0x324] ss:$8 sps:$4 sm:$0xff]   ;;  %v3024_v27 = vld [vmem:[%s4488_s0 + $0x90] ss:$72 sps:$4 sm:$0xff]   ;;  %v2974_v28 = vld [vmem:[%s4487_s1 + $0x220] ss:$8 sps:$4 sm:$0xff]  }
  0x20   :  { %2041 = vmatpush1.bf16.msra.mxu1 %v2889_v31  ;;  %1989 = vmatprep.subr.bf16.mxu0 %v2890_v32  ;;  %v3025_v29 = vld [vmem:[%s4488_s0 + $0x9c] ss:$72 sps:$4 sm:$0xff]   ;;  %v2977_v30 = vld [vmem:[%s4487_s1 + $0x320] ss:$8 sps:$4 sm:$0xff]  }
  0x21   :  { %2042 = vmatprep.subr.bf16.mxu1 %v2892_v33  ;;  %v3027_v31 = vld [vmem:[%s4488_s0 + $0x98] ss:$72 sps:$4 sm:$0xff]   ;;  %v2982_v32 = vld [vmem:[%s4487_s1 + $0x214] ss:$8 sps:$4 sm:$0xff]  }
  0x22   :  { %v2985_v33 = vld [vmem:[%s4487_s1 + $0x314] ss:$8 sps:$4 sm:$0xff]   ;;  %v3001_v49 = vld [vmem:[%s4487_s1 + $0x3e0] ss:$8 sps:$4 sm:$0xff]  }
  0x23   :  { %1990 = vmatpush2.bf16.msra.mxu0 %v2894_v34  ;;  %v2980_v34 = vld [vmem:[%s4487_s1 + $0x210] ss:$8 sps:$4 sm:$0xff]   ;;  %v3009_v51 = vld [vmem:[%s4487_s1 + $0x3d4] ss:$8 sps:$4 sm:$0xff]  }
  0x24   :  { %2043 = vmatpush2.bf16.msra.mxu1 %v2895_v35  ;;  %1991 = vmatprep.subr.bf16.mxu0 %v2896_v36  ;;  %v2983_v35 = vld [vmem:[%s4487_s1 + $0x310] ss:$8 sps:$4 sm:$0xff]   ;;  %v2988_v36 = vld [vmem:[%s4487_s1 + $0x204] ss:$8 sps:$4 sm:$0xff]  }
  0x25   :  { %2044 = vmatprep.subr.bf16.mxu1 %v2898_v37  ;;  %v2991_v37 = vld [vmem:[%s4487_s1 + $0x304] ss:$8 sps:$4 sm:$0xff]  }
  0x27   :  { %1992 = vmatpush2.bf16.msra.mxu0 %v2900_v38  ;;  %v2986_v38 = vld [vmem:[%s4487_s1 + $0x200] ss:$8 sps:$4 sm:$0xff]  }
  0x28   :  { %2045 = vmatpush2.bf16.msra.mxu1 %v2901_v39  ;;  %1993 = vmatprep.subr.bf16.mxu0 %v2902_v40  ;;  %v2989_v39 = vld [vmem:[%s4487_s1 + $0x300] ss:$8 sps:$4 sm:$0xff]   ;;  %v2994_v40 = vld [vmem:[%s4487_s1 + $0x2f4] ss:$8 sps:$4 sm:$0xff]  }
  0x29   :  { %2046 = vmatprep.subr.bf16.mxu1 %v2904_v41  ;;  %v3048_v41 = vld [vmem:[%s4488_s0 + $0x14] ss:$72 sps:$4 sm:$0xff]  }
  0x2b   :  { %1994 = vmatpush2.bf16.msra.mxu0 %v2906_v42  ;;  %v2997_v42 = vld [vmem:[%s4487_s1 + $0x3f4] ss:$8 sps:$4 sm:$0xff]  }
  0x2c   :  { %2047 = vmatpush2.bf16.msra.mxu1 %v2907_v43  ;;  %1995 = vmatprep.subr.bf16.mxu0 %v2908_v44  ;;  %v3051_v43 = vld [vmem:[%s4488_s0 + $0x1c] ss:$72 sps:$4 sm:$0xff]   ;;  %v2992_v44 = vld [vmem:[%s4487_s1 + $0x2f0] ss:$8 sps:$4 sm:$0xff]  }
  0x2d   :  { %2048 = vmatprep.subr.bf16.mxu1 %v2910_v45  ;;  %v2995_v45 = vld [vmem:[%s4487_s1 + $0x3f0] ss:$8 sps:$4 sm:$0xff]  }
  0x2f   :  { %1996 = vmatpush2.bf16.msra.mxu0 %v2912_v46  ;;  %v3000_v46 = vld [vmem:[%s4487_s1 + $0x2e4] ss:$8 sps:$4 sm:$0xff]  }
  0x30   :  { %2049 = vmatpush2.bf16.msra.mxu1 %v2913_v47  ;;  %1997 = vmatprep.subr.bf16.mxu0 %v2914_v48  ;;  %v3003_v47 = vld [vmem:[%s4487_s1 + $0x3e4] ss:$8 sps:$4 sm:$0xff]   ;;  %v2998_v48 = vld [vmem:[%s4487_s1 + $0x2e0] ss:$8 sps:$4 sm:$0xff]  }
  0x31   :  { %2050 = vmatprep.subr.bf16.mxu1 %v2916_v50  ;;  %v3006_v50 = vld [vmem:[%s4487_s1 + $0x2d4] ss:$8 sps:$4 sm:$0xff]  }
  0x33   :  { %1998 = vmatpush2.bf16.msra.mxu0 %v2918_v52  ;;  %v3004_v52 = vld [vmem:[%s4487_s1 + $0x2d0] ss:$8 sps:$4 sm:$0xff]  }
  0x34   :  { %2051 = vmatpush2.bf16.msra.mxu1 %v2919_v53  ;;  %1999 = vmatprep.subr.bf16.mxu0 %v2920_v54  ;;  %v3007_v53 = vld [vmem:[%s4487_s1 + $0x3d0] ss:$8 sps:$4 sm:$0xff]   ;;  %v3012_v54 = vld [vmem:[%s4487_s1 + $0x2c4] ss:$8 sps:$4 sm:$0xff]  }
  0x35   :  { %2052 = vmatprep.subr.bf16.mxu1 %v2922_v55  ;;  %v3015_v55 = vld [vmem:[%s4487_s1 + $0x3c4] ss:$8 sps:$4 sm:$0xff]  }
  0x37   :  { %2000 = vmatpush2.bf16.msra.mxu0 %v2924_v56  ;;  %v3010_v56 = vld [vmem:[%s4487_s1 + $0x2c0] ss:$8 sps:$4 sm:$0xff]  }
  0x38   :  { %2053 = vmatpush2.bf16.msra.mxu1 %v2925_v57  ;;  %2001 = vmatprep.subr.bf16.mxu0 %v2926_v58  ;;  %v3013_v57 = vld [vmem:[%s4487_s1 + $0x3c0] ss:$8 sps:$4 sm:$0xff]   ;;  %v3020_v58 = vld [vmem:[%s4487_s1 + $0x2b4] ss:$8 sps:$4 sm:$0xff]  }
  0x39   :  { %2054 = vmatprep.subr.bf16.mxu1 %v2928_v59  ;;  %v3023_v59 = vld [vmem:[%s4487_s1 + $0x3b4] ss:$8 sps:$4 sm:$0xff]  }
  0x3b   :  { %2002 = vmatpush2.bf16.msra.mxu0 %v2930_v60  ;;  %v3018_v60 = vld [vmem:[%s4487_s1 + $0x2b0] ss:$8 sps:$4 sm:$0xff]  }
  0x3c   :  { %2055 = vmatpush2.bf16.msra.mxu1 %v2931_v61  ;;  %2003 = vmatprep.subr.bf16.mxu0 %v2932_v62  ;;  %v3021_v61 = vld [vmem:[%s4487_s1 + $0x3b0] ss:$8 sps:$4 sm:$0xff]   ;;  %v3030_v62 = vld [vmem:[%s4487_s1 + $0x2a4] ss:$8 sps:$4 sm:$0xff]  }
  0x3d   :  { %2056 = vmatprep.subr.bf16.mxu1 %v2934_v63  ;;  %v3033_v63 = vld [vmem:[%s4487_s1 + $0x3a4] ss:$8 sps:$4 sm:$0xff]  }
  0x3f   :  { %2004 = vmatpush2.bf16.msra.mxu0 %v2936_v0  ;;  %v3028_v0 = vld [vmem:[%s4487_s1 + $0x2a0] ss:$8 sps:$4 sm:$0xff]  }
  0x40   :  { %2057 = vmatpush2.bf16.msra.mxu1 %v2937_v1  ;;  %2079 = vmatprep.subr.bf16.mxu0 %v2946_v2  ;;  %v3031_v1 = vld [vmem:[%s4487_s1 + $0x3a0] ss:$8 sps:$4 sm:$0xff]   ;;  %v3036_v2 = vld [vmem:[%s4487_s1 + $0x294] ss:$8 sps:$4 sm:$0xff]  }
  0x41   :  { %2132 = vmatprep.subr.bf16.mxu1 %v2949_v3  ;;  %v3039_v3 = vld [vmem:[%s4487_s1 + $0x394] ss:$8 sps:$4 sm:$0xff]  }
  0x42   :  { %2006 = vmatmul.mubr.bf16.vlgmr.msra.gmra.mxu0 %v2938_v4  ;;  %v3034_v4 = vld [vmem:[%s4487_s1 + $0x290] ss:$8 sps:$4 sm:$0xff]  }
  0x43   :  { %2059 = vmatmul.mubr.bf16.vlgmr.msra.gmra.mxu1 %v2941_v5  ;;  %2080 = vmatpush1.bf16.msra.mxu0 %v2944_v6  ;;  %v3037_v5 = vld [vmem:[%s4487_s1 + $0x390] ss:$8 sps:$4 sm:$0xff]   ;;  %v3042_v6 = vld [vmem:[%s4487_s1 + $0x284] ss:$8 sps:$4 sm:$0xff]  }
  0x44   :  { %2133 = vmatpush1.bf16.msra.mxu1 %v2947_v7  ;;  %2081 = vmatprep.subr.bf16.mxu0 %v2952_v8  ;;  %v3045_v7 = vld [vmem:[%s4487_s1 + $0x384] ss:$8 sps:$4 sm:$0xff]   ;;  %v3040_v8 = vld [vmem:[%s4487_s1 + $0x280] ss:$8 sps:$4 sm:$0xff]  }
  0x45   :  { %2134 = vmatprep.subr.bf16.mxu1 %v2955_v9  ;;  %2015 = vmatprep.mubr.bf16.mxu0 %v3016_v22  ;;  %v3043_v9 = vld [vmem:[%s4487_s1 + $0x380] ss:$8 sps:$4 sm:$0xff]   ;;  %v3069_v22 = vld [vmem:[%s4487_s1 + $0x454] ss:$8 sps:$4 sm:$0xff]  }
  0x46   :  { %2068 = vmatprep.mubr.bf16.mxu1 %v3025_v29  ;;  %v3081_v29 = vld [vmem:[%s4487_s1 + $0x544] ss:$8 sps:$4 sm:$0xff]  }
  0x47   :  { %2082 = vmatpush1.bf16.msra.mxu0 %v2950_v10  ;;  %v3054_v10 = vld [vmem:[%s4487_s1 + $0x474] ss:$8 sps:$4 sm:$0xff]  }
  0x48   :  { %2135 = vmatpush1.bf16.msra.mxu1 %v2953_v11  ;;  %2083 = vmatprep.subr.bf16.mxu0 %v2958_v12  ;;  %v3057_v11 = vld [vmem:[%s4487_s1 + $0x574] ss:$8 sps:$4 sm:$0xff]   ;;  %v3046_v12 = vld [vmem:[%s4488_s0 + $0x10] ss:$72 sps:$4 sm:$0xff]  }
  0x49   :  { %2136 = vmatprep.subr.bf16.mxu1 %v2961_v13  ;;  %v3049_v13 = vld [vmem:[%s4488_s0 + $0x18] ss:$72 sps:$4 sm:$0xff]  }
  0x4a   :  { %2016 = vmatmul.mubr.bf16.gmra.mxu0 %v3024_v27  ;;  %v3075_v27 = vld [vmem:[%s4488_s0 + $0xa8] ss:$72 sps:$4 sm:$0xff]  }
  0x4b   :  { %2084 = vmatpush1.bf16.msra.mxu0 %v2956_v14  ;;  %2069 = vmatmul.mubr.bf16.gmra.mxu1 %v3027_v31  ;;  %v3052_v14 = vld [vmem:[%s4487_s1 + $0x470] ss:$8 sps:$4 sm:$0xff]   ;;  %v3079_v31 = vld [vmem:[%s4487_s1 + $0x540] ss:$8 sps:$4 sm:$0xff]  }
  0x4c   :  { %2137 = vmatpush1.bf16.msra.mxu1 %v2959_v15  ;;  %2085 = vmatprep.subr.bf16.mxu0 %v2964_v16  ;;  %v3055_v15 = vld [vmem:[%s4487_s1 + $0x570] ss:$8 sps:$4 sm:$0xff]   ;;  %v3060_v16 = vld [vmem:[%s4487_s1 + $0x464] ss:$8 sps:$4 sm:$0xff]  }
  0x4d   :  { %2138 = vmatprep.subr.bf16.mxu1 %v2967_v17  ;;  %2111 = vmatprep.mubr.bf16.mxu0 %v3048_v41  ;;  %v3063_v17 = vld [vmem:[%s4487_s1 + $0x564] ss:$8 sps:$4 sm:$0xff]   ;;  %v3091_v41 = vld [vmem:[%s4487_s1 + $0x520] ss:$8 sps:$4 sm:$0xff]  }
  0x4e   :  { %2164 = vmatprep.mubr.bf16.mxu1 %v3051_v43  ;;  %v3099_v43 = vld [vmem:[%s4487_s1 + $0x514] ss:$8 sps:$4 sm:$0xff]  }
  0x4f   :  { %2086 = vmatpush1.bf16.msra.mxu0 %v2962_v18  ;;  %v3064_v18 = vld [vmem:[%s4488_s0 + $0xa4] ss:$72 sps:$4 sm:$0xff]  }
  0x50   :  { %2139 = vmatpush1.bf16.msra.mxu1 %v2965_v19  ;;  %2087 = vmatprep.subr.bf16.mxu0 %v2970_v20  ;;  %v3073_v19 = vld [vmem:[%s4488_s0 + $0xac] ss:$72 sps:$4 sm:$0xff]   ;;  %v3058_v20 = vld [vmem:[%s4487_s1 + $0x460] ss:$8 sps:$4 sm:$0xff]  }
  0x51   :  { %2140 = vmatprep.subr.bf16.mxu1 %v2973_v21  ;;  %v3061_v21 = vld [vmem:[%s4487_s1 + $0x560] ss:$8 sps:$4 sm:$0xff]  }
  0x53   :  { %2088 = vmatpush1.bf16.msra.mxu0 %v2968_v23  ;;  %v3072_v23 = vld [vmem:[%s4487_s1 + $0x554] ss:$8 sps:$4 sm:$0xff]  }
  0x54   :  { %2141 = vmatpush1.bf16.msra.mxu1 %v2971_v24  ;;  %2089 = vmatprep.subr.bf16.mxu0 %v2976_v25  ;;  %v3066_v24 = vld [vmem:[%s4488_s0 + $0xa0] ss:$72 sps:$4 sm:$0xff]   ;;  %v3067_v25 = vld [vmem:[%s4487_s1 + $0x450] ss:$8 sps:$4 sm:$0xff]  }
  0x55   :  { %2142 = vmatprep.subr.bf16.mxu1 %v2979_v26  ;;  %v3070_v26 = vld [vmem:[%s4487_s1 + $0x550] ss:$8 sps:$4 sm:$0xff]  }
  0x57   :  { %2090 = vmatpush1.bf16.msra.mxu0 %v2974_v28  ;;  %v3078_v28 = vld [vmem:[%s4487_s1 + $0x444] ss:$8 sps:$4 sm:$0xff]  }
  0x58   :  { %2143 = vmatpush1.bf16.msra.mxu1 %v2977_v30  ;;  %2091 = vmatprep.subr.bf16.mxu0 %v2982_v32  ;;  %v3076_v30 = vld [vmem:[%s4487_s1 + $0x440] ss:$8 sps:$4 sm:$0xff]   ;;  %v3084_v32 = vld [vmem:[%s4487_s1 + $0x434] ss:$8 sps:$4 sm:$0xff]  }
  0x59   :  { %2144 = vmatprep.subr.bf16.mxu1 %v2985_v33  ;;  %v3156_v33 = vld [vmem:[%s4488_s0 + $0x24] ss:$72 sps:$4 sm:$0xff]  }
  0x5b   :  { %2092 = vmatpush1.bf16.msra.mxu0 %v2980_v34  ;;  %v3087_v34 = vld [vmem:[%s4487_s1 + $0x534] ss:$8 sps:$4 sm:$0xff]  }
  0x5c   :  { %2145 = vmatpush1.bf16.msra.mxu1 %v2983_v35  ;;  %2093 = vmatprep.subr.bf16.mxu0 %v2988_v36  ;;  %v3159_v35 = vld [vmem:[%s4488_s0 + $0x2c] ss:$72 sps:$4 sm:$0xff]   ;;  %v3082_v36 = vld [vmem:[%s4487_s1 + $0x430] ss:$8 sps:$4 sm:$0xff]  }
  0x5d   :  { %2146 = vmatprep.subr.bf16.mxu1 %v2991_v37  ;;  %v3085_v37 = vld [vmem:[%s4487_s1 + $0x530] ss:$8 sps:$4 sm:$0xff]  }
  0x5f   :  { %2094 = vmatpush1.bf16.msra.mxu0 %v2986_v38  ;;  %v3090_v38 = vld [vmem:[%s4487_s1 + $0x424] ss:$8 sps:$4 sm:$0xff]  }
  0x60   :  { %2147 = vmatpush1.bf16.msra.mxu1 %v2989_v39  ;;  %2095 = vmatprep.subr.bf16.mxu0 %v2994_v40  ;;  %v3093_v39 = vld [vmem:[%s4487_s1 + $0x524] ss:$8 sps:$4 sm:$0xff]   ;;  %v3088_v40 = vld [vmem:[%s4487_s1 + $0x420] ss:$8 sps:$4 sm:$0xff]  }
  0x61   :  { %2148 = vmatprep.subr.bf16.mxu1 %v2997_v42  ;;  %v3096_v42 = vld [vmem:[%s4487_s1 + $0x414] ss:$8 sps:$4 sm:$0xff]  }
  0x63   :  { %2096 = vmatpush2.bf16.msra.mxu0 %v2992_v44  ;;  %v3094_v44 = vld [vmem:[%s4487_s1 + $0x410] ss:$8 sps:$4 sm:$0xff]  }
  0x64   :  { %2149 = vmatpush2.bf16.msra.mxu1 %v2995_v45  ;;  %2097 = vmatprep.subr.bf16.mxu0 %v3000_v46  ;;  %v3097_v45 = vld [vmem:[%s4487_s1 + $0x510] ss:$8 sps:$4 sm:$0xff]   ;;  %v3102_v46 = vld [vmem:[%s4487_s1 + $0x404] ss:$8 sps:$4 sm:$0xff]  }
  0x65   :  { %2150 = vmatprep.subr.bf16.mxu1 %v3003_v47  ;;  %v3105_v47 = vld [vmem:[%s4487_s1 + $0x504] ss:$8 sps:$4 sm:$0xff]  }
  0x67   :  { %2098 = vmatpush2.bf16.msra.mxu0 %v2998_v48  ;;  %v3100_v48 = vld [vmem:[%s4487_s1 + $0x400] ss:$8 sps:$4 sm:$0xff]  }
  0x68   :  { %2151 = vmatpush2.bf16.msra.mxu1 %v3001_v49  ;;  %2099 = vmatprep.subr.bf16.mxu0 %v3006_v50  ;;  %v3103_v49 = vld [vmem:[%s4487_s1 + $0x500] ss:$8 sps:$4 sm:$0xff]   ;;  %v3108_v50 = vld [vmem:[%s4487_s1 + $0x4f4] ss:$8 sps:$4 sm:$0xff]  }
  0x69   :  { %2152 = vmatprep.subr.bf16.mxu1 %v3009_v51  ;;  %v3111_v51 = vld [vmem:[%s4487_s1 + $0x5f4] ss:$8 sps:$4 sm:$0xff]  }
  0x6b   :  { %2100 = vmatpush2.bf16.msra.mxu0 %v3004_v52  ;;  %v3106_v52 = vld [vmem:[%s4487_s1 + $0x4f0] ss:$8 sps:$4 sm:$0xff]  }
  0x6c   :  { %2153 = vmatpush2.bf16.msra.mxu1 %v3007_v53  ;;  %2101 = vmatprep.subr.bf16.mxu0 %v3012_v54  ;;  %v3109_v53 = vld [vmem:[%s4487_s1 + $0x5f0] ss:$8 sps:$4 sm:$0xff]   ;;  %v3114_v54 = vld [vmem:[%s4487_s1 + $0x4e4] ss:$8 sps:$4 sm:$0xff]  }
  0x6d   :  { %2154 = vmatprep.subr.bf16.mxu1 %v3015_v55  ;;  %v3117_v55 = vld [vmem:[%s4487_s1 + $0x5e4] ss:$8 sps:$4 sm:$0xff]  }
  0x6f   :  { %2102 = vmatpush2.bf16.msra.mxu0 %v3010_v56  ;;  %v3112_v56 = vld [vmem:[%s4487_s1 + $0x4e0] ss:$8 sps:$4 sm:$0xff]  }
  0x70   :  { %2155 = vmatpush2.bf16.msra.mxu1 %v3013_v57  ;;  %2103 = vmatprep.subr.bf16.mxu0 %v3020_v58  ;;  %v3115_v57 = vld [vmem:[%s4487_s1 + $0x5e0] ss:$8 sps:$4 sm:$0xff]   ;;  %v3120_v58 = vld [vmem:[%s4487_s1 + $0x4d4] ss:$8 sps:$4 sm:$0xff]  }
  0x71   :  { %2156 = vmatprep.subr.bf16.mxu1 %v3023_v59  ;;  %v3123_v59 = vld [vmem:[%s4487_s1 + $0x5d4] ss:$8 sps:$4 sm:$0xff]  }
  0x73   :  { %2104 = vmatpush2.bf16.msra.mxu0 %v3018_v60  ;;  %v3118_v60 = vld [vmem:[%s4487_s1 + $0x4d0] ss:$8 sps:$4 sm:$0xff]  }
  0x74   :  { %2157 = vmatpush2.bf16.msra.mxu1 %v3021_v61  ;;  %2105 = vmatprep.subr.bf16.mxu0 %v3030_v62  ;;  %v3121_v61 = vld [vmem:[%s4487_s1 + $0x5d0] ss:$8 sps:$4 sm:$0xff]   ;;  %v3126_v62 = vld [vmem:[%s4487_s1 + $0x4c4] ss:$8 sps:$4 sm:$0xff]  }
  0x75   :  { %2158 = vmatprep.subr.bf16.mxu1 %v3033_v63  ;;  %v3129_v63 = vld [vmem:[%s4487_s1 + $0x5c4] ss:$8 sps:$4 sm:$0xff]  }
  0x77   :  { %2106 = vmatpush2.bf16.msra.mxu0 %v3028_v0  ;;  %v3124_v0 = vld [vmem:[%s4487_s1 + $0x4c0] ss:$8 sps:$4 sm:$0xff]  }
  0x78   :  { %2159 = vmatpush2.bf16.msra.mxu1 %v3031_v1  ;;  %2107 = vmatprep.subr.bf16.mxu0 %v3036_v2  ;;  %v3127_v1 = vld [vmem:[%s4487_s1 + $0x5c0] ss:$8 sps:$4 sm:$0xff]   ;;  %v3132_v2 = vld [vmem:[%s4487_s1 + $0x4b4] ss:$8 sps:$4 sm:$0xff]  }
  0x79   :  { %2160 = vmatprep.subr.bf16.mxu1 %v3039_v3  ;;  %v3135_v3 = vld [vmem:[%s4487_s1 + $0x5b4] ss:$8 sps:$4 sm:$0xff]  }
  0x7b   :  { %2108 = vmatpush2.bf16.msra.mxu0 %v3034_v4  ;;  %v3130_v4 = vld [vmem:[%s4487_s1 + $0x4b0] ss:$8 sps:$4 sm:$0xff]  }
  0x7c   :  { %2161 = vmatpush2.bf16.msra.mxu1 %v3037_v5  ;;  %2109 = vmatprep.subr.bf16.mxu0 %v3042_v6  ;;  %v3133_v5 = vld [vmem:[%s4487_s1 + $0x5b0] ss:$8 sps:$4 sm:$0xff]   ;;  %v3138_v6 = vld [vmem:[%s4487_s1 + $0x4a4] ss:$8 sps:$4 sm:$0xff]  }
  0x7d   :  { %2162 = vmatprep.subr.bf16.mxu1 %v3045_v7  ;;  %v3141_v7 = vld [vmem:[%s4487_s1 + $0x5a4] ss:$8 sps:$4 sm:$0xff]  }
  0x7f   :  { %2110 = vmatpush2.bf16.msra.mxu0 %v3040_v8  ;;  %v3136_v8 = vld [vmem:[%s4487_s1 + $0x4a0] ss:$8 sps:$4 sm:$0xff]  }
  0x80   :  { %2163 = vmatpush2.bf16.msra.mxu1 %v3043_v9  ;;  %2185 = vmatprep.subr.bf16.mxu0 %v3054_v10  ;;  %v3139_v9 = vld [vmem:[%s4487_s1 + $0x5a0] ss:$8 sps:$4 sm:$0xff]   ;;  %v3144_v10 = vld [vmem:[%s4487_s1 + $0x494] ss:$8 sps:$4 sm:$0xff]  }
  0x81   :  { %2238 = vmatprep.subr.bf16.mxu1 %v3057_v11  ;;  %v3147_v11 = vld [vmem:[%s4487_s1 + $0x594] ss:$8 sps:$4 sm:$0xff]  }
  0x82   :  { %2112 = vmatmul.mubr.bf16.vlgmr.msra.gmra.mxu0 %v3046_v12  ;;  %v3142_v12 = vld [vmem:[%s4487_s1 + $0x490] ss:$8 sps:$4 sm:$0xff]  }
  0x83   :  { %2165 = vmatmul.mubr.bf16.vlgmr.msra.gmra.mxu1 %v3049_v13  ;;  %2186 = vmatpush1.bf16.msra.mxu0 %v3052_v14  ;;  %v3145_v13 = vld [vmem:[%s4487_s1 + $0x590] ss:$8 sps:$4 sm:$0xff]   ;;  %v3150_v14 = vld [vmem:[%s4487_s1 + $0x484] ss:$8 sps:$4 sm:$0xff]  }
  0x84   :  { %2239 = vmatpush1.bf16.msra.mxu1 %v3055_v15  ;;  %2187 = vmatprep.subr.bf16.mxu0 %v3060_v16  ;;  %v3153_v15 = vld [vmem:[%s4487_s1 + $0x584] ss:$8 sps:$4 sm:$0xff]   ;;  %v3148_v16 = vld [vmem:[%s4487_s1 + $0x480] ss:$8 sps:$4 sm:$0xff]  }
  0x85   :  { %2240 = vmatprep.subr.bf16.mxu1 %v3063_v17  ;;  %2121 = vmatprep.mubr.bf16.mxu0 %v3064_v18  ;;  %v3151_v17 = vld [vmem:[%s4487_s1 + $0x580] ss:$8 sps:$4 sm:$0xff]   ;;  %v3162_v18 = vld [vmem:[%s4487_s1 + $0x674] ss:$8 sps:$4 sm:$0xff]  }
  0x86   :  { %2174 = vmatprep.mubr.bf16.mxu1 %v3073_v19  ;;  %v3165_v19 = vld [vmem:[%s4487_s1 + $0x774] ss:$8 sps:$4 sm:$0xff]  }
  0x87   :  { %2188 = vmatpush1.bf16.msra.mxu0 %v3058_v20  ;;  %v3154_v20 = vld [vmem:[%s4488_s0 + $0x20] ss:$72 sps:$4 sm:$0xff]  }
  0x88   :  { %2241 = vmatpush1.bf16.msra.mxu1 %v3061_v21  ;;  %2189 = vmatprep.subr.bf16.mxu0 %v3069_v22  ;;  %v3157_v21 = vld [vmem:[%s4488_s0 + $0x28] ss:$72 sps:$4 sm:$0xff]  }
  0x89   :  { %2242 = vmatprep.subr.bf16.mxu1 %v3072_v23  ;;  %v3160_v22 = vld [vmem:[%s4487_s1 + $0x670] ss:$8 sps:$4 sm:$0xff]  }
  0x8a   :  { %2122 = vmatmul.mubr.bf16.gmra.mxu0 %v3066_v24  ;;  %v3163_v23 = vld [vmem:[%s4487_s1 + $0x770] ss:$8 sps:$4 sm:$0xff]   ;;  %v3168_v24 = vld [vmem:[%s4487_s1 + $0x664] ss:$8 sps:$4 sm:$0xff]  }
  0x8b   :  { %2175 = vmatmul.mubr.bf16.gmra.mxu1 %v3075_v27  ;;  %2190 = vmatpush1.bf16.msra.mxu0 %v3067_v25  ;;  %v3171_v25 = vld [vmem:[%s4487_s1 + $0x764] ss:$8 sps:$4 sm:$0xff]  }
  0x8c   :  { %2243 = vmatpush1.bf16.msra.mxu1 %v3070_v26  ;;  %2191 = vmatprep.subr.bf16.mxu0 %v3078_v28  ;;  %v3172_v26 = vld [vmem:[%s4488_s0 + $0xb4] ss:$72 sps:$4 sm:$0xff]   ;;  %v3166_v28 = vld [vmem:[%s4487_s1 + $0x660] ss:$8 sps:$4 sm:$0xff]  }
  0x8d   :  { %2244 = vmatprep.subr.bf16.mxu1 %v3081_v29  ;;  %2217 = vmatprep.mubr.bf16.mxu0 %v3156_v33  ;;  %v3181_v27 = vld [vmem:[%s4488_s0 + $0xbc] ss:$72 sps:$4 sm:$0xff]   ;;  %v3169_v29 = vld [vmem:[%s4487_s1 + $0x760] ss:$8 sps:$4 sm:$0xff]   ;;  %v3175_v33 = vld [vmem:[%s4487_s1 + $0x650] ss:$8 sps:$4 sm:$0xff]  }
  0x8e   :  { %2270 = vmatprep.mubr.bf16.mxu1 %v3159_v35  ;;  %v3178_v35 = vld [vmem:[%s4487_s1 + $0x750] ss:$8 sps:$4 sm:$0xff]  }
  0x8f   :  { %2192 = vmatpush1.bf16.msra.mxu0 %v3076_v30  ;;  %v3177_v30 = vld [vmem:[%s4487_s1 + $0x654] ss:$8 sps:$4 sm:$0xff]  }
  0x90   :  { %2245 = vmatpush1.bf16.msra.mxu1 %v3079_v31  ;;  %2193 = vmatprep.subr.bf16.mxu0 %v3084_v32  ;;  %v3180_v31 = vld [vmem:[%s4487_s1 + $0x754] ss:$8 sps:$4 sm:$0xff]   ;;  %v3174_v32 = vld [vmem:[%s4488_s0 + $0xb0] ss:$72 sps:$4 sm:$0xff]  }
  0x91   :  { %2246 = vmatprep.subr.bf16.mxu1 %v3087_v34  ;;  %v3183_v34 = vld [vmem:[%s4488_s0 + $0xb8] ss:$72 sps:$4 sm:$0xff]  }
  0x93   :  { %2194 = vmatpush1.bf16.msra.mxu0 %v3082_v36  ;;  %v3186_v36 = vld [vmem:[%s4487_s1 + $0x644] ss:$8 sps:$4 sm:$0xff]  }
  0x94   :  { %2247 = vmatpush1.bf16.msra.mxu1 %v3085_v37  ;;  %2195 = vmatprep.subr.bf16.mxu0 %v3090_v38  ;;  %v3189_v37 = vld [vmem:[%s4487_s1 + $0x744] ss:$8 sps:$4 sm:$0xff]   ;;  %v3264_v38 = vld [vmem:[%s4488_s0 + $0x34] ss:$72 sps:$4 sm:$0xff]  }
  0x95   :  { %2248 = vmatprep.subr.bf16.mxu1 %v3093_v39  ;;  %v3267_v39 = vld [vmem:[%s4488_s0 + $0x3c] ss:$72 sps:$4 sm:$0xff]  }
  0x97   :  { %2196 = vmatpush1.bf16.msra.mxu0 %v3088_v40  ;;  %v3184_v40 = vld [vmem:[%s4487_s1 + $0x640] ss:$8 sps:$4 sm:$0xff]  }
  0x98   :  { %2249 = vmatpush1.bf16.msra.mxu1 %v3091_v41  ;;  %2197 = vmatprep.subr.bf16.mxu0 %v3096_v42  ;;  %v3187_v41 = vld [vmem:[%s4487_s1 + $0x740] ss:$8 sps:$4 sm:$0xff]   ;;  %v3192_v42 = vld [vmem:[%s4487_s1 + $0x634] ss:$8 sps:$4 sm:$0xff]  }
  0x99   :  { %2250 = vmatprep.subr.bf16.mxu1 %v3099_v43  ;;  %v3195_v43 = vld [vmem:[%s4487_s1 + $0x734] ss:$8 sps:$4 sm:$0xff]  }
  0x9b   :  { %2198 = vmatpush1.bf16.msra.mxu0 %v3094_v44  ;;  %v3190_v44 = vld [vmem:[%s4487_s1 + $0x630] ss:$8 sps:$4 sm:$0xff]  }
  0x9c   :  { %2251 = vmatpush1.bf16.msra.mxu1 %v3097_v45  ;;  %2199 = vmatprep.subr.bf16.mxu0 %v3102_v46  ;;  %v3193_v45 = vld [vmem:[%s4487_s1 + $0x730] ss:$8 sps:$4 sm:$0xff]   ;;  %v3198_v46 = vld [vmem:[%s4487_s1 + $0x624] ss:$8 sps:$4 sm:$0xff]  }
  0x9d   :  { %2252 = vmatprep.subr.bf16.mxu1 %v3105_v47  ;;  %v3201_v47 = vld [vmem:[%s4487_s1 + $0x724] ss:$8 sps:$4 sm:$0xff]  }
  0x9f   :  { %2200 = vmatpush1.bf16.msra.mxu0 %v3100_v48  ;;  %v3196_v48 = vld [vmem:[%s4487_s1 + $0x620] ss:$8 sps:$4 sm:$0xff]  }
  0xa0   :  { %2253 = vmatpush1.bf16.msra.mxu1 %v3103_v49  ;;  %2201 = vmatprep.subr.bf16.mxu0 %v3108_v50  ;;  %v3199_v49 = vld [vmem:[%s4487_s1 + $0x720] ss:$8 sps:$4 sm:$0xff]   ;;  %v3204_v50 = vld [vmem:[%s4487_s1 + $0x614] ss:$8 sps:$4 sm:$0xff]  }
  0xa1   :  { %2254 = vmatprep.subr.bf16.mxu1 %v3111_v51  ;;  %v3207_v51 = vld [vmem:[%s4487_s1 + $0x714] ss:$8 sps:$4 sm:$0xff]  }
  0xa3   :  { %2202 = vmatpush2.bf16.msra.mxu0 %v3106_v52  ;;  %v3202_v52 = vld [vmem:[%s4487_s1 + $0x610] ss:$8 sps:$4 sm:$0xff]  }
  0xa4   :  { %2255 = vmatpush2.bf16.msra.mxu1 %v3109_v53  ;;  %2203 = vmatprep.subr.bf16.mxu0 %v3114_v54  ;;  %v3205_v53 = vld [vmem:[%s4487_s1 + $0x710] ss:$8 sps:$4 sm:$0xff]   ;;  %v3210_v54 = vld [vmem:[%s4487_s1 + $0x604] ss:$8 sps:$4 sm:$0xff]  }
  0xa5   :  { %2256 = vmatprep.subr.bf16.mxu1 %v3117_v55  ;;  %v3213_v55 = vld [vmem:[%s4487_s1 + $0x704] ss:$8 sps:$4 sm:$0xff]  }
  0xa7   :  { %2204 = vmatpush2.bf16.msra.mxu0 %v3112_v56  ;;  %v3208_v56 = vld [vmem:[%s4487_s1 + $0x600] ss:$8 sps:$4 sm:$0xff]  }
  0xa8   :  { %2257 = vmatpush2.bf16.msra.mxu1 %v3115_v57  ;;  %2205 = vmatprep.subr.bf16.mxu0 %v3120_v58  ;;  %v3211_v57 = vld [vmem:[%s4487_s1 + $0x700] ss:$8 sps:$4 sm:$0xff]   ;;  %v3216_v58 = vld [vmem:[%s4487_s1 + $0x6f4] ss:$8 sps:$4 sm:$0xff]  }
  0xa9   :  { %2258 = vmatprep.subr.bf16.mxu1 %v3123_v59  ;;  %v3219_v59 = vld [vmem:[%s4487_s1 + $0x7f4] ss:$8 sps:$4 sm:$0xff]  }
  0xab   :  { %2206 = vmatpush2.bf16.msra.mxu0 %v3118_v60  ;;  %v3214_v60 = vld [vmem:[%s4487_s1 + $0x6f0] ss:$8 sps:$4 sm:$0xff]  }
  0xac   :  { %2259 = vmatpush2.bf16.msra.mxu1 %v3121_v61  ;;  %2207 = vmatprep.subr.bf16.mxu0 %v3126_v62  ;;  %v3217_v61 = vld [vmem:[%s4487_s1 + $0x7f0] ss:$8 sps:$4 sm:$0xff]   ;;  %v3222_v62 = vld [vmem:[%s4487_s1 + $0x6e4] ss:$8 sps:$4 sm:$0xff]  }
  0xad   :  { %2260 = vmatprep.subr.bf16.mxu1 %v3129_v63  ;;  %v3225_v63 = vld [vmem:[%s4487_s1 + $0x7e4] ss:$8 sps:$4 sm:$0xff]  }
  0xaf   :  { %2208 = vmatpush2.bf16.msra.mxu0 %v3124_v0  ;;  %v3220_v0 = vld [vmem:[%s4487_s1 + $0x6e0] ss:$8 sps:$4 sm:$0xff]  }
  0xb0   :  { %2261 = vmatpush2.bf16.msra.mxu1 %v3127_v1  ;;  %2209 = vmatprep.subr.bf16.mxu0 %v3132_v2  ;;  %v3223_v1 = vld [vmem:[%s4487_s1 + $0x7e0] ss:$8 sps:$4 sm:$0xff]   ;;  %v3228_v2 = vld [vmem:[%s4487_s1 + $0x6d4] ss:$8 sps:$4 sm:$0xff]  }
  0xb1   :  { %2262 = vmatprep.subr.bf16.mxu1 %v3135_v3  ;;  %v3231_v3 = vld [vmem:[%s4487_s1 + $0x7d4] ss:$8 sps:$4 sm:$0xff]  }
  0xb3   :  { %2210 = vmatpush2.bf16.msra.mxu0 %v3130_v4  ;;  %v3226_v4 = vld [vmem:[%s4487_s1 + $0x6d0] ss:$8 sps:$4 sm:$0xff]  }
  0xb4   :  { %2263 = vmatpush2.bf16.msra.mxu1 %v3133_v5  ;;  %2211 = vmatprep.subr.bf16.mxu0 %v3138_v6  ;;  %v3229_v5 = vld [vmem:[%s4487_s1 + $0x7d0] ss:$8 sps:$4 sm:$0xff]   ;;  %v3234_v6 = vld [vmem:[%s4487_s1 + $0x6c4] ss:$8 sps:$4 sm:$0xff]  }
  0xb5   :  { %2264 = vmatprep.subr.bf16.mxu1 %v3141_v7  ;;  %v3237_v7 = vld [vmem:[%s4487_s1 + $0x7c4] ss:$8 sps:$4 sm:$0xff]  }
  0xb7   :  { %2212 = vmatpush2.bf16.msra.mxu0 %v3136_v8  ;;  %v3232_v8 = vld [vmem:[%s4487_s1 + $0x6c0] ss:$8 sps:$4 sm:$0xff]  }
  0xb8   :  { %2265 = vmatpush2.bf16.msra.mxu1 %v3139_v9  ;;  %2213 = vmatprep.subr.bf16.mxu0 %v3144_v10  ;;  %v3235_v9 = vld [vmem:[%s4487_s1 + $0x7c0] ss:$8 sps:$4 sm:$0xff]   ;;  %v3240_v10 = vld [vmem:[%s4487_s1 + $0x6b4] ss:$8 sps:$4 sm:$0xff]  }
  0xb9   :  { %2266 = vmatprep.subr.bf16.mxu1 %v3147_v11  ;;  %v3243_v11 = vld [vmem:[%s4487_s1 + $0x7b4] ss:$8 sps:$4 sm:$0xff]  }
  0xbb   :  { %2214 = vmatpush2.bf16.msra.mxu0 %v3142_v12  ;;  %v3238_v12 = vld [vmem:[%s4487_s1 + $0x6b0] ss:$8 sps:$4 sm:$0xff]  }
  0xbc   :  { %2267 = vmatpush2.bf16.msra.mxu1 %v3145_v13  ;;  %2215 = vmatprep.subr.bf16.mxu0 %v3150_v14  ;;  %v3241_v13 = vld [vmem:[%s4487_s1 + $0x7b0] ss:$8 sps:$4 sm:$0xff]   ;;  %v3246_v14 = vld [vmem:[%s4487_s1 + $0x6a4] ss:$8 sps:$4 sm:$0xff]  }
  0xbd   :  { %2268 = vmatprep.subr.bf16.mxu1 %v3153_v15  ;;  %v3249_v15 = vld [vmem:[%s4487_s1 + $0x7a4] ss:$8 sps:$4 sm:$0xff]  }
  0xbf   :  { %2216 = vmatpush2.bf16.msra.mxu0 %v3148_v16  ;;  %v3244_v16 = vld [vmem:[%s4487_s1 + $0x6a0] ss:$8 sps:$4 sm:$0xff]  }
  0xc0   :  { %2269 = vmatpush2.bf16.msra.mxu1 %v3151_v17  ;;  %2291 = vmatprep.subr.bf16.mxu0 %v3162_v18  ;;  %v3247_v17 = vld [vmem:[%s4487_s1 + $0x7a0] ss:$8 sps:$4 sm:$0xff]   ;;  %v3252_v18 = vld [vmem:[%s4487_s1 + $0x694] ss:$8 sps:$4 sm:$0xff]  }
  0xc1   :  { %2344 = vmatprep.subr.bf16.mxu1 %v3165_v19  ;;  %v3255_v19 = vld [vmem:[%s4487_s1 + $0x794] ss:$8 sps:$4 sm:$0xff]  }
  0xc2   :  { %2218 = vmatmul.mubr.bf16.vlgmr.msra.gmra.mxu0 %v3154_v20  ;;  %v3250_v20 = vld [vmem:[%s4487_s1 + $0x690] ss:$8 sps:$4 sm:$0xff]  }
  0xc3   :  { %2271 = vmatmul.mubr.bf16.vlgmr.msra.gmra.mxu1 %v3157_v21  ;;  %2292 = vmatpush1.bf16.msra.mxu0 %v3160_v22  ;;  %v3253_v21 = vld [vmem:[%s4487_s1 + $0x790] ss:$8 sps:$4 sm:$0xff]   ;;  %v3258_v22 = vld [vmem:[%s4487_s1 + $0x684] ss:$8 sps:$4 sm:$0xff]  }
  0xc4   :  { %2345 = vmatpush1.bf16.msra.mxu1 %v3163_v23  ;;  %2293 = vmatprep.subr.bf16.mxu0 %v3168_v24  ;;  %v3261_v23 = vld [vmem:[%s4487_s1 + $0x784] ss:$8 sps:$4 sm:$0xff]   ;;  %v3256_v24 = vld [vmem:[%s4487_s1 + $0x680] ss:$8 sps:$4 sm:$0xff]  }
  0xc5   :  { %2346 = vmatprep.subr.bf16.mxu1 %v3171_v25  ;;  %2227 = vmatprep.mubr.bf16.mxu0 %v3172_v26  ;;  %v3259_v25 = vld [vmem:[%s4487_s1 + $0x780] ss:$8 sps:$4 sm:$0xff]   ;;  %v3270_v26 = vld [vmem:[%s4487_s1 + $0x874] ss:$8 sps:$4 sm:$0xff]  }
  0xc6   :  { %2280 = vmatprep.mubr.bf16.mxu1 %v3181_v27  ;;  %v3262_v27 = vld [vmem:[%s4488_s0 + $0x30] ss:$72 sps:$4 sm:$0xff]  }
  0xc7   :  { %2294 = vmatpush1.bf16.msra.mxu0 %v3166_v28  ;;  %v3265_v28 = vld [vmem:[%s4488_s0 + $0x38] ss:$72 sps:$4 sm:$0xff]  }
  0xc8   :  { %2347 = vmatpush1.bf16.msra.mxu1 %v3169_v29  ;;  %2295 = vmatprep.subr.bf16.mxu0 %v3177_v30  ;;  %v3268_v29 = vld [vmem:[%s4487_s1 + $0x870] ss:$8 sps:$4 sm:$0xff]   ;;  %v3273_v30 = vld [vmem:[%s4487_s1 + $0x864] ss:$8 sps:$4 sm:$0xff]  }
  0xc9   :  { %2348 = vmatprep.subr.bf16.mxu1 %v3180_v31  ;;  %v3274_v31 = vld [vmem:[%s4488_s0 + $0xc4] ss:$72 sps:$4 sm:$0xff]  }
  0xca   :  { %2228 = vmatmul.mubr.bf16.gmra.mxu0 %v3174_v32  ;;  %v3280_v32 = vld [vmem:[%s4488_s0 + $0xcc] ss:$72 sps:$4 sm:$0xff]  }
  0xcb   :  { %2281 = vmatmul.mubr.bf16.gmra.mxu1 %v3183_v34  ;;  %2296 = vmatpush1.bf16.msra.mxu0 %v3175_v33  ;;  %v3271_v33 = vld [vmem:[%s4487_s1 + $0x860] ss:$8 sps:$4 sm:$0xff]   ;;  %v3279_v34 = vld [vmem:[%s4487_s1 + $0x854] ss:$8 sps:$4 sm:$0xff]  }
  0xcc   :  { %2349 = vmatpush1.bf16.msra.mxu1 %v3178_v35  ;;  %2297 = vmatprep.subr.bf16.mxu0 %v3186_v36  ;;  %v3276_v35 = vld [vmem:[%s4488_s0 + $0xc0] ss:$72 sps:$4 sm:$0xff]  }
  0xcd   :  { %2350 = vmatprep.subr.bf16.mxu1 %v3189_v37  ;;  %2323 = vmatprep.mubr.bf16.mxu0 %v3264_v38  ;;  %v3282_v36 = vld [vmem:[%s4488_s0 + $0xc8] ss:$72 sps:$4 sm:$0xff]   ;;  %v3285_v38 = vld [vmem:[%s4487_s1 + $0x844] ss:$8 sps:$4 sm:$0xff]  }
  0xce   :  { %2376 = vmatprep.mubr.bf16.mxu1 %v3267_v39  ;;  %v3277_v37 = vld [vmem:[%s4487_s1 + $0x850] ss:$8 sps:$4 sm:$0xff]   ;;  %v3324_v39 = vld [vmem:[%s4488_s0 + $0x44] ss:$72 sps:$4 sm:$0xff]  }
  0xcf   :  { %2298 = vmatpush1.bf16.msra.mxu0 %v3184_v40  ;;  %v3327_v40 = vld [vmem:[%s4488_s0 + $0xd4] ss:$72 sps:$4 sm:$0xff]  }
  0xd0   :  { %2351 = vmatpush1.bf16.msra.mxu1 %v3187_v41  ;;  %2299 = vmatprep.subr.bf16.mxu0 %v3192_v42  ;;  %v3283_v41 = vld [vmem:[%s4487_s1 + $0x840] ss:$8 sps:$4 sm:$0xff]   ;;  %v3288_v42 = vld [vmem:[%s4487_s1 + $0x834] ss:$8 sps:$4 sm:$0xff]  }
  0xd1   :  { %2352 = vmatprep.subr.bf16.mxu1 %v3195_v43  ;;  %v3286_v43 = vld [vmem:[%s4487_s1 + $0x830] ss:$8 sps:$4 sm:$0xff]  }
  0xd3   :  { %2300 = vmatpush1.bf16.msra.mxu0 %v3190_v44  ;;  %v3291_v44 = vld [vmem:[%s4487_s1 + $0x824] ss:$8 sps:$4 sm:$0xff]  }
  0xd4   :  { %2353 = vmatpush1.bf16.msra.mxu1 %v3193_v45  ;;  %2301 = vmatprep.subr.bf16.mxu0 %v3198_v46  ;;  %v3289_v45 = vld [vmem:[%s4487_s1 + $0x820] ss:$8 sps:$4 sm:$0xff]   ;;  %v3294_v46 = vld [vmem:[%s4487_s1 + $0x814] ss:$8 sps:$4 sm:$0xff]  }
  0xd5   :  { %2354 = vmatprep.subr.bf16.mxu1 %v3201_v47  ;;  %v3292_v47 = vld [vmem:[%s4487_s1 + $0x810] ss:$8 sps:$4 sm:$0xff]  }
  0xd7   :  { %2302 = vmatpush1.bf16.msra.mxu0 %v3196_v48  ;;  %v3297_v48 = vld [vmem:[%s4487_s1 + $0x804] ss:$8 sps:$4 sm:$0xff]  }
  0xd8   :  { %2355 = vmatpush1.bf16.msra.mxu1 %v3199_v49  ;;  %2303 = vmatprep.subr.bf16.mxu0 %v3204_v50  ;;  %v3295_v49 = vld [vmem:[%s4487_s1 + $0x800] ss:$8 sps:$4 sm:$0xff]   ;;  %v3300_v50 = vld [vmem:[%s4487_s1 + $0x8f4] ss:$8 sps:$4 sm:$0xff]  }
  0xd9   :  { %2356 = vmatprep.subr.bf16.mxu1 %v3207_v51  ;;  %v3298_v51 = vld [vmem:[%s4487_s1 + $0x8f0] ss:$8 sps:$4 sm:$0xff]  }
  0xdb   :  { %2304 = vmatpush1.bf16.msra.mxu0 %v3202_v52  ;;  %v3303_v52 = vld [vmem:[%s4487_s1 + $0x8e4] ss:$8 sps:$4 sm:$0xff]  }
  0xdc   :  { %2357 = vmatpush1.bf16.msra.mxu1 %v3205_v53  ;;  %2305 = vmatprep.subr.bf16.mxu0 %v3210_v54  ;;  %v3301_v53 = vld [vmem:[%s4487_s1 + $0x8e0] ss:$8 sps:$4 sm:$0xff]   ;;  %v3306_v54 = vld [vmem:[%s4487_s1 + $0x8d4] ss:$8 sps:$4 sm:$0xff]  }
  0xdd   :  { %2358 = vmatprep.subr.bf16.mxu1 %v3213_v55  ;;  %v3304_v55 = vld [vmem:[%s4487_s1 + $0x8d0] ss:$8 sps:$4 sm:$0xff]  }
  0xdf   :  { %2306 = vmatpush1.bf16.msra.mxu0 %v3208_v56  ;;  %v3309_v56 = vld [vmem:[%s4487_s1 + $0x8c4] ss:$8 sps:$4 sm:$0xff]  }
  0xe0   :  { %2359 = vmatpush1.bf16.msra.mxu1 %v3211_v57  ;;  %2307 = vmatprep.subr.bf16.mxu0 %v3216_v58  ;;  %v3307_v57 = vld [vmem:[%s4487_s1 + $0x8c0] ss:$8 sps:$4 sm:$0xff]   ;;  %v3312_v58 = vld [vmem:[%s4487_s1 + $0x8b4] ss:$8 sps:$4 sm:$0xff]  }
  0xe1   :  { %2360 = vmatprep.subr.bf16.mxu1 %v3219_v59  ;;  %v3310_v59 = vld [vmem:[%s4487_s1 + $0x8b0] ss:$8 sps:$4 sm:$0xff]  }
  0xe3   :  { %2308 = vmatpush2.bf16.msra.mxu0 %v3214_v60  ;;  %v3315_v60 = vld [vmem:[%s4487_s1 + $0x8a4] ss:$8 sps:$4 sm:$0xff]  }
  0xe4   :  { %2361 = vmatpush2.bf16.msra.mxu1 %v3217_v61  ;;  %2309 = vmatprep.subr.bf16.mxu0 %v3222_v62  ;;  %v3313_v61 = vld [vmem:[%s4487_s1 + $0x8a0] ss:$8 sps:$4 sm:$0xff]   ;;  %v3318_v62 = vld [vmem:[%s4487_s1 + $0x894] ss:$8 sps:$4 sm:$0xff]  }
  0xe5   :  { %2362 = vmatprep.subr.bf16.mxu1 %v3225_v63  ;;  %v3316_v63 = vld [vmem:[%s4487_s1 + $0x890] ss:$8 sps:$4 sm:$0xff]  }
  0xe7   :  { %2310 = vmatpush2.bf16.msra.mxu0 %v3220_v0  ;;  %v3321_v0 = vld [vmem:[%s4487_s1 + $0x884] ss:$8 sps:$4 sm:$0xff]  }
  0xe8   :  { %2363 = vmatpush2.bf16.msra.mxu1 %v3223_v1  ;;  %2311 = vmatprep.subr.bf16.mxu0 %v3228_v2  ;;  %v3319_v1 = vld [vmem:[%s4487_s1 + $0x880] ss:$8 sps:$4 sm:$0xff]  }
  0xe9   :  { %2364 = vmatprep.subr.bf16.mxu1 %v3231_v3  ;;  %v3322_v2 = vld [vmem:[%s4488_s0 + $0x40] ss:$72 sps:$4 sm:$0xff]   ;;  %v3325_v3 = vld [vmem:[%s4488_s0 + $0xd0] ss:$72 sps:$4 sm:$0xff]  }
  0xeb   :  { %2312 = vmatpush2.bf16.msra.mxu0 %v3226_v4 }
  0xec   :  { %2365 = vmatpush2.bf16.msra.mxu1 %v3229_v5  ;;  %2313 = vmatprep.subr.bf16.mxu0 %v3234_v6 }
  0xed   :  { %2366 = vmatprep.subr.bf16.mxu1 %v3237_v7 }
  0xef   :  { %2314 = vmatpush2.bf16.msra.mxu0 %v3232_v8 }
  0xf0   :  { %2367 = vmatpush2.bf16.msra.mxu1 %v3235_v9  ;;  %2315 = vmatprep.subr.bf16.mxu0 %v3240_v10 }
  0xf1   :  { %2368 = vmatprep.subr.bf16.mxu1 %v3243_v11 }
  0xf3   :  { %2316 = vmatpush2.bf16.msra.mxu0 %v3238_v12 }
  0xf4   :  { %2369 = vmatpush2.bf16.msra.mxu1 %v3241_v13  ;;  %2317 = vmatprep.subr.bf16.mxu0 %v3246_v14 }
  0xf5   :  { %2370 = vmatprep.subr.bf16.mxu1 %v3249_v15 }
  0xf7   :  { %2318 = vmatpush2.bf16.msra.mxu0 %v3244_v16 }
  0xf8   :  { %2371 = vmatpush2.bf16.msra.mxu1 %v3247_v17  ;;  %2319 = vmatprep.subr.bf16.mxu0 %v3252_v18 }
  0xf9   :  { %2372 = vmatprep.subr.bf16.mxu1 %v3255_v19 }
  0xfb   :  { %2320 = vmatpush2.bf16.msra.mxu0 %v3250_v20 }
  0xfc   :  { %2373 = vmatpush2.bf16.msra.mxu1 %v3253_v21  ;;  %2321 = vmatprep.subr.bf16.mxu0 %v3258_v22 }
  0xfd   :  { %2374 = vmatprep.subr.bf16.mxu1 %v3261_v23 }
  0xff   :  { %2322 = vmatpush2.bf16.msra.mxu0 %v3256_v24 }
 0x100   :  { %2375 = vmatpush2.bf16.msra.mxu1 %v3259_v25  ;;  %2397 = vmatprep.subr.bf16.mxu0 %v3270_v26 }
 0x101   :  { %2810 = vmatprep.subr.bf16.mxu1 %v3270_v26 }
 0x102   :  { %2324 = vmatmul.mubr.bf16.vlgmr.msra.gmra.mxu0 %v3262_v27  ;;  %v2007_v4 = vpop.f32.mrf.mxu0 }
 0x103   :  { %2377 = vmatmul.mubr.bf16.vlgmr.msra.gmra.mxu1 %v3265_v28  ;;  %2398 = vmatpush1.bf16.msra.mxu0 %v3268_v29  ;;  %v4325_v6 = vpop.f32.mrf.mxu1 }
 0x104   :  { %2826 = vmatpush1.bf16.msra.mxu1 %v3268_v29  ;;  %2399 = vmatprep.subr.bf16.mxu0 %v3273_v30  ;;  %v2009_v5 = vpop.f32.mrf.mxu0 }
 0x105   :  { %2811 = vmatprep.subr.bf16.mxu1 %v3273_v30  ;;  %2333 = vmatprep.mubr.bf16.mxu0 %v3274_v31  ;;  %v4329_v8 = vpop.f32.mrf.mxu1 }
 0x106   :  { %2386 = vmatprep.mubr.bf16.mxu1 %v3280_v32  ;;  %v4327_v7 = vpop.f32.mrf.mxu0 }
 0x107   :  { %2400 = vmatpush1.bf16.msra.mxu0 %v3271_v33  ;;  %v4333_v11 = vpop.f32.mrf.mxu1 }
 0x108   :  { %2827 = vmatpush1.bf16.msra.mxu1 %v3271_v33  ;;  %2401 = vmatprep.subr.bf16.mxu0 %v3279_v34  ;;  %v4331_v9 = vpop.f32.mrf.mxu0 }
 0x109   :  { %2812 = vmatprep.subr.bf16.mxu1 %v3279_v34  ;;  %v4335_v13 = vpop.f32.mrf.mxu1 }
 0x10a   :  { %2334 = vmatmul.mubr.bf16.gmra.mxu0 %v3276_v35  ;;  %v2017_v10 = vpop.f32.mrf.mxu0 }
 0x10b   :  { %2387 = vmatmul.mubr.bf16.gmra.mxu1 %v3282_v36  ;;  %2402 = vmatpush1.bf16.msra.mxu0 %v3277_v37  ;;  %v2070_v14 = vpop.f32.mrf.mxu1 }
 0x10c   :  { %2828 = vmatpush1.bf16.msra.mxu1 %v3277_v37  ;;  %2403 = vmatprep.subr.bf16.mxu0 %v3285_v38  ;;  %v2019_v12 = vpop.f32.mrf.mxu0 }
 0x10d   :  { %2813 = vmatprep.subr.bf16.mxu1 %v3285_v38  ;;  %2429 = vmatprep.mubr.bf16.mxu0 %v3324_v39  ;;  %v2072_v16 = vpop.f32.mrf.mxu1 }
 0x10e   :  { %2439 = vmatprep.mubr.bf16.mxu1 %v3327_v40  ;;  %v2021_v15 = vpop.f32.mrf.mxu0 }
 0x10f   :  { %2404 = vmatpush1.bf16.msra.mxu0 %v3283_v41  ;;  %v4337_v19 = vpop.f32.mrf.mxu1 }
 0x110   :  { %2829 = vmatpush1.bf16.msra.mxu1 %v3283_v41  ;;  %2405 = vmatprep.subr.bf16.mxu0 %v3288_v42  ;;  %v2023_v17 = vpop.f32.mrf.mxu0 }
 0x111   :  { %2814 = vmatprep.subr.bf16.mxu1 %v3288_v42  ;;  %v4339_v21 = vpop.f32.mrf.mxu1 }
 0x113   :  { %2406 = vmatpush1.bf16.msra.mxu0 %v3286_v43 }
 0x114   :  { %2830 = vmatpush1.bf16.msra.mxu1 %v3286_v43  ;;  %2407 = vmatprep.subr.bf16.mxu0 %v3291_v44 }
 0x115   :  { %2815 = vmatprep.subr.bf16.mxu1 %v3291_v44 }
 0x117   :  { %2408 = vmatpush1.bf16.msra.mxu0 %v3289_v45 }
 0x118   :  { %2831 = vmatpush1.bf16.msra.mxu1 %v3289_v45  ;;  %2409 = vmatprep.subr.bf16.mxu0 %v3294_v46 }
 0x119   :  { %2816 = vmatprep.subr.bf16.mxu1 %v3294_v46 }
 0x11b   :  { %2410 = vmatpush1.bf16.msra.mxu0 %v3292_v47 }
 0x11c   :  { %2832 = vmatpush1.bf16.msra.mxu1 %v3292_v47  ;;  %2411 = vmatprep.subr.bf16.mxu0 %v3297_v48  ;;  %v343_v47 = vlaneseq }
 0x11d   :  { %2817 = vmatprep.subr.bf16.mxu1 %v3297_v48 }
 0x11f   :  { %2412 = vmatpush1.bf16.msra.mxu0 %v3295_v49 }
 0x120   :  { %2833 = vmatpush1.bf16.msra.mxu1 %v3295_v49  ;;  %2413 = vmatprep.subr.bf16.mxu0 %v3300_v50 }
 0x121   :  { %2818 = vmatprep.subr.bf16.mxu1 %v3300_v50  ;;  %v344_v50 = vshrl.u32 %v343_v47, 7 }
 0x123   :  { %2414 = vmatpush2.bf16.msra.mxu0 %v3298_v51 }
 0x124   :  { %2834 = vmatpush2.bf16.msra.mxu1 %v3298_v51  ;;  %2415 = vmatprep.subr.bf16.mxu0 %v3303_v52 }
 0x125   :  { %2819 = vmatprep.subr.bf16.mxu1 %v3303_v52 }
 0x127   :  { %2416 = vmatpush2.bf16.msra.mxu0 %v3301_v53 }
 0x128   :  { %2835 = vmatpush2.bf16.msra.mxu1 %v3301_v53  ;;  %2417 = vmatprep.subr.bf16.mxu0 %v3306_v54  ;;  %v345_v53 = vsub.s32 0, %v344_v50 }
 0x129   :  { %2820 = vmatprep.subr.bf16.mxu1 %v3306_v54 }
 0x12b   :  { %2418 = vmatpush2.bf16.msra.mxu0 %v3304_v55 }
 0x12c   :  { %2836 = vmatpush2.bf16.msra.mxu1 %v3304_v55  ;;  %2419 = vmatprep.subr.bf16.mxu0 %v3309_v56  ;;  %v341_v55 = vld [vmem:[%s4489_s2] sm:$0x3] }
 0x12d   :  { %2821 = vmatprep.subr.bf16.mxu1 %v3309_v56 }
 0x12f   :  { %2420 = vmatpush2.bf16.msra.mxu0 %v3307_v57 }
 0x130   :  { %2837 = vmatpush2.bf16.msra.mxu1 %v3307_v57  ;;  %2421 = vmatprep.subr.bf16.mxu0 %v3312_v58  ;;  %v349_v57 = vsub.s32 1, %v344_v50 }
 0x131   :  { %2822 = vmatprep.subr.bf16.mxu1 %v3312_v58 }
 0x133   :  { %2422 = vmatpush2.bf16.msra.mxu0 %v3310_v59 }
 0x134   :  { %2838 = vmatpush2.bf16.msra.mxu1 %v3310_v59  ;;  %2423 = vmatprep.subr.bf16.mxu0 %v3315_v60  ;;  %v346_v59 = vrot.slane %v341_v55, %v345_v53 }
 0x135   :  { %2823 = vmatprep.subr.bf16.mxu1 %v3315_v60 }
 0x136   :  { %v2012_v50 = vadd.f32 %v4327_v7, %v346_v59 }
 0x137   :  { %2424 = vmatpush2.bf16.msra.mxu0 %v3313_v61 }
 0x138   :  { %2839 = vmatpush2.bf16.msra.mxu1 %v3313_v61  ;;  %2425 = vmatprep.subr.bf16.mxu0 %v3318_v62  ;;  %v350_v61 = vrot.slane %v341_v55, %v349_v57 }
 0x139   :  { %2824 = vmatprep.subr.bf16.mxu1 %v3318_v62 }
 0x13a   :  { %v2014_v53 = vadd.f32 %v4331_v9, %v350_v61  ;;  %v2024_v55 = vadd.f32 %v2023_v17, %v350_v61 }
 0x13b   :  { %2426 = vmatpush2.bf16.msra.mxu0 %v3316_v63 }
 0x13c   :  { %2840 = vmatpush2.bf16.msra.mxu1 %v3316_v63  ;;  %2427 = vmatprep.subr.bf16.mxu0 %v3321_v0  ;;  %v2008_v63 = vadd.f32 %v2007_v4, %v346_v59  ;;  %v2077_v9 = vadd.f32 %v4339_v21, %v2024_v55 }
 0x13d   :  { %2825 = vmatprep.subr.bf16.mxu1 %v3321_v0  ;;  %v2018_v0 = vadd.f32 %v2017_v10, %v346_v59 }
 0x13f   :  { %2428 = vmatpush2.bf16.msra.mxu0 %v3319_v1 }
 0x140   :  { %2841 = vmatpush2.bf16.msra.mxu1 %v3319_v1 }
 0x142   :  { %2430 = vmatmul.mubr.bf16.vlgmr.msra.gmra.mxu0 %v3322_v2  ;;  %v2113_v18 = vpop.f32.mrf.mxu0  ;;  %v2010_v2 = vadd.f32 %v2009_v5, %v350_v61 }
 0x143   :  { %2440 = vmatmul.mubr.bf16.vlgmr.msra.gmra.mxu1 %v3325_v3  ;;  %v4341_v22 = vpop.f32.mrf.mxu1  ;;  %v2020_v3 = vadd.f32 %v2019_v12, %v350_v61 }
 0x144   :  { %v2115_v20 = vpop.f32.mrf.mxu0  ;;  %v2063_v57 = vadd.f32 %v4329_v8, %v2010_v2 }
 0x145   :  { %v4345_v24 = vpop.f32.mrf.mxu1  ;;  %v2073_v4 = vadd.f32 %v2072_v16, %v2020_v3 }
 0x146   :  { %v4343_v23 = vpop.f32.mrf.mxu0  ;;  %v2116_v5 = vadd.f32 %v2115_v20, %v2063_v57  ;;  %v2454_v57 = vld [vmem:[%s4490_s3 + $0x20] sm:$0xff] }
 0x147   :  { %v4349_v26 = vpop.f32.mrf.mxu1 }
 0x148   :  { %v4347_v25 = vpop.f32.mrf.mxu0 }
 0x149   :  { %v4351_v28 = vpop.f32.mrf.mxu1 }
 0x14a   :  { %v2123_v27 = vpop.f32.mrf.mxu0 }
 0x14b   :  { %v2176_v30 = vpop.f32.mrf.mxu1 }
 0x14c   :  { %v2125_v29 = vpop.f32.mrf.mxu0 }
 0x14d   :  { %v4355_v32 = vpop.f32.mrf.mxu1  ;;  %v2126_v12 = vadd.f32 %v2125_v29, %v2073_v4  ;;  %v2169_v29 = vadd.f32 %v4345_v24, %v2116_v5 }
 0x14e   :  { %v4353_v31 = vpop.f32.mrf.mxu0 }
 0x14f   :  { %v4357_v34 = vpop.f32.mrf.mxu1 }
 0x150   :  { %v2129_v33 = vpop.f32.mrf.mxu0 }
 0x151   :  { %v4361_v36 = vpop.f32.mrf.mxu1 }
 0x182   :  { %v4359_v35 = vpop.f32.mrf.mxu0 }
 0x183   :  { %v4365_v38 = vpop.f32.mrf.mxu1 }
 0x184   :  { %v4363_v37 = vpop.f32.mrf.mxu0 }
 0x185   :  { %v4369_v40 = vpop.f32.mrf.mxu1 }
 0x186   :  { %v4367_v39 = vpop.f32.mrf.mxu0 }
 0x187   :  { %v4373_v42 = vpop.f32.mrf.mxu1 }
 0x188   :  { %v4371_v41 = vpop.f32.mrf.mxu0 }
 0x189   :  { %v4375_v44 = vpop.f32.mrf.mxu1 }
 0x18a   :  { %v2229_v43 = vpop.f32.mrf.mxu0  ;;  %4492 = vst [vmem:[#allocation2_spill] sm:$0xff] %v4375_v44  ;;  %v2071_v44 = vadd.f32 %v2070_v14, %v2018_v0  ;;  %v2067_v14 = vadd.f32 %v4335_v13, %v2014_v53 }
 0x18b   :  { %v4377_v45 = vpop.f32.mrf.mxu1 }
 0x18c   :  { %v2231_v46 = vpop.f32.mrf.mxu0 }
 0x18d   :  { %v4379_v48 = vpop.f32.mrf.mxu1 }
 0x18e   :  { %v4381_v49 = vpop.f32.mrf.mxu0 }
 0x18f   :  { %v4383_v51 = vpop.f32.mrf.mxu1 }
 0x190   :  { %4493 = vst [vmem:[#allocation3_spill] sm:$0xff] %v4383_v51  ;;  %v2235_v52 = vpop.f32.mrf.mxu0  ;;  %v2061_v51 = vadd.f32 %v4325_v6, %v2008_v63  ;;  %v2065_v6 = vadd.f32 %v4333_v11, %v2012_v50  ;;  %v2179_v11 = vadd.f32 %v4355_v32, %v2126_v12 }
 0x191   :  { %v4390_v56 = vpop.f32.mrf.mxu1 }
 0x192   :  { %4494 = vst [vmem:[#allocation4_spill] sm:$0xff] %v4390_v56  ;;  %v2114_v10 = vadd.f32 %v2113_v18, %v2061_v51  ;;  %v2118_v16 = vadd.f32 %v4343_v23, %v2065_v6  ;;  %v2120_v18 = vadd.f32 %v4347_v25, %v2067_v14  ;;  %v2222_v51 = vadd.f32 %v4363_v37, %v2169_v29 }
 0x194   :  { %v2167_v17 = vadd.f32 %v4341_v22, %v2114_v10  ;;  %v2232_v22 = vadd.f32 %v2231_v46, %v2179_v11  ;;  %v2173_v23 = vadd.f32 %v4351_v28, %v2120_v18 }
 0x196   :  { %v2220_v13 = vadd.f32 %v4359_v35, %v2167_v17  ;;  %v2285_v28 = vadd.f32 %v4379_v48, %v2232_v22 }
 0x197   :  { %v4500_v63 = vld [vmem:[#allocation3_spill] sm:$0xff] }
 0x198   :  { %v2273_v24 = vadd.f32 %v4365_v38, %v2220_v13 }
 0x199   :  { %v4501_v0 = vld [vmem:[#allocation4_spill] sm:$0xff] }
 0x1c2   :  { %v4385_v54 = vpop.f32.mrf.mxu0 }
 0x1c3   :  { %v4392_v58 = vpop.f32.mrf.mxu1 }
 0x1c4   :  { %4495 = vst [vmem:[#allocation5_spill] sm:$0xff] %v4392_v58  ;;  %v2327_v60 = vpop.f32.mrf.mxu0  ;;  %v2022_v58 = vadd.f32 %v2021_v15, %v346_v59 }
 0x1c5   :  { %v4394_v62 = vpop.f32.mrf.mxu1 }
 0x1c6   :  { %4496 = vst [vmem:[#allocation6_spill] sm:$0xff] %v4394_v62  ;;  %v4396_v1 = vpop.f32.mrf.mxu0  ;;  %v2124_v62 = vadd.f32 %v2123_v27, %v2071_v44  ;;  %v2075_v7 = vadd.f32 %v4337_v19, %v2022_v58  ;;  %v2130_v27 = vadd.f32 %v2129_v33, %v2077_v9  ;;  %v2455_v9 = vld [vmem:[%s4490_s3 + $0x28] sm:$0xff] }
 0x1c7   :  { %4497 = vst [vmem:[#allocation7_spill] sm:$0xff] %v4396_v1  ;;  %v4398_v47 = vpop.f32.mrf.mxu1 }
 0x1c8   :  { %4498 = vst [vmem:[#allocation8_spill] sm:$0xff] %v4398_v47  ;;  %v2331_v56 = vpop.f32.mrf.mxu0  ;;  %v2177_v8 = vadd.f32 %v2176_v30, %v2124_v62  ;;  %v2128_v20 = vadd.f32 %v4353_v31, %v2075_v7  ;;  %v2171_v30 = vadd.f32 %v4349_v26, %v2118_v16  ;;  %v2183_v31 = vadd.f32 %v4361_v36, %v2130_v27  ;;  %v4499_v62 = vld [vmem:[#allocation2_spill] sm:$0xff] }
 0x1c9   :  { %v4404_v1 = vpop.f32.mrf.mxu1  ;;  %v2275_v26 = vadd.f32 %v4369_v40, %v2222_v51 }
 0x1ca   :  { %v2335_v47 = vpop.f32.mrf.mxu0  ;;  %v2230_v19 = vadd.f32 %v2229_v43, %v2177_v8  ;;  %v2181_v25 = vadd.f32 %v4357_v34, %v2128_v20  ;;  %v2224_v35 = vadd.f32 %v4367_v39, %v2171_v30  ;;  %v2226_v43 = vadd.f32 %v4371_v41, %v2173_v23  ;;  %v2452_v30 = vld [vmem:[%s4490_s3 + $0x10] sm:$0xff] }
 0x1cb   :  { %v2388_v15 = vpop.f32.mrf.mxu1  ;;  %v2236_v46 = vadd.f32 %v2235_v52, %v2183_v31  ;;  %v2326_v34 = vadd.f32 %v4385_v54, %v2273_v24  ;;  %v2328_v59 = vadd.f32 %v2327_v60, %v2275_v26  ;;  %v4502_v2 = vld [vmem:[#allocation5_spill] sm:$0xff]  ;;  %v2456_v23 = vld [vmem:[%s4490_s3 + $0x30] sm:$0xff] }
 0x1cc   :  { %v2337_v44 = vpop.f32.mrf.mxu0  ;;  %v2283_v32 = vadd.f32 %v4377_v45, %v2230_v19  ;;  %v2234_v37 = vadd.f32 %v4381_v49, %v2181_v25  ;;  %v2277_v45 = vadd.f32 %v4373_v42, %v2224_v35  ;;  %v2279_v39 = vadd.f32 %v4499_v62, %v2226_v43  ;;  %v2450_v42 = vld [vmem:[%s4490_s3] sm:$0xff] }
 0x1cd   :  { %v2390_v21 = vpop.f32.mrf.mxu1  ;;  %v2338_v38 = vadd.f32 %v2337_v44, %v2285_v28  ;;  %v2289_v49 = vadd.f32 %v4501_v0, %v2236_v46  ;;  %v2379_v3 = vadd.f32 %v4502_v2, %v2326_v34  ;;  %v4504_v4 = vld [vmem:[#allocation6_spill] sm:$0xff] }
 0x1ce   :  { %v2339_v33 = vpop.f32.mrf.mxu0  ;;  %v2336_v36 = vadd.f32 %v2335_v47, %v2283_v32  ;;  %v2287_v41 = vadd.f32 %v4500_v63, %v2234_v37  ;;  %v4503_v50 = vld [vmem:[#allocation7_spill] sm:$0xff]  ;;  %v2332_v53 = vadd.f32 %v2331_v56, %v2279_v39  ;;  %v2381_v10 = vadd.f32 %v4504_v4, %v2328_v59 }
 0x1cf   :  { %v2392_v58 = vpop.f32.mrf.mxu1  ;;  %v2330_v48 = vadd.f32 %v4503_v50, %v2277_v45  ;;  %v2391_v5 = vadd.f32 %v2390_v21, %v2338_v38  ;;  %v2451_v56 = vld [vmem:[%s4490_s3 + $0x8] sm:$0xff]  ;;  %v4505_v18 = vld [vmem:[#allocation8_spill] sm:$0xff] }
 0x1d0   :  { %v2341_v61 = vpop.f32.mrf.mxu0  ;;  %v2389_v40 = vadd.f32 %v2388_v15, %v2336_v36  ;;  %v2340_v54 = vadd.f32 %v2339_v33, %v2287_v41  ;;  %v2385_v27 = vadd.f32 %v4404_v1, %v2332_v53  ;;  %v2453_v1 = vld [vmem:[%s4490_s3 + $0x18] sm:$0xff] }
 0x1d1   :  { %v2394_v52 = vpop.f32.mrf.mxu1  ;;  %v2342_v47 = vadd.f32 %v2341_v61, %v2289_v49  ;;  %v2383_v20 = vadd.f32 %v4505_v18, %v2330_v48  ;;  %v2457_v33 = vld [vmem:[%s4490_s3 + $0x38] sm:$0xff] }
 0x1d2   :  { %v2393_v29 = vadd.f32 %v2392_v58, %v2340_v54 }
 0x1d3   :  { %v2395_v11 = vadd.f32 %v2394_v52, %v2342_v47 }
 0x202   :  { %v2431_v60 = vpop.f32.mrf.mxu0 }
 0x203   :  { %v2441_v55 = vpop.f32.mrf.mxu1  ;;  %v2432_v12 = vadd.f32 %v2431_v60, %v2379_v3 }
 0x204   :  { %v2442_v6 = vadd.f32 %v2441_v55, %v2389_v40  ;;  %v2433_v14 = vpop.f32.mrf.mxu0 }
 0x205   :  { %v2443_v7 = vpop.f32.mrf.mxu1  ;;  %v2458_v15 = vadd.f32 %v2450_v42, %v2432_v12  ;;  %v2434_v8 = vadd.f32 %v2433_v14, %v2381_v10 }
 0x206   :  { %v2462_v17 = vadd.f32 %v2454_v57, %v2442_v6  ;;  %v2444_v16 = vadd.f32 %v2443_v7, %v2391_v5  ;;  %v2435_v13 = vpop.f32.mrf.mxu0 }
 0x207   :  { %v2445_v19 = vpop.f32.mrf.mxu1  ;;  %v2466_v44 = vmax.f32 %v2458_v15, 0.0  ;;  %v2459_v51 = vadd.f32 %v2451_v56, %v2434_v8  ;;  %v2436_v25 = vadd.f32 %v2435_v13, %v2383_v20 }
 0x208   :  { %v2470_v21 = vmax.f32 %v2462_v17, 0.0  ;;  %v2463_v22 = vadd.f32 %v2455_v9, %v2444_v16  ;;  %v2446_v31 = vadd.f32 %v2445_v19, %v2393_v29  ;;  %v2437_v24 = vpop.f32.mrf.mxu0 }
 0x209   :  { %v2447_v32 = vpop.f32.mrf.mxu1  ;;  %2474 = vst [vmem:[%s4491_s4] sm:$0xff] %v2466_v44  ;;  %v2467_v35 = vmax.f32 %v2459_v51, 0.0  ;;  %v2438_v37 = vadd.f32 %v2437_v24, %v2385_v27  ;;  %v2460_v58 = vadd.f32 %v2452_v30, %v2436_v25 }
 0x20a   :  { %2478 = vst [vmem:[%s4491_s4 + $0x20] sm:$0xff] %v2470_v21  ;;  %v2471_v43 = vmax.f32 %v2463_v22, 0.0  ;;  %v2448_v46 = vadd.f32 %v2447_v32, %v2395_v11  ;;  %v2464_v26 = vadd.f32 %v2456_v23, %v2446_v31 }
 0x20b   :  { %2475 = vst [vmem:[%s4491_s4 + $0x8] sm:$0xff] %v2467_v35  ;;  %v2461_v28 = vadd.f32 %v2453_v1, %v2438_v37  ;;  %v2468_v36 = vmax.f32 %v2460_v58, 0.0 }
 0x20c   :  { %2479 = vst [vmem:[%s4491_s4 + $0x28] sm:$0xff] %v2471_v43  ;;  %v2465_v34 = vadd.f32 %v2457_v33, %v2448_v46  ;;  %v2472_v59 = vmax.f32 %v2464_v26, 0.0 }
 0x20d   :  { %v2469_v38 = vmax.f32 %v2461_v28, 0.0  ;;  %2476 = vst [vmem:[%s4491_s4 + $0x10] sm:$0xff] %v2468_v36 }
 0x20e   :  { %v2473_v61 = vmax.f32 %v2465_v34, 0.0  ;;  %2480 = vst [vmem:[%s4491_s4 + $0x30] sm:$0xff] %v2472_v59 }
 0x20f   :  { %2477 = vst [vmem:[%s4491_s4 + $0x18] sm:$0xff] %v2469_v38 }
 0x210   :  { %2481 = vst [vmem:[%s4491_s4 + $0x38] sm:$0xff] %v2473_v61 }

// kernel: generator_forward.8
= control target key start
LH: loop header
LB: loop body
LE: loop exit
PB: predicated region body
PF: predicated region fallthrough
CT: control target
= control target key end

     0   :  { %s4433_s1 = inlined_call_operand.vmem [shape: bf16[2304,256], index: 1, kind: input, shape index: {}]   ;;  %s4434_s0 = inlined_call_operand.vmem [shape: bf16[32,2304], index: 0, kind: input, shape index: {}]   ;;  %s4435_s2 = inlined_call_operand.vmem [shape: f32[1,256], index: 2, kind: input, shape index: {}]   ;;  %s4436_s3 = inlined_call_operand.vmem [shape: f32[32,256], index: 3, kind: output, shape index: {}]  }
   0x1   :  { %v2823_v0 = vld [vmem:[%s4433_s1 + $0x74] ss:$8 sps:$4 sm:$0xff]   ;;  %v2827_v2 = vld [vmem:[%s4433_s1 + $0x70] ss:$8 sps:$4 sm:$0xff]   ;;  %v2829_v4 = vld [vmem:[%s4433_s1 + $0x64] ss:$8 sps:$4 sm:$0xff]  }
   0x2   :  { %v2825_v1 = vld [vmem:[%s4433_s1 + $0x174] ss:$8 sps:$4 sm:$0xff]   ;;  %1970 = vmatprep.subr.bf16.mxu0 %v2823_v0  ;;  %v2828_v3 = vld [vmem:[%s4433_s1 + $0x170] ss:$8 sps:$4 sm:$0xff]   ;;  %v2831_v5 = vld [vmem:[%s4433_s1 + $0x164] ss:$8 sps:$4 sm:$0xff]  }
   0x3   :  { %2023 = vmatprep.subr.bf16.mxu1 %v2825_v1  ;;  %1971 = vmatpush1.bf16.msra.mxu0 %v2827_v2  ;;  %v2833_v6 = vld [vmem:[%s4433_s1 + $0x60] ss:$8 sps:$4 sm:$0xff]   ;;  %v2835_v8 = vld [vmem:[%s4433_s1 + $0x54] ss:$8 sps:$4 sm:$0xff]   ;;  %v2839_v10 = vld [vmem:[%s4433_s1 + $0x50] ss:$8 sps:$4 sm:$0xff]  }
   0x4   :  { %2024 = vmatpush1.bf16.msra.mxu1 %v2828_v3  ;;  %1972 = vmatprep.subr.bf16.mxu0 %v2829_v4  ;;  %v2834_v7 = vld [vmem:[%s4433_s1 + $0x160] ss:$8 sps:$4 sm:$0xff]   ;;  %v2837_v9 = vld [vmem:[%s4433_s1 + $0x154] ss:$8 sps:$4 sm:$0xff]   ;;  %v2840_v11 = vld [vmem:[%s4433_s1 + $0x150] ss:$8 sps:$4 sm:$0xff]  }
   0x5   :  { %2025 = vmatprep.subr.bf16.mxu1 %v2831_v5  ;;  %v2841_v12 = vld [vmem:[%s4433_s1 + $0x44] ss:$8 sps:$4 sm:$0xff]   ;;  %v2845_v14 = vld [vmem:[%s4433_s1 + $0x40] ss:$8 sps:$4 sm:$0xff]   ;;  %v2847_v16 = vld [vmem:[%s4433_s1 + $0x34] ss:$8 sps:$4 sm:$0xff]  }
   0x6   :  { %v2843_v13 = vld [vmem:[%s4433_s1 + $0x144] ss:$8 sps:$4 sm:$0xff]   ;;  %v2846_v15 = vld [vmem:[%s4433_s1 + $0x140] ss:$8 sps:$4 sm:$0xff]   ;;  %v2849_v17 = vld [vmem:[%s4433_s1 + $0x134] ss:$8 sps:$4 sm:$0xff]  }
   0x7   :  { %1973 = vmatpush1.bf16.msra.mxu0 %v2833_v6  ;;  %v2851_v18 = vld [vmem:[%s4433_s1 + $0x30] ss:$8 sps:$4 sm:$0xff]   ;;  %v2853_v20 = vld [vmem:[%s4433_s1 + $0x24] ss:$8 sps:$4 sm:$0xff]   ;;  %v2857_v22 = vld [vmem:[%s4433_s1 + $0x20] ss:$8 sps:$4 sm:$0xff]  }
   0x8   :  { %2026 = vmatpush1.bf16.msra.mxu1 %v2834_v7  ;;  %1974 = vmatprep.subr.bf16.mxu0 %v2835_v8  ;;  %v2852_v19 = vld [vmem:[%s4433_s1 + $0x130] ss:$8 sps:$4 sm:$0xff]   ;;  %v2855_v21 = vld [vmem:[%s4433_s1 + $0x124] ss:$8 sps:$4 sm:$0xff]   ;;  %v2858_v23 = vld [vmem:[%s4433_s1 + $0x120] ss:$8 sps:$4 sm:$0xff]  }
   0x9   :  { %2027 = vmatprep.subr.bf16.mxu1 %v2837_v9  ;;  %v2859_v24 = vld [vmem:[%s4433_s1 + $0x14] ss:$8 sps:$4 sm:$0xff]   ;;  %v2863_v26 = vld [vmem:[%s4433_s1 + $0x10] ss:$8 sps:$4 sm:$0xff]   ;;  %v2865_v28 = vld [vmem:[%s4433_s1 + $0x4] ss:$8 sps:$4 sm:$0xff]  }
   0xa   :  { %v2861_v25 = vld [vmem:[%s4433_s1 + $0x114] ss:$8 sps:$4 sm:$0xff]   ;;  %v2864_v27 = vld [vmem:[%s4433_s1 + $0x110] ss:$8 sps:$4 sm:$0xff]   ;;  %v2867_v29 = vld [vmem:[%s4433_s1 + $0x104] ss:$8 sps:$4 sm:$0xff]  }
   0xb   :  { %1975 = vmatpush1.bf16.msra.mxu0 %v2839_v10  ;;  %v2869_v30 = vld [vmem:[%s4433_s1] ss:$8 sps:$4 sm:$0xff]   ;;  %v2871_v32 = vld [vmem:[%s4433_s1 + $0xf4] ss:$8 sps:$4 sm:$0xff]   ;;  %v2875_v34 = vld [vmem:[%s4433_s1 + $0xf0] ss:$8 sps:$4 sm:$0xff]  }
   0xc   :  { %2028 = vmatpush1.bf16.msra.mxu1 %v2840_v11  ;;  %1976 = vmatprep.subr.bf16.mxu0 %v2841_v12  ;;  %v2870_v31 = vld [vmem:[%s4433_s1 + $0x100] ss:$8 sps:$4 sm:$0xff]   ;;  %v2873_v33 = vld [vmem:[%s4433_s1 + $0x1f4] ss:$8 sps:$4 sm:$0xff]   ;;  %v2876_v35 = vld [vmem:[%s4433_s1 + $0x1f0] ss:$8 sps:$4 sm:$0xff]  }
   0xd   :  { %2029 = vmatprep.subr.bf16.mxu1 %v2843_v13  ;;  %v2877_v36 = vld [vmem:[%s4433_s1 + $0xe4] ss:$8 sps:$4 sm:$0xff]   ;;  %v2881_v38 = vld [vmem:[%s4433_s1 + $0xe0] ss:$8 sps:$4 sm:$0xff]   ;;  %v2883_v40 = vld [vmem:[%s4433_s1 + $0xd4] ss:$8 sps:$4 sm:$0xff]  }
   0xe   :  { %v2879_v37 = vld [vmem:[%s4433_s1 + $0x1e4] ss:$8 sps:$4 sm:$0xff]   ;;  %v2882_v39 = vld [vmem:[%s4433_s1 + $0x1e0] ss:$8 sps:$4 sm:$0xff]   ;;  %v2885_v41 = vld [vmem:[%s4433_s1 + $0x1d4] ss:$8 sps:$4 sm:$0xff]  }
   0xf   :  { %1977 = vmatpush1.bf16.msra.mxu0 %v2845_v14  ;;  %v2887_v42 = vld [vmem:[%s4433_s1 + $0xd0] ss:$8 sps:$4 sm:$0xff]   ;;  %v2889_v44 = vld [vmem:[%s4433_s1 + $0xc4] ss:$8 sps:$4 sm:$0xff]   ;;  %v2893_v46 = vld [vmem:[%s4433_s1 + $0xc0] ss:$8 sps:$4 sm:$0xff]  }
  0x10   :  { %2030 = vmatpush1.bf16.msra.mxu1 %v2846_v15  ;;  %1978 = vmatprep.subr.bf16.mxu0 %v2847_v16  ;;  %v2888_v43 = vld [vmem:[%s4433_s1 + $0x1d0] ss:$8 sps:$4 sm:$0xff]   ;;  %v2891_v45 = vld [vmem:[%s4433_s1 + $0x1c4] ss:$8 sps:$4 sm:$0xff]   ;;  %v2894_v47 = vld [vmem:[%s4433_s1 + $0x1c0] ss:$8 sps:$4 sm:$0xff]  }
  0x11   :  { %2031 = vmatprep.subr.bf16.mxu1 %v2849_v17  ;;  %v2895_v48 = vld [vmem:[%s4433_s1 + $0xb4] ss:$8 sps:$4 sm:$0xff]   ;;  %v2921_v49 = vld [vmem:[%s4434_s0 + $0x4] ss:$72 sps:$4 sm:$0xff]   ;;  %v2899_v52 = vld [vmem:[%s4433_s1 + $0xb0] ss:$8 sps:$4 sm:$0xff]  }
  0x12   :  { %v2897_v50 = vld [vmem:[%s4433_s1 + $0x1b4] ss:$8 sps:$4 sm:$0xff]   ;;  %2002 = vmatprep.mubr.bf16.mxu0 %v2921_v49  ;;  %v2900_v53 = vld [vmem:[%s4433_s1 + $0x1b0] ss:$8 sps:$4 sm:$0xff]   ;;  %v2901_v54 = vld [vmem:[%s4433_s1 + $0xa4] ss:$8 sps:$4 sm:$0xff]  }
  0x13   :  { %1979 = vmatpush1.bf16.msra.mxu0 %v2851_v18  ;;  %v2924_v51 = vld [vmem:[%s4434_s0 + $0xc] ss:$72 sps:$4 sm:$0xff]   ;;  %v2905_v56 = vld [vmem:[%s4433_s1 + $0xa0] ss:$8 sps:$4 sm:$0xff]   ;;  %v2911_v60 = vld [vmem:[%s4433_s1 + $0x90] ss:$8 sps:$4 sm:$0xff]  }
  0x14   :  { %2032 = vmatpush1.bf16.msra.mxu1 %v2852_v19  ;;  %1980 = vmatprep.subr.bf16.mxu0 %v2853_v20  ;;  %v2903_v55 = vld [vmem:[%s4433_s1 + $0x1a4] ss:$8 sps:$4 sm:$0xff]   ;;  %v2906_v57 = vld [vmem:[%s4433_s1 + $0x1a0] ss:$8 sps:$4 sm:$0xff]   ;;  %v2907_v58 = vld [vmem:[%s4433_s1 + $0x94] ss:$8 sps:$4 sm:$0xff]  }
  0x15   :  { %2033 = vmatprep.subr.bf16.mxu1 %v2855_v21  ;;  %2055 = vmatprep.mubr.bf16.mxu1 %v2924_v51  ;;  %v2909_v59 = vld [vmem:[%s4433_s1 + $0x194] ss:$8 sps:$4 sm:$0xff]   ;;  %v2912_v61 = vld [vmem:[%s4433_s1 + $0x190] ss:$8 sps:$4 sm:$0xff]   ;;  %v2913_v62 = vld [vmem:[%s4433_s1 + $0x84] ss:$8 sps:$4 sm:$0xff]  }
  0x16   :  { %v2915_v63 = vld [vmem:[%s4433_s1 + $0x184] ss:$8 sps:$4 sm:$0xff]   ;;  %v2917_v0 = vld [vmem:[%s4433_s1 + $0x80] ss:$8 sps:$4 sm:$0xff]   ;;  %v2927_v2 = vld [vmem:[%s4433_s1 + $0x274] ss:$8 sps:$4 sm:$0xff]  }
  0x17   :  { %1981 = vmatpush1.bf16.msra.mxu0 %v2857_v22  ;;  %v2918_v1 = vld [vmem:[%s4433_s1 + $0x180] ss:$8 sps:$4 sm:$0xff]   ;;  %v2930_v3 = vld [vmem:[%s4433_s1 + $0x374] ss:$8 sps:$4 sm:$0xff]   ;;  %v2925_v6 = vld [vmem:[%s4433_s1 + $0x270] ss:$8 sps:$4 sm:$0xff]  }
  0x18   :  { %2034 = vmatpush1.bf16.msra.mxu1 %v2858_v23  ;;  %1982 = vmatprep.subr.bf16.mxu0 %v2859_v24  ;;  %v2919_v4 = vld [vmem:[%s4434_s0] ss:$72 sps:$4 sm:$0xff]   ;;  %v2928_v7 = vld [vmem:[%s4433_s1 + $0x370] ss:$8 sps:$4 sm:$0xff]   ;;  %v2933_v8 = vld [vmem:[%s4433_s1 + $0x264] ss:$8 sps:$4 sm:$0xff]  }
  0x19   :  { %2035 = vmatprep.subr.bf16.mxu1 %v2861_v25  ;;  %v2922_v5 = vld [vmem:[%s4434_s0 + $0x8] ss:$72 sps:$4 sm:$0xff]   ;;  %v2936_v9 = vld [vmem:[%s4433_s1 + $0x364] ss:$8 sps:$4 sm:$0xff]   ;;  %v2939_v12 = vld [vmem:[%s4433_s1 + $0x254] ss:$8 sps:$4 sm:$0xff]  }
  0x1a   :  { %v2931_v10 = vld [vmem:[%s4433_s1 + $0x260] ss:$8 sps:$4 sm:$0xff]   ;;  %v2942_v13 = vld [vmem:[%s4433_s1 + $0x354] ss:$8 sps:$4 sm:$0xff]   ;;  %v2937_v14 = vld [vmem:[%s4433_s1 + $0x250] ss:$8 sps:$4 sm:$0xff]  }
  0x1b   :  { %1983 = vmatpush1.bf16.msra.mxu0 %v2863_v26  ;;  %v2934_v11 = vld [vmem:[%s4433_s1 + $0x360] ss:$8 sps:$4 sm:$0xff]   ;;  %v2940_v15 = vld [vmem:[%s4433_s1 + $0x350] ss:$8 sps:$4 sm:$0xff]   ;;  %v2945_v16 = vld [vmem:[%s4433_s1 + $0x244] ss:$8 sps:$4 sm:$0xff]  }
  0x1c   :  { %2036 = vmatpush1.bf16.msra.mxu1 %v2864_v27  ;;  %1984 = vmatprep.subr.bf16.mxu0 %v2865_v28  ;;  %v2948_v17 = vld [vmem:[%s4433_s1 + $0x344] ss:$8 sps:$4 sm:$0xff]   ;;  %v2943_v18 = vld [vmem:[%s4433_s1 + $0x240] ss:$8 sps:$4 sm:$0xff]   ;;  %v2951_v20 = vld [vmem:[%s4433_s1 + $0x234] ss:$8 sps:$4 sm:$0xff]  }
  0x1d   :  { %2037 = vmatprep.subr.bf16.mxu1 %v2867_v29  ;;  %v2946_v19 = vld [vmem:[%s4433_s1 + $0x340] ss:$8 sps:$4 sm:$0xff]   ;;  %v2954_v21 = vld [vmem:[%s4433_s1 + $0x334] ss:$8 sps:$4 sm:$0xff]   ;;  %v2949_v23 = vld [vmem:[%s4433_s1 + $0x230] ss:$8 sps:$4 sm:$0xff]  }
  0x1e   :  { %v2997_v22 = vld [vmem:[%s4434_s0 + $0x94] ss:$72 sps:$4 sm:$0xff]   ;;  %v2952_v24 = vld [vmem:[%s4433_s1 + $0x330] ss:$8 sps:$4 sm:$0xff]   ;;  %v2957_v25 = vld [vmem:[%s4433_s1 + $0x224] ss:$8 sps:$4 sm:$0xff]  }
  0x1f   :  { %1985 = vmatpush1.bf16.msra.mxu0 %v2869_v30  ;;  %v2960_v26 = vld [vmem:[%s4433_s1 + $0x324] ss:$8 sps:$4 sm:$0xff]   ;;  %v3005_v27 = vld [vmem:[%s4434_s0 + $0x90] ss:$72 sps:$4 sm:$0xff]   ;;  %v2955_v28 = vld [vmem:[%s4433_s1 + $0x220] ss:$8 sps:$4 sm:$0xff]  }
  0x20   :  { %2038 = vmatpush1.bf16.msra.mxu1 %v2870_v31  ;;  %1986 = vmatprep.subr.bf16.mxu0 %v2871_v32  ;;  %v3006_v29 = vld [vmem:[%s4434_s0 + $0x9c] ss:$72 sps:$4 sm:$0xff]   ;;  %v2958_v30 = vld [vmem:[%s4433_s1 + $0x320] ss:$8 sps:$4 sm:$0xff]  }
  0x21   :  { %2039 = vmatprep.subr.bf16.mxu1 %v2873_v33  ;;  %v3008_v31 = vld [vmem:[%s4434_s0 + $0x98] ss:$72 sps:$4 sm:$0xff]   ;;  %v2963_v32 = vld [vmem:[%s4433_s1 + $0x214] ss:$8 sps:$4 sm:$0xff]  }
  0x22   :  { %v2966_v33 = vld [vmem:[%s4433_s1 + $0x314] ss:$8 sps:$4 sm:$0xff]   ;;  %v2982_v49 = vld [vmem:[%s4433_s1 + $0x3e0] ss:$8 sps:$4 sm:$0xff]  }
  0x23   :  { %1987 = vmatpush2.bf16.msra.mxu0 %v2875_v34  ;;  %v2961_v34 = vld [vmem:[%s4433_s1 + $0x210] ss:$8 sps:$4 sm:$0xff]   ;;  %v2990_v51 = vld [vmem:[%s4433_s1 + $0x3d4] ss:$8 sps:$4 sm:$0xff]  }
  0x24   :  { %2040 = vmatpush2.bf16.msra.mxu1 %v2876_v35  ;;  %1988 = vmatprep.subr.bf16.mxu0 %v2877_v36  ;;  %v2964_v35 = vld [vmem:[%s4433_s1 + $0x310] ss:$8 sps:$4 sm:$0xff]   ;;  %v2969_v36 = vld [vmem:[%s4433_s1 + $0x204] ss:$8 sps:$4 sm:$0xff]  }
  0x25   :  { %2041 = vmatprep.subr.bf16.mxu1 %v2879_v37  ;;  %v2972_v37 = vld [vmem:[%s4433_s1 + $0x304] ss:$8 sps:$4 sm:$0xff]  }
  0x27   :  { %1989 = vmatpush2.bf16.msra.mxu0 %v2881_v38  ;;  %v2967_v38 = vld [vmem:[%s4433_s1 + $0x200] ss:$8 sps:$4 sm:$0xff]  }
  0x28   :  { %2042 = vmatpush2.bf16.msra.mxu1 %v2882_v39  ;;  %1990 = vmatprep.subr.bf16.mxu0 %v2883_v40  ;;  %v2970_v39 = vld [vmem:[%s4433_s1 + $0x300] ss:$8 sps:$4 sm:$0xff]   ;;  %v2975_v40 = vld [vmem:[%s4433_s1 + $0x2f4] ss:$8 sps:$4 sm:$0xff]  }
  0x29   :  { %2043 = vmatprep.subr.bf16.mxu1 %v2885_v41  ;;  %v3029_v41 = vld [vmem:[%s4434_s0 + $0x14] ss:$72 sps:$4 sm:$0xff]  }
  0x2b   :  { %1991 = vmatpush2.bf16.msra.mxu0 %v2887_v42  ;;  %v2978_v42 = vld [vmem:[%s4433_s1 + $0x3f4] ss:$8 sps:$4 sm:$0xff]  }
  0x2c   :  { %2044 = vmatpush2.bf16.msra.mxu1 %v2888_v43  ;;  %1992 = vmatprep.subr.bf16.mxu0 %v2889_v44  ;;  %v3032_v43 = vld [vmem:[%s4434_s0 + $0x1c] ss:$72 sps:$4 sm:$0xff]   ;;  %v2973_v44 = vld [vmem:[%s4433_s1 + $0x2f0] ss:$8 sps:$4 sm:$0xff]  }
  0x2d   :  { %2045 = vmatprep.subr.bf16.mxu1 %v2891_v45  ;;  %v2976_v45 = vld [vmem:[%s4433_s1 + $0x3f0] ss:$8 sps:$4 sm:$0xff]  }
  0x2f   :  { %1993 = vmatpush2.bf16.msra.mxu0 %v2893_v46  ;;  %v2981_v46 = vld [vmem:[%s4433_s1 + $0x2e4] ss:$8 sps:$4 sm:$0xff]  }
  0x30   :  { %2046 = vmatpush2.bf16.msra.mxu1 %v2894_v47  ;;  %1994 = vmatprep.subr.bf16.mxu0 %v2895_v48  ;;  %v2984_v47 = vld [vmem:[%s4433_s1 + $0x3e4] ss:$8 sps:$4 sm:$0xff]   ;;  %v2979_v48 = vld [vmem:[%s4433_s1 + $0x2e0] ss:$8 sps:$4 sm:$0xff]  }
  0x31   :  { %2047 = vmatprep.subr.bf16.mxu1 %v2897_v50  ;;  %v2987_v50 = vld [vmem:[%s4433_s1 + $0x2d4] ss:$8 sps:$4 sm:$0xff]  }
  0x33   :  { %1995 = vmatpush2.bf16.msra.mxu0 %v2899_v52  ;;  %v2985_v52 = vld [vmem:[%s4433_s1 + $0x2d0] ss:$8 sps:$4 sm:$0xff]  }
  0x34   :  { %2048 = vmatpush2.bf16.msra.mxu1 %v2900_v53  ;;  %1996 = vmatprep.subr.bf16.mxu0 %v2901_v54  ;;  %v2988_v53 = vld [vmem:[%s4433_s1 + $0x3d0] ss:$8 sps:$4 sm:$0xff]   ;;  %v2993_v54 = vld [vmem:[%s4433_s1 + $0x2c4] ss:$8 sps:$4 sm:$0xff]  }
  0x35   :  { %2049 = vmatprep.subr.bf16.mxu1 %v2903_v55  ;;  %v2996_v55 = vld [vmem:[%s4433_s1 + $0x3c4] ss:$8 sps:$4 sm:$0xff]  }
  0x37   :  { %1997 = vmatpush2.bf16.msra.mxu0 %v2905_v56  ;;  %v2991_v56 = vld [vmem:[%s4433_s1 + $0x2c0] ss:$8 sps:$4 sm:$0xff]  }
  0x38   :  { %2050 = vmatpush2.bf16.msra.mxu1 %v2906_v57  ;;  %1998 = vmatprep.subr.bf16.mxu0 %v2907_v58  ;;  %v2994_v57 = vld [vmem:[%s4433_s1 + $0x3c0] ss:$8 sps:$4 sm:$0xff]   ;;  %v3001_v58 = vld [vmem:[%s4433_s1 + $0x2b4] ss:$8 sps:$4 sm:$0xff]  }
  0x39   :  { %2051 = vmatprep.subr.bf16.mxu1 %v2909_v59  ;;  %v3004_v59 = vld [vmem:[%s4433_s1 + $0x3b4] ss:$8 sps:$4 sm:$0xff]  }
  0x3b   :  { %1999 = vmatpush2.bf16.msra.mxu0 %v2911_v60  ;;  %v2999_v60 = vld [vmem:[%s4433_s1 + $0x2b0] ss:$8 sps:$4 sm:$0xff]  }
  0x3c   :  { %2052 = vmatpush2.bf16.msra.mxu1 %v2912_v61  ;;  %2000 = vmatprep.subr.bf16.mxu0 %v2913_v62  ;;  %v3002_v61 = vld [vmem:[%s4433_s1 + $0x3b0] ss:$8 sps:$4 sm:$0xff]   ;;  %v3011_v62 = vld [vmem:[%s4433_s1 + $0x2a4] ss:$8 sps:$4 sm:$0xff]  }
  0x3d   :  { %2053 = vmatprep.subr.bf16.mxu1 %v2915_v63  ;;  %v3014_v63 = vld [vmem:[%s4433_s1 + $0x3a4] ss:$8 sps:$4 sm:$0xff]  }
  0x3f   :  { %2001 = vmatpush2.bf16.msra.mxu0 %v2917_v0  ;;  %v3009_v0 = vld [vmem:[%s4433_s1 + $0x2a0] ss:$8 sps:$4 sm:$0xff]  }
  0x40   :  { %2054 = vmatpush2.bf16.msra.mxu1 %v2918_v1  ;;  %2076 = vmatprep.subr.bf16.mxu0 %v2927_v2  ;;  %v3012_v1 = vld [vmem:[%s4433_s1 + $0x3a0] ss:$8 sps:$4 sm:$0xff]   ;;  %v3017_v2 = vld [vmem:[%s4433_s1 + $0x294] ss:$8 sps:$4 sm:$0xff]  }
  0x41   :  { %2129 = vmatprep.subr.bf16.mxu1 %v2930_v3  ;;  %v3020_v3 = vld [vmem:[%s4433_s1 + $0x394] ss:$8 sps:$4 sm:$0xff]  }
  0x42   :  { %2003 = vmatmul.mubr.bf16.vlgmr.msra.gmra.mxu0 %v2919_v4  ;;  %v3015_v4 = vld [vmem:[%s4433_s1 + $0x290] ss:$8 sps:$4 sm:$0xff]  }
  0x43   :  { %2056 = vmatmul.mubr.bf16.vlgmr.msra.gmra.mxu1 %v2922_v5  ;;  %2077 = vmatpush1.bf16.msra.mxu0 %v2925_v6  ;;  %v3018_v5 = vld [vmem:[%s4433_s1 + $0x390] ss:$8 sps:$4 sm:$0xff]   ;;  %v3023_v6 = vld [vmem:[%s4433_s1 + $0x284] ss:$8 sps:$4 sm:$0xff]  }
  0x44   :  { %2130 = vmatpush1.bf16.msra.mxu1 %v2928_v7  ;;  %2078 = vmatprep.subr.bf16.mxu0 %v2933_v8  ;;  %v3026_v7 = vld [vmem:[%s4433_s1 + $0x384] ss:$8 sps:$4 sm:$0xff]   ;;  %v3021_v8 = vld [vmem:[%s4433_s1 + $0x280] ss:$8 sps:$4 sm:$0xff]  }
  0x45   :  { %2131 = vmatprep.subr.bf16.mxu1 %v2936_v9  ;;  %2012 = vmatprep.mubr.bf16.mxu0 %v2997_v22  ;;  %v3024_v9 = vld [vmem:[%s4433_s1 + $0x380] ss:$8 sps:$4 sm:$0xff]   ;;  %v3050_v22 = vld [vmem:[%s4433_s1 + $0x454] ss:$8 sps:$4 sm:$0xff]  }
  0x46   :  { %2065 = vmatprep.mubr.bf16.mxu1 %v3006_v29  ;;  %v3062_v29 = vld [vmem:[%s4433_s1 + $0x544] ss:$8 sps:$4 sm:$0xff]  }
  0x47   :  { %2079 = vmatpush1.bf16.msra.mxu0 %v2931_v10  ;;  %v3035_v10 = vld [vmem:[%s4433_s1 + $0x474] ss:$8 sps:$4 sm:$0xff]  }
  0x48   :  { %2132 = vmatpush1.bf16.msra.mxu1 %v2934_v11  ;;  %2080 = vmatprep.subr.bf16.mxu0 %v2939_v12  ;;  %v3038_v11 = vld [vmem:[%s4433_s1 + $0x574] ss:$8 sps:$4 sm:$0xff]   ;;  %v3027_v12 = vld [vmem:[%s4434_s0 + $0x10] ss:$72 sps:$4 sm:$0xff]  }
  0x49   :  { %2133 = vmatprep.subr.bf16.mxu1 %v2942_v13  ;;  %v3030_v13 = vld [vmem:[%s4434_s0 + $0x18] ss:$72 sps:$4 sm:$0xff]  }
  0x4a   :  { %2013 = vmatmul.mubr.bf16.gmra.mxu0 %v3005_v27  ;;  %v3056_v27 = vld [vmem:[%s4434_s0 + $0xa8] ss:$72 sps:$4 sm:$0xff]  }
  0x4b   :  { %2081 = vmatpush1.bf16.msra.mxu0 %v2937_v14  ;;  %2066 = vmatmul.mubr.bf16.gmra.mxu1 %v3008_v31  ;;  %v3033_v14 = vld [vmem:[%s4433_s1 + $0x470] ss:$8 sps:$4 sm:$0xff]   ;;  %v3060_v31 = vld [vmem:[%s4433_s1 + $0x540] ss:$8 sps:$4 sm:$0xff]  }
  0x4c   :  { %2134 = vmatpush1.bf16.msra.mxu1 %v2940_v15  ;;  %2082 = vmatprep.subr.bf16.mxu0 %v2945_v16  ;;  %v3036_v15 = vld [vmem:[%s4433_s1 + $0x570] ss:$8 sps:$4 sm:$0xff]   ;;  %v3041_v16 = vld [vmem:[%s4433_s1 + $0x464] ss:$8 sps:$4 sm:$0xff]  }
  0x4d   :  { %2135 = vmatprep.subr.bf16.mxu1 %v2948_v17  ;;  %2108 = vmatprep.mubr.bf16.mxu0 %v3029_v41  ;;  %v3044_v17 = vld [vmem:[%s4433_s1 + $0x564] ss:$8 sps:$4 sm:$0xff]   ;;  %v3072_v41 = vld [vmem:[%s4433_s1 + $0x520] ss:$8 sps:$4 sm:$0xff]  }
  0x4e   :  { %2161 = vmatprep.mubr.bf16.mxu1 %v3032_v43  ;;  %v3080_v43 = vld [vmem:[%s4433_s1 + $0x514] ss:$8 sps:$4 sm:$0xff]  }
  0x4f   :  { %2083 = vmatpush1.bf16.msra.mxu0 %v2943_v18  ;;  %v3045_v18 = vld [vmem:[%s4434_s0 + $0xa4] ss:$72 sps:$4 sm:$0xff]  }
  0x50   :  { %2136 = vmatpush1.bf16.msra.mxu1 %v2946_v19  ;;  %2084 = vmatprep.subr.bf16.mxu0 %v2951_v20  ;;  %v3054_v19 = vld [vmem:[%s4434_s0 + $0xac] ss:$72 sps:$4 sm:$0xff]   ;;  %v3039_v20 = vld [vmem:[%s4433_s1 + $0x460] ss:$8 sps:$4 sm:$0xff]  }
  0x51   :  { %2137 = vmatprep.subr.bf16.mxu1 %v2954_v21  ;;  %v3042_v21 = vld [vmem:[%s4433_s1 + $0x560] ss:$8 sps:$4 sm:$0xff]  }
  0x53   :  { %2085 = vmatpush1.bf16.msra.mxu0 %v2949_v23  ;;  %v3053_v23 = vld [vmem:[%s4433_s1 + $0x554] ss:$8 sps:$4 sm:$0xff]  }
  0x54   :  { %2138 = vmatpush1.bf16.msra.mxu1 %v2952_v24  ;;  %2086 = vmatprep.subr.bf16.mxu0 %v2957_v25  ;;  %v3047_v24 = vld [vmem:[%s4434_s0 + $0xa0] ss:$72 sps:$4 sm:$0xff]   ;;  %v3048_v25 = vld [vmem:[%s4433_s1 + $0x450] ss:$8 sps:$4 sm:$0xff]  }
  0x55   :  { %2139 = vmatprep.subr.bf16.mxu1 %v2960_v26  ;;  %v3051_v26 = vld [vmem:[%s4433_s1 + $0x550] ss:$8 sps:$4 sm:$0xff]  }
  0x57   :  { %2087 = vmatpush1.bf16.msra.mxu0 %v2955_v28  ;;  %v3059_v28 = vld [vmem:[%s4433_s1 + $0x444] ss:$8 sps:$4 sm:$0xff]  }
  0x58   :  { %2140 = vmatpush1.bf16.msra.mxu1 %v2958_v30  ;;  %2088 = vmatprep.subr.bf16.mxu0 %v2963_v32  ;;  %v3057_v30 = vld [vmem:[%s4433_s1 + $0x440] ss:$8 sps:$4 sm:$0xff]   ;;  %v3065_v32 = vld [vmem:[%s4433_s1 + $0x434] ss:$8 sps:$4 sm:$0xff]  }
  0x59   :  { %2141 = vmatprep.subr.bf16.mxu1 %v2966_v33  ;;  %v3137_v33 = vld [vmem:[%s4434_s0 + $0x24] ss:$72 sps:$4 sm:$0xff]  }
  0x5b   :  { %2089 = vmatpush1.bf16.msra.mxu0 %v2961_v34  ;;  %v3068_v34 = vld [vmem:[%s4433_s1 + $0x534] ss:$8 sps:$4 sm:$0xff]  }
  0x5c   :  { %2142 = vmatpush1.bf16.msra.mxu1 %v2964_v35  ;;  %2090 = vmatprep.subr.bf16.mxu0 %v2969_v36  ;;  %v3140_v35 = vld [vmem:[%s4434_s0 + $0x2c] ss:$72 sps:$4 sm:$0xff]   ;;  %v3063_v36 = vld [vmem:[%s4433_s1 + $0x430] ss:$8 sps:$4 sm:$0xff]  }
  0x5d   :  { %2143 = vmatprep.subr.bf16.mxu1 %v2972_v37  ;;  %v3066_v37 = vld [vmem:[%s4433_s1 + $0x530] ss:$8 sps:$4 sm:$0xff]  }
  0x5f   :  { %2091 = vmatpush1.bf16.msra.mxu0 %v2967_v38  ;;  %v3071_v38 = vld [vmem:[%s4433_s1 + $0x424] ss:$8 sps:$4 sm:$0xff]  }
  0x60   :  { %2144 = vmatpush1.bf16.msra.mxu1 %v2970_v39  ;;  %2092 = vmatprep.subr.bf16.mxu0 %v2975_v40  ;;  %v3074_v39 = vld [vmem:[%s4433_s1 + $0x524] ss:$8 sps:$4 sm:$0xff]   ;;  %v3069_v40 = vld [vmem:[%s4433_s1 + $0x420] ss:$8 sps:$4 sm:$0xff]  }
  0x61   :  { %2145 = vmatprep.subr.bf16.mxu1 %v2978_v42  ;;  %v3077_v42 = vld [vmem:[%s4433_s1 + $0x414] ss:$8 sps:$4 sm:$0xff]  }
  0x63   :  { %2093 = vmatpush2.bf16.msra.mxu0 %v2973_v44  ;;  %v3075_v44 = vld [vmem:[%s4433_s1 + $0x410] ss:$8 sps:$4 sm:$0xff]  }
  0x64   :  { %2146 = vmatpush2.bf16.msra.mxu1 %v2976_v45  ;;  %2094 = vmatprep.subr.bf16.mxu0 %v2981_v46  ;;  %v3078_v45 = vld [vmem:[%s4433_s1 + $0x510] ss:$8 sps:$4 sm:$0xff]   ;;  %v3083_v46 = vld [vmem:[%s4433_s1 + $0x404] ss:$8 sps:$4 sm:$0xff]  }
  0x65   :  { %2147 = vmatprep.subr.bf16.mxu1 %v2984_v47  ;;  %v3086_v47 = vld [vmem:[%s4433_s1 + $0x504] ss:$8 sps:$4 sm:$0xff]  }
  0x67   :  { %2095 = vmatpush2.bf16.msra.mxu0 %v2979_v48  ;;  %v3081_v48 = vld [vmem:[%s4433_s1 + $0x400] ss:$8 sps:$4 sm:$0xff]  }
  0x68   :  { %2148 = vmatpush2.bf16.msra.mxu1 %v2982_v49  ;;  %2096 = vmatprep.subr.bf16.mxu0 %v2987_v50  ;;  %v3084_v49 = vld [vmem:[%s4433_s1 + $0x500] ss:$8 sps:$4 sm:$0xff]   ;;  %v3089_v50 = vld [vmem:[%s4433_s1 + $0x4f4] ss:$8 sps:$4 sm:$0xff]  }
  0x69   :  { %2149 = vmatprep.subr.bf16.mxu1 %v2990_v51  ;;  %v3092_v51 = vld [vmem:[%s4433_s1 + $0x5f4] ss:$8 sps:$4 sm:$0xff]  }
  0x6b   :  { %2097 = vmatpush2.bf16.msra.mxu0 %v2985_v52  ;;  %v3087_v52 = vld [vmem:[%s4433_s1 + $0x4f0] ss:$8 sps:$4 sm:$0xff]  }
  0x6c   :  { %2150 = vmatpush2.bf16.msra.mxu1 %v2988_v53  ;;  %2098 = vmatprep.subr.bf16.mxu0 %v2993_v54  ;;  %v3090_v53 = vld [vmem:[%s4433_s1 + $0x5f0] ss:$8 sps:$4 sm:$0xff]   ;;  %v3095_v54 = vld [vmem:[%s4433_s1 + $0x4e4] ss:$8 sps:$4 sm:$0xff]  }
  0x6d   :  { %2151 = vmatprep.subr.bf16.mxu1 %v2996_v55  ;;  %v3098_v55 = vld [vmem:[%s4433_s1 + $0x5e4] ss:$8 sps:$4 sm:$0xff]  }
  0x6f   :  { %2099 = vmatpush2.bf16.msra.mxu0 %v2991_v56  ;;  %v3093_v56 = vld [vmem:[%s4433_s1 + $0x4e0] ss:$8 sps:$4 sm:$0xff]  }
  0x70   :  { %2152 = vmatpush2.bf16.msra.mxu1 %v2994_v57  ;;  %2100 = vmatprep.subr.bf16.mxu0 %v3001_v58  ;;  %v3096_v57 = vld [vmem:[%s4433_s1 + $0x5e0] ss:$8 sps:$4 sm:$0xff]   ;;  %v3101_v58 = vld [vmem:[%s4433_s1 + $0x4d4] ss:$8 sps:$4 sm:$0xff]  }
  0x71   :  { %2153 = vmatprep.subr.bf16.mxu1 %v3004_v59  ;;  %v3104_v59 = vld [vmem:[%s4433_s1 + $0x5d4] ss:$8 sps:$4 sm:$0xff]  }
  0x73   :  { %2101 = vmatpush2.bf16.msra.mxu0 %v2999_v60  ;;  %v3099_v60 = vld [vmem:[%s4433_s1 + $0x4d0] ss:$8 sps:$4 sm:$0xff]  }
  0x74   :  { %2154 = vmatpush2.bf16.msra.mxu1 %v3002_v61  ;;  %2102 = vmatprep.subr.bf16.mxu0 %v3011_v62  ;;  %v3102_v61 = vld [vmem:[%s4433_s1 + $0x5d0] ss:$8 sps:$4 sm:$0xff]   ;;  %v3107_v62 = vld [vmem:[%s4433_s1 + $0x4c4] ss:$8 sps:$4 sm:$0xff]  }
  0x75   :  { %2155 = vmatprep.subr.bf16.mxu1 %v3014_v63  ;;  %v3110_v63 = vld [vmem:[%s4433_s1 + $0x5c4] ss:$8 sps:$4 sm:$0xff]  }
  0x77   :  { %2103 = vmatpush2.bf16.msra.mxu0 %v3009_v0  ;;  %v3105_v0 = vld [vmem:[%s4433_s1 + $0x4c0] ss:$8 sps:$4 sm:$0xff]  }
  0x78   :  { %2156 = vmatpush2.bf16.msra.mxu1 %v3012_v1  ;;  %2104 = vmatprep.subr.bf16.mxu0 %v3017_v2  ;;  %v3108_v1 = vld [vmem:[%s4433_s1 + $0x5c0] ss:$8 sps:$4 sm:$0xff]   ;;  %v3113_v2 = vld [vmem:[%s4433_s1 + $0x4b4] ss:$8 sps:$4 sm:$0xff]  }
  0x79   :  { %2157 = vmatprep.subr.bf16.mxu1 %v3020_v3  ;;  %v3116_v3 = vld [vmem:[%s4433_s1 + $0x5b4] ss:$8 sps:$4 sm:$0xff]  }
  0x7b   :  { %2105 = vmatpush2.bf16.msra.mxu0 %v3015_v4  ;;  %v3111_v4 = vld [vmem:[%s4433_s1 + $0x4b0] ss:$8 sps:$4 sm:$0xff]  }
  0x7c   :  { %2158 = vmatpush2.bf16.msra.mxu1 %v3018_v5  ;;  %2106 = vmatprep.subr.bf16.mxu0 %v3023_v6  ;;  %v3114_v5 = vld [vmem:[%s4433_s1 + $0x5b0] ss:$8 sps:$4 sm:$0xff]   ;;  %v3119_v6 = vld [vmem:[%s4433_s1 + $0x4a4] ss:$8 sps:$4 sm:$0xff]  }
  0x7d   :  { %2159 = vmatprep.subr.bf16.mxu1 %v3026_v7  ;;  %v3122_v7 = vld [vmem:[%s4433_s1 + $0x5a4] ss:$8 sps:$4 sm:$0xff]  }
  0x7f   :  { %2107 = vmatpush2.bf16.msra.mxu0 %v3021_v8  ;;  %v3117_v8 = vld [vmem:[%s4433_s1 + $0x4a0] ss:$8 sps:$4 sm:$0xff]  }
  0x80   :  { %2160 = vmatpush2.bf16.msra.mxu1 %v3024_v9  ;;  %2182 = vmatprep.subr.bf16.mxu0 %v3035_v10  ;;  %v3120_v9 = vld [vmem:[%s4433_s1 + $0x5a0] ss:$8 sps:$4 sm:$0xff]   ;;  %v3125_v10 = vld [vmem:[%s4433_s1 + $0x494] ss:$8 sps:$4 sm:$0xff]  }
  0x81   :  { %2235 = vmatprep.subr.bf16.mxu1 %v3038_v11  ;;  %v3128_v11 = vld [vmem:[%s4433_s1 + $0x594] ss:$8 sps:$4 sm:$0xff]  }
  0x82   :  { %2109 = vmatmul.mubr.bf16.vlgmr.msra.gmra.mxu0 %v3027_v12  ;;  %v3123_v12 = vld [vmem:[%s4433_s1 + $0x490] ss:$8 sps:$4 sm:$0xff]  }
  0x83   :  { %2162 = vmatmul.mubr.bf16.vlgmr.msra.gmra.mxu1 %v3030_v13  ;;  %2183 = vmatpush1.bf16.msra.mxu0 %v3033_v14  ;;  %v3126_v13 = vld [vmem:[%s4433_s1 + $0x590] ss:$8 sps:$4 sm:$0xff]   ;;  %v3131_v14 = vld [vmem:[%s4433_s1 + $0x484] ss:$8 sps:$4 sm:$0xff]  }
  0x84   :  { %2236 = vmatpush1.bf16.msra.mxu1 %v3036_v15  ;;  %2184 = vmatprep.subr.bf16.mxu0 %v3041_v16  ;;  %v3134_v15 = vld [vmem:[%s4433_s1 + $0x584] ss:$8 sps:$4 sm:$0xff]   ;;  %v3129_v16 = vld [vmem:[%s4433_s1 + $0x480] ss:$8 sps:$4 sm:$0xff]  }
  0x85   :  { %2237 = vmatprep.subr.bf16.mxu1 %v3044_v17  ;;  %2118 = vmatprep.mubr.bf16.mxu0 %v3045_v18  ;;  %v3132_v17 = vld [vmem:[%s4433_s1 + $0x580] ss:$8 sps:$4 sm:$0xff]   ;;  %v3143_v18 = vld [vmem:[%s4433_s1 + $0x674] ss:$8 sps:$4 sm:$0xff]  }
  0x86   :  { %2171 = vmatprep.mubr.bf16.mxu1 %v3054_v19  ;;  %v3146_v19 = vld [vmem:[%s4433_s1 + $0x774] ss:$8 sps:$4 sm:$0xff]  }
  0x87   :  { %2185 = vmatpush1.bf16.msra.mxu0 %v3039_v20  ;;  %v3135_v20 = vld [vmem:[%s4434_s0 + $0x20] ss:$72 sps:$4 sm:$0xff]  }
  0x88   :  { %2238 = vmatpush1.bf16.msra.mxu1 %v3042_v21  ;;  %2186 = vmatprep.subr.bf16.mxu0 %v3050_v22  ;;  %v3138_v21 = vld [vmem:[%s4434_s0 + $0x28] ss:$72 sps:$4 sm:$0xff]  }
  0x89   :  { %2239 = vmatprep.subr.bf16.mxu1 %v3053_v23  ;;  %v3141_v22 = vld [vmem:[%s4433_s1 + $0x670] ss:$8 sps:$4 sm:$0xff]  }
  0x8a   :  { %2119 = vmatmul.mubr.bf16.gmra.mxu0 %v3047_v24  ;;  %v3144_v23 = vld [vmem:[%s4433_s1 + $0x770] ss:$8 sps:$4 sm:$0xff]   ;;  %v3149_v24 = vld [vmem:[%s4433_s1 + $0x664] ss:$8 sps:$4 sm:$0xff]  }
  0x8b   :  { %2172 = vmatmul.mubr.bf16.gmra.mxu1 %v3056_v27  ;;  %2187 = vmatpush1.bf16.msra.mxu0 %v3048_v25  ;;  %v3152_v25 = vld [vmem:[%s4433_s1 + $0x764] ss:$8 sps:$4 sm:$0xff]  }
  0x8c   :  { %2240 = vmatpush1.bf16.msra.mxu1 %v3051_v26  ;;  %2188 = vmatprep.subr.bf16.mxu0 %v3059_v28  ;;  %v3153_v26 = vld [vmem:[%s4434_s0 + $0xb4] ss:$72 sps:$4 sm:$0xff]   ;;  %v3147_v28 = vld [vmem:[%s4433_s1 + $0x660] ss:$8 sps:$4 sm:$0xff]  }
  0x8d   :  { %2241 = vmatprep.subr.bf16.mxu1 %v3062_v29  ;;  %2214 = vmatprep.mubr.bf16.mxu0 %v3137_v33  ;;  %v3162_v27 = vld [vmem:[%s4434_s0 + $0xbc] ss:$72 sps:$4 sm:$0xff]   ;;  %v3150_v29 = vld [vmem:[%s4433_s1 + $0x760] ss:$8 sps:$4 sm:$0xff]   ;;  %v3156_v33 = vld [vmem:[%s4433_s1 + $0x650] ss:$8 sps:$4 sm:$0xff]  }
  0x8e   :  { %2267 = vmatprep.mubr.bf16.mxu1 %v3140_v35  ;;  %v3159_v35 = vld [vmem:[%s4433_s1 + $0x750] ss:$8 sps:$4 sm:$0xff]  }
  0x8f   :  { %2189 = vmatpush1.bf16.msra.mxu0 %v3057_v30  ;;  %v3158_v30 = vld [vmem:[%s4433_s1 + $0x654] ss:$8 sps:$4 sm:$0xff]  }
  0x90   :  { %2242 = vmatpush1.bf16.msra.mxu1 %v3060_v31  ;;  %2190 = vmatprep.subr.bf16.mxu0 %v3065_v32  ;;  %v3161_v31 = vld [vmem:[%s4433_s1 + $0x754] ss:$8 sps:$4 sm:$0xff]   ;;  %v3155_v32 = vld [vmem:[%s4434_s0 + $0xb0] ss:$72 sps:$4 sm:$0xff]  }
  0x91   :  { %2243 = vmatprep.subr.bf16.mxu1 %v3068_v34  ;;  %v3164_v34 = vld [vmem:[%s4434_s0 + $0xb8] ss:$72 sps:$4 sm:$0xff]  }
  0x93   :  { %2191 = vmatpush1.bf16.msra.mxu0 %v3063_v36  ;;  %v3167_v36 = vld [vmem:[%s4433_s1 + $0x644] ss:$8 sps:$4 sm:$0xff]  }
  0x94   :  { %2244 = vmatpush1.bf16.msra.mxu1 %v3066_v37  ;;  %2192 = vmatprep.subr.bf16.mxu0 %v3071_v38  ;;  %v3170_v37 = vld [vmem:[%s4433_s1 + $0x744] ss:$8 sps:$4 sm:$0xff]   ;;  %v3245_v38 = vld [vmem:[%s4434_s0 + $0x34] ss:$72 sps:$4 sm:$0xff]  }
  0x95   :  { %2245 = vmatprep.subr.bf16.mxu1 %v3074_v39  ;;  %v3248_v39 = vld [vmem:[%s4434_s0 + $0x3c] ss:$72 sps:$4 sm:$0xff]  }
  0x97   :  { %2193 = vmatpush1.bf16.msra.mxu0 %v3069_v40  ;;  %v3165_v40 = vld [vmem:[%s4433_s1 + $0x640] ss:$8 sps:$4 sm:$0xff]  }
  0x98   :  { %2246 = vmatpush1.bf16.msra.mxu1 %v3072_v41  ;;  %2194 = vmatprep.subr.bf16.mxu0 %v3077_v42  ;;  %v3168_v41 = vld [vmem:[%s4433_s1 + $0x740] ss:$8 sps:$4 sm:$0xff]   ;;  %v3173_v42 = vld [vmem:[%s4433_s1 + $0x634] ss:$8 sps:$4 sm:$0xff]  }
  0x99   :  { %2247 = vmatprep.subr.bf16.mxu1 %v3080_v43  ;;  %v3176_v43 = vld [vmem:[%s4433_s1 + $0x734] ss:$8 sps:$4 sm:$0xff]  }
  0x9b   :  { %2195 = vmatpush1.bf16.msra.mxu0 %v3075_v44  ;;  %v3171_v44 = vld [vmem:[%s4433_s1 + $0x630] ss:$8 sps:$4 sm:$0xff]  }
  0x9c   :  { %2248 = vmatpush1.bf16.msra.mxu1 %v3078_v45  ;;  %2196 = vmatprep.subr.bf16.mxu0 %v3083_v46  ;;  %v3174_v45 = vld [vmem:[%s4433_s1 + $0x730] ss:$8 sps:$4 sm:$0xff]   ;;  %v3179_v46 = vld [vmem:[%s4433_s1 + $0x624] ss:$8 sps:$4 sm:$0xff]  }
  0x9d   :  { %2249 = vmatprep.subr.bf16.mxu1 %v3086_v47  ;;  %v3182_v47 = vld [vmem:[%s4433_s1 + $0x724] ss:$8 sps:$4 sm:$0xff]  }
  0x9f   :  { %2197 = vmatpush1.bf16.msra.mxu0 %v3081_v48  ;;  %v3177_v48 = vld [vmem:[%s4433_s1 + $0x620] ss:$8 sps:$4 sm:$0xff]  }
  0xa0   :  { %2250 = vmatpush1.bf16.msra.mxu1 %v3084_v49  ;;  %2198 = vmatprep.subr.bf16.mxu0 %v3089_v50  ;;  %v3180_v49 = vld [vmem:[%s4433_s1 + $0x720] ss:$8 sps:$4 sm:$0xff]   ;;  %v3185_v50 = vld [vmem:[%s4433_s1 + $0x614] ss:$8 sps:$4 sm:$0xff]  }
  0xa1   :  { %2251 = vmatprep.subr.bf16.mxu1 %v3092_v51  ;;  %v3188_v51 = vld [vmem:[%s4433_s1 + $0x714] ss:$8 sps:$4 sm:$0xff]  }
  0xa3   :  { %2199 = vmatpush2.bf16.msra.mxu0 %v3087_v52  ;;  %v3183_v52 = vld [vmem:[%s4433_s1 + $0x610] ss:$8 sps:$4 sm:$0xff]  }
  0xa4   :  { %2252 = vmatpush2.bf16.msra.mxu1 %v3090_v53  ;;  %2200 = vmatprep.subr.bf16.mxu0 %v3095_v54  ;;  %v3186_v53 = vld [vmem:[%s4433_s1 + $0x710] ss:$8 sps:$4 sm:$0xff]   ;;  %v3191_v54 = vld [vmem:[%s4433_s1 + $0x604] ss:$8 sps:$4 sm:$0xff]  }
  0xa5   :  { %2253 = vmatprep.subr.bf16.mxu1 %v3098_v55  ;;  %v3194_v55 = vld [vmem:[%s4433_s1 + $0x704] ss:$8 sps:$4 sm:$0xff]  }
  0xa7   :  { %2201 = vmatpush2.bf16.msra.mxu0 %v3093_v56  ;;  %v3189_v56 = vld [vmem:[%s4433_s1 + $0x600] ss:$8 sps:$4 sm:$0xff]  }
  0xa8   :  { %2254 = vmatpush2.bf16.msra.mxu1 %v3096_v57  ;;  %2202 = vmatprep.subr.bf16.mxu0 %v3101_v58  ;;  %v3192_v57 = vld [vmem:[%s4433_s1 + $0x700] ss:$8 sps:$4 sm:$0xff]   ;;  %v3197_v58 = vld [vmem:[%s4433_s1 + $0x6f4] ss:$8 sps:$4 sm:$0xff]  }
  0xa9   :  { %2255 = vmatprep.subr.bf16.mxu1 %v3104_v59  ;;  %v3200_v59 = vld [vmem:[%s4433_s1 + $0x7f4] ss:$8 sps:$4 sm:$0xff]  }
  0xab   :  { %2203 = vmatpush2.bf16.msra.mxu0 %v3099_v60  ;;  %v3195_v60 = vld [vmem:[%s4433_s1 + $0x6f0] ss:$8 sps:$4 sm:$0xff]  }
  0xac   :  { %2256 = vmatpush2.bf16.msra.mxu1 %v3102_v61  ;;  %2204 = vmatprep.subr.bf16.mxu0 %v3107_v62  ;;  %v3198_v61 = vld [vmem:[%s4433_s1 + $0x7f0] ss:$8 sps:$4 sm:$0xff]   ;;  %v3203_v62 = vld [vmem:[%s4433_s1 + $0x6e4] ss:$8 sps:$4 sm:$0xff]  }
  0xad   :  { %2257 = vmatprep.subr.bf16.mxu1 %v3110_v63  ;;  %v3206_v63 = vld [vmem:[%s4433_s1 + $0x7e4] ss:$8 sps:$4 sm:$0xff]  }
  0xaf   :  { %2205 = vmatpush2.bf16.msra.mxu0 %v3105_v0  ;;  %v3201_v0 = vld [vmem:[%s4433_s1 + $0x6e0] ss:$8 sps:$4 sm:$0xff]  }
  0xb0   :  { %2258 = vmatpush2.bf16.msra.mxu1 %v3108_v1  ;;  %2206 = vmatprep.subr.bf16.mxu0 %v3113_v2  ;;  %v3204_v1 = vld [vmem:[%s4433_s1 + $0x7e0] ss:$8 sps:$4 sm:$0xff]   ;;  %v3209_v2 = vld [vmem:[%s4433_s1 + $0x6d4] ss:$8 sps:$4 sm:$0xff]  }
  0xb1   :  { %2259 = vmatprep.subr.bf16.mxu1 %v3116_v3  ;;  %v3212_v3 = vld [vmem:[%s4433_s1 + $0x7d4] ss:$8 sps:$4 sm:$0xff]  }
  0xb3   :  { %2207 = vmatpush2.bf16.msra.mxu0 %v3111_v4  ;;  %v3207_v4 = vld [vmem:[%s4433_s1 + $0x6d0] ss:$8 sps:$4 sm:$0xff]  }
  0xb4   :  { %2260 = vmatpush2.bf16.msra.mxu1 %v3114_v5  ;;  %2208 = vmatprep.subr.bf16.mxu0 %v3119_v6  ;;  %v3210_v5 = vld [vmem:[%s4433_s1 + $0x7d0] ss:$8 sps:$4 sm:$0xff]   ;;  %v3215_v6 = vld [vmem:[%s4433_s1 + $0x6c4] ss:$8 sps:$4 sm:$0xff]  }
  0xb5   :  { %2261 = vmatprep.subr.bf16.mxu1 %v3122_v7  ;;  %v3218_v7 = vld [vmem:[%s4433_s1 + $0x7c4] ss:$8 sps:$4 sm:$0xff]  }
  0xb7   :  { %2209 = vmatpush2.bf16.msra.mxu0 %v3117_v8  ;;  %v3213_v8 = vld [vmem:[%s4433_s1 + $0x6c0] ss:$8 sps:$4 sm:$0xff]  }
  0xb8   :  { %2262 = vmatpush2.bf16.msra.mxu1 %v3120_v9  ;;  %2210 = vmatprep.subr.bf16.mxu0 %v3125_v10  ;;  %v3216_v9 = vld [vmem:[%s4433_s1 + $0x7c0] ss:$8 sps:$4 sm:$0xff]   ;;  %v3221_v10 = vld [vmem:[%s4433_s1 + $0x6b4] ss:$8 sps:$4 sm:$0xff]  }
  0xb9   :  { %2263 = vmatprep.subr.bf16.mxu1 %v3128_v11  ;;  %v3224_v11 = vld [vmem:[%s4433_s1 + $0x7b4] ss:$8 sps:$4 sm:$0xff]  }
  0xbb   :  { %2211 = vmatpush2.bf16.msra.mxu0 %v3123_v12  ;;  %v3219_v12 = vld [vmem:[%s4433_s1 + $0x6b0] ss:$8 sps:$4 sm:$0xff]  }
  0xbc   :  { %2264 = vmatpush2.bf16.msra.mxu1 %v3126_v13  ;;  %2212 = vmatprep.subr.bf16.mxu0 %v3131_v14  ;;  %v3222_v13 = vld [vmem:[%s4433_s1 + $0x7b0] ss:$8 sps:$4 sm:$0xff]   ;;  %v3227_v14 = vld [vmem:[%s4433_s1 + $0x6a4] ss:$8 sps:$4 sm:$0xff]  }
  0xbd   :  { %2265 = vmatprep.subr.bf16.mxu1 %v3134_v15  ;;  %v3230_v15 = vld [vmem:[%s4433_s1 + $0x7a4] ss:$8 sps:$4 sm:$0xff]  }
  0xbf   :  { %2213 = vmatpush2.bf16.msra.mxu0 %v3129_v16  ;;  %v3225_v16 = vld [vmem:[%s4433_s1 + $0x6a0] ss:$8 sps:$4 sm:$0xff]  }
  0xc0   :  { %2266 = vmatpush2.bf16.msra.mxu1 %v3132_v17  ;;  %2288 = vmatprep.subr.bf16.mxu0 %v3143_v18  ;;  %v3228_v17 = vld [vmem:[%s4433_s1 + $0x7a0] ss:$8 sps:$4 sm:$0xff]   ;;  %v3233_v18 = vld [vmem:[%s4433_s1 + $0x694] ss:$8 sps:$4 sm:$0xff]  }
  0xc1   :  { %2341 = vmatprep.subr.bf16.mxu1 %v3146_v19  ;;  %v3236_v19 = vld [vmem:[%s4433_s1 + $0x794] ss:$8 sps:$4 sm:$0xff]  }
  0xc2   :  { %2215 = vmatmul.mubr.bf16.vlgmr.msra.gmra.mxu0 %v3135_v20  ;;  %v3231_v20 = vld [vmem:[%s4433_s1 + $0x690] ss:$8 sps:$4 sm:$0xff]  }
  0xc3   :  { %2268 = vmatmul.mubr.bf16.vlgmr.msra.gmra.mxu1 %v3138_v21  ;;  %2289 = vmatpush1.bf16.msra.mxu0 %v3141_v22  ;;  %v3234_v21 = vld [vmem:[%s4433_s1 + $0x790] ss:$8 sps:$4 sm:$0xff]   ;;  %v3239_v22 = vld [vmem:[%s4433_s1 + $0x684] ss:$8 sps:$4 sm:$0xff]  }
  0xc4   :  { %2342 = vmatpush1.bf16.msra.mxu1 %v3144_v23  ;;  %2290 = vmatprep.subr.bf16.mxu0 %v3149_v24  ;;  %v3242_v23 = vld [vmem:[%s4433_s1 + $0x784] ss:$8 sps:$4 sm:$0xff]   ;;  %v3237_v24 = vld [vmem:[%s4433_s1 + $0x680] ss:$8 sps:$4 sm:$0xff]  }
  0xc5   :  { %2343 = vmatprep.subr.bf16.mxu1 %v3152_v25  ;;  %2224 = vmatprep.mubr.bf16.mxu0 %v3153_v26  ;;  %v3240_v25 = vld [vmem:[%s4433_s1 + $0x780] ss:$8 sps:$4 sm:$0xff]   ;;  %v3251_v26 = vld [vmem:[%s4433_s1 + $0x874] ss:$8 sps:$4 sm:$0xff]  }
  0xc6   :  { %2277 = vmatprep.mubr.bf16.mxu1 %v3162_v27  ;;  %v3243_v27 = vld [vmem:[%s4434_s0 + $0x30] ss:$72 sps:$4 sm:$0xff]  }
  0xc7   :  { %2291 = vmatpush1.bf16.msra.mxu0 %v3147_v28  ;;  %v3246_v28 = vld [vmem:[%s4434_s0 + $0x38] ss:$72 sps:$4 sm:$0xff]  }
  0xc8   :  { %2344 = vmatpush1.bf16.msra.mxu1 %v3150_v29  ;;  %2292 = vmatprep.subr.bf16.mxu0 %v3158_v30  ;;  %v3249_v29 = vld [vmem:[%s4433_s1 + $0x870] ss:$8 sps:$4 sm:$0xff]   ;;  %v3254_v30 = vld [vmem:[%s4433_s1 + $0x864] ss:$8 sps:$4 sm:$0xff]  }
  0xc9   :  { %2345 = vmatprep.subr.bf16.mxu1 %v3161_v31  ;;  %v3255_v31 = vld [vmem:[%s4434_s0 + $0xc4] ss:$72 sps:$4 sm:$0xff]  }
  0xca   :  { %2225 = vmatmul.mubr.bf16.gmra.mxu0 %v3155_v32  ;;  %v3261_v32 = vld [vmem:[%s4434_s0 + $0xcc] ss:$72 sps:$4 sm:$0xff]  }
  0xcb   :  { %2278 = vmatmul.mubr.bf16.gmra.mxu1 %v3164_v34  ;;  %2293 = vmatpush1.bf16.msra.mxu0 %v3156_v33  ;;  %v3252_v33 = vld [vmem:[%s4433_s1 + $0x860] ss:$8 sps:$4 sm:$0xff]   ;;  %v3260_v34 = vld [vmem:[%s4433_s1 + $0x854] ss:$8 sps:$4 sm:$0xff]  }
  0xcc   :  { %2346 = vmatpush1.bf16.msra.mxu1 %v3159_v35  ;;  %2294 = vmatprep.subr.bf16.mxu0 %v3167_v36  ;;  %v3257_v35 = vld [vmem:[%s4434_s0 + $0xc0] ss:$72 sps:$4 sm:$0xff]  }
  0xcd   :  { %2347 = vmatprep.subr.bf16.mxu1 %v3170_v37  ;;  %2320 = vmatprep.mubr.bf16.mxu0 %v3245_v38  ;;  %v3263_v36 = vld [vmem:[%s4434_s0 + $0xc8] ss:$72 sps:$4 sm:$0xff]   ;;  %v3266_v38 = vld [vmem:[%s4433_s1 + $0x844] ss:$8 sps:$4 sm:$0xff]  }
  0xce   :  { %2373 = vmatprep.mubr.bf16.mxu1 %v3248_v39  ;;  %v3258_v37 = vld [vmem:[%s4433_s1 + $0x850] ss:$8 sps:$4 sm:$0xff]   ;;  %v3305_v39 = vld [vmem:[%s4434_s0 + $0x44] ss:$72 sps:$4 sm:$0xff]  }
  0xcf   :  { %2295 = vmatpush1.bf16.msra.mxu0 %v3165_v40  ;;  %v3308_v40 = vld [vmem:[%s4434_s0 + $0xd4] ss:$72 sps:$4 sm:$0xff]  }
  0xd0   :  { %2348 = vmatpush1.bf16.msra.mxu1 %v3168_v41  ;;  %2296 = vmatprep.subr.bf16.mxu0 %v3173_v42  ;;  %v3264_v41 = vld [vmem:[%s4433_s1 + $0x840] ss:$8 sps:$4 sm:$0xff]   ;;  %v3269_v42 = vld [vmem:[%s4433_s1 + $0x834] ss:$8 sps:$4 sm:$0xff]  }
  0xd1   :  { %2349 = vmatprep.subr.bf16.mxu1 %v3176_v43  ;;  %v3267_v43 = vld [vmem:[%s4433_s1 + $0x830] ss:$8 sps:$4 sm:$0xff]  }
  0xd3   :  { %2297 = vmatpush1.bf16.msra.mxu0 %v3171_v44  ;;  %v3272_v44 = vld [vmem:[%s4433_s1 + $0x824] ss:$8 sps:$4 sm:$0xff]  }
  0xd4   :  { %2350 = vmatpush1.bf16.msra.mxu1 %v3174_v45  ;;  %2298 = vmatprep.subr.bf16.mxu0 %v3179_v46  ;;  %v3270_v45 = vld [vmem:[%s4433_s1 + $0x820] ss:$8 sps:$4 sm:$0xff]   ;;  %v3275_v46 = vld [vmem:[%s4433_s1 + $0x814] ss:$8 sps:$4 sm:$0xff]  }
  0xd5   :  { %2351 = vmatprep.subr.bf16.mxu1 %v3182_v47  ;;  %v3273_v47 = vld [vmem:[%s4433_s1 + $0x810] ss:$8 sps:$4 sm:$0xff]  }
  0xd7   :  { %2299 = vmatpush1.bf16.msra.mxu0 %v3177_v48  ;;  %v3278_v48 = vld [vmem:[%s4433_s1 + $0x804] ss:$8 sps:$4 sm:$0xff]  }
  0xd8   :  { %2352 = vmatpush1.bf16.msra.mxu1 %v3180_v49  ;;  %2300 = vmatprep.subr.bf16.mxu0 %v3185_v50  ;;  %v3276_v49 = vld [vmem:[%s4433_s1 + $0x800] ss:$8 sps:$4 sm:$0xff]   ;;  %v3281_v50 = vld [vmem:[%s4433_s1 + $0x8f4] ss:$8 sps:$4 sm:$0xff]  }
  0xd9   :  { %2353 = vmatprep.subr.bf16.mxu1 %v3188_v51  ;;  %v3279_v51 = vld [vmem:[%s4433_s1 + $0x8f0] ss:$8 sps:$4 sm:$0xff]  }
  0xdb   :  { %2301 = vmatpush1.bf16.msra.mxu0 %v3183_v52  ;;  %v3284_v52 = vld [vmem:[%s4433_s1 + $0x8e4] ss:$8 sps:$4 sm:$0xff]  }
  0xdc   :  { %2354 = vmatpush1.bf16.msra.mxu1 %v3186_v53  ;;  %2302 = vmatprep.subr.bf16.mxu0 %v3191_v54  ;;  %v3282_v53 = vld [vmem:[%s4433_s1 + $0x8e0] ss:$8 sps:$4 sm:$0xff]   ;;  %v3287_v54 = vld [vmem:[%s4433_s1 + $0x8d4] ss:$8 sps:$4 sm:$0xff]  }
  0xdd   :  { %2355 = vmatprep.subr.bf16.mxu1 %v3194_v55  ;;  %v3285_v55 = vld [vmem:[%s4433_s1 + $0x8d0] ss:$8 sps:$4 sm:$0xff]  }
  0xdf   :  { %2303 = vmatpush1.bf16.msra.mxu0 %v3189_v56  ;;  %v3290_v56 = vld [vmem:[%s4433_s1 + $0x8c4] ss:$8 sps:$4 sm:$0xff]  }
  0xe0   :  { %2356 = vmatpush1.bf16.msra.mxu1 %v3192_v57  ;;  %2304 = vmatprep.subr.bf16.mxu0 %v3197_v58  ;;  %v3288_v57 = vld [vmem:[%s4433_s1 + $0x8c0] ss:$8 sps:$4 sm:$0xff]   ;;  %v3293_v58 = vld [vmem:[%s4433_s1 + $0x8b4] ss:$8 sps:$4 sm:$0xff]  }
  0xe1   :  { %2357 = vmatprep.subr.bf16.mxu1 %v3200_v59  ;;  %v3291_v59 = vld [vmem:[%s4433_s1 + $0x8b0] ss:$8 sps:$4 sm:$0xff]  }
  0xe3   :  { %2305 = vmatpush2.bf16.msra.mxu0 %v3195_v60  ;;  %v3296_v60 = vld [vmem:[%s4433_s1 + $0x8a4] ss:$8 sps:$4 sm:$0xff]  }
  0xe4   :  { %2358 = vmatpush2.bf16.msra.mxu1 %v3198_v61  ;;  %2306 = vmatprep.subr.bf16.mxu0 %v3203_v62  ;;  %v3294_v61 = vld [vmem:[%s4433_s1 + $0x8a0] ss:$8 sps:$4 sm:$0xff]   ;;  %v3299_v62 = vld [vmem:[%s4433_s1 + $0x894] ss:$8 sps:$4 sm:$0xff]  }
  0xe5   :  { %2359 = vmatprep.subr.bf16.mxu1 %v3206_v63  ;;  %v3297_v63 = vld [vmem:[%s4433_s1 + $0x890] ss:$8 sps:$4 sm:$0xff]  }
  0xe7   :  { %2307 = vmatpush2.bf16.msra.mxu0 %v3201_v0  ;;  %v3302_v0 = vld [vmem:[%s4433_s1 + $0x884] ss:$8 sps:$4 sm:$0xff]  }
  0xe8   :  { %2360 = vmatpush2.bf16.msra.mxu1 %v3204_v1  ;;  %2308 = vmatprep.subr.bf16.mxu0 %v3209_v2  ;;  %v3300_v1 = vld [vmem:[%s4433_s1 + $0x880] ss:$8 sps:$4 sm:$0xff]  }
  0xe9   :  { %2361 = vmatprep.subr.bf16.mxu1 %v3212_v3  ;;  %v3303_v2 = vld [vmem:[%s4434_s0 + $0x40] ss:$72 sps:$4 sm:$0xff]   ;;  %v3306_v3 = vld [vmem:[%s4434_s0 + $0xd0] ss:$72 sps:$4 sm:$0xff]  }
  0xeb   :  { %2309 = vmatpush2.bf16.msra.mxu0 %v3207_v4 }
  0xec   :  { %2362 = vmatpush2.bf16.msra.mxu1 %v3210_v5  ;;  %2310 = vmatprep.subr.bf16.mxu0 %v3215_v6 }
  0xed   :  { %2363 = vmatprep.subr.bf16.mxu1 %v3218_v7 }
  0xef   :  { %2311 = vmatpush2.bf16.msra.mxu0 %v3213_v8 }
  0xf0   :  { %2364 = vmatpush2.bf16.msra.mxu1 %v3216_v9  ;;  %2312 = vmatprep.subr.bf16.mxu0 %v3221_v10 }
  0xf1   :  { %2365 = vmatprep.subr.bf16.mxu1 %v3224_v11 }
  0xf3   :  { %2313 = vmatpush2.bf16.msra.mxu0 %v3219_v12 }
  0xf4   :  { %2366 = vmatpush2.bf16.msra.mxu1 %v3222_v13  ;;  %2314 = vmatprep.subr.bf16.mxu0 %v3227_v14 }
  0xf5   :  { %2367 = vmatprep.subr.bf16.mxu1 %v3230_v15 }
  0xf7   :  { %2315 = vmatpush2.bf16.msra.mxu0 %v3225_v16 }
  0xf8   :  { %2368 = vmatpush2.bf16.msra.mxu1 %v3228_v17  ;;  %2316 = vmatprep.subr.bf16.mxu0 %v3233_v18 }
  0xf9   :  { %2369 = vmatprep.subr.bf16.mxu1 %v3236_v19 }
  0xfb   :  { %2317 = vmatpush2.bf16.msra.mxu0 %v3231_v20 }
  0xfc   :  { %2370 = vmatpush2.bf16.msra.mxu1 %v3234_v21  ;;  %2318 = vmatprep.subr.bf16.mxu0 %v3239_v22 }
  0xfd   :  { %2371 = vmatprep.subr.bf16.mxu1 %v3242_v23 }
  0xff   :  { %2319 = vmatpush2.bf16.msra.mxu0 %v3237_v24 }
 0x100   :  { %2372 = vmatpush2.bf16.msra.mxu1 %v3240_v25  ;;  %2394 = vmatprep.subr.bf16.mxu0 %v3251_v26 }
 0x101   :  { %2791 = vmatprep.subr.bf16.mxu1 %v3251_v26 }
 0x102   :  { %2321 = vmatmul.mubr.bf16.vlgmr.msra.gmra.mxu0 %v3243_v27  ;;  %v2004_v4 = vpop.f32.mrf.mxu0 }
 0x103   :  { %2374 = vmatmul.mubr.bf16.vlgmr.msra.gmra.mxu1 %v3246_v28  ;;  %2395 = vmatpush1.bf16.msra.mxu0 %v3249_v29  ;;  %v4301_v6 = vpop.f32.mrf.mxu1 }
 0x104   :  { %2807 = vmatpush1.bf16.msra.mxu1 %v3249_v29  ;;  %2396 = vmatprep.subr.bf16.mxu0 %v3254_v30  ;;  %v2006_v5 = vpop.f32.mrf.mxu0 }
 0x105   :  { %2792 = vmatprep.subr.bf16.mxu1 %v3254_v30  ;;  %2330 = vmatprep.mubr.bf16.mxu0 %v3255_v31  ;;  %v4303_v8 = vpop.f32.mrf.mxu1 }
 0x106   :  { %2383 = vmatprep.mubr.bf16.mxu1 %v3261_v32  ;;  %v2008_v7 = vpop.f32.mrf.mxu0 }
 0x107   :  { %2397 = vmatpush1.bf16.msra.mxu0 %v3252_v33  ;;  %v4307_v11 = vpop.f32.mrf.mxu1 }
 0x108   :  { %2808 = vmatpush1.bf16.msra.mxu1 %v3252_v33  ;;  %2398 = vmatprep.subr.bf16.mxu0 %v3260_v34  ;;  %v4305_v9 = vpop.f32.mrf.mxu0 }
 0x109   :  { %2793 = vmatprep.subr.bf16.mxu1 %v3260_v34  ;;  %v4309_v13 = vpop.f32.mrf.mxu1 }
 0x10a   :  { %2331 = vmatmul.mubr.bf16.gmra.mxu0 %v3257_v35  ;;  %v2014_v10 = vpop.f32.mrf.mxu0 }
 0x10b   :  { %2384 = vmatmul.mubr.bf16.gmra.mxu1 %v3263_v36  ;;  %2399 = vmatpush1.bf16.msra.mxu0 %v3258_v37  ;;  %v2067_v14 = vpop.f32.mrf.mxu1 }
 0x10c   :  { %2809 = vmatpush1.bf16.msra.mxu1 %v3258_v37  ;;  %2400 = vmatprep.subr.bf16.mxu0 %v3266_v38  ;;  %v2016_v12 = vpop.f32.mrf.mxu0 }
 0x10d   :  { %2794 = vmatprep.subr.bf16.mxu1 %v3266_v38  ;;  %2426 = vmatprep.mubr.bf16.mxu0 %v3305_v39  ;;  %v2069_v16 = vpop.f32.mrf.mxu1 }
 0x10e   :  { %2436 = vmatprep.mubr.bf16.mxu1 %v3308_v40  ;;  %v2018_v15 = vpop.f32.mrf.mxu0 }
 0x10f   :  { %2401 = vmatpush1.bf16.msra.mxu0 %v3264_v41  ;;  %v4311_v19 = vpop.f32.mrf.mxu1 }
 0x110   :  { %2810 = vmatpush1.bf16.msra.mxu1 %v3264_v41  ;;  %2402 = vmatprep.subr.bf16.mxu0 %v3269_v42  ;;  %v2020_v17 = vpop.f32.mrf.mxu0 }
 0x111   :  { %2795 = vmatprep.subr.bf16.mxu1 %v3269_v42  ;;  %v4315_v21 = vpop.f32.mrf.mxu1 }
 0x113   :  { %2403 = vmatpush1.bf16.msra.mxu0 %v3267_v43 }
 0x114   :  { %2811 = vmatpush1.bf16.msra.mxu1 %v3267_v43  ;;  %2404 = vmatprep.subr.bf16.mxu0 %v3272_v44 }
 0x115   :  { %2796 = vmatprep.subr.bf16.mxu1 %v3272_v44 }
 0x117   :  { %2405 = vmatpush1.bf16.msra.mxu0 %v3270_v45 }
 0x118   :  { %2812 = vmatpush1.bf16.msra.mxu1 %v3270_v45  ;;  %2406 = vmatprep.subr.bf16.mxu0 %v3275_v46 }
 0x119   :  { %2797 = vmatprep.subr.bf16.mxu1 %v3275_v46 }
 0x11b   :  { %2407 = vmatpush1.bf16.msra.mxu0 %v3273_v47 }
 0x11c   :  { %2813 = vmatpush1.bf16.msra.mxu1 %v3273_v47  ;;  %2408 = vmatprep.subr.bf16.mxu0 %v3278_v48  ;;  %v340_v47 = vlaneseq }
 0x11d   :  { %2798 = vmatprep.subr.bf16.mxu1 %v3278_v48 }
 0x11f   :  { %2409 = vmatpush1.bf16.msra.mxu0 %v3276_v49 }
 0x120   :  { %2814 = vmatpush1.bf16.msra.mxu1 %v3276_v49  ;;  %2410 = vmatprep.subr.bf16.mxu0 %v3281_v50 }
 0x121   :  { %2799 = vmatprep.subr.bf16.mxu1 %v3281_v50  ;;  %v341_v50 = vshrl.u32 %v340_v47, 7 }
 0x123   :  { %2411 = vmatpush2.bf16.msra.mxu0 %v3279_v51 }
 0x124   :  { %2815 = vmatpush2.bf16.msra.mxu1 %v3279_v51  ;;  %2412 = vmatprep.subr.bf16.mxu0 %v3284_v52 }
 0x125   :  { %2800 = vmatprep.subr.bf16.mxu1 %v3284_v52 }
 0x127   :  { %2413 = vmatpush2.bf16.msra.mxu0 %v3282_v53 }
 0x128   :  { %2816 = vmatpush2.bf16.msra.mxu1 %v3282_v53  ;;  %2414 = vmatprep.subr.bf16.mxu0 %v3287_v54  ;;  %v342_v53 = vsub.s32 0, %v341_v50 }
 0x129   :  { %2801 = vmatprep.subr.bf16.mxu1 %v3287_v54 }
 0x12b   :  { %2415 = vmatpush2.bf16.msra.mxu0 %v3285_v55 }
 0x12c   :  { %2817 = vmatpush2.bf16.msra.mxu1 %v3285_v55  ;;  %2416 = vmatprep.subr.bf16.mxu0 %v3290_v56  ;;  %v338_v55 = vld [vmem:[%s4435_s2] sm:$0x3] }
 0x12d   :  { %2802 = vmatprep.subr.bf16.mxu1 %v3290_v56 }
 0x12f   :  { %2417 = vmatpush2.bf16.msra.mxu0 %v3288_v57 }
 0x130   :  { %2818 = vmatpush2.bf16.msra.mxu1 %v3288_v57  ;;  %2418 = vmatprep.subr.bf16.mxu0 %v3293_v58  ;;  %v346_v57 = vsub.s32 1, %v341_v50 }
 0x131   :  { %2803 = vmatprep.subr.bf16.mxu1 %v3293_v58 }
 0x133   :  { %2419 = vmatpush2.bf16.msra.mxu0 %v3291_v59 }
 0x134   :  { %2819 = vmatpush2.bf16.msra.mxu1 %v3291_v59  ;;  %2420 = vmatprep.subr.bf16.mxu0 %v3296_v60  ;;  %v343_v59 = vrot.slane %v338_v55, %v342_v53 }
 0x135   :  { %2804 = vmatprep.subr.bf16.mxu1 %v3296_v60 }
 0x136   :  { %v2009_v47 = vadd.f32 %v2008_v7, %v343_v59 }
 0x137   :  { %2421 = vmatpush2.bf16.msra.mxu0 %v3294_v61 }
 0x138   :  { %2820 = vmatpush2.bf16.msra.mxu1 %v3294_v61  ;;  %2422 = vmatprep.subr.bf16.mxu0 %v3299_v62  ;;  %v347_v61 = vrot.slane %v338_v55, %v346_v57 }
 0x139   :  { %2805 = vmatprep.subr.bf16.mxu1 %v3299_v62 }
 0x13a   :  { %v2021_v53 = vadd.f32 %v2020_v17, %v347_v61 }
 0x13b   :  { %2423 = vmatpush2.bf16.msra.mxu0 %v3297_v63 }
 0x13c   :  { %2821 = vmatpush2.bf16.msra.mxu1 %v3297_v63  ;;  %2424 = vmatprep.subr.bf16.mxu0 %v3302_v0  ;;  %v2005_v63 = vadd.f32 %v2004_v4, %v343_v59 }
 0x13d   :  { %2806 = vmatprep.subr.bf16.mxu1 %v3302_v0  ;;  %v2015_v0 = vadd.f32 %v2014_v10, %v343_v59  ;;  %v2062_v10 = vadd.f32 %v4307_v11, %v2009_v47 }
 0x13f   :  { %2425 = vmatpush2.bf16.msra.mxu0 %v3300_v1 }
 0x140   :  { %2822 = vmatpush2.bf16.msra.mxu1 %v3300_v1 }
 0x142   :  { %2427 = vmatmul.mubr.bf16.vlgmr.msra.gmra.mxu0 %v3303_v2  ;;  %v2110_v18 = vpop.f32.mrf.mxu0  ;;  %v2007_v2 = vadd.f32 %v2006_v5, %v347_v61 }
 0x143   :  { %2437 = vmatmul.mubr.bf16.vlgmr.msra.gmra.mxu1 %v3306_v3  ;;  %v4317_v22 = vpop.f32.mrf.mxu1  ;;  %v2017_v3 = vadd.f32 %v2016_v12, %v347_v61 }
 0x144   :  { %v4313_v20 = vpop.f32.mrf.mxu0  ;;  %v2060_v55 = vadd.f32 %v4303_v8, %v2007_v2 }
 0x145   :  { %v4321_v24 = vpop.f32.mrf.mxu1  ;;  %v2070_v57 = vadd.f32 %v2069_v16, %v2017_v3 }
 0x146   :  { %v4319_v23 = vpop.f32.mrf.mxu0  ;;  %v2113_v12 = vadd.f32 %v4313_v20, %v2060_v55 }
 0x147   :  { %v4325_v26 = vpop.f32.mrf.mxu1  ;;  %v2115_v17 = vadd.f32 %v4319_v23, %v2062_v10 }
 0x148   :  { %v4323_v25 = vpop.f32.mrf.mxu0 }
 0x149   :  { %v4327_v28 = vpop.f32.mrf.mxu1 }
 0x14a   :  { %v2120_v27 = vpop.f32.mrf.mxu0 }
 0x14b   :  { %v4329_v30 = vpop.f32.mrf.mxu1 }
 0x14c   :  { %v2122_v29 = vpop.f32.mrf.mxu0 }
 0x14d   :  { %v4331_v32 = vpop.f32.mrf.mxu1 }
 0x14e   :  { %v2124_v31 = vpop.f32.mrf.mxu0 }
 0x14f   :  { %v4333_v34 = vpop.f32.mrf.mxu1 }
 0x150   :  { %v2126_v33 = vpop.f32.mrf.mxu0 }
 0x151   :  { %v4337_v36 = vpop.f32.mrf.mxu1 }
 0x182   :  { %v4335_v35 = vpop.f32.mrf.mxu0 }
 0x183   :  { %v4341_v38 = vpop.f32.mrf.mxu1 }
 0x184   :  { %v4339_v37 = vpop.f32.mrf.mxu0 }
 0x185   :  { %v4345_v40 = vpop.f32.mrf.mxu1 }
 0x186   :  { %v4343_v39 = vpop.f32.mrf.mxu0 }
 0x187   :  { %v4349_v42 = vpop.f32.mrf.mxu1 }
 0x188   :  { %v4347_v41 = vpop.f32.mrf.mxu0  ;;  %4437 = vst [vmem:[#allocation2_spill] sm:$0xff] %v4349_v42  ;;  %v2058_v42 = vadd.f32 %v4301_v6, %v2005_v63 }
 0x189   :  { %v4351_v44 = vpop.f32.mrf.mxu1 }
 0x18a   :  { %v2226_v43 = vpop.f32.mrf.mxu0  ;;  %4438 = vst [vmem:[#allocation3_spill] sm:$0xff] %v4351_v44  ;;  %v2019_v44 = vadd.f32 %v2018_v15, %v343_v59  ;;  %v2123_v15 = vadd.f32 %v2122_v29, %v2070_v57 }
 0x18b   :  { %v4353_v45 = vpop.f32.mrf.mxu1 }
 0x18c   :  { %v2228_v46 = vpop.f32.mrf.mxu0  ;;  %v2072_v5 = vadd.f32 %v4311_v19, %v2019_v44  ;;  %v2176_v20 = vadd.f32 %v4331_v32, %v2123_v15 }
 0x18d   :  { %v4355_v48 = vpop.f32.mrf.mxu1 }
 0x18e   :  { %v2230_v49 = vpop.f32.mrf.mxu0  ;;  %v2125_v8 = vadd.f32 %v2124_v31, %v2072_v5 }
 0x18f   :  { %v4357_v51 = vpop.f32.mrf.mxu1 }
 0x190   :  { %4439 = vst [vmem:[#allocation4_spill] sm:$0xff] %v4357_v51  ;;  %v2232_v52 = vpop.f32.mrf.mxu0  ;;  %v2178_v23 = vadd.f32 %v4333_v34, %v2125_v8 }
 0x191   :  { %v4364_v56 = vpop.f32.mrf.mxu1 }
 0x192   :  { %4440 = vst [vmem:[#allocation5_spill] sm:$0xff] %v4364_v56  ;;  %v2068_v56 = vadd.f32 %v2067_v14, %v2015_v0 }
 0x194   :  { %v2121_v4 = vadd.f32 %v2120_v27, %v2068_v56  ;;  %v2229_v56 = vadd.f32 %v2228_v46, %v2176_v20 }
 0x196   :  { %v2174_v11 = vadd.f32 %v4329_v30, %v2121_v4 }
 0x199   :  { %v4446_v2 = vld [vmem:[#allocation5_spill] sm:$0xff] }
 0x1c2   :  { %v4359_v54 = vpop.f32.mrf.mxu0 }
 0x1c3   :  { %v4366_v58 = vpop.f32.mrf.mxu1 }
 0x1c4   :  { %4441 = vst [vmem:[#allocation6_spill] sm:$0xff] %v4366_v58  ;;  %v2324_v60 = vpop.f32.mrf.mxu0  ;;  %v2011_v58 = vadd.f32 %v4305_v9, %v347_v61  ;;  %v2074_v9 = vadd.f32 %v4315_v21, %v2021_v53  ;;  %v2168_v21 = vadd.f32 %v4325_v26, %v2115_v17 }
 0x1c5   :  { %v4368_v62 = vpop.f32.mrf.mxu1 }
 0x1c6   :  { %4442 = vst [vmem:[#allocation7_spill] sm:$0xff] %v4368_v62  ;;  %v2326_v1 = vpop.f32.mrf.mxu0  ;;  %v2111_v62 = vadd.f32 %v2110_v18, %v2058_v42  ;;  %v2064_v14 = vadd.f32 %v4309_v13, %v2011_v58  ;;  %v2127_v27 = vadd.f32 %v2126_v33, %v2074_v9  ;;  %v2166_v42 = vadd.f32 %v4321_v24, %v2113_v12 }
 0x1c7   :  { %v4370_v51 = vpop.f32.mrf.mxu1  ;;  %v2227_v13 = vadd.f32 %v2226_v43, %v2174_v11  ;;  %v2221_v24 = vadd.f32 %v4343_v39, %v2168_v21  ;;  %v2231_v33 = vadd.f32 %v2230_v49, %v2178_v23  ;;  %v4444_v39 = vld [vmem:[#allocation4_spill] sm:$0xff] }
 0x1c8   :  { %v2328_v50 = vpop.f32.mrf.mxu0  ;;  %v2164_v18 = vadd.f32 %v4317_v22, %v2111_v62  ;;  %v2117_v19 = vadd.f32 %v4323_v25, %v2064_v14  ;;  %v2219_v22 = vadd.f32 %v4339_v37, %v2166_v42  ;;  %v2180_v25 = vadd.f32 %v4337_v36, %v2127_v27  ;;  %v4443_v36 = vld [vmem:[#allocation2_spill] sm:$0xff] }
 0x1c9   :  { %v4377_v7 = vpop.f32.mrf.mxu1  ;;  %v2282_v37 = vadd.f32 %v4355_v48, %v2229_v56  ;;  %v2274_v61 = vadd.f32 %v4443_v36, %v2221_v24  ;;  %v2284_v49 = vadd.f32 %v4444_v39, %v2231_v33 }
 0x1ca   :  { %v2332_v6 = vpop.f32.mrf.mxu0  ;;  %v2217_v29 = vadd.f32 %v4335_v35, %v2164_v18  ;;  %v2170_v30 = vadd.f32 %v4327_v28, %v2117_v19  ;;  %v2280_v35 = vadd.f32 %v4353_v45, %v2227_v13  ;;  %v2233_v58 = vadd.f32 %v2232_v52, %v2180_v25  ;;  %v4445_v45 = vld [vmem:[#allocation3_spill] sm:$0xff] }
 0x1cb   :  { %v2385_v16 = vpop.f32.mrf.mxu1  ;;  %v2272_v59 = vadd.f32 %v4345_v40, %v2219_v22  ;;  %v2327_v52 = vadd.f32 %v2326_v1, %v2274_v61  ;;  %v4447_v40 = vld [vmem:[#allocation6_spill] sm:$0xff] }
 0x1cc   :  { %v2334_v44 = vpop.f32.mrf.mxu0  ;;  %v2270_v32 = vadd.f32 %v4341_v38, %v2217_v29  ;;  %v2223_v26 = vadd.f32 %v4347_v41, %v2170_v30  ;;  %v2333_v46 = vadd.f32 %v2332_v6, %v2280_v35  ;;  %v2286_v41 = vadd.f32 %v4446_v2, %v2233_v58 }
 0x1cd   :  { %v2387_v31 = vpop.f32.mrf.mxu1  ;;  %v2325_v62 = vadd.f32 %v2324_v60, %v2272_v59  ;;  %v2335_v38 = vadd.f32 %v2334_v44, %v2282_v37  ;;  %v4448_v10 = vld [vmem:[#allocation7_spill] sm:$0xff]  ;;  %v2380_v6 = vadd.f32 %v4370_v51, %v2327_v52 }
 0x1ce   :  { %v2336_v43 = vpop.f32.mrf.mxu0  ;;  %v2323_v28 = vadd.f32 %v4359_v54, %v2270_v32  ;;  %v2276_v0 = vadd.f32 %v4445_v45, %v2223_v26  ;;  %v2386_v48 = vadd.f32 %v2385_v16, %v2333_v46 }
 0x1cf   :  { %v2389_v34 = vpop.f32.mrf.mxu1  ;;  %v2337_v3 = vadd.f32 %v2336_v43, %v2284_v49  ;;  %v2378_v5 = vadd.f32 %v4448_v10, %v2325_v62  ;;  %v2388_v12 = vadd.f32 %v2387_v31, %v2335_v38 }
 0x1d0   :  { %v2338_v63 = vpop.f32.mrf.mxu0  ;;  %v2376_v53 = vadd.f32 %v4447_v40, %v2323_v28  ;;  %v2329_v55 = vadd.f32 %v2328_v50, %v2276_v0 }
 0x1d1   :  { %v2391_v47 = vpop.f32.mrf.mxu1  ;;  %v2339_v54 = vadd.f32 %v2338_v63, %v2286_v41  ;;  %v2390_v14 = vadd.f32 %v2389_v34, %v2337_v3 }
 0x1d2   :  { %v2382_v16 = vadd.f32 %v4377_v7, %v2329_v55 }
 0x1d3   :  { %v2392_v50 = vadd.f32 %v2391_v47, %v2339_v54 }
 0x202   :  { %v2428_v57 = vpop.f32.mrf.mxu0 }
 0x203   :  { %v2438_v4 = vpop.f32.mrf.mxu1  ;;  %v2429_v60 = vadd.f32 %v2428_v57, %v2376_v53 }
 0x204   :  { %v2439_v15 = vadd.f32 %v2438_v4, %v2386_v48  ;;  %v2430_v9 = vpop.f32.mrf.mxu0 }
 0x205   :  { %v2440_v17 = vpop.f32.mrf.mxu1  ;;  %v2447_v1 = vmax.f32 %v2429_v60, 0.0  ;;  %v2431_v18 = vadd.f32 %v2430_v9, %v2378_v5 }
 0x206   :  { %v2451_v8 = vmax.f32 %v2439_v15, 0.0  ;;  %v2441_v11 = vadd.f32 %v2440_v17, %v2388_v12  ;;  %v2432_v19 = vpop.f32.mrf.mxu0 }
 0x207   :  { %v2442_v27 = vpop.f32.mrf.mxu1  ;;  %2455 = vst [vmem:[%s4436_s3] sm:$0xff] %v2447_v1  ;;  %v2448_v51 = vmax.f32 %v2431_v18, 0.0  ;;  %v2433_v20 = vadd.f32 %v2432_v19, %v2380_v6 }
 0x208   :  { %2459 = vst [vmem:[%s4436_s3 + $0x20] sm:$0xff] %v2451_v8  ;;  %v2452_v42 = vmax.f32 %v2441_v11, 0.0  ;;  %v2443_v29 = vadd.f32 %v2442_v27, %v2390_v14  ;;  %v2434_v13 = vpop.f32.mrf.mxu0 }
 0x209   :  { %v2444_v44 = vpop.f32.mrf.mxu1  ;;  %2456 = vst [vmem:[%s4436_s3 + $0x8] sm:$0xff] %v2448_v51  ;;  %v2449_v7 = vmax.f32 %v2433_v20, 0.0  ;;  %v2435_v23 = vadd.f32 %v2434_v13, %v2382_v16 }
 0x20a   :  { %2460 = vst [vmem:[%s4436_s3 + $0x28] sm:$0xff] %v2452_v42  ;;  %v2453_v21 = vmax.f32 %v2443_v29, 0.0  ;;  %v2445_v31 = vadd.f32 %v2444_v44, %v2392_v50 }
 0x20b   :  { %2457 = vst [vmem:[%s4436_s3 + $0x10] sm:$0xff] %v2449_v7  ;;  %v2450_v22 = vmax.f32 %v2435_v23, 0.0 }
 0x20c   :  { %2461 = vst [vmem:[%s4436_s3 + $0x30] sm:$0xff] %v2453_v21  ;;  %v2454_v56 = vmax.f32 %v2445_v31, 0.0 }
 0x20d   :  { %2458 = vst [vmem:[%s4436_s3 + $0x18] sm:$0xff] %v2450_v22 }
 0x20e   :  { %2462 = vst [vmem:[%s4436_s3 + $0x38] sm:$0xff] %v2454_v56 }

// kernel: generator_forward.7
= control target key start
LH: loop header
LB: loop body
LE: loop exit
PB: predicated region body
PF: predicated region fallthrough
CT: control target
= control target key end

     0   :  { %8 = vsyncpa [#allocation3], 0  ;;  %s5045_s0 = inlined_call_operand.vmem [shape: bf16[16,256], index: 0, kind: input, shape index: {}]   ;;  %s5046_s1 = inlined_call_operand.hbm [shape: bf16[256,4096], index: 1, kind: input, shape index: {}]   ;;  %s5047_s2 = inlined_call_operand.hbm [shape: f32[1,4096], index: 2, kind: input, shape index: {}]   ;;  %s5048_s3 = inlined_call_operand.vmem [shape: f32[16,4096], index: 3, kind: output, shape index: {}]  }
   0x1   :  { %9 = vsyncpa [#allocation5], 0  ;;  %s4683_s12 = smov [#allocation2]  }
   0x2   :  { %s17_s13 = sshll.u32 %s4683_s12, 4  ;;  %s18_s13 = int_to_ptr.vmem [resolvable:$true] %s17_s13 }
   0x3   :  { %s4647_s14 = scalar_lea.vmem %s18_s13, 65536  ;;  %p4652_p1 = scmp.lt.s32.totalorder %s18_s13, %s18_s13 }
   0x4   :  { %p4648_p0 = scmp.ne.s32.totalorder %s18_s13, %s4647_s14  ;;  %p4653_p2 = scmp.lt.s32.totalorder %s4647_s14, %s4647_s14 }
   0x6   :  { %p4654_p3 = por %p4653_p2, %p4652_p1 }
   0x8   :  { %p4655_p4 = pnand %p4654_p3, %p4648_p0 }
   0xa   :  { %4658 = shalt.err (!%p4655_p4)
}
   0xb   :  { %s4684_s15 = smov 2048   ;;  %s4685_s16 = smov 128  }
   0xc   :  { %23 = dma.hbm_to_vmem [thread:$0]  %s5046_s1, 65536, %s18_s13, [#allocation3], %s4684_s15, %s4684_s15, %s4685_s16  }
   0xd   :  { %s4686_s19 = smov [#allocation4]  }
   0xe   :  { %s30_s20 = sshll.u32 %s4686_s19, 4  ;;  %s31_s20 = int_to_ptr.vmem [resolvable:$true] %s30_s20 }
   0xf   :  { %s4667_s21 = scalar_lea.vmem %s31_s20, 512  ;;  %p4672_p6 = scmp.lt.s32.totalorder %s31_s20, %s31_s20 }
  0x10   :  { %p4668_p5 = scmp.ne.s32.totalorder %s31_s20, %s4667_s21  ;;  %p4673_p7 = scmp.lt.s32.totalorder %s4667_s21, %s4667_s21 }
  0x12   :  { %p4674_p8 = por %p4673_p7, %p4672_p6 }
  0x14   :  { %p4675_p9 = pnand %p4674_p8, %p4668_p5 }
  0x16   :  { %4678 = shalt.err (!%p4675_p9)
}
  0x17   :  { %33 = dma.hbm_to_vmem [thread:$0]  %s5047_s2, 512, %s31_s20, [#allocation5]  }
  0x18   :  { %4679 = dma.done.wait [#allocation3], 65536  }
  0x19   :  { %4680 = vsyncadd [#allocation3], 4294901760 }
  0x1a   :  { %4681 = dma.done.wait [#allocation5], 512  }
  0x1b   :  { %4682 = vsyncadd [#allocation5], 4294966784  ;;  %v266_v0 = vld [vmem:[#allocation2 + $0x700] sm:$0xff]  ;;  %v267_v2 = vld [vmem:[#allocation2 + $0x708] sm:$0xff] }
  0x1c   :  { %v282_v1 = vld [vmem:[#allocation2 + $0x780] sm:$0xff]  ;;  %v283_v4 = vld [vmem:[#allocation2 + $0x788] sm:$0xff] }
  0x1d   :  { %v4341_v3 = vcombine.high %v266_v0, %v282_v1  ;;  %v4340_v5 = vcombine.low %v266_v0, %v282_v1  ;;  %v234_v6 = vld [vmem:[#allocation2 + $0x600] sm:$0xff]  ;;  %v4343_v8 = vcombine.high %v267_v2, %v283_v4  ;;  %v4342_v9 = vcombine.low %v267_v2, %v283_v4  ;;  %v235_v11 = vld [vmem:[#allocation2 + $0x608] sm:$0xff] }
  0x1e   :  { %v250_v7 = vld [vmem:[#allocation2 + $0x680] sm:$0xff]  ;;  %v251_v12 = vld [vmem:[#allocation2 + $0x688] sm:$0xff] }
  0x1f   :  { %v4309_v10 = vcombine.high %v234_v6, %v250_v7  ;;  %v202_v13 = vld [vmem:[#allocation2 + $0x500] sm:$0xff]  ;;  %3292 = vmatprep.subr.bf16.mxu0 %v4341_v3  ;;  %v4311_v14 = vcombine.high %v235_v11, %v251_v12  ;;  %v203_v16 = vld [vmem:[#allocation2 + $0x508] sm:$0xff]  ;;  %3335 = vmatprep.subr.bf16.mxu1 %v4343_v8  ;;  %v4308_v18 = vcombine.low %v234_v6, %v250_v7 }
  0x20   :  { %v218_v15 = vld [vmem:[#allocation2 + $0x580] sm:$0xff]  ;;  %v219_v17 = vld [vmem:[#allocation2 + $0x588] sm:$0xff]  ;;  %3293 = vmatpush1.bf16.msra.mxu0 %v4340_v5  ;;  %3336 = vmatpush1.bf16.msra.mxu1 %v4342_v9  ;;  %v4310_v19 = vcombine.low %v235_v11, %v251_v12 }
  0x21   :  { %3294 = vmatprep.subr.bf16.mxu0 %v4309_v10  ;;  %v4277_v20 = vcombine.high %v202_v13, %v218_v15  ;;  %3337 = vmatprep.subr.bf16.mxu1 %v4311_v14  ;;  %v4279_v21 = vcombine.high %v203_v16, %v219_v17  ;;  %v170_v22 = vld [vmem:[#allocation2 + $0x400] sm:$0xff]  ;;  %v171_v24 = vld [vmem:[#allocation2 + $0x408] sm:$0xff]  ;;  %v4276_v26 = vcombine.low %v202_v13, %v218_v15 }
  0x22   :  { %v186_v23 = vld [vmem:[#allocation2 + $0x480] sm:$0xff]  ;;  %v187_v25 = vld [vmem:[#allocation2 + $0x488] sm:$0xff]  ;;  %v4278_v27 = vcombine.low %v203_v16, %v219_v17 }
  0x23   :  { %v4245_v28 = vcombine.high %v170_v22, %v186_v23  ;;  %v4247_v29 = vcombine.high %v171_v24, %v187_v25  ;;  %v138_v30 = vld [vmem:[#allocation2 + $0x300] sm:$0xff]  ;;  %v139_v32 = vld [vmem:[#allocation2 + $0x308] sm:$0xff]  ;;  %v4244_v34 = vcombine.low %v170_v22, %v186_v23  ;;  %v4246_v35 = vcombine.low %v171_v24, %v187_v25 }
  0x24   :  { %3295 = vmatpush1.bf16.msra.mxu0 %v4308_v18  ;;  %3338 = vmatpush1.bf16.msra.mxu1 %v4310_v19  ;;  %v154_v31 = vld [vmem:[#allocation2 + $0x380] sm:$0xff]  ;;  %v155_v33 = vld [vmem:[#allocation2 + $0x388] sm:$0xff] }
  0x25   :  { %3296 = vmatprep.subr.bf16.mxu0 %v4277_v20  ;;  %3339 = vmatprep.subr.bf16.mxu1 %v4279_v21  ;;  %v4213_v36 = vcombine.high %v138_v30, %v154_v31  ;;  %v4215_v37 = vcombine.high %v139_v32, %v155_v33  ;;  %v106_v38 = vld [vmem:[#allocation2 + $0x200] sm:$0xff]  ;;  %v107_v40 = vld [vmem:[#allocation2 + $0x208] sm:$0xff]  ;;  %v4212_v42 = vcombine.low %v138_v30, %v154_v31 }
  0x26   :  { %v122_v39 = vld [vmem:[#allocation2 + $0x280] sm:$0xff]  ;;  %v123_v41 = vld [vmem:[#allocation2 + $0x288] sm:$0xff]  ;;  %v4214_v43 = vcombine.low %v139_v32, %v155_v33 }
  0x27   :  { %v4181_v44 = vcombine.high %v106_v38, %v122_v39  ;;  %v4183_v45 = vcombine.high %v107_v40, %v123_v41  ;;  %v74_v46 = vld [vmem:[#allocation2 + $0x100] sm:$0xff]  ;;  %v75_v48 = vld [vmem:[#allocation2 + $0x108] sm:$0xff]  ;;  %v4180_v50 = vcombine.low %v106_v38, %v122_v39  ;;  %v4182_v51 = vcombine.low %v107_v40, %v123_v41 }
  0x28   :  { %3297 = vmatpush1.bf16.msra.mxu0 %v4276_v26  ;;  %3340 = vmatpush1.bf16.msra.mxu1 %v4278_v27  ;;  %v90_v47 = vld [vmem:[#allocation2 + $0x180] sm:$0xff]  ;;  %v91_v49 = vld [vmem:[#allocation2 + $0x188] sm:$0xff] }
  0x29   :  { %3298 = vmatprep.subr.bf16.mxu0 %v4245_v28  ;;  %3341 = vmatprep.subr.bf16.mxu1 %v4247_v29  ;;  %v4149_v52 = vcombine.high %v74_v46, %v90_v47  ;;  %v4151_v53 = vcombine.high %v75_v48, %v91_v49  ;;  %v42_v54 = vld [vmem:[#allocation2] sm:$0xff]  ;;  %v43_v57 = vld [vmem:[#allocation2 + $0x8] sm:$0xff]  ;;  %v4148_v59 = vcombine.low %v74_v46, %v90_v47 }
  0x2a   :  { %v58_v55 = vld [vmem:[#allocation2 + $0x80] sm:$0xff]  ;;  %v59_v58 = vld [vmem:[#allocation2 + $0x88] sm:$0xff]  ;;  %v4150_v60 = vcombine.low %v75_v48, %v91_v49 }
  0x2b   :  { %v4716_v56 = vld [vmem:[%s5045_s0 + $0x4] ss:$8 sps:$4 sm:$0xff]   ;;  %v4117_v61 = vcombine.high %v42_v54, %v58_v55  ;;  %v4119_v62 = vcombine.high %v43_v57, %v59_v58  ;;  %v4116_v3 = vcombine.low %v42_v54, %v58_v55  ;;  %v4118_v4 = vcombine.low %v43_v57, %v59_v58 }
  0x2c   :  { %3299 = vmatpush1.bf16.msra.mxu0 %v4244_v34  ;;  %3342 = vmatpush1.bf16.msra.mxu1 %v4246_v35  ;;  %v522_v63 = vld [vmem:[#allocation2 + $0xf00] sm:$0xff]  ;;  %v523_v1 = vld [vmem:[#allocation2 + $0xf08] sm:$0xff] }
  0x2d   :  { %3300 = vmatprep.subr.bf16.mxu0 %v4213_v36  ;;  %3343 = vmatprep.subr.bf16.mxu1 %v4215_v37  ;;  %v538_v0 = vld [vmem:[#allocation2 + $0xf80] sm:$0xff]  ;;  %v539_v2 = vld [vmem:[#allocation2 + $0xf88] sm:$0xff] }
  0x2e   :  { %3324 = vmatprep.mubr.bf16.mxu0 %v4716_v56  ;;  %3367 = vmatprep.mubr.bf16.mxu1 %v4716_v56  ;;  %v4597_v5 = vcombine.high %v522_v63, %v538_v0  ;;  %v4599_v6 = vcombine.high %v523_v1, %v539_v2  ;;  %v490_v7 = vld [vmem:[#allocation2 + $0xe00] sm:$0xff]  ;;  %v491_v9 = vld [vmem:[#allocation2 + $0xe08] sm:$0xff]  ;;  %v4596_v11 = vcombine.low %v522_v63, %v538_v0  ;;  %v268_v0 = vld [vmem:[#allocation2 + $0x710] sm:$0xff] }
  0x2f   :  { %v506_v8 = vld [vmem:[#allocation2 + $0xe80] sm:$0xff]  ;;  %v507_v10 = vld [vmem:[#allocation2 + $0xe88] sm:$0xff]  ;;  %v4598_v12 = vcombine.low %v523_v1, %v539_v2  ;;  %v284_v1 = vld [vmem:[#allocation2 + $0x790] sm:$0xff] }
  0x30   :  { %3301 = vmatpush1.bf16.msra.mxu0 %v4212_v42  ;;  %3344 = vmatpush1.bf16.msra.mxu1 %v4214_v43  ;;  %v4565_v13 = vcombine.high %v490_v7, %v506_v8  ;;  %v4567_v14 = vcombine.high %v491_v9, %v507_v10  ;;  %v458_v15 = vld [vmem:[#allocation2 + $0xd00] sm:$0xff]  ;;  %v459_v17 = vld [vmem:[#allocation2 + $0xd08] sm:$0xff]  ;;  %v4564_v19 = vcombine.low %v490_v7, %v506_v8  ;;  %v269_v2 = vld [vmem:[#allocation2 + $0x718] sm:$0xff] }
  0x31   :  { %3302 = vmatprep.subr.bf16.mxu0 %v4181_v44  ;;  %3345 = vmatprep.subr.bf16.mxu1 %v4183_v45  ;;  %v474_v16 = vld [vmem:[#allocation2 + $0xd80] sm:$0xff]  ;;  %v475_v18 = vld [vmem:[#allocation2 + $0xd88] sm:$0xff]  ;;  %v4566_v20 = vcombine.low %v491_v9, %v507_v10  ;;  %v236_v8 = vld [vmem:[#allocation2 + $0x610] sm:$0xff] }
  0x32   :  { %v4533_v21 = vcombine.high %v458_v15, %v474_v16  ;;  %v4535_v22 = vcombine.high %v459_v17, %v475_v18  ;;  %v426_v23 = vld [vmem:[#allocation2 + $0xc00] sm:$0xff]  ;;  %v427_v25 = vld [vmem:[#allocation2 + $0xc08] sm:$0xff]  ;;  %v4532_v27 = vcombine.low %v458_v15, %v474_v16  ;;  %v4534_v28 = vcombine.low %v459_v17, %v475_v18  ;;  %v252_v9 = vld [vmem:[#allocation2 + $0x690] sm:$0xff] }
  0x33   :  { %v442_v24 = vld [vmem:[#allocation2 + $0xc80] sm:$0xff]  ;;  %v443_v26 = vld [vmem:[#allocation2 + $0xc88] sm:$0xff]  ;;  %v4313_v15 = vcombine.high %v236_v8, %v252_v9  ;;  %v204_v17 = vld [vmem:[#allocation2 + $0x510] sm:$0xff] }
  0x34   :  { %3303 = vmatpush1.bf16.msra.mxu0 %v4180_v50  ;;  %3346 = vmatpush1.bf16.msra.mxu1 %v4182_v51  ;;  %v4501_v29 = vcombine.high %v426_v23, %v442_v24  ;;  %v4503_v30 = vcombine.high %v427_v25, %v443_v26  ;;  %v394_v31 = vld [vmem:[#allocation2 + $0xb00] sm:$0xff]  ;;  %v395_v33 = vld [vmem:[#allocation2 + $0xb08] sm:$0xff]  ;;  %v4500_v35 = vcombine.low %v426_v23, %v442_v24  ;;  %v220_v18 = vld [vmem:[#allocation2 + $0x590] sm:$0xff] }
  0x35   :  { %3304 = vmatprep.subr.bf16.mxu0 %v4149_v52  ;;  %3347 = vmatprep.subr.bf16.mxu1 %v4151_v53  ;;  %v410_v32 = vld [vmem:[#allocation2 + $0xb80] sm:$0xff]  ;;  %v411_v34 = vld [vmem:[#allocation2 + $0xb88] sm:$0xff]  ;;  %v4502_v36 = vcombine.low %v427_v25, %v443_v26  ;;  %v4281_v23 = vcombine.high %v204_v17, %v220_v18  ;;  %v172_v25 = vld [vmem:[#allocation2 + $0x410] sm:$0xff] }
  0x36   :  { %v4469_v37 = vcombine.high %v394_v31, %v410_v32  ;;  %v4471_v38 = vcombine.high %v395_v33, %v411_v34  ;;  %v362_v39 = vld [vmem:[#allocation2 + $0xa00] sm:$0xff]  ;;  %v363_v41 = vld [vmem:[#allocation2 + $0xa08] sm:$0xff]  ;;  %v4468_v43 = vcombine.low %v394_v31, %v410_v32  ;;  %v4470_v44 = vcombine.low %v395_v33, %v411_v34  ;;  %v188_v26 = vld [vmem:[#allocation2 + $0x490] sm:$0xff] }
  0x37   :  { %v378_v40 = vld [vmem:[#allocation2 + $0xa80] sm:$0xff]  ;;  %v379_v42 = vld [vmem:[#allocation2 + $0xa88] sm:$0xff]  ;;  %v4249_v31 = vcombine.high %v172_v25, %v188_v26  ;;  %v140_v33 = vld [vmem:[#allocation2 + $0x310] sm:$0xff] }
  0x38   :  { %3305 = vmatpush1.bf16.msra.mxu0 %v4148_v59  ;;  %3348 = vmatpush1.bf16.msra.mxu1 %v4150_v60  ;;  %v4437_v45 = vcombine.high %v362_v39, %v378_v40  ;;  %v4439_v46 = vcombine.high %v363_v41, %v379_v42  ;;  %v330_v47 = vld [vmem:[#allocation2 + $0x900] sm:$0xff]  ;;  %v331_v49 = vld [vmem:[#allocation2 + $0x908] sm:$0xff]  ;;  %v4436_v51 = vcombine.low %v362_v39, %v378_v40  ;;  %v156_v34 = vld [vmem:[#allocation2 + $0x390] sm:$0xff] }
  0x39   :  { %3306 = vmatprep.subr.bf16.mxu0 %v4117_v61  ;;  %3349 = vmatprep.subr.bf16.mxu1 %v4119_v62  ;;  %v346_v48 = vld [vmem:[#allocation2 + $0x980] sm:$0xff]  ;;  %v347_v50 = vld [vmem:[#allocation2 + $0x988] sm:$0xff]  ;;  %v4438_v52 = vcombine.low %v363_v41, %v379_v42  ;;  %v4217_v39 = vcombine.high %v140_v33, %v156_v34  ;;  %v108_v41 = vld [vmem:[#allocation2 + $0x210] sm:$0xff] }
  0x3a   :  { %v4405_v53 = vcombine.high %v330_v47, %v346_v48  ;;  %v4407_v54 = vcombine.high %v331_v49, %v347_v50  ;;  %v298_v55 = vld [vmem:[#allocation2 + $0x800] sm:$0xff]  ;;  %v299_v58 = vld [vmem:[#allocation2 + $0x808] sm:$0xff]  ;;  %v4404_v60 = vcombine.low %v330_v47, %v346_v48  ;;  %v4406_v61 = vcombine.low %v331_v49, %v347_v50  ;;  %v124_v42 = vld [vmem:[#allocation2 + $0x290] sm:$0xff] }
  0x3b   :  { %v314_v57 = vld [vmem:[#allocation2 + $0x880] sm:$0xff]  ;;  %v315_v59 = vld [vmem:[#allocation2 + $0x888] sm:$0xff]  ;;  %v4185_v47 = vcombine.high %v108_v41, %v124_v42  ;;  %v76_v49 = vld [vmem:[#allocation2 + $0x110] sm:$0xff] }
  0x3c   :  { %3307 = vmatpush1.bf16.msra.mxu0 %v4116_v3  ;;  %3350 = vmatpush1.bf16.msra.mxu1 %v4118_v4  ;;  %v4373_v62 = vcombine.high %v298_v55, %v314_v57  ;;  %v4375_v63 = vcombine.high %v299_v58, %v315_v59  ;;  %v285_v3 = vld [vmem:[#allocation2 + $0x798] sm:$0xff]  ;;  %v4372_v4 = vcombine.low %v298_v55, %v314_v57  ;;  %v4723_v10 = vld [vmem:[%s5045_s0] ss:$8 sps:$4 sm:$0xff]   ;;  %v92_v50 = vld [vmem:[#allocation2 + $0x190] sm:$0xff] }
  0x3d   :  { %3308 = vmatprep.subr.bf16.mxu0 %v4597_v5  ;;  %3351 = vmatprep.subr.bf16.mxu1 %v4599_v6  ;;  %v4374_v5 = vcombine.low %v299_v58, %v315_v59  ;;  %v4345_v6 = vcombine.high %v268_v0, %v284_v1  ;;  %v4347_v7 = vcombine.high %v269_v2, %v285_v3  ;;  %v44_v58 = vld [vmem:[#allocation2 + $0x10] sm:$0xff] }
  0x3e   :  { %v4153_v55 = vcombine.high %v76_v49, %v92_v50  ;;  %v60_v59 = vld [vmem:[#allocation2 + $0x90] sm:$0xff] }
  0x40   :  { %3309 = vmatpush2.bf16.msra.mxu0 %v4596_v11  ;;  %3352 = vmatpush2.bf16.msra.mxu1 %v4598_v12  ;;  %v237_v11 = vld [vmem:[#allocation2 + $0x618] sm:$0xff] }
  0x41   :  { %3310 = vmatprep.subr.bf16.mxu0 %v4565_v13  ;;  %3353 = vmatprep.subr.bf16.mxu1 %v4567_v14  ;;  %v253_v12 = vld [vmem:[#allocation2 + $0x698] sm:$0xff]  ;;  %v4344_v13 = vcombine.low %v268_v0, %v284_v1  ;;  %v4346_v14 = vcombine.low %v269_v2, %v285_v3  ;;  %v4121_v0 = vcombine.high %v44_v58, %v60_v59  ;;  %v524_v2 = vld [vmem:[#allocation2 + $0xf10] sm:$0xff] }
  0x42   :  { %v4315_v16 = vcombine.high %v237_v11, %v253_v12  ;;  %v540_v3 = vld [vmem:[#allocation2 + $0xf90] sm:$0xff] }
  0x44   :  { %3311 = vmatpush2.bf16.msra.mxu0 %v4564_v19  ;;  %3354 = vmatpush2.bf16.msra.mxu1 %v4566_v20  ;;  %v205_v19 = vld [vmem:[#allocation2 + $0x518] sm:$0xff] }
  0x45   :  { %3312 = vmatprep.subr.bf16.mxu0 %v4533_v21  ;;  %3355 = vmatprep.subr.bf16.mxu1 %v4535_v22  ;;  %v221_v20 = vld [vmem:[#allocation2 + $0x598] sm:$0xff]  ;;  %v4312_v21 = vcombine.low %v236_v8, %v252_v9  ;;  %v4314_v22 = vcombine.low %v237_v11, %v253_v12  ;;  %v4601_v8 = vcombine.high %v524_v2, %v540_v3  ;;  %v492_v11 = vld [vmem:[#allocation2 + $0xe10] sm:$0xff] }
  0x46   :  { %v4283_v24 = vcombine.high %v205_v19, %v221_v20  ;;  %v508_v12 = vld [vmem:[#allocation2 + $0xe90] sm:$0xff] }
  0x48   :  { %3313 = vmatpush2.bf16.msra.mxu0 %v4532_v27  ;;  %3356 = vmatpush2.bf16.msra.mxu1 %v4534_v28  ;;  %v173_v27 = vld [vmem:[#allocation2 + $0x418] sm:$0xff] }
  0x49   :  { %3314 = vmatprep.subr.bf16.mxu0 %v4501_v29  ;;  %3357 = vmatprep.subr.bf16.mxu1 %v4503_v30  ;;  %v189_v28 = vld [vmem:[#allocation2 + $0x498] sm:$0xff]  ;;  %v4280_v29 = vcombine.low %v204_v17, %v220_v18  ;;  %v4282_v30 = vcombine.low %v205_v19, %v221_v20  ;;  %v4569_v17 = vcombine.high %v492_v11, %v508_v12  ;;  %v460_v19 = vld [vmem:[#allocation2 + $0xd10] sm:$0xff] }
  0x4a   :  { %v4251_v32 = vcombine.high %v173_v27, %v189_v28  ;;  %v476_v20 = vld [vmem:[#allocation2 + $0xd90] sm:$0xff] }
  0x4c   :  { %3315 = vmatpush2.bf16.msra.mxu0 %v4500_v35  ;;  %3358 = vmatpush2.bf16.msra.mxu1 %v4502_v36  ;;  %v141_v35 = vld [vmem:[#allocation2 + $0x318] sm:$0xff] }
  0x4d   :  { %3316 = vmatprep.subr.bf16.mxu0 %v4469_v37  ;;  %3359 = vmatprep.subr.bf16.mxu1 %v4471_v38  ;;  %v157_v36 = vld [vmem:[#allocation2 + $0x398] sm:$0xff]  ;;  %v4248_v37 = vcombine.low %v172_v25, %v188_v26  ;;  %v4250_v38 = vcombine.low %v173_v27, %v189_v28  ;;  %v4537_v25 = vcombine.high %v460_v19, %v476_v20  ;;  %v428_v27 = vld [vmem:[#allocation2 + $0xc10] sm:$0xff] }
  0x4e   :  { %v4219_v40 = vcombine.high %v141_v35, %v157_v36  ;;  %v444_v28 = vld [vmem:[#allocation2 + $0xc90] sm:$0xff] }
  0x50   :  { %3317 = vmatpush2.bf16.msra.mxu0 %v4468_v43  ;;  %3360 = vmatpush2.bf16.msra.mxu1 %v4470_v44  ;;  %v109_v43 = vld [vmem:[#allocation2 + $0x218] sm:$0xff] }
  0x51   :  { %3318 = vmatprep.subr.bf16.mxu0 %v4437_v45  ;;  %3361 = vmatprep.subr.bf16.mxu1 %v4439_v46  ;;  %v125_v44 = vld [vmem:[#allocation2 + $0x298] sm:$0xff]  ;;  %v4216_v45 = vcombine.low %v140_v33, %v156_v34  ;;  %v4218_v46 = vcombine.low %v141_v35, %v157_v36  ;;  %v4505_v33 = vcombine.high %v428_v27, %v444_v28  ;;  %v396_v35 = vld [vmem:[#allocation2 + $0xb10] sm:$0xff] }
  0x52   :  { %v4187_v48 = vcombine.high %v109_v43, %v125_v44  ;;  %v412_v36 = vld [vmem:[#allocation2 + $0xb90] sm:$0xff] }
  0x54   :  { %3319 = vmatpush2.bf16.msra.mxu0 %v4436_v51  ;;  %3362 = vmatpush2.bf16.msra.mxu1 %v4438_v52  ;;  %v77_v51 = vld [vmem:[#allocation2 + $0x118] sm:$0xff] }
  0x55   :  { %3320 = vmatprep.subr.bf16.mxu0 %v4405_v53  ;;  %3363 = vmatprep.subr.bf16.mxu1 %v4407_v54  ;;  %v93_v52 = vld [vmem:[#allocation2 + $0x198] sm:$0xff]  ;;  %v4184_v53 = vcombine.low %v108_v41, %v124_v42  ;;  %v4186_v54 = vcombine.low %v109_v43, %v125_v44  ;;  %v4473_v41 = vcombine.high %v396_v35, %v412_v36  ;;  %v364_v43 = vld [vmem:[#allocation2 + $0xa10] sm:$0xff] }
  0x56   :  { %v4155_v57 = vcombine.high %v77_v51, %v93_v52  ;;  %v380_v44 = vld [vmem:[#allocation2 + $0xa90] sm:$0xff] }
  0x58   :  { %3321 = vmatpush2.bf16.msra.mxu0 %v4404_v60  ;;  %3364 = vmatpush2.bf16.msra.mxu1 %v4406_v61  ;;  %v45_v60 = vld [vmem:[#allocation2 + $0x18] sm:$0xff] }
  0x59   :  { %3322 = vmatprep.subr.bf16.mxu0 %v4373_v62  ;;  %3365 = vmatprep.subr.bf16.mxu1 %v4375_v63  ;;  %v61_v61 = vld [vmem:[#allocation2 + $0x98] sm:$0xff]  ;;  %v4152_v62 = vcombine.low %v76_v49, %v92_v50  ;;  %v4154_v63 = vcombine.low %v77_v51, %v93_v52  ;;  %v4441_v49 = vcombine.high %v364_v43, %v380_v44  ;;  %v332_v51 = vld [vmem:[#allocation2 + $0x910] sm:$0xff] }
  0x5a   :  { %v4123_v1 = vcombine.high %v45_v60, %v61_v61  ;;  %v348_v52 = vld [vmem:[#allocation2 + $0x990] sm:$0xff] }
  0x5c   :  { %3323 = vmatpush2.bf16.msra.mxu0 %v4372_v4  ;;  %3366 = vmatpush2.bf16.msra.mxu1 %v4374_v5  ;;  %v525_v4 = vld [vmem:[#allocation2 + $0xf18] sm:$0xff] }
  0x5d   :  { %3378 = vmatprep.subr.bf16.mxu0 %v4345_v6  ;;  %3421 = vmatprep.subr.bf16.mxu1 %v4347_v7  ;;  %v541_v5 = vld [vmem:[#allocation2 + $0xf98] sm:$0xff]  ;;  %v4120_v6 = vcombine.low %v44_v58, %v60_v59  ;;  %v4122_v7 = vcombine.low %v45_v60, %v61_v61  ;;  %v4409_v58 = vcombine.high %v332_v51, %v348_v52  ;;  %v300_v60 = vld [vmem:[#allocation2 + $0x810] sm:$0xff] }
  0x5e   :  { %v4603_v9 = vcombine.high %v525_v4, %v541_v5  ;;  %v316_v61 = vld [vmem:[#allocation2 + $0x890] sm:$0xff] }
  0x5f   :  { %3325 = vmatmul.mubr.bf16.vlgmr.msra.gmra.mxu0 %v4723_v10  ;;  %3368 = vmatmul.mubr.bf16.vlgmr.msra.gmra.mxu1 %v4723_v10 }
  0x60   :  { %3379 = vmatpush1.bf16.msra.mxu0 %v4344_v13  ;;  %3422 = vmatpush1.bf16.msra.mxu1 %v4346_v14  ;;  %v493_v13 = vld [vmem:[#allocation2 + $0xe18] sm:$0xff] }
  0x61   :  { %3380 = vmatprep.subr.bf16.mxu0 %v4313_v15  ;;  %3423 = vmatprep.subr.bf16.mxu1 %v4315_v16  ;;  %v509_v14 = vld [vmem:[#allocation2 + $0xe98] sm:$0xff]  ;;  %v4600_v15 = vcombine.low %v524_v2, %v540_v3  ;;  %v4602_v16 = vcombine.low %v525_v4, %v541_v5  ;;  %v4377_v2 = vcombine.high %v300_v60, %v316_v61  ;;  %v270_v4 = vld [vmem:[#allocation2 + $0x720] sm:$0xff] }
  0x62   :  { %3410 = vmatprep.mubr.bf16.mxu0 %v4716_v56  ;;  %3453 = vmatprep.mubr.bf16.mxu1 %v4716_v56  ;;  %v4571_v18 = vcombine.high %v493_v13, %v509_v14  ;;  %v286_v5 = vld [vmem:[#allocation2 + $0x7a0] sm:$0xff] }
  0x64   :  { %3381 = vmatpush1.bf16.msra.mxu0 %v4312_v21  ;;  %3424 = vmatpush1.bf16.msra.mxu1 %v4314_v22  ;;  %v461_v21 = vld [vmem:[#allocation2 + $0xd18] sm:$0xff] }
  0x65   :  { %3382 = vmatprep.subr.bf16.mxu0 %v4281_v23  ;;  %3425 = vmatprep.subr.bf16.mxu1 %v4283_v24  ;;  %v477_v22 = vld [vmem:[#allocation2 + $0xd98] sm:$0xff]  ;;  %v4568_v23 = vcombine.low %v492_v11, %v508_v12  ;;  %v4570_v24 = vcombine.low %v493_v13, %v509_v14  ;;  %v4349_v11 = vcombine.high %v270_v4, %v286_v5  ;;  %v238_v13 = vld [vmem:[#allocation2 + $0x620] sm:$0xff] }
  0x66   :  { %v4539_v26 = vcombine.high %v461_v21, %v477_v22  ;;  %v254_v14 = vld [vmem:[#allocation2 + $0x6a0] sm:$0xff] }
  0x68   :  { %3383 = vmatpush1.bf16.msra.mxu0 %v4280_v29  ;;  %3426 = vmatpush1.bf16.msra.mxu1 %v4282_v30  ;;  %v429_v29 = vld [vmem:[#allocation2 + $0xc18] sm:$0xff] }
  0x69   :  { %3384 = vmatprep.subr.bf16.mxu0 %v4249_v31  ;;  %3427 = vmatprep.subr.bf16.mxu1 %v4251_v32  ;;  %v445_v30 = vld [vmem:[#allocation2 + $0xc98] sm:$0xff]  ;;  %v4536_v31 = vcombine.low %v460_v19, %v476_v20  ;;  %v4538_v32 = vcombine.low %v461_v21, %v477_v22  ;;  %v4317_v19 = vcombine.high %v238_v13, %v254_v14  ;;  %v206_v21 = vld [vmem:[#allocation2 + $0x520] sm:$0xff] }
  0x6a   :  { %v4507_v34 = vcombine.high %v429_v29, %v445_v30  ;;  %v222_v22 = vld [vmem:[#allocation2 + $0x5a0] sm:$0xff] }
  0x6c   :  { %3385 = vmatpush1.bf16.msra.mxu0 %v4248_v37  ;;  %3428 = vmatpush1.bf16.msra.mxu1 %v4250_v38  ;;  %v397_v37 = vld [vmem:[#allocation2 + $0xb18] sm:$0xff] }
  0x6d   :  { %3386 = vmatprep.subr.bf16.mxu0 %v4217_v39  ;;  %3429 = vmatprep.subr.bf16.mxu1 %v4219_v40  ;;  %v413_v38 = vld [vmem:[#allocation2 + $0xb98] sm:$0xff]  ;;  %v4504_v39 = vcombine.low %v428_v27, %v444_v28  ;;  %v4506_v40 = vcombine.low %v429_v29, %v445_v30  ;;  %v4285_v27 = vcombine.high %v206_v21, %v222_v22  ;;  %v174_v29 = vld [vmem:[#allocation2 + $0x420] sm:$0xff] }
  0x6e   :  { %v4475_v42 = vcombine.high %v397_v37, %v413_v38  ;;  %v190_v30 = vld [vmem:[#allocation2 + $0x4a0] sm:$0xff] }
  0x70   :  { %3387 = vmatpush1.bf16.msra.mxu0 %v4216_v45  ;;  %3430 = vmatpush1.bf16.msra.mxu1 %v4218_v46  ;;  %v365_v45 = vld [vmem:[#allocation2 + $0xa18] sm:$0xff] }
  0x71   :  { %3388 = vmatprep.subr.bf16.mxu0 %v4185_v47  ;;  %3431 = vmatprep.subr.bf16.mxu1 %v4187_v48  ;;  %v381_v46 = vld [vmem:[#allocation2 + $0xa98] sm:$0xff]  ;;  %v4472_v47 = vcombine.low %v396_v35, %v412_v36  ;;  %v4474_v48 = vcombine.low %v397_v37, %v413_v38  ;;  %v4253_v35 = vcombine.high %v174_v29, %v190_v30  ;;  %v142_v37 = vld [vmem:[#allocation2 + $0x320] sm:$0xff] }
  0x72   :  { %v4443_v50 = vcombine.high %v365_v45, %v381_v46  ;;  %v158_v38 = vld [vmem:[#allocation2 + $0x3a0] sm:$0xff] }
  0x74   :  { %3389 = vmatpush1.bf16.msra.mxu0 %v4184_v53  ;;  %3432 = vmatpush1.bf16.msra.mxu1 %v4186_v54  ;;  %v333_v53 = vld [vmem:[#allocation2 + $0x918] sm:$0xff] }
  0x75   :  { %3390 = vmatprep.subr.bf16.mxu0 %v4153_v55  ;;  %3433 = vmatprep.subr.bf16.mxu1 %v4155_v57  ;;  %v349_v54 = vld [vmem:[#allocation2 + $0x998] sm:$0xff]  ;;  %v4440_v55 = vcombine.low %v364_v43, %v380_v44  ;;  %v4442_v57 = vcombine.low %v365_v45, %v381_v46  ;;  %v4221_v43 = vcombine.high %v142_v37, %v158_v38  ;;  %v110_v44 = vld [vmem:[#allocation2 + $0x220] sm:$0xff]  ;;  %v111_v46 = vld [vmem:[#allocation2 + $0x228] sm:$0xff] }
  0x76   :  { %v4411_v59 = vcombine.high %v333_v53, %v349_v54  ;;  %v126_v45 = vld [vmem:[#allocation2 + $0x2a0] sm:$0xff] }
  0x78   :  { %3391 = vmatpush1.bf16.msra.mxu0 %v4152_v62  ;;  %3434 = vmatpush1.bf16.msra.mxu1 %v4154_v63  ;;  %v301_v62 = vld [vmem:[#allocation2 + $0x818] sm:$0xff] }
  0x79   :  { %3392 = vmatprep.subr.bf16.mxu0 %v4121_v0  ;;  %3435 = vmatprep.subr.bf16.mxu1 %v4123_v1  ;;  %v317_v63 = vld [vmem:[#allocation2 + $0x898] sm:$0xff]  ;;  %v4408_v0 = vcombine.low %v332_v51, %v348_v52  ;;  %v4410_v1 = vcombine.low %v333_v53, %v349_v54  ;;  %v78_v52 = vld [vmem:[#allocation2 + $0x120] sm:$0xff]  ;;  %v79_v54 = vld [vmem:[#allocation2 + $0x128] sm:$0xff] }
  0x7a   :  { %v4379_v3 = vcombine.high %v301_v62, %v317_v63  ;;  %v94_v53 = vld [vmem:[#allocation2 + $0x1a0] sm:$0xff] }
  0x7c   :  { %3393 = vmatpush1.bf16.msra.mxu0 %v4120_v6  ;;  %3436 = vmatpush1.bf16.msra.mxu1 %v4122_v7  ;;  %v271_v6 = vld [vmem:[#allocation2 + $0x728] sm:$0xff] }
  0x7d   :  { %3394 = vmatprep.subr.bf16.mxu0 %v4601_v8  ;;  %3437 = vmatprep.subr.bf16.mxu1 %v4603_v9  ;;  %v287_v7 = vld [vmem:[#allocation2 + $0x7a8] sm:$0xff]  ;;  %v4376_v8 = vcombine.low %v300_v60, %v316_v61  ;;  %v4378_v9 = vcombine.low %v301_v62, %v317_v63  ;;  %v46_v61 = vld [vmem:[#allocation2 + $0x20] sm:$0xff] }
  0x7e   :  { %v4351_v12 = vcombine.high %v271_v6, %v287_v7  ;;  %v62_v62 = vld [vmem:[#allocation2 + $0xa0] sm:$0xff]  ;;  %v47_v63 = vld [vmem:[#allocation2 + $0x28] sm:$0xff] }
  0x80   :  { %3395 = vmatpush2.bf16.msra.mxu0 %v4600_v15  ;;  %3438 = vmatpush2.bf16.msra.mxu1 %v4602_v16  ;;  %v239_v15 = vld [vmem:[#allocation2 + $0x628] sm:$0xff] }
  0x81   :  { %3396 = vmatprep.subr.bf16.mxu0 %v4569_v17  ;;  %3439 = vmatprep.subr.bf16.mxu1 %v4571_v18  ;;  %v255_v16 = vld [vmem:[#allocation2 + $0x6a8] sm:$0xff]  ;;  %v4348_v17 = vcombine.low %v270_v4, %v286_v5  ;;  %v4350_v18 = vcombine.low %v271_v6, %v287_v7  ;;  %v526_v5 = vld [vmem:[#allocation2 + $0xf20] sm:$0xff] }
  0x82   :  { %v4319_v20 = vcombine.high %v239_v15, %v255_v16  ;;  %v542_v6 = vld [vmem:[#allocation2 + $0xfa0] sm:$0xff]  ;;  %v527_v7 = vld [vmem:[#allocation2 + $0xf28] sm:$0xff] }
  0x84   :  { %3397 = vmatpush2.bf16.msra.mxu0 %v4568_v23  ;;  %3440 = vmatpush2.bf16.msra.mxu1 %v4570_v24  ;;  %v207_v23 = vld [vmem:[#allocation2 + $0x528] sm:$0xff] }
  0x85   :  { %3398 = vmatprep.subr.bf16.mxu0 %v4537_v25  ;;  %3441 = vmatprep.subr.bf16.mxu1 %v4539_v26  ;;  %v223_v24 = vld [vmem:[#allocation2 + $0x5a8] sm:$0xff]  ;;  %v4316_v25 = vcombine.low %v238_v13, %v254_v14  ;;  %v4318_v26 = vcombine.low %v239_v15, %v255_v16  ;;  %v494_v14 = vld [vmem:[#allocation2 + $0xe20] sm:$0xff] }
  0x86   :  { %v4287_v28 = vcombine.high %v207_v23, %v223_v24  ;;  %v510_v15 = vld [vmem:[#allocation2 + $0xea0] sm:$0xff]  ;;  %v495_v16 = vld [vmem:[#allocation2 + $0xe28] sm:$0xff] }
  0x88   :  { %3399 = vmatpush2.bf16.msra.mxu0 %v4536_v31  ;;  %3442 = vmatpush2.bf16.msra.mxu1 %v4538_v32  ;;  %v175_v31 = vld [vmem:[#allocation2 + $0x428] sm:$0xff] }
  0x89   :  { %3400 = vmatprep.subr.bf16.mxu0 %v4505_v33  ;;  %3443 = vmatprep.subr.bf16.mxu1 %v4507_v34  ;;  %v191_v32 = vld [vmem:[#allocation2 + $0x4a8] sm:$0xff]  ;;  %v4284_v33 = vcombine.low %v206_v21, %v222_v22  ;;  %v4286_v34 = vcombine.low %v207_v23, %v223_v24  ;;  %v462_v22 = vld [vmem:[#allocation2 + $0xd20] sm:$0xff] }
  0x8a   :  { %v4255_v36 = vcombine.high %v175_v31, %v191_v32  ;;  %v478_v23 = vld [vmem:[#allocation2 + $0xda0] sm:$0xff]  ;;  %v463_v24 = vld [vmem:[#allocation2 + $0xd28] sm:$0xff] }
  0x8c   :  { %3401 = vmatpush2.bf16.msra.mxu0 %v4504_v39  ;;  %3444 = vmatpush2.bf16.msra.mxu1 %v4506_v40  ;;  %v143_v39 = vld [vmem:[#allocation2 + $0x328] sm:$0xff] }
  0x8d   :  { %3402 = vmatprep.subr.bf16.mxu0 %v4473_v41  ;;  %3445 = vmatprep.subr.bf16.mxu1 %v4475_v42  ;;  %v159_v40 = vld [vmem:[#allocation2 + $0x3a8] sm:$0xff]  ;;  %v4252_v41 = vcombine.low %v174_v29, %v190_v30  ;;  %v4254_v42 = vcombine.low %v175_v31, %v191_v32  ;;  %v430_v30 = vld [vmem:[#allocation2 + $0xc20] sm:$0xff] }
  0x8e   :  { %v446_v31 = vld [vmem:[#allocation2 + $0xca0] sm:$0xff]  ;;  %v431_v32 = vld [vmem:[#allocation2 + $0xc28] sm:$0xff] }
  0x90   :  { %3403 = vmatpush2.bf16.msra.mxu0 %v4472_v47  ;;  %3446 = vmatpush2.bf16.msra.mxu1 %v4474_v48  ;;  %v127_v47 = vld [vmem:[#allocation2 + $0x2a8] sm:$0xff]  ;;  %v4220_v48 = vcombine.low %v142_v37, %v158_v38  ;;  %v398_v38 = vld [vmem:[#allocation2 + $0xb20] sm:$0xff] }
  0x91   :  { %3404 = vmatprep.subr.bf16.mxu0 %v4441_v49  ;;  %3447 = vmatprep.subr.bf16.mxu1 %v4443_v50  ;;  %v4222_v49 = vcombine.low %v143_v39, %v159_v40  ;;  %v4189_v50 = vcombine.high %v110_v44, %v126_v45  ;;  %v4191_v51 = vcombine.high %v111_v46, %v127_v47 }
  0x94   :  { %3405 = vmatpush2.bf16.msra.mxu0 %v4440_v55  ;;  %3448 = vmatpush2.bf16.msra.mxu1 %v4442_v57  ;;  %v95_v55 = vld [vmem:[#allocation2 + $0x1a8] sm:$0xff]  ;;  %v4188_v57 = vcombine.low %v110_v44, %v126_v45  ;;  %v366_v45 = vld [vmem:[#allocation2 + $0xa20] sm:$0xff] }
  0x95   :  { %3406 = vmatprep.subr.bf16.mxu0 %v4409_v58  ;;  %3449 = vmatprep.subr.bf16.mxu1 %v4411_v59  ;;  %v4190_v58 = vcombine.low %v111_v46, %v127_v47  ;;  %v4157_v59 = vcombine.high %v78_v52, %v94_v53  ;;  %v4159_v60 = vcombine.high %v79_v54, %v95_v55  ;;  %v382_v46 = vld [vmem:[#allocation2 + $0xaa0] sm:$0xff]  ;;  %v367_v47 = vld [vmem:[#allocation2 + $0xa28] sm:$0xff] }
  0x98   :  { %3407 = vmatpush2.bf16.msra.mxu0 %v4408_v0  ;;  %3450 = vmatpush2.bf16.msra.mxu1 %v4410_v1  ;;  %v63_v0 = vld [vmem:[#allocation2 + $0xa8] sm:$0xff]  ;;  %v4156_v1 = vcombine.low %v78_v52, %v94_v53  ;;  %v334_v53 = vld [vmem:[#allocation2 + $0x920] sm:$0xff] }
  0x99   :  { %3408 = vmatprep.subr.bf16.mxu0 %v4377_v2  ;;  %3451 = vmatprep.subr.bf16.mxu1 %v4379_v3  ;;  %v4158_v2 = vcombine.low %v79_v54, %v95_v55  ;;  %v4125_v3 = vcombine.high %v46_v61, %v62_v62  ;;  %v4127_v4 = vcombine.high %v47_v63, %v63_v0  ;;  %v350_v54 = vld [vmem:[#allocation2 + $0x9a0] sm:$0xff]  ;;  %v335_v55 = vld [vmem:[#allocation2 + $0x928] sm:$0xff] }
  0x9c   :  { %3409 = vmatpush2.bf16.msra.mxu0 %v4376_v8  ;;  %3452 = vmatpush2.bf16.msra.mxu1 %v4378_v9  ;;  %v543_v8 = vld [vmem:[#allocation2 + $0xfa8] sm:$0xff]  ;;  %v4124_v9 = vcombine.low %v46_v61, %v62_v62  ;;  %v302_v62 = vld [vmem:[#allocation2 + $0x820] sm:$0xff] }
  0x9d   :  { %3464 = vmatprep.subr.bf16.mxu0 %v4349_v11  ;;  %3507 = vmatprep.subr.bf16.mxu1 %v4351_v12  ;;  %v4126_v11 = vcombine.low %v47_v63, %v63_v0  ;;  %v4605_v12 = vcombine.high %v526_v5, %v542_v6  ;;  %v4607_v13 = vcombine.high %v527_v7, %v543_v8  ;;  %v318_v63 = vld [vmem:[#allocation2 + $0x8a0] sm:$0xff]  ;;  %v303_v0 = vld [vmem:[#allocation2 + $0x828] sm:$0xff] }
  0x9f   :  { %3411 = vmatmul.mubr.bf16.vlgmr.msra.gmra.mxu0 %v4723_v10  ;;  %3454 = vmatmul.mubr.bf16.vlgmr.msra.gmra.mxu1 %v4723_v10 }
  0xa0   :  { %3465 = vmatpush1.bf16.msra.mxu0 %v4348_v17  ;;  %3508 = vmatpush1.bf16.msra.mxu1 %v4350_v18  ;;  %v511_v17 = vld [vmem:[#allocation2 + $0xea8] sm:$0xff]  ;;  %v4604_v18 = vcombine.low %v526_v5, %v542_v6  ;;  %v272_v6 = vld [vmem:[#allocation2 + $0x730] sm:$0xff] }
  0xa1   :  { %3466 = vmatprep.subr.bf16.mxu0 %v4317_v19  ;;  %3509 = vmatprep.subr.bf16.mxu1 %v4319_v20  ;;  %v4606_v19 = vcombine.low %v527_v7, %v543_v8  ;;  %v4573_v20 = vcombine.high %v494_v14, %v510_v15  ;;  %v4575_v21 = vcombine.high %v495_v16, %v511_v17  ;;  %v288_v7 = vld [vmem:[#allocation2 + $0x7b0] sm:$0xff]  ;;  %v273_v8 = vld [vmem:[#allocation2 + $0x738] sm:$0xff] }
  0xa2   :  { %3496 = vmatprep.mubr.bf16.mxu0 %v4716_v56  ;;  %3539 = vmatprep.mubr.bf16.mxu1 %v4716_v56  ;;  %v4223_v56 = vcombine.high %v143_v39, %v159_v40  ;;  %v414_v39 = vld [vmem:[#allocation2 + $0xba0] sm:$0xff]  ;;  %v399_v40 = vld [vmem:[#allocation2 + $0xb28] sm:$0xff] }
  0xa4   :  { %3467 = vmatpush1.bf16.msra.mxu0 %v4316_v25  ;;  %3510 = vmatpush1.bf16.msra.mxu1 %v4318_v26  ;;  %v479_v25 = vld [vmem:[#allocation2 + $0xda8] sm:$0xff]  ;;  %v4572_v26 = vcombine.low %v494_v14, %v510_v15  ;;  %v240_v15 = vld [vmem:[#allocation2 + $0x630] sm:$0xff] }
  0xa5   :  { %3468 = vmatprep.subr.bf16.mxu0 %v4285_v27  ;;  %3511 = vmatprep.subr.bf16.mxu1 %v4287_v28  ;;  %v4574_v27 = vcombine.low %v495_v16, %v511_v17  ;;  %v4541_v28 = vcombine.high %v462_v22, %v478_v23  ;;  %v4543_v29 = vcombine.high %v463_v24, %v479_v25  ;;  %v256_v16 = vld [vmem:[#allocation2 + $0x6b0] sm:$0xff]  ;;  %v241_v17 = vld [vmem:[#allocation2 + $0x638] sm:$0xff] }
  0xa8   :  { %3469 = vmatpush1.bf16.msra.mxu0 %v4284_v33  ;;  %3512 = vmatpush1.bf16.msra.mxu1 %v4286_v34  ;;  %v447_v33 = vld [vmem:[#allocation2 + $0xca8] sm:$0xff]  ;;  %v4540_v34 = vcombine.low %v462_v22, %v478_v23  ;;  %v208_v23 = vld [vmem:[#allocation2 + $0x530] sm:$0xff] }
  0xa9   :  { %3470 = vmatprep.subr.bf16.mxu0 %v4253_v35  ;;  %3513 = vmatprep.subr.bf16.mxu1 %v4255_v36  ;;  %v4542_v35 = vcombine.low %v463_v24, %v479_v25  ;;  %v4509_v36 = vcombine.high %v430_v30, %v446_v31  ;;  %v4511_v37 = vcombine.high %v431_v32, %v447_v33  ;;  %v224_v24 = vld [vmem:[#allocation2 + $0x5b0] sm:$0xff]  ;;  %v209_v25 = vld [vmem:[#allocation2 + $0x538] sm:$0xff] }
  0xac   :  { %3471 = vmatpush1.bf16.msra.mxu0 %v4252_v41  ;;  %3514 = vmatpush1.bf16.msra.mxu1 %v4254_v42  ;;  %v415_v41 = vld [vmem:[#allocation2 + $0xba8] sm:$0xff]  ;;  %v4508_v42 = vcombine.low %v430_v30, %v446_v31  ;;  %v176_v31 = vld [vmem:[#allocation2 + $0x430] sm:$0xff] }
  0xad   :  { %3472 = vmatprep.subr.bf16.mxu0 %v4221_v43  ;;  %3515 = vmatprep.subr.bf16.mxu1 %v4223_v56  ;;  %v4510_v43 = vcombine.low %v431_v32, %v447_v33  ;;  %v4477_v56 = vcombine.high %v398_v38, %v414_v39  ;;  %v4479_v44 = vcombine.high %v399_v40, %v415_v41  ;;  %v192_v32 = vld [vmem:[#allocation2 + $0x4b0] sm:$0xff]  ;;  %v4738_v33 = vld [vmem:[%s5045_s0 + $0x4] ss:$8 sps:$4 sm:$0xff]  }
  0xb0   :  { %3473 = vmatpush1.bf16.msra.mxu0 %v4220_v48  ;;  %3516 = vmatpush1.bf16.msra.mxu1 %v4222_v49  ;;  %v383_v48 = vld [vmem:[#allocation2 + $0xaa8] sm:$0xff]  ;;  %v4476_v49 = vcombine.low %v398_v38, %v414_v39  ;;  %v144_v39 = vld [vmem:[#allocation2 + $0x330] sm:$0xff] }
  0xb1   :  { %3474 = vmatprep.subr.bf16.mxu0 %v4189_v50  ;;  %3517 = vmatprep.subr.bf16.mxu1 %v4191_v51  ;;  %v4478_v50 = vcombine.low %v399_v40, %v415_v41  ;;  %v4445_v51 = vcombine.high %v366_v45, %v382_v46  ;;  %v4447_v52 = vcombine.high %v367_v47, %v383_v48  ;;  %v160_v40 = vld [vmem:[#allocation2 + $0x3b0] sm:$0xff]  ;;  %v145_v41 = vld [vmem:[#allocation2 + $0x338] sm:$0xff] }
  0xb4   :  { %3475 = vmatpush1.bf16.msra.mxu0 %v4188_v57  ;;  %3518 = vmatpush1.bf16.msra.mxu1 %v4190_v58  ;;  %v351_v57 = vld [vmem:[#allocation2 + $0x9a8] sm:$0xff]  ;;  %v4444_v58 = vcombine.low %v366_v45, %v382_v46  ;;  %v112_v46 = vld [vmem:[#allocation2 + $0x230] sm:$0xff] }
  0xb5   :  { %3476 = vmatprep.subr.bf16.mxu0 %v4157_v59  ;;  %3519 = vmatprep.subr.bf16.mxu1 %v4159_v60  ;;  %v4446_v59 = vcombine.low %v367_v47, %v383_v48  ;;  %v4413_v60 = vcombine.high %v334_v53, %v350_v54  ;;  %v4415_v61 = vcombine.high %v335_v55, %v351_v57  ;;  %v128_v47 = vld [vmem:[#allocation2 + $0x2b0] sm:$0xff]  ;;  %v113_v48 = vld [vmem:[#allocation2 + $0x238] sm:$0xff] }
  0xb8   :  { %3477 = vmatpush1.bf16.msra.mxu0 %v4156_v1  ;;  %3520 = vmatpush1.bf16.msra.mxu1 %v4158_v2  ;;  %v319_v1 = vld [vmem:[#allocation2 + $0x8a8] sm:$0xff]  ;;  %v4412_v2 = vcombine.low %v334_v53, %v350_v54  ;;  %v80_v54 = vld [vmem:[#allocation2 + $0x130] sm:$0xff] }
  0xb9   :  { %3478 = vmatprep.subr.bf16.mxu0 %v4125_v3  ;;  %3521 = vmatprep.subr.bf16.mxu1 %v4127_v4  ;;  %v4414_v3 = vcombine.low %v335_v55, %v351_v57  ;;  %v4381_v4 = vcombine.high %v302_v62, %v318_v63  ;;  %v4383_v5 = vcombine.high %v303_v0, %v319_v1  ;;  %v96_v55 = vld [vmem:[#allocation2 + $0x1b0] sm:$0xff]  ;;  %v81_v57 = vld [vmem:[#allocation2 + $0x138] sm:$0xff] }
  0xbc   :  { %3479 = vmatpush1.bf16.msra.mxu0 %v4124_v9  ;;  %3522 = vmatpush1.bf16.msra.mxu1 %v4126_v11  ;;  %v289_v9 = vld [vmem:[#allocation2 + $0x7b8] sm:$0xff]  ;;  %v4380_v11 = vcombine.low %v302_v62, %v318_v63  ;;  %v48_v63 = vld [vmem:[#allocation2 + $0x30] sm:$0xff] }
  0xbd   :  { %3480 = vmatprep.subr.bf16.mxu0 %v4605_v12  ;;  %3523 = vmatprep.subr.bf16.mxu1 %v4607_v13  ;;  %v4382_v12 = vcombine.low %v303_v0, %v319_v1  ;;  %v4353_v13 = vcombine.high %v272_v6, %v288_v7  ;;  %v4355_v14 = vcombine.high %v273_v8, %v289_v9  ;;  %v64_v0 = vld [vmem:[#allocation2 + $0xb0] sm:$0xff]  ;;  %v49_v1 = vld [vmem:[#allocation2 + $0x38] sm:$0xff] }
  0xc0   :  { %3481 = vmatpush2.bf16.msra.mxu0 %v4604_v18  ;;  %3524 = vmatpush2.bf16.msra.mxu1 %v4606_v19  ;;  %v257_v18 = vld [vmem:[#allocation2 + $0x6b8] sm:$0xff]  ;;  %v4352_v19 = vcombine.low %v272_v6, %v288_v7  ;;  %v528_v7 = vld [vmem:[#allocation2 + $0xf30] sm:$0xff] }
  0xc1   :  { %3482 = vmatprep.subr.bf16.mxu0 %v4573_v20  ;;  %3525 = vmatprep.subr.bf16.mxu1 %v4575_v21  ;;  %v4354_v20 = vcombine.low %v273_v8, %v289_v9  ;;  %v4321_v21 = vcombine.high %v240_v15, %v256_v16  ;;  %v4323_v22 = vcombine.high %v241_v17, %v257_v18  ;;  %v544_v8 = vld [vmem:[#allocation2 + $0xfb0] sm:$0xff]  ;;  %v529_v9 = vld [vmem:[#allocation2 + $0xf38] sm:$0xff] }
  0xc4   :  { %3483 = vmatpush2.bf16.msra.mxu0 %v4572_v26  ;;  %3526 = vmatpush2.bf16.msra.mxu1 %v4574_v27  ;;  %v225_v26 = vld [vmem:[#allocation2 + $0x5b8] sm:$0xff]  ;;  %v4320_v27 = vcombine.low %v240_v15, %v256_v16  ;;  %v496_v16 = vld [vmem:[#allocation2 + $0xe30] sm:$0xff] }
  0xc5   :  { %3484 = vmatprep.subr.bf16.mxu0 %v4541_v28  ;;  %3527 = vmatprep.subr.bf16.mxu1 %v4543_v29  ;;  %v4322_v28 = vcombine.low %v241_v17, %v257_v18  ;;  %v4289_v29 = vcombine.high %v208_v23, %v224_v24  ;;  %v4291_v30 = vcombine.high %v209_v25, %v225_v26  ;;  %v512_v17 = vld [vmem:[#allocation2 + $0xeb0] sm:$0xff]  ;;  %v497_v18 = vld [vmem:[#allocation2 + $0xe38] sm:$0xff] }
  0xc8   :  { %3485 = vmatpush2.bf16.msra.mxu0 %v4540_v34  ;;  %3528 = vmatpush2.bf16.msra.mxu1 %v4542_v35  ;;  %v177_v34 = vld [vmem:[#allocation2 + $0x438] sm:$0xff] }
  0xc9   :  { %3486 = vmatprep.subr.bf16.mxu0 %v4509_v36  ;;  %3529 = vmatprep.subr.bf16.mxu1 %v4511_v37  ;;  %v193_v35 = vld [vmem:[#allocation2 + $0x4b8] sm:$0xff]  ;;  %v4290_v36 = vcombine.low %v209_v25, %v225_v26  ;;  %v4257_v37 = vcombine.high %v176_v31, %v192_v32  ;;  %v480_v25 = vld [vmem:[#allocation2 + $0xdb0] sm:$0xff] }
  0xca   :  { %v4259_v38 = vcombine.high %v177_v34, %v193_v35  ;;  %v465_v26 = vld [vmem:[#allocation2 + $0xd38] sm:$0xff] }
  0xcc   :  { %3487 = vmatpush2.bf16.msra.mxu0 %v4508_v42  ;;  %3530 = vmatpush2.bf16.msra.mxu1 %v4510_v43  ;;  %v161_v42 = vld [vmem:[#allocation2 + $0x3b8] sm:$0xff]  ;;  %v4256_v43 = vcombine.low %v176_v31, %v192_v32  ;;  %v432_v32 = vld [vmem:[#allocation2 + $0xc30] sm:$0xff] }
  0xcd   :  { %3488 = vmatprep.subr.bf16.mxu0 %v4477_v56  ;;  %3531 = vmatprep.subr.bf16.mxu1 %v4479_v44  ;;  %v4258_v56 = vcombine.low %v177_v34, %v193_v35  ;;  %v4225_v44 = vcombine.high %v144_v39, %v160_v40  ;;  %v4227_v45 = vcombine.high %v145_v41, %v161_v42  ;;  %v448_v34 = vld [vmem:[#allocation2 + $0xcb0] sm:$0xff]  ;;  %v433_v35 = vld [vmem:[#allocation2 + $0xc38] sm:$0xff] }
  0xd0   :  { %3489 = vmatpush2.bf16.msra.mxu0 %v4476_v49  ;;  %3532 = vmatpush2.bf16.msra.mxu1 %v4478_v50  ;;  %v129_v49 = vld [vmem:[#allocation2 + $0x2b8] sm:$0xff]  ;;  %v4224_v50 = vcombine.low %v144_v39, %v160_v40  ;;  %v400_v40 = vld [vmem:[#allocation2 + $0xb30] sm:$0xff] }
  0xd1   :  { %3490 = vmatprep.subr.bf16.mxu0 %v4445_v51  ;;  %3533 = vmatprep.subr.bf16.mxu1 %v4447_v52  ;;  %v4226_v51 = vcombine.low %v145_v41, %v161_v42  ;;  %v4193_v52 = vcombine.high %v112_v46, %v128_v47  ;;  %v4195_v53 = vcombine.high %v113_v48, %v129_v49  ;;  %v416_v41 = vld [vmem:[#allocation2 + $0xbb0] sm:$0xff]  ;;  %v401_v42 = vld [vmem:[#allocation2 + $0xb38] sm:$0xff] }
  0xd4   :  { %3491 = vmatpush2.bf16.msra.mxu0 %v4444_v58  ;;  %3534 = vmatpush2.bf16.msra.mxu1 %v4446_v59  ;;  %v97_v58 = vld [vmem:[#allocation2 + $0x1b8] sm:$0xff]  ;;  %v4192_v59 = vcombine.low %v112_v46, %v128_v47  ;;  %v368_v47 = vld [vmem:[#allocation2 + $0xa30] sm:$0xff] }
  0xd5   :  { %3492 = vmatprep.subr.bf16.mxu0 %v4413_v60  ;;  %3535 = vmatprep.subr.bf16.mxu1 %v4415_v61  ;;  %v4194_v60 = vcombine.low %v113_v48, %v129_v49  ;;  %v4161_v61 = vcombine.high %v80_v54, %v96_v55  ;;  %v4163_v62 = vcombine.high %v81_v57, %v97_v58  ;;  %v384_v48 = vld [vmem:[#allocation2 + $0xab0] sm:$0xff]  ;;  %v369_v49 = vld [vmem:[#allocation2 + $0xa38] sm:$0xff] }
  0xd8   :  { %3493 = vmatpush2.bf16.msra.mxu0 %v4412_v2  ;;  %3536 = vmatpush2.bf16.msra.mxu1 %v4414_v3  ;;  %v65_v2 = vld [vmem:[#allocation2 + $0xb8] sm:$0xff]  ;;  %v4160_v3 = vcombine.low %v80_v54, %v96_v55  ;;  %v336_v55 = vld [vmem:[#allocation2 + $0x930] sm:$0xff] }
  0xd9   :  { %3494 = vmatprep.subr.bf16.mxu0 %v4381_v4  ;;  %3537 = vmatprep.subr.bf16.mxu1 %v4383_v5  ;;  %v4162_v4 = vcombine.low %v81_v57, %v97_v58  ;;  %v4129_v5 = vcombine.high %v48_v63, %v64_v0  ;;  %v4131_v6 = vcombine.high %v49_v1, %v65_v2  ;;  %v352_v57 = vld [vmem:[#allocation2 + $0x9b0] sm:$0xff]  ;;  %v337_v58 = vld [vmem:[#allocation2 + $0x938] sm:$0xff] }
  0xdc   :  { %3495 = vmatpush2.bf16.msra.mxu0 %v4380_v11  ;;  %3538 = vmatpush2.bf16.msra.mxu1 %v4382_v12  ;;  %v545_v11 = vld [vmem:[#allocation2 + $0xfb8] sm:$0xff]  ;;  %v4128_v12 = vcombine.low %v48_v63, %v64_v0  ;;  %v4417_v63 = vcombine.high %v336_v55, %v352_v57 }
  0xdd   :  { %3550 = vmatprep.subr.bf16.mxu0 %v4353_v13  ;;  %3593 = vmatprep.subr.bf16.mxu1 %v4355_v14  ;;  %v4130_v13 = vcombine.low %v49_v1, %v65_v2  ;;  %v4609_v14 = vcombine.high %v528_v7, %v544_v8  ;;  %v4611_v15 = vcombine.high %v529_v9, %v545_v11  ;;  %v304_v1 = vld [vmem:[#allocation2 + $0x830] sm:$0xff] }
  0xde   :  { %v320_v2 = vld [vmem:[#allocation2 + $0x8b0] sm:$0xff] }
  0xdf   :  { %3497 = vmatmul.mubr.bf16.vlgmr.msra.gmra.mxu0 %v4723_v10  ;;  %3540 = vmatmul.mubr.bf16.vlgmr.msra.gmra.mxu1 %v4723_v10  ;;  %v4288_v10 = vcombine.low %v208_v23, %v224_v24  ;;  %v464_v24 = vld [vmem:[#allocation2 + $0xd30] sm:$0xff] }
  0xe0   :  { %3551 = vmatpush1.bf16.msra.mxu0 %v4352_v19  ;;  %3594 = vmatpush1.bf16.msra.mxu1 %v4354_v20  ;;  %v513_v19 = vld [vmem:[#allocation2 + $0xeb8] sm:$0xff]  ;;  %v4608_v20 = vcombine.low %v528_v7, %v544_v8  ;;  %v4385_v8 = vcombine.high %v304_v1, %v320_v2 }
  0xe1   :  { %3552 = vmatprep.subr.bf16.mxu0 %v4321_v21  ;;  %3595 = vmatprep.subr.bf16.mxu1 %v4323_v22  ;;  %v4610_v21 = vcombine.low %v529_v9, %v545_v11  ;;  %v4577_v22 = vcombine.high %v496_v16, %v512_v17  ;;  %v4579_v23 = vcombine.high %v497_v18, %v513_v19  ;;  %v274_v11 = vld [vmem:[#allocation2 + $0x740] sm:$0xff] }
  0xe2   :  { %3582 = vmatprep.mubr.bf16.mxu0 %v4738_v33  ;;  %3625 = vmatprep.mubr.bf16.mxu1 %v4738_v33 }
  0xe4   :  { %3553 = vmatpush1.bf16.msra.mxu0 %v4320_v27  ;;  %3596 = vmatpush1.bf16.msra.mxu1 %v4322_v28  ;;  %v481_v27 = vld [vmem:[#allocation2 + $0xdb8] sm:$0xff]  ;;  %v4576_v28 = vcombine.low %v496_v16, %v512_v17 }
  0xe5   :  { %3554 = vmatprep.subr.bf16.mxu0 %v4289_v29  ;;  %3597 = vmatprep.subr.bf16.mxu1 %v4291_v30  ;;  %v4578_v29 = vcombine.low %v497_v18, %v513_v19  ;;  %v4545_v30 = vcombine.high %v464_v24, %v480_v25  ;;  %v4547_v31 = vcombine.high %v465_v26, %v481_v27  ;;  %v4747_v18 = vld [vmem:[#allocation4] sm:$0xff] }
  0xe8   :  { %3555 = vmatpush1.bf16.msra.mxu0 %v4288_v10  ;;  %3598 = vmatpush1.bf16.msra.mxu1 %v4290_v36  ;;  %v449_v10 = vld [vmem:[#allocation2 + $0xcb8] sm:$0xff]  ;;  %v4544_v36 = vcombine.low %v464_v24, %v480_v25  ;;  %v258_v24 = vld [vmem:[#allocation2 + $0x6c0] sm:$0xff] }
  0xe9   :  { %3556 = vmatprep.subr.bf16.mxu0 %v4257_v37  ;;  %3599 = vmatprep.subr.bf16.mxu1 %v4259_v38  ;;  %v4546_v37 = vcombine.low %v465_v26, %v481_v27  ;;  %v4513_v38 = vcombine.high %v432_v32, %v448_v34  ;;  %v4515_v39 = vcombine.high %v433_v35, %v449_v10  ;;  %v243_v26 = vld [vmem:[#allocation2 + $0x648] sm:$0xff] }
  0xea   :  { %v259_v27 = vld [vmem:[#allocation2 + $0x6c8] sm:$0xff] }
  0xec   :  { %3557 = vmatpush1.bf16.msra.mxu0 %v4256_v43  ;;  %3600 = vmatpush1.bf16.msra.mxu1 %v4258_v56  ;;  %v417_v43 = vld [vmem:[#allocation2 + $0xbb8] sm:$0xff]  ;;  %v4512_v56 = vcombine.low %v432_v32, %v448_v34 }
  0xed   :  { %3558 = vmatprep.subr.bf16.mxu0 %v4225_v44  ;;  %3601 = vmatprep.subr.bf16.mxu1 %v4227_v45  ;;  %v4514_v44 = vcombine.low %v433_v35, %v449_v10  ;;  %v4481_v45 = vcombine.high %v400_v40, %v416_v41  ;;  %v4483_v46 = vcombine.high %v401_v42, %v417_v43  ;;  %v210_v10 = vld [vmem:[#allocation2 + $0x540] sm:$0xff] }
  0xee   :  { %v4327_v35 = vcombine.high %v243_v26, %v259_v27 }
  0xf0   :  { %3559 = vmatpush1.bf16.msra.mxu0 %v4224_v50  ;;  %3602 = vmatpush1.bf16.msra.mxu1 %v4226_v51  ;;  %v385_v50 = vld [vmem:[#allocation2 + $0xab8] sm:$0xff]  ;;  %v4480_v51 = vcombine.low %v400_v40, %v416_v41  ;;  %v211_v40 = vld [vmem:[#allocation2 + $0x548] sm:$0xff] }
  0xf1   :  { %3560 = vmatprep.subr.bf16.mxu0 %v4193_v52  ;;  %3603 = vmatprep.subr.bf16.mxu1 %v4195_v53  ;;  %v4482_v52 = vcombine.low %v401_v42, %v417_v43  ;;  %v4449_v53 = vcombine.high %v368_v47, %v384_v48  ;;  %v4451_v54 = vcombine.high %v369_v49, %v385_v50  ;;  %v227_v41 = vld [vmem:[#allocation2 + $0x5c8] sm:$0xff] }
  0xf4   :  { %3561 = vmatpush1.bf16.msra.mxu0 %v4192_v59  ;;  %3604 = vmatpush1.bf16.msra.mxu1 %v4194_v60  ;;  %v353_v59 = vld [vmem:[#allocation2 + $0x9b8] sm:$0xff]  ;;  %v4448_v60 = vcombine.low %v368_v47, %v384_v48 }
  0xf5   :  { %3562 = vmatprep.subr.bf16.mxu0 %v4161_v61  ;;  %3605 = vmatprep.subr.bf16.mxu1 %v4163_v62  ;;  %v562_v61 = vlaneseq  ;;  %v4450_v62 = vcombine.low %v369_v49, %v385_v50  ;;  %v4419_v0 = vcombine.high %v337_v58, %v353_v59  ;;  %v4418_v7 = vcombine.low %v337_v58, %v353_v59  ;;  %v179_v58 = vld [vmem:[#allocation2 + $0x448] sm:$0xff] }
  0xf6   :  { %v195_v59 = vld [vmem:[#allocation2 + $0x4c8] sm:$0xff] }
  0xf8   :  { %3563 = vmatpush1.bf16.msra.mxu0 %v4160_v3  ;;  %3606 = vmatpush1.bf16.msra.mxu1 %v4162_v4  ;;  %v305_v3 = vld [vmem:[#allocation2 + $0x838] sm:$0xff] }
  0xf9   :  { %3564 = vmatprep.subr.bf16.mxu0 %v4129_v5  ;;  %3607 = vmatprep.subr.bf16.mxu1 %v4131_v6  ;;  %v321_v4 = vld [vmem:[#allocation2 + $0x8b8] sm:$0xff]  ;;  %v4416_v5 = vcombine.low %v336_v55, %v352_v57  ;;  %v4742_v6 = vshrl.u32 %v562_v61, 7 }
  0xfa   :  { %v4387_v9 = vcombine.high %v305_v3, %v321_v4  ;;  %v4386_v17 = vcombine.low %v305_v3, %v321_v4  ;;  %v4294_v3 = vcombine.low %v211_v40, %v227_v41 }
  0xfb   :  { %v4745_v16 = vsub.s32 0, %v4742_v6  ;;  %v4750_v19 = vsub.s32 2, %v4742_v6  ;;  %v4756_v25 = vsub.s32 3, %v4742_v6 }
  0xfc   :  { %3565 = vmatpush1.bf16.msra.mxu0 %v4128_v12  ;;  %3608 = vmatpush1.bf16.msra.mxu1 %v4130_v13  ;;  %v290_v12 = vld [vmem:[#allocation2 + $0x7c0] sm:$0xff]  ;;  %v275_v13 = vld [vmem:[#allocation2 + $0x748] sm:$0xff] }
  0xfd   :  { %3566 = vmatprep.subr.bf16.mxu0 %v4609_v14  ;;  %3609 = vmatprep.subr.bf16.mxu1 %v4611_v15  ;;  %v291_v14 = vld [vmem:[#allocation2 + $0x7c8] sm:$0xff]  ;;  %v4384_v15 = vcombine.low %v304_v1, %v320_v2 }
 0x100   :  { %3567 = vmatpush2.bf16.msra.mxu0 %v4608_v20  ;;  %3610 = vmatpush2.bf16.msra.mxu1 %v4610_v21  ;;  %v4357_v20 = vcombine.high %v274_v11, %v290_v12  ;;  %v4359_v21 = vcombine.high %v275_v13, %v291_v14 }
 0x101   :  { %3568 = vmatprep.subr.bf16.mxu0 %v4577_v22  ;;  %3611 = vmatprep.subr.bf16.mxu1 %v4579_v23  ;;  %v4753_v22 = vsub.s32 1, %v4742_v6  ;;  %v242_v23 = vld [vmem:[#allocation2 + $0x640] sm:$0xff] }
 0x102   :  { %v4325_v32 = vcombine.high %v242_v23, %v258_v24 }
 0x103   :  { %v569_v34 = vrot.slane %v4747_v18, %v4753_v22 }
 0x104   :  { %3569 = vmatpush2.bf16.msra.mxu0 %v4576_v28  ;;  %3612 = vmatpush2.bf16.msra.mxu1 %v4578_v29  ;;  %v565_v28 = vrot.slane %v4747_v18, %v4745_v16  ;;  %v4356_v29 = vcombine.low %v274_v11, %v290_v12  ;;  %v146_v11 = vld [vmem:[#allocation2 + $0x340] sm:$0xff] }
 0x105   :  { %3570 = vmatprep.subr.bf16.mxu0 %v4545_v30  ;;  %3613 = vmatprep.subr.bf16.mxu1 %v4547_v31  ;;  %v573_v30 = vrot.slane %v4747_v18, %v4750_v19  ;;  %v4358_v31 = vcombine.low %v275_v13, %v291_v14  ;;  %v162_v12 = vld [vmem:[#allocation2 + $0x3c0] sm:$0xff] }
 0x108   :  { %3571 = vmatpush2.bf16.msra.mxu0 %v4544_v36  ;;  %3614 = vmatpush2.bf16.msra.mxu1 %v4546_v37  ;;  %v226_v36 = vld [vmem:[#allocation2 + $0x5c0] sm:$0xff] }
 0x109   :  { %3572 = vmatprep.subr.bf16.mxu0 %v4513_v38  ;;  %3615 = vmatprep.subr.bf16.mxu1 %v4515_v39  ;;  %v4767_v38 = vld [vmem:[%s5045_s0] ss:$8 sps:$4 sm:$0xff]   ;;  %v577_v39 = vrot.slane %v4747_v18, %v4756_v25  ;;  %v4293_v47 = vcombine.high %v210_v10, %v226_v36 }
 0x10c   :  { %3573 = vmatpush2.bf16.msra.mxu0 %v4512_v56  ;;  %3616 = vmatpush2.bf16.msra.mxu1 %v4514_v44  ;;  %v4324_v56 = vcombine.low %v242_v23, %v258_v24  ;;  %v4262_v24 = vcombine.low %v179_v58, %v195_v59 }
 0x10d   :  { %3574 = vmatprep.subr.bf16.mxu0 %v4481_v45  ;;  %3617 = vmatprep.subr.bf16.mxu1 %v4483_v46  ;;  %v4326_v46 = vcombine.low %v243_v26, %v259_v27  ;;  %v4229_v26 = vcombine.high %v146_v11, %v162_v12 }
 0x110   :  { %3575 = vmatpush2.bf16.msra.mxu0 %v4480_v51  ;;  %3618 = vmatpush2.bf16.msra.mxu1 %v4482_v52  ;;  %v4295_v51 = vcombine.high %v211_v40, %v227_v41  ;;  %v178_v52 = vld [vmem:[#allocation2 + $0x440] sm:$0xff]  ;;  %v99_v40 = vld [vmem:[#allocation2 + $0x1c8] sm:$0xff] }
 0x111   :  { %3576 = vmatprep.subr.bf16.mxu0 %v4449_v53  ;;  %3619 = vmatprep.subr.bf16.mxu1 %v4451_v54  ;;  %v194_v53 = vld [vmem:[#allocation2 + $0x4c0] sm:$0xff] }
 0x112   :  { %v4261_v4 = vcombine.high %v178_v52, %v194_v53 }
 0x114   :  { %3577 = vmatpush2.bf16.msra.mxu0 %v4448_v60  ;;  %3620 = vmatpush2.bf16.msra.mxu1 %v4450_v62 }
 0x115   :  { %3578 = vmatprep.subr.bf16.mxu0 %v4417_v63  ;;  %3621 = vmatprep.subr.bf16.mxu1 %v4419_v0  ;;  %v4292_v63 = vcombine.low %v210_v10, %v226_v36  ;;  %v82_v36 = vld [vmem:[#allocation2 + $0x140] sm:$0xff] }
 0x118   :  { %3579 = vmatpush2.bf16.msra.mxu0 %v4416_v5  ;;  %3622 = vmatpush2.bf16.msra.mxu1 %v4418_v7 }
 0x119   :  { %3580 = vmatprep.subr.bf16.mxu0 %v4385_v8  ;;  %3623 = vmatprep.subr.bf16.mxu1 %v4387_v9  ;;  %v4263_v9 = vcombine.high %v179_v58, %v195_v59 }
 0x11c   :  { %3581 = vmatpush2.bf16.msra.mxu0 %v4384_v15  ;;  %3624 = vmatpush2.bf16.msra.mxu1 %v4386_v17  ;;  %v147_v15 = vld [vmem:[#allocation2 + $0x348] sm:$0xff] }
 0x11d   :  { %3636 = vmatprep.subr.bf16.mxu0 %v4357_v20  ;;  %3679 = vmatprep.subr.bf16.mxu1 %v4359_v21  ;;  %v163_v17 = vld [vmem:[#allocation2 + $0x3c8] sm:$0xff]  ;;  %v4260_v21 = vcombine.low %v178_v52, %v194_v53  ;;  %v530_v52 = vld [vmem:[#allocation2 + $0xf40] sm:$0xff] }
 0x11e   :  { %v4231_v27 = vcombine.high %v147_v15, %v163_v17  ;;  %v546_v53 = vld [vmem:[#allocation2 + $0xfc0] sm:$0xff] }
 0x11f   :  { %v3326_v37 = vpop.f32.mrf.mxu0  ;;  %3583 = vmatmul.mubr.bf16.vlgmr.msra.gmra.mxu0 %v4767_v38  ;;  %v3369_v43 = vpop.f32.mrf.mxu1  ;;  %3626 = vmatmul.mubr.bf16.vlgmr.msra.gmra.mxu1 %v4767_v38  ;;  %v4613_v59 = vcombine.high %v530_v52, %v546_v53 }
 0x120   :  { %v3327_v42 = vadd.f32 %v3326_v37, %v565_v28  ;;  %3637 = vmatpush1.bf16.msra.mxu0 %v4356_v29  ;;  %v3370_v44 = vadd.f32 %v3369_v43, %v573_v30  ;;  %3680 = vmatpush1.bf16.msra.mxu1 %v4358_v31  ;;  %v130_v29 = vld [vmem:[#allocation2 + $0x2c0] sm:$0xff]  ;;  %v131_v31 = vld [vmem:[#allocation2 + $0x2c8] sm:$0xff] }
 0x121   :  { %v3328_v45 = vpop.f32.mrf.mxu0  ;;  %3638 = vmatprep.subr.bf16.mxu0 %v4325_v32  ;;  %v3371_v50 = vpop.f32.mrf.mxu1  ;;  %3681 = vmatprep.subr.bf16.mxu1 %v4327_v35  ;;  %v4228_v32 = vcombine.low %v146_v11, %v162_v12  ;;  %v98_v37 = vld [vmem:[#allocation2 + $0x1c0] sm:$0xff] }
 0x122   :  { %v3980_v48 = vmax.f32 %v3327_v42, 0.0  ;;  %v3329_v49 = vadd.f32 %v3328_v45, %v569_v34  ;;  %3668 = vmatprep.mubr.bf16.mxu0 %v4738_v33  ;;  %v3982_v54 = vmax.f32 %v3370_v44, 0.0  ;;  %v3372_v55 = vadd.f32 %v3371_v50, %v577_v39  ;;  %3711 = vmatprep.mubr.bf16.mxu1 %v4738_v33  ;;  %v50_v44 = vld [vmem:[#allocation2 + $0x40] sm:$0xff] }
 0x123   :  { %v3330_v57 = vpop.f32.mrf.mxu0  ;;  %v3373_v62 = vpop.f32.mrf.mxu1  ;;  %v4165_v43 = vcombine.high %v82_v36, %v98_v37  ;;  %v66_v45 = vld [vmem:[#allocation2 + $0xc0] sm:$0xff] }
 0x124   :  { %4044 = vst [vmem:[%s5048_s3] sm:$0xff] %v3980_v48  ;;  %v3981_v60 = vmax.f32 %v3329_v49, 0.0  ;;  %v3331_v61 = vadd.f32 %v3330_v57, %v565_v28  ;;  %3639 = vmatpush1.bf16.msra.mxu0 %v4324_v56  ;;  %4046 = vst [vmem:[%s5048_s3 + $0x10] sm:$0xff] %v3982_v54  ;;  %v3983_v0 = vmax.f32 %v3372_v55, 0.0  ;;  %v3374_v1 = vadd.f32 %v3373_v62, %v573_v30  ;;  %v114_v28 = vld [vmem:[#allocation2 + $0x240] sm:$0xff]  ;;  %v115_v30 = vld [vmem:[#allocation2 + $0x248] sm:$0xff] }
 0x125   :  { %3682 = vmatpush1.bf16.msra.mxu1 %v4326_v46  ;;  %v3332_v2 = vpop.f32.mrf.mxu0  ;;  %3640 = vmatprep.subr.bf16.mxu0 %v4293_v47  ;;  %v3375_v8 = vpop.f32.mrf.mxu1  ;;  %v4197_v35 = vcombine.high %v114_v28, %v130_v29  ;;  %v4199_v10 = vcombine.high %v115_v30, %v131_v31  ;;  %v4196_v41 = vcombine.low %v114_v28, %v130_v29  ;;  %v51_v46 = vld [vmem:[#allocation2 + $0x48] sm:$0xff]  ;;  %v514_v62 = vld [vmem:[#allocation2 + $0xec0] sm:$0xff] }
 0x126   :  { %4045 = vst [vmem:[%s5048_s3 + $0x8] sm:$0xff] %v3981_v60  ;;  %v4012_v5 = vmax.f32 %v3331_v61, 0.0  ;;  %v3333_v7 = vadd.f32 %v3332_v2, %v569_v34  ;;  %3683 = vmatprep.subr.bf16.mxu1 %v4295_v51  ;;  %4047 = vst [vmem:[%s5048_s3 + $0x18] sm:$0xff] %v3983_v0  ;;  %v4014_v13 = vmax.f32 %v3374_v1, 0.0  ;;  %v3376_v14 = vadd.f32 %v3375_v8, %v577_v39  ;;  %v83_v39 = vld [vmem:[#allocation2 + $0x148] sm:$0xff]  ;;  %v498_v61 = vld [vmem:[#allocation2 + $0xe40] sm:$0xff] }
 0x127   :  { %v4230_v34 = vcombine.low %v147_v15, %v163_v17  ;;  %v4198_v42 = vcombine.low %v115_v30, %v131_v31  ;;  %v4167_v56 = vcombine.high %v83_v39, %v99_v40  ;;  %v67_v47 = vld [vmem:[#allocation2 + $0xc8] sm:$0xff]  ;;  %v4164_v48 = vcombine.low %v82_v36, %v98_v37  ;;  %v434_v15 = vld [vmem:[#allocation2 + $0xc40] sm:$0xff] }
 0x128   :  { %4076 = vst [vmem:[%s5048_s3 + $0x100] sm:$0xff] %v4012_v5  ;;  %v4013_v20 = vmax.f32 %v3333_v7, 0.0  ;;  %3641 = vmatpush1.bf16.msra.mxu0 %v4292_v63  ;;  %4078 = vst [vmem:[%s5048_s3 + $0x110] sm:$0xff] %v4014_v13  ;;  %v4015_v23 = vmax.f32 %v3376_v14, 0.0  ;;  %v4166_v49 = vcombine.low %v83_v39, %v99_v40  ;;  %v4133_v50 = vcombine.high %v50_v44, %v66_v45  ;;  %v531_v54 = vld [vmem:[#allocation2 + $0xf48] sm:$0xff]  ;;  %v466_v5 = vld [vmem:[#allocation2 + $0xd40] sm:$0xff] }
 0x129   :  { %3684 = vmatpush1.bf16.msra.mxu1 %v4294_v3  ;;  %3642 = vmatprep.subr.bf16.mxu0 %v4261_v4  ;;  %v4135_v51 = vcombine.high %v51_v46, %v67_v47  ;;  %v547_v55 = vld [vmem:[#allocation2 + $0xfc8] sm:$0xff]  ;;  %v4132_v57 = vcombine.low %v50_v44, %v66_v45  ;;  %v4134_v58 = vcombine.low %v51_v46, %v67_v47  ;;  %v482_v7 = vld [vmem:[#allocation2 + $0xdc0] sm:$0xff] }
 0x12a   :  { %4077 = vst [vmem:[%s5048_s3 + $0x108] sm:$0xff] %v4013_v20  ;;  %3685 = vmatprep.subr.bf16.mxu1 %v4263_v9  ;;  %4079 = vst [vmem:[%s5048_s3 + $0x118] sm:$0xff] %v4015_v23  ;;  %v4615_v60 = vcombine.high %v531_v54, %v547_v55  ;;  %v499_v63 = vld [vmem:[#allocation2 + $0xe48] sm:$0xff]  ;;  %v4612_v1 = vcombine.low %v530_v52, %v546_v53  ;;  %v4614_v2 = vcombine.low %v531_v54, %v547_v55  ;;  %v450_v17 = vld [vmem:[#allocation2 + $0xcc0] sm:$0xff] }
 0x12b   :  { %v515_v0 = vld [vmem:[#allocation2 + $0xec8] sm:$0xff]  ;;  %v4581_v3 = vcombine.high %v498_v61, %v514_v62  ;;  %v4580_v11 = vcombine.low %v498_v61, %v514_v62  ;;  %v4549_v13 = vcombine.high %v466_v5, %v482_v7  ;;  %v4548_v23 = vcombine.low %v466_v5, %v482_v7  ;;  %v402_v28 = vld [vmem:[#allocation2 + $0xb40] sm:$0xff]  ;;  %v276_v61 = vld [vmem:[#allocation2 + $0x750] sm:$0xff] }
 0x12c   :  { %3643 = vmatpush1.bf16.msra.mxu0 %v4260_v21  ;;  %v4583_v4 = vcombine.high %v499_v63, %v515_v0  ;;  %v467_v8 = vld [vmem:[#allocation2 + $0xd48] sm:$0xff]  ;;  %v4582_v12 = vcombine.low %v499_v63, %v515_v0  ;;  %v418_v29 = vld [vmem:[#allocation2 + $0xbc0] sm:$0xff]  ;;  %v292_v62 = vld [vmem:[#allocation2 + $0x7d0] sm:$0xff] }
 0x12d   :  { %3686 = vmatpush1.bf16.msra.mxu1 %v4262_v24  ;;  %3644 = vmatprep.subr.bf16.mxu0 %v4229_v26  ;;  %v483_v9 = vld [vmem:[#allocation2 + $0xdc8] sm:$0xff]  ;;  %v4517_v26 = vcombine.high %v434_v15, %v450_v17  ;;  %v370_v36 = vld [vmem:[#allocation2 + $0xa40] sm:$0xff]  ;;  %v277_v63 = vld [vmem:[#allocation2 + $0x758] sm:$0xff]  ;;  %v4361_v5 = vcombine.high %v276_v61, %v292_v62 }
 0x12e   :  { %3687 = vmatprep.subr.bf16.mxu1 %v4231_v27  ;;  %v4551_v14 = vcombine.high %v467_v8, %v483_v9  ;;  %v435_v20 = vld [vmem:[#allocation2 + $0xc48] sm:$0xff]  ;;  %v4550_v24 = vcombine.low %v467_v8, %v483_v9  ;;  %v386_v37 = vld [vmem:[#allocation2 + $0xac0] sm:$0xff]  ;;  %v293_v0 = vld [vmem:[#allocation2 + $0x7d8] sm:$0xff]  ;;  %v4806_v8 = vsub.s32 5, %v4742_v6 }
 0x12f   :  { %v451_v21 = vld [vmem:[#allocation2 + $0xcc8] sm:$0xff]  ;;  %v338_v44 = vld [vmem:[#allocation2 + $0x940] sm:$0xff]  ;;  %v4363_v7 = vcombine.high %v277_v63, %v293_v0  ;;  %v244_v9 = vld [vmem:[#allocation2 + $0x650] sm:$0xff] }
 0x130   :  { %3645 = vmatpush1.bf16.msra.mxu0 %v4228_v32  ;;  %v4519_v27 = vcombine.high %v435_v20, %v451_v21  ;;  %v403_v30 = vld [vmem:[#allocation2 + $0xb48] sm:$0xff]  ;;  %v4516_v32 = vcombine.low %v434_v15, %v450_v17  ;;  %v354_v45 = vld [vmem:[#allocation2 + $0x9c0] sm:$0xff]  ;;  %v4360_v17 = vcombine.low %v276_v61, %v292_v62  ;;  %v148_v62 = vld [vmem:[#allocation2 + $0x350] sm:$0xff] }
 0x131   :  { %3688 = vmatpush1.bf16.msra.mxu1 %v4230_v34  ;;  %3646 = vmatprep.subr.bf16.mxu0 %v4197_v35  ;;  %v419_v31 = vld [vmem:[#allocation2 + $0xbc8] sm:$0xff]  ;;  %v4518_v34 = vcombine.low %v435_v20, %v451_v21  ;;  %v4485_v35 = vcombine.high %v402_v28, %v418_v29  ;;  %v306_v52 = vld [vmem:[#allocation2 + $0x840] sm:$0xff]  ;;  %v4362_v21 = vcombine.low %v277_v63, %v293_v0  ;;  %v164_v63 = vld [vmem:[#allocation2 + $0x3d0] sm:$0xff] }
 0x132   :  { %3689 = vmatprep.subr.bf16.mxu1 %v4199_v10  ;;  %v4487_v10 = vcombine.high %v403_v30, %v419_v31  ;;  %v371_v39 = vld [vmem:[#allocation2 + $0xa48] sm:$0xff]  ;;  %v322_v53 = vld [vmem:[#allocation2 + $0x8c0] sm:$0xff] }
 0x133   :  { %v387_v40 = vld [vmem:[#allocation2 + $0xac8] sm:$0xff] }
 0x134   :  { %3647 = vmatpush1.bf16.msra.mxu0 %v4196_v41  ;;  %v4484_v41 = vcombine.low %v402_v28, %v418_v29  ;;  %v339_v46 = vld [vmem:[#allocation2 + $0x948] sm:$0xff] }
 0x135   :  { %3690 = vmatpush1.bf16.msra.mxu1 %v4198_v42  ;;  %3648 = vmatprep.subr.bf16.mxu0 %v4165_v43  ;;  %v4486_v42 = vcombine.low %v403_v30, %v419_v31  ;;  %v4453_v43 = vcombine.high %v370_v36, %v386_v37  ;;  %v355_v47 = vld [vmem:[#allocation2 + $0x9c8] sm:$0xff]  ;;  %v213_v30 = vld [vmem:[#allocation2 + $0x558] sm:$0xff] }
 0x136   :  { %3691 = vmatprep.subr.bf16.mxu1 %v4167_v56  ;;  %v4455_v56 = vcombine.high %v371_v39, %v387_v40  ;;  %v307_v54 = vld [vmem:[#allocation2 + $0x848] sm:$0xff]  ;;  %v229_v31 = vld [vmem:[#allocation2 + $0x5d8] sm:$0xff] }
 0x137   :  { %v323_v55 = vld [vmem:[#allocation2 + $0x8c8] sm:$0xff] }
 0x138   :  { %3649 = vmatpush1.bf16.msra.mxu0 %v4164_v48  ;;  %v4452_v48 = vcombine.low %v370_v36, %v386_v37 }
 0x139   :  { %3692 = vmatpush1.bf16.msra.mxu1 %v4166_v49  ;;  %3650 = vmatprep.subr.bf16.mxu0 %v4133_v50  ;;  %v4454_v49 = vcombine.low %v371_v39, %v387_v40  ;;  %v4421_v50 = vcombine.high %v338_v44, %v354_v45 }
 0x13a   :  { %3693 = vmatprep.subr.bf16.mxu1 %v4135_v51  ;;  %v4423_v51 = vcombine.high %v339_v46, %v355_v47 }
 0x13c   :  { %3651 = vmatpush1.bf16.msra.mxu0 %v4132_v57  ;;  %v4420_v57 = vcombine.low %v338_v44, %v354_v45 }
 0x13d   :  { %3694 = vmatpush1.bf16.msra.mxu1 %v4134_v58  ;;  %3652 = vmatprep.subr.bf16.mxu0 %v4613_v59  ;;  %v4422_v58 = vcombine.low %v339_v46, %v355_v47  ;;  %v4389_v59 = vcombine.high %v306_v52, %v322_v53  ;;  %v181_v47 = vld [vmem:[#allocation2 + $0x458] sm:$0xff] }
 0x13e   :  { %3695 = vmatprep.subr.bf16.mxu1 %v4615_v60  ;;  %v4391_v60 = vcombine.high %v307_v54, %v323_v55 }
 0x140   :  { %3653 = vmatpush2.bf16.msra.mxu0 %v4612_v1  ;;  %v4388_v1 = vcombine.low %v306_v52, %v322_v53 }
 0x141   :  { %3696 = vmatpush2.bf16.msra.mxu1 %v4614_v2  ;;  %3654 = vmatprep.subr.bf16.mxu0 %v4581_v3  ;;  %v4800_v2 = vsub.s32 4, %v4742_v6  ;;  %v4390_v3 = vcombine.low %v307_v54, %v323_v55 }
 0x142   :  { %3697 = vmatprep.subr.bf16.mxu1 %v4583_v4  ;;  %v4803_v4 = vsub.s32 6, %v4742_v6 }
 0x143   :  { %v581_v15 = vrot.slane %v4747_v18, %v4800_v2 }
 0x144   :  { %3655 = vmatpush2.bf16.msra.mxu0 %v4580_v11  ;;  %v260_v11 = vld [vmem:[#allocation2 + $0x6d0] sm:$0xff]  ;;  %v589_v20 = vrot.slane %v4747_v18, %v4803_v4 }
 0x145   :  { %3698 = vmatpush2.bf16.msra.mxu1 %v4582_v12  ;;  %3656 = vmatprep.subr.bf16.mxu0 %v4549_v13  ;;  %v4809_v12 = vsub.s32 7, %v4742_v6  ;;  %v245_v13 = vld [vmem:[#allocation2 + $0x658] sm:$0xff] }
 0x146   :  { %3699 = vmatprep.subr.bf16.mxu1 %v4551_v14  ;;  %v261_v14 = vld [vmem:[#allocation2 + $0x6d8] sm:$0xff] }
 0x147   :  { %v4331_v6 = vcombine.high %v245_v13, %v261_v14  ;;  %v593_v29 = vrot.slane %v4747_v18, %v4809_v12  ;;  %v4330_v37 = vcombine.low %v245_v13, %v261_v14  ;;  %v4233_v14 = vcombine.high %v148_v62, %v164_v63 }
 0x148   :  { %3657 = vmatpush2.bf16.msra.mxu0 %v4548_v23  ;;  %v4329_v23 = vcombine.high %v244_v9, %v260_v11 }
 0x149   :  { %3700 = vmatpush2.bf16.msra.mxu1 %v4550_v24  ;;  %3658 = vmatprep.subr.bf16.mxu0 %v4517_v26  ;;  %v585_v24 = vrot.slane %v4747_v18, %v4806_v8  ;;  %v212_v26 = vld [vmem:[#allocation2 + $0x550] sm:$0xff] }
 0x14a   :  { %3701 = vmatprep.subr.bf16.mxu1 %v4519_v27  ;;  %v228_v27 = vld [vmem:[#allocation2 + $0x5d0] sm:$0xff] }
 0x14b   :  { %v4297_v39 = vcombine.high %v212_v26, %v228_v27  ;;  %v180_v18 = vld [vmem:[#allocation2 + $0x450] sm:$0xff]  ;;  %v4296_v52 = vcombine.low %v212_v26, %v228_v27 }
 0x14c   :  { %3659 = vmatpush2.bf16.msra.mxu0 %v4516_v32 }
 0x14d   :  { %3702 = vmatpush2.bf16.msra.mxu1 %v4518_v34  ;;  %3660 = vmatprep.subr.bf16.mxu0 %v4485_v35  ;;  %v4328_v35 = vcombine.low %v244_v9, %v260_v11 }
 0x14e   :  { %3703 = vmatprep.subr.bf16.mxu1 %v4487_v10 }
 0x150   :  { %3661 = vmatpush2.bf16.msra.mxu0 %v4484_v41 }
 0x151   :  { %3704 = vmatpush2.bf16.msra.mxu1 %v4486_v42  ;;  %3662 = vmatprep.subr.bf16.mxu0 %v4453_v43  ;;  %v4299_v43 = vcombine.high %v213_v30, %v229_v31 }
 0x152   :  { %3705 = vmatprep.subr.bf16.mxu1 %v4455_v56  ;;  %v196_v56 = vld [vmem:[#allocation2 + $0x4d0] sm:$0xff] }
 0x153   :  { %v4264_v9 = vcombine.low %v180_v18, %v196_v56 }
 0x154   :  { %3663 = vmatpush2.bf16.msra.mxu0 %v4452_v48  ;;  %v197_v48 = vld [vmem:[#allocation2 + $0x4d8] sm:$0xff] }
 0x155   :  { %3706 = vmatpush2.bf16.msra.mxu1 %v4454_v49  ;;  %3664 = vmatprep.subr.bf16.mxu0 %v4421_v50  ;;  %v4267_v61 = vcombine.high %v181_v47, %v197_v48  ;;  %v4266_v13 = vcombine.low %v181_v47, %v197_v48 }
 0x156   :  { %3707 = vmatprep.subr.bf16.mxu1 %v4423_v51 }
 0x158   :  { %3665 = vmatpush2.bf16.msra.mxu0 %v4420_v57  ;;  %v4298_v57 = vcombine.low %v213_v30, %v229_v31  ;;  %v85_v30 = vld [vmem:[#allocation2 + $0x158] sm:$0xff] }
 0x159   :  { %3708 = vmatpush2.bf16.msra.mxu1 %v4422_v58  ;;  %3666 = vmatprep.subr.bf16.mxu0 %v4389_v59  ;;  %v101_v31 = vld [vmem:[#allocation2 + $0x1d8] sm:$0xff] }
 0x15a   :  { %3709 = vmatprep.subr.bf16.mxu1 %v4391_v60 }
 0x15c   :  { %3667 = vmatpush2.bf16.msra.mxu0 %v4388_v1 }
 0x15d   :  { %3710 = vmatpush2.bf16.msra.mxu1 %v4390_v3  ;;  %3722 = vmatprep.subr.bf16.mxu0 %v4361_v5  ;;  %v149_v3 = vld [vmem:[#allocation2 + $0x358] sm:$0xff] }
 0x15e   :  { %3765 = vmatprep.subr.bf16.mxu1 %v4363_v7  ;;  %v165_v5 = vld [vmem:[#allocation2 + $0x3d8] sm:$0xff] }
 0x15f   :  { %v3412_v28 = vpop.f32.mrf.mxu0  ;;  %3669 = vmatmul.mubr.bf16.vlgmr.msra.gmra.mxu0 %v4767_v38  ;;  %v3455_v34 = vpop.f32.mrf.mxu1 }
 0x160   :  { %v3413_v32 = vadd.f32 %v3412_v28, %v581_v15  ;;  %3712 = vmatmul.mubr.bf16.vlgmr.msra.gmra.mxu1 %v4767_v38  ;;  %3723 = vmatpush1.bf16.msra.mxu0 %v4360_v17  ;;  %v3456_v10 = vadd.f32 %v3455_v34, %v589_v20  ;;  %v116_v17 = vld [vmem:[#allocation2 + $0x250] sm:$0xff] }
 0x161   :  { %3766 = vmatpush1.bf16.msra.mxu1 %v4362_v21  ;;  %v3414_v36 = vpop.f32.mrf.mxu0  ;;  %3724 = vmatprep.subr.bf16.mxu0 %v4329_v23  ;;  %v3457_v42 = vpop.f32.mrf.mxu1  ;;  %v117_v21 = vld [vmem:[#allocation2 + $0x258] sm:$0xff]  ;;  %v84_v28 = vld [vmem:[#allocation2 + $0x150] sm:$0xff] }
 0x162   :  { %v3984_v40 = vmax.f32 %v3413_v32, 0.0  ;;  %v3415_v41 = vadd.f32 %v3414_v36, %v585_v24  ;;  %3767 = vmatprep.subr.bf16.mxu1 %v4331_v6  ;;  %3754 = vmatprep.mubr.bf16.mxu0 %v4738_v33  ;;  %v3986_v44 = vmax.f32 %v3456_v10, 0.0  ;;  %v3458_v45 = vadd.f32 %v3457_v42, %v593_v29  ;;  %v133_v23 = vld [vmem:[#allocation2 + $0x2d8] sm:$0xff]  ;;  %v52_v36 = vld [vmem:[#allocation2 + $0x50] sm:$0xff] }
 0x163   :  { %v3416_v46 = vpop.f32.mrf.mxu0  ;;  %3797 = vmatprep.mubr.bf16.mxu1 %v4738_v33  ;;  %v3459_v51 = vpop.f32.mrf.mxu1  ;;  %v4265_v33 = vcombine.high %v180_v18, %v196_v56  ;;  %v4234_v6 = vcombine.low %v149_v3, %v165_v5  ;;  %v4203_v27 = vcombine.high %v117_v21, %v133_v23  ;;  %v4202_v34 = vcombine.low %v117_v21, %v133_v23  ;;  %v532_v56 = vld [vmem:[#allocation2 + $0xf50] sm:$0xff]  ;;  %v405_v23 = vld [vmem:[#allocation2 + $0xb58] sm:$0xff] }
 0x164   :  { %4048 = vst [vmem:[%s5048_s3 + $0x20] sm:$0xff] %v3984_v40  ;;  %v3985_v49 = vmax.f32 %v3415_v41, 0.0  ;;  %v3417_v50 = vadd.f32 %v3416_v46, %v581_v15  ;;  %3725 = vmatpush1.bf16.msra.mxu0 %v4328_v35  ;;  %4050 = vst [vmem:[%s5048_s3 + $0x30] sm:$0xff] %v3986_v44  ;;  %v3987_v53 = vmax.f32 %v3458_v45, 0.0  ;;  %v3460_v54 = vadd.f32 %v3459_v51, %v589_v20  ;;  %v132_v20 = vld [vmem:[#allocation2 + $0x2d0] sm:$0xff]  ;;  %v69_v40 = vld [vmem:[#allocation2 + $0xd8] sm:$0xff] }
 0x165   :  { %3768 = vmatpush1.bf16.msra.mxu1 %v4330_v37  ;;  %v3418_v55 = vpop.f32.mrf.mxu0  ;;  %3726 = vmatprep.subr.bf16.mxu0 %v4297_v39  ;;  %v3461_v60 = vpop.f32.mrf.mxu1  ;;  %v4235_v15 = vcombine.high %v149_v3, %v165_v5  ;;  %v4201_v26 = vcombine.high %v116_v17, %v132_v20  ;;  %v4200_v32 = vcombine.low %v116_v17, %v132_v20  ;;  %v68_v37 = vld [vmem:[#allocation2 + $0xd0] sm:$0xff]  ;;  %v53_v39 = vld [vmem:[#allocation2 + $0x58] sm:$0xff] }
 0x166   :  { %4049 = vst [vmem:[%s5048_s3 + $0x28] sm:$0xff] %v3985_v49  ;;  %v4016_v58 = vmax.f32 %v3417_v50, 0.0  ;;  %v3419_v59 = vadd.f32 %v3418_v55, %v585_v24  ;;  %3769 = vmatprep.subr.bf16.mxu1 %v4299_v43  ;;  %4051 = vst [vmem:[%s5048_s3 + $0x38] sm:$0xff] %v3987_v53  ;;  %v4018_v0 = vmax.f32 %v3460_v54, 0.0  ;;  %v3462_v1 = vadd.f32 %v3461_v60, %v593_v29  ;;  %v100_v29 = vld [vmem:[#allocation2 + $0x1d0] sm:$0xff]  ;;  %v533_v45 = vld [vmem:[#allocation2 + $0xf58] sm:$0xff] }
 0x167   :  { %v4232_v24 = vcombine.low %v148_v62, %v164_v63  ;;  %v4169_v35 = vcombine.high %v84_v28, %v100_v29  ;;  %v4171_v10 = vcombine.high %v85_v30, %v101_v31  ;;  %v4168_v41 = vcombine.low %v84_v28, %v100_v29  ;;  %v548_v44 = vld [vmem:[#allocation2 + $0xfd0] sm:$0xff]  ;;  %v549_v46 = vld [vmem:[#allocation2 + $0xfd8] sm:$0xff] }
 0x168   :  { %4080 = vst [vmem:[%s5048_s3 + $0x120] sm:$0xff] %v4016_v58  ;;  %v4017_v7 = vmax.f32 %v3419_v59, 0.0  ;;  %3727 = vmatpush1.bf16.msra.mxu0 %v4296_v52  ;;  %4082 = vst [vmem:[%s5048_s3 + $0x130] sm:$0xff] %v4018_v0  ;;  %v4019_v11 = vmax.f32 %v3462_v1, 0.0  ;;  %v4170_v42 = vcombine.low %v85_v30, %v101_v31  ;;  %v4137_v43 = vcombine.high %v52_v36, %v68_v37  ;;  %v500_v51 = vld [vmem:[#allocation2 + $0xe50] sm:$0xff]  ;;  %v501_v53 = vld [vmem:[#allocation2 + $0xe58] sm:$0xff] }
 0x169   :  { %3770 = vmatpush1.bf16.msra.mxu1 %v4298_v57  ;;  %3728 = vmatprep.subr.bf16.mxu0 %v4265_v33  ;;  %v4139_v18 = vcombine.high %v53_v39, %v69_v40  ;;  %v4136_v47 = vcombine.low %v52_v36, %v68_v37  ;;  %v4138_v48 = vcombine.low %v53_v39, %v69_v40  ;;  %v516_v52 = vld [vmem:[#allocation2 + $0xed0] sm:$0xff]  ;;  %v517_v54 = vld [vmem:[#allocation2 + $0xed8] sm:$0xff] }
 0x16a   :  { %4081 = vst [vmem:[%s5048_s3 + $0x128] sm:$0xff] %v4017_v7  ;;  %3771 = vmatprep.subr.bf16.mxu1 %v4267_v61  ;;  %4083 = vst [vmem:[%s5048_s3 + $0x138] sm:$0xff] %v4019_v11  ;;  %v4617_v49 = vcombine.high %v532_v56, %v548_v44  ;;  %v4619_v50 = vcombine.high %v533_v45, %v549_v46  ;;  %v4616_v55 = vcombine.low %v532_v56, %v548_v44  ;;  %v468_v59 = vld [vmem:[#allocation2 + $0xd50] sm:$0xff]  ;;  %v469_v61 = vld [vmem:[#allocation2 + $0xd58] sm:$0xff] }
 0x16b   :  { %v4618_v57 = vcombine.low %v533_v45, %v549_v46  ;;  %v4585_v33 = vcombine.high %v500_v51, %v516_v52  ;;  %v4587_v58 = vcombine.high %v501_v53, %v517_v54  ;;  %v484_v60 = vld [vmem:[#allocation2 + $0xdd0] sm:$0xff]  ;;  %v485_v62 = vld [vmem:[#allocation2 + $0xdd8] sm:$0xff]  ;;  %v4584_v63 = vcombine.low %v500_v51, %v516_v52  ;;  %v278_v52 = vld [vmem:[#allocation2 + $0x760] sm:$0xff] }
 0x16c   :  { %3729 = vmatpush1.bf16.msra.mxu0 %v4264_v9  ;;  %v4586_v0 = vcombine.low %v501_v53, %v517_v54  ;;  %v4553_v1 = vcombine.high %v468_v59, %v484_v60  ;;  %v4555_v3 = vcombine.high %v469_v61, %v485_v62  ;;  %v436_v5 = vld [vmem:[#allocation2 + $0xc50] sm:$0xff]  ;;  %v437_v9 = vld [vmem:[#allocation2 + $0xc58] sm:$0xff]  ;;  %v294_v53 = vld [vmem:[#allocation2 + $0x7e0] sm:$0xff] }
 0x16d   :  { %3772 = vmatpush1.bf16.msra.mxu1 %v4266_v13  ;;  %3730 = vmatprep.subr.bf16.mxu0 %v4233_v14  ;;  %v452_v7 = vld [vmem:[#allocation2 + $0xcd0] sm:$0xff]  ;;  %v453_v11 = vld [vmem:[#allocation2 + $0xcd8] sm:$0xff]  ;;  %v4552_v13 = vcombine.low %v468_v59, %v484_v60  ;;  %v4554_v14 = vcombine.low %v469_v61, %v485_v62  ;;  %v279_v54 = vld [vmem:[#allocation2 + $0x768] sm:$0xff]  ;;  %v4365_v59 = vcombine.high %v278_v52, %v294_v53 }
 0x16e   :  { %3773 = vmatprep.subr.bf16.mxu1 %v4235_v15  ;;  %v4521_v15 = vcombine.high %v436_v5, %v452_v7  ;;  %v4523_v17 = vcombine.high %v437_v9, %v453_v11  ;;  %v404_v20 = vld [vmem:[#allocation2 + $0xb50] sm:$0xff]  ;;  %v373_v31 = vld [vmem:[#allocation2 + $0xa58] sm:$0xff]  ;;  %v246_v61 = vld [vmem:[#allocation2 + $0x660] sm:$0xff] }
 0x16f   :  { %v420_v21 = vld [vmem:[#allocation2 + $0xbd0] sm:$0xff]  ;;  %v341_v40 = vld [vmem:[#allocation2 + $0x958] sm:$0xff]  ;;  %v262_v62 = vld [vmem:[#allocation2 + $0x6e0] sm:$0xff] }
 0x170   :  { %3731 = vmatpush1.bf16.msra.mxu0 %v4232_v24  ;;  %v421_v24 = vld [vmem:[#allocation2 + $0xbd8] sm:$0xff]  ;;  %v372_v29 = vld [vmem:[#allocation2 + $0xa50] sm:$0xff] }
 0x171   :  { %3774 = vmatpush1.bf16.msra.mxu1 %v4234_v6  ;;  %3732 = vmatprep.subr.bf16.mxu0 %v4201_v26  ;;  %v4520_v6 = vcombine.low %v436_v5, %v452_v7  ;;  %v4522_v26 = vcombine.low %v437_v9, %v453_v11  ;;  %v4491_v28 = vcombine.high %v405_v23, %v421_v24  ;;  %v388_v30 = vld [vmem:[#allocation2 + $0xad0] sm:$0xff]  ;;  %v309_v46 = vld [vmem:[#allocation2 + $0x858] sm:$0xff] }
 0x172   :  { %3775 = vmatprep.subr.bf16.mxu1 %v4203_v27  ;;  %v4489_v27 = vcombine.high %v404_v20, %v420_v21  ;;  %v340_v37 = vld [vmem:[#allocation2 + $0x950] sm:$0xff]  ;;  %v4333_v9 = vcombine.high %v246_v61, %v262_v62 }
 0x173   :  { %v356_v39 = vld [vmem:[#allocation2 + $0x9d0] sm:$0xff] }
 0x174   :  { %3733 = vmatpush1.bf16.msra.mxu0 %v4200_v32  ;;  %v389_v32 = vld [vmem:[#allocation2 + $0xad8] sm:$0xff]  ;;  %v308_v44 = vld [vmem:[#allocation2 + $0x850] sm:$0xff] }
 0x175   :  { %3776 = vmatpush1.bf16.msra.mxu1 %v4202_v34  ;;  %3734 = vmatprep.subr.bf16.mxu0 %v4169_v35  ;;  %v4488_v34 = vcombine.low %v404_v20, %v420_v21  ;;  %v4490_v35 = vcombine.low %v405_v23, %v421_v24  ;;  %v4459_v36 = vcombine.high %v373_v31, %v389_v32  ;;  %v324_v45 = vld [vmem:[#allocation2 + $0x8d0] sm:$0xff]  ;;  %v215_v21 = vld [vmem:[#allocation2 + $0x568] sm:$0xff] }
 0x176   :  { %3777 = vmatprep.subr.bf16.mxu1 %v4171_v10  ;;  %v4457_v10 = vcombine.high %v372_v29, %v388_v30  ;;  %v231_v23 = vld [vmem:[#allocation2 + $0x5e8] sm:$0xff] }
 0x178   :  { %3735 = vmatpush1.bf16.msra.mxu0 %v4168_v41  ;;  %v357_v41 = vld [vmem:[#allocation2 + $0x9d8] sm:$0xff] }
 0x179   :  { %3778 = vmatpush1.bf16.msra.mxu1 %v4170_v42  ;;  %3736 = vmatprep.subr.bf16.mxu0 %v4137_v43  ;;  %v4456_v42 = vcombine.low %v372_v29, %v388_v30  ;;  %v4458_v43 = vcombine.low %v373_v31, %v389_v32  ;;  %v4427_v56 = vcombine.high %v341_v40, %v357_v41 }
 0x17a   :  { %3779 = vmatprep.subr.bf16.mxu1 %v4139_v18  ;;  %v4425_v18 = vcombine.high %v340_v37, %v356_v39 }
 0x17c   :  { %3737 = vmatpush1.bf16.msra.mxu0 %v4136_v47  ;;  %v325_v47 = vld [vmem:[#allocation2 + $0x8d8] sm:$0xff] }
 0x17d   :  { %3780 = vmatpush1.bf16.msra.mxu1 %v4138_v48  ;;  %3738 = vmatprep.subr.bf16.mxu0 %v4617_v49  ;;  %v4424_v48 = vcombine.low %v340_v37, %v356_v39  ;;  %v4426_v49 = vcombine.low %v341_v40, %v357_v41  ;;  %v4395_v51 = vcombine.high %v309_v46, %v325_v47  ;;  %v4862_v37 = vld [vmem:[%s5045_s0 + $0x4] ss:$8 sps:$4 sm:$0xff]  }
 0x17e   :  { %3781 = vmatprep.subr.bf16.mxu1 %v4619_v50  ;;  %v4393_v50 = vcombine.high %v308_v44, %v324_v45  ;;  %v183_v41 = vld [vmem:[#allocation2 + $0x468] sm:$0xff] }
 0x180   :  { %3739 = vmatpush2.bf16.msra.mxu0 %v4616_v55  ;;  %v295_v55 = vld [vmem:[#allocation2 + $0x7e8] sm:$0xff] }
 0x181   :  { %3782 = vmatpush2.bf16.msra.mxu1 %v4618_v57  ;;  %3740 = vmatprep.subr.bf16.mxu0 %v4585_v33  ;;  %v4392_v57 = vcombine.low %v308_v44, %v324_v45  ;;  %v4394_v33 = vcombine.low %v309_v46, %v325_v47  ;;  %v4367_v60 = vcombine.high %v279_v54, %v295_v55 }
 0x182   :  { %3783 = vmatprep.subr.bf16.mxu1 %v4587_v58  ;;  %v4847_v58 = vld [vmem:[#allocation4 + $0x8] sm:$0xff]  ;;  %v4366_v7 = vcombine.low %v279_v54, %v295_v55  ;;  %v150_v54 = vld [vmem:[#allocation2 + $0x360] sm:$0xff] }
 0x183   :  { %v605_v5 = vrot.slane %v4847_v58, %v4750_v19  ;;  %v601_v11 = vrot.slane %v4847_v58, %v4753_v22  ;;  %v609_v20 = vrot.slane %v4847_v58, %v4756_v25  ;;  %v166_v55 = vld [vmem:[#allocation2 + $0x3e0] sm:$0xff] }
 0x184   :  { %3741 = vmatpush2.bf16.msra.mxu0 %v4584_v63  ;;  %v247_v63 = vld [vmem:[#allocation2 + $0x668] sm:$0xff] }
 0x185   :  { %3784 = vmatpush2.bf16.msra.mxu1 %v4586_v0  ;;  %3742 = vmatprep.subr.bf16.mxu0 %v4553_v1  ;;  %v263_v0 = vld [vmem:[#allocation2 + $0x6e8] sm:$0xff]  ;;  %v597_v1 = vrot.slane %v4847_v58, %v4745_v16 }
 0x186   :  { %3785 = vmatprep.subr.bf16.mxu1 %v4555_v3  ;;  %v4364_v3 = vcombine.low %v278_v52, %v294_v53  ;;  %v4334_v29 = vcombine.low %v247_v63, %v263_v0 }
 0x188   :  { %3743 = vmatpush2.bf16.msra.mxu0 %v4552_v13  ;;  %v4335_v13 = vcombine.high %v247_v63, %v263_v0 }
 0x189   :  { %3786 = vmatpush2.bf16.msra.mxu1 %v4554_v14  ;;  %3744 = vmatprep.subr.bf16.mxu0 %v4521_v15  ;;  %v214_v14 = vld [vmem:[#allocation2 + $0x560] sm:$0xff] }
 0x18a   :  { %3787 = vmatprep.subr.bf16.mxu1 %v4523_v17  ;;  %v230_v15 = vld [vmem:[#allocation2 + $0x5e0] sm:$0xff] }
 0x18b   :  { %v4301_v30 = vcombine.high %v214_v14, %v230_v15  ;;  %v4300_v44 = vcombine.low %v214_v14, %v230_v15 }
 0x18c   :  { %3745 = vmatpush2.bf16.msra.mxu0 %v4520_v6 }
 0x18d   :  { %3788 = vmatpush2.bf16.msra.mxu1 %v4522_v26  ;;  %3746 = vmatprep.subr.bf16.mxu0 %v4489_v27  ;;  %v4332_v26 = vcombine.low %v246_v61, %v262_v62 }
 0x18e   :  { %3789 = vmatprep.subr.bf16.mxu1 %v4491_v28 }
 0x190   :  { %3747 = vmatpush2.bf16.msra.mxu0 %v4488_v34 }
 0x191   :  { %3790 = vmatpush2.bf16.msra.mxu1 %v4490_v35  ;;  %3748 = vmatprep.subr.bf16.mxu0 %v4457_v10  ;;  %v4303_v35 = vcombine.high %v215_v21, %v231_v23  ;;  %v182_v10 = vld [vmem:[#allocation2 + $0x460] sm:$0xff] }
 0x192   :  { %3791 = vmatprep.subr.bf16.mxu1 %v4459_v36  ;;  %v198_v36 = vld [vmem:[#allocation2 + $0x4e0] sm:$0xff] }
 0x193   :  { %v4268_v62 = vcombine.low %v182_v10, %v198_v36 }
 0x194   :  { %3749 = vmatpush2.bf16.msra.mxu0 %v4456_v42  ;;  %v199_v42 = vld [vmem:[#allocation2 + $0x4e8] sm:$0xff] }
 0x195   :  { %3792 = vmatpush2.bf16.msra.mxu1 %v4458_v43  ;;  %3750 = vmatprep.subr.bf16.mxu0 %v4425_v18  ;;  %v4271_v53 = vcombine.high %v183_v41, %v199_v42  ;;  %v4270_v0 = vcombine.low %v183_v41, %v199_v42  ;;  %v551_v41 = vld [vmem:[#allocation2 + $0xfe8] sm:$0xff] }
 0x196   :  { %3793 = vmatprep.subr.bf16.mxu1 %v4427_v56 }
 0x198   :  { %3751 = vmatpush2.bf16.msra.mxu0 %v4424_v48  ;;  %v4302_v48 = vcombine.low %v215_v21, %v231_v23  ;;  %v102_v21 = vld [vmem:[#allocation2 + $0x1e0] sm:$0xff]  ;;  %v87_v23 = vld [vmem:[#allocation2 + $0x168] sm:$0xff] }
 0x199   :  { %3794 = vmatpush2.bf16.msra.mxu1 %v4426_v49  ;;  %3752 = vmatprep.subr.bf16.mxu0 %v4393_v50  ;;  %v4269_v49 = vcombine.high %v182_v10, %v198_v36 }
 0x19a   :  { %3795 = vmatprep.subr.bf16.mxu1 %v4395_v51 }
 0x19c   :  { %3753 = vmatpush2.bf16.msra.mxu0 %v4392_v57 }
 0x19d   :  { %3796 = vmatpush2.bf16.msra.mxu1 %v4394_v33  ;;  %3808 = vmatprep.subr.bf16.mxu0 %v4365_v59  ;;  %v151_v59 = vld [vmem:[#allocation2 + $0x368] sm:$0xff] }
 0x19e   :  { %3851 = vmatprep.subr.bf16.mxu1 %v4367_v60  ;;  %v167_v60 = vld [vmem:[#allocation2 + $0x3e8] sm:$0xff] }
 0x19f   :  { %v3498_v17 = vpop.f32.mrf.mxu0  ;;  %3755 = vmatmul.mubr.bf16.vlgmr.msra.gmra.mxu0 %v4767_v38  ;;  %v3541_v6 = vpop.f32.mrf.mxu1  ;;  %v4238_v14 = vcombine.low %v151_v59, %v167_v60 }
 0x1a0   :  { %v3499_v24 = vadd.f32 %v3498_v17, %v597_v1  ;;  %3798 = vmatmul.mubr.bf16.vlgmr.msra.gmra.mxu1 %v4767_v38  ;;  %3809 = vmatpush1.bf16.msra.mxu0 %v4364_v3  ;;  %v3542_v27 = vadd.f32 %v3541_v6, %v605_v5  ;;  %v4239_v3 = vcombine.high %v151_v59, %v167_v60 }
 0x1a1   :  { %3852 = vmatpush1.bf16.msra.mxu1 %v4366_v7  ;;  %v3500_v28 = vpop.f32.mrf.mxu0  ;;  %3810 = vmatprep.subr.bf16.mxu0 %v4333_v9  ;;  %v3543_v34 = vpop.f32.mrf.mxu1  ;;  %v134_v7 = vld [vmem:[#allocation2 + $0x2e0] sm:$0xff]  ;;  %v119_v9 = vld [vmem:[#allocation2 + $0x268] sm:$0xff] }
 0x1a2   :  { %v3988_v31 = vmax.f32 %v3499_v24, 0.0  ;;  %v3501_v32 = vadd.f32 %v3500_v28, %v601_v11  ;;  %3853 = vmatprep.subr.bf16.mxu1 %v4335_v13  ;;  %3840 = vmatprep.mubr.bf16.mxu0 %v4862_v37  ;;  %v3990_v38 = vmax.f32 %v3542_v27, 0.0  ;;  %v3544_v39 = vadd.f32 %v3543_v34, %v609_v20  ;;  %v103_v24 = vld [vmem:[#allocation2 + $0x1e8] sm:$0xff] }
 0x1a3   :  { %v3502_v40 = vpop.f32.mrf.mxu0  ;;  %3883 = vmatprep.mubr.bf16.mxu1 %v4862_v37  ;;  %v3545_v56 = vpop.f32.mrf.mxu1  ;;  %v4236_v13 = vcombine.low %v150_v54, %v166_v55  ;;  %v4175_v28 = vcombine.high %v87_v23, %v103_v24 }
 0x1a4   :  { %4052 = vst [vmem:[%s5048_s3 + $0x40] sm:$0xff] %v3988_v31  ;;  %v3989_v43 = vmax.f32 %v3501_v32, 0.0  ;;  %v3503_v18 = vadd.f32 %v3502_v40, %v597_v1  ;;  %3811 = vmatpush1.bf16.msra.mxu0 %v4332_v26  ;;  %4054 = vst [vmem:[%s5048_s3 + $0x50] sm:$0xff] %v3990_v38  ;;  %v3991_v45 = vmax.f32 %v3544_v39, 0.0  ;;  %v3546_v46 = vadd.f32 %v3545_v56, %v605_v5  ;;  %v118_v5 = vld [vmem:[#allocation2 + $0x260] sm:$0xff]  ;;  %v55_v31 = vld [vmem:[#allocation2 + $0x68] sm:$0xff] }
 0x1a5   :  { %3854 = vmatpush1.bf16.msra.mxu1 %v4334_v29  ;;  %v3504_v47 = vpop.f32.mrf.mxu0  ;;  %3812 = vmatprep.subr.bf16.mxu0 %v4301_v30  ;;  %v3547_v52 = vpop.f32.mrf.mxu1  ;;  %v4237_v1 = vcombine.high %v150_v54, %v166_v55  ;;  %v4205_v15 = vcombine.high %v118_v5, %v134_v7  ;;  %v4204_v6 = vcombine.low %v118_v5, %v134_v7  ;;  %v54_v29 = vld [vmem:[#allocation2 + $0x60] sm:$0xff]  ;;  %v71_v32 = vld [vmem:[#allocation2 + $0xe8] sm:$0xff] }
 0x1a6   :  { %4053 = vst [vmem:[%s5048_s3 + $0x48] sm:$0xff] %v3989_v43  ;;  %v4020_v50 = vmax.f32 %v3503_v18, 0.0  ;;  %v3505_v51 = vadd.f32 %v3504_v47, %v601_v11  ;;  %3855 = vmatprep.subr.bf16.mxu1 %v4303_v35  ;;  %4055 = vst [vmem:[%s5048_s3 + $0x58] sm:$0xff] %v3991_v45  ;;  %v4022_v57 = vmax.f32 %v3546_v46, 0.0  ;;  %v3548_v33 = vadd.f32 %v3547_v52, %v609_v20  ;;  %v135_v11 = vld [vmem:[#allocation2 + $0x2e8] sm:$0xff]  ;;  %v86_v20 = vld [vmem:[#allocation2 + $0x160] sm:$0xff] }
 0x1a7   :  { %v4207_v17 = vcombine.high %v119_v9, %v135_v11  ;;  %v4206_v26 = vcombine.low %v119_v9, %v135_v11  ;;  %v4173_v27 = vcombine.high %v86_v20, %v102_v21  ;;  %v70_v30 = vld [vmem:[#allocation2 + $0xe0] sm:$0xff]  ;;  %v4172_v34 = vcombine.low %v86_v20, %v102_v21  ;;  %v535_v40 = vld [vmem:[#allocation2 + $0xf68] sm:$0xff] }
 0x1a8   :  { %4084 = vst [vmem:[%s5048_s3 + $0x140] sm:$0xff] %v4020_v50  ;;  %v4021_v61 = vmax.f32 %v3505_v51, 0.0  ;;  %3813 = vmatpush1.bf16.msra.mxu0 %v4300_v44  ;;  %4086 = vst [vmem:[%s5048_s3 + $0x150] sm:$0xff] %v4022_v57  ;;  %v4023_v63 = vmax.f32 %v3548_v33, 0.0  ;;  %v4174_v35 = vcombine.low %v87_v23, %v103_v24  ;;  %v4141_v10 = vcombine.high %v54_v29, %v70_v30  ;;  %v534_v38 = vld [vmem:[#allocation2 + $0xf60] sm:$0xff]  ;;  %v503_v46 = vld [vmem:[#allocation2 + $0xe68] sm:$0xff] }
 0x1a9   :  { %3856 = vmatpush1.bf16.msra.mxu1 %v4302_v48  ;;  %3814 = vmatprep.subr.bf16.mxu0 %v4269_v49  ;;  %v4143_v36 = vcombine.high %v55_v31, %v71_v32  ;;  %v550_v39 = vld [vmem:[#allocation2 + $0xfe0] sm:$0xff]  ;;  %v4140_v42 = vcombine.low %v54_v29, %v70_v30  ;;  %v4142_v43 = vcombine.low %v55_v31, %v71_v32  ;;  %v519_v47 = vld [vmem:[#allocation2 + $0xee8] sm:$0xff] }
 0x1aa   :  { %4085 = vst [vmem:[%s5048_s3 + $0x148] sm:$0xff] %v4021_v61  ;;  %3857 = vmatprep.subr.bf16.mxu1 %v4271_v53  ;;  %4087 = vst [vmem:[%s5048_s3 + $0x158] sm:$0xff] %v4023_v63  ;;  %v4621_v18 = vcombine.high %v534_v38, %v550_v39  ;;  %v4623_v56 = vcombine.high %v535_v40, %v551_v41  ;;  %v502_v44 = vld [vmem:[#allocation2 + $0xe60] sm:$0xff]  ;;  %v4620_v48 = vcombine.low %v534_v38, %v550_v39  ;;  %v471_v54 = vld [vmem:[#allocation2 + $0xd68] sm:$0xff] }
 0x1ab   :  { %v518_v45 = vld [vmem:[#allocation2 + $0xee0] sm:$0xff]  ;;  %v4622_v49 = vcombine.low %v535_v40, %v551_v41  ;;  %v4591_v51 = vcombine.high %v503_v46, %v519_v47  ;;  %v487_v55 = vld [vmem:[#allocation2 + $0xde8] sm:$0xff]  ;;  %v4590_v33 = vcombine.low %v503_v46, %v519_v47  ;;  %v280_v46 = vld [vmem:[#allocation2 + $0x770] sm:$0xff] }
 0x1ac   :  { %3815 = vmatpush1.bf16.msra.mxu0 %v4268_v62  ;;  %v4589_v50 = vcombine.high %v502_v44, %v518_v45  ;;  %v470_v52 = vld [vmem:[#allocation2 + $0xd60] sm:$0xff]  ;;  %v4588_v57 = vcombine.low %v502_v44, %v518_v45  ;;  %v4559_v60 = vcombine.high %v471_v54, %v487_v55  ;;  %v439_v63 = vld [vmem:[#allocation2 + $0xc68] sm:$0xff]  ;;  %v296_v47 = vld [vmem:[#allocation2 + $0x7f0] sm:$0xff] }
 0x1ad   :  { %3858 = vmatpush1.bf16.msra.mxu1 %v4270_v0  ;;  %3816 = vmatprep.subr.bf16.mxu0 %v4237_v1  ;;  %v486_v53 = vld [vmem:[#allocation2 + $0xde0] sm:$0xff]  ;;  %v455_v0 = vld [vmem:[#allocation2 + $0xce8] sm:$0xff] }
 0x1ae   :  { %3859 = vmatprep.subr.bf16.mxu1 %v4239_v3  ;;  %v4557_v59 = vcombine.high %v470_v52, %v486_v53  ;;  %v438_v61 = vld [vmem:[#allocation2 + $0xc60] sm:$0xff]  ;;  %v4556_v1 = vcombine.low %v470_v52, %v486_v53  ;;  %v4558_v3 = vcombine.low %v471_v54, %v487_v55  ;;  %v4527_v7 = vcombine.high %v439_v63, %v455_v0  ;;  %v248_v54 = vld [vmem:[#allocation2 + $0x670] sm:$0xff] }
 0x1af   :  { %v454_v62 = vld [vmem:[#allocation2 + $0xce0] sm:$0xff]  ;;  %v4369_v52 = vcombine.high %v280_v46, %v296_v47  ;;  %v264_v55 = vld [vmem:[#allocation2 + $0x6f0] sm:$0xff] }
 0x1b0   :  { %3817 = vmatpush1.bf16.msra.mxu0 %v4236_v13  ;;  %v4525_v5 = vcombine.high %v438_v61, %v454_v62  ;;  %v406_v9 = vld [vmem:[#allocation2 + $0xb60] sm:$0xff]  ;;  %v407_v13 = vld [vmem:[#allocation2 + $0xb68] sm:$0xff] }
 0x1b1   :  { %3860 = vmatpush1.bf16.msra.mxu1 %v4238_v14  ;;  %3818 = vmatprep.subr.bf16.mxu0 %v4205_v15  ;;  %v422_v11 = vld [vmem:[#allocation2 + $0xbe0] sm:$0xff]  ;;  %v423_v14 = vld [vmem:[#allocation2 + $0xbe8] sm:$0xff]  ;;  %v4524_v15 = vcombine.low %v438_v61, %v454_v62  ;;  %v621_v61 = vrot.slane %v4847_v58, %v4803_v4 }
 0x1b2   :  { %3861 = vmatprep.subr.bf16.mxu1 %v4207_v17  ;;  %v4526_v17 = vcombine.low %v439_v63, %v455_v0  ;;  %v4493_v20 = vcombine.high %v406_v9, %v422_v11  ;;  %v4495_v21 = vcombine.high %v407_v13, %v423_v14  ;;  %v374_v23 = vld [vmem:[#allocation2 + $0xa60] sm:$0xff]  ;;  %v4337_v63 = vcombine.high %v248_v54, %v264_v55 }
 0x1b3   :  { %v390_v24 = vld [vmem:[#allocation2 + $0xae0] sm:$0xff]  ;;  %v617_v0 = vrot.slane %v4847_v58, %v4806_v8 }
 0x1b4   :  { %3819 = vmatpush1.bf16.msra.mxu0 %v4204_v6  ;;  %v375_v6 = vld [vmem:[#allocation2 + $0xa68] sm:$0xff]  ;;  %v4461_v29 = vcombine.high %v374_v23, %v390_v24  ;;  %v342_v31 = vld [vmem:[#allocation2 + $0x960] sm:$0xff] }
 0x1b5   :  { %3862 = vmatpush1.bf16.msra.mxu1 %v4206_v26  ;;  %3820 = vmatprep.subr.bf16.mxu0 %v4173_v27  ;;  %v391_v26 = vld [vmem:[#allocation2 + $0xae8] sm:$0xff]  ;;  %v4492_v27 = vcombine.low %v406_v9, %v422_v11  ;;  %v358_v32 = vld [vmem:[#allocation2 + $0x9e0] sm:$0xff]  ;;  %v625_v11 = vrot.slane %v4847_v58, %v4809_v12 }
 0x1b6   :  { %3863 = vmatprep.subr.bf16.mxu1 %v4175_v28  ;;  %v4494_v28 = vcombine.low %v407_v13, %v423_v14  ;;  %v4463_v30 = vcombine.high %v375_v6, %v391_v26  ;;  %v4429_v38 = vcombine.high %v342_v31, %v358_v32  ;;  %v310_v40 = vld [vmem:[#allocation2 + $0x860] sm:$0xff]  ;;  %v217_v13 = vld [vmem:[#allocation2 + $0x578] sm:$0xff] }
 0x1b7   :  { %v326_v41 = vld [vmem:[#allocation2 + $0x8e0] sm:$0xff]  ;;  %v233_v14 = vld [vmem:[#allocation2 + $0x5f8] sm:$0xff] }
 0x1b8   :  { %3821 = vmatpush1.bf16.msra.mxu0 %v4172_v34  ;;  %v343_v34 = vld [vmem:[#allocation2 + $0x968] sm:$0xff]  ;;  %v4397_v44 = vcombine.high %v310_v40, %v326_v41 }
 0x1b9   :  { %3864 = vmatpush1.bf16.msra.mxu1 %v4174_v35  ;;  %3822 = vmatprep.subr.bf16.mxu0 %v4141_v10  ;;  %v359_v35 = vld [vmem:[#allocation2 + $0x9e8] sm:$0xff]  ;;  %v4460_v10 = vcombine.low %v374_v23, %v390_v24 }
 0x1ba   :  { %3865 = vmatprep.subr.bf16.mxu1 %v4143_v36  ;;  %v4462_v36 = vcombine.low %v375_v6, %v391_v26  ;;  %v4431_v39 = vcombine.high %v343_v34, %v359_v35  ;;  %v4899_v9 = vld [vmem:[%s5045_s0] ss:$8 sps:$4 sm:$0xff]  }
 0x1bc   :  { %3823 = vmatpush1.bf16.msra.mxu0 %v4140_v42  ;;  %v311_v42 = vld [vmem:[#allocation2 + $0x868] sm:$0xff] }
 0x1bd   :  { %3866 = vmatpush1.bf16.msra.mxu1 %v4142_v43  ;;  %3824 = vmatprep.subr.bf16.mxu0 %v4621_v18  ;;  %v327_v43 = vld [vmem:[#allocation2 + $0x8e8] sm:$0xff]  ;;  %v4428_v18 = vcombine.low %v342_v31, %v358_v32 }
 0x1be   :  { %3867 = vmatprep.subr.bf16.mxu1 %v4623_v56  ;;  %v4430_v56 = vcombine.low %v343_v34, %v359_v35  ;;  %v4399_v45 = vcombine.high %v311_v42, %v327_v43  ;;  %v185_v35 = vld [vmem:[#allocation2 + $0x478] sm:$0xff] }
 0x1c0   :  { %3825 = vmatpush2.bf16.msra.mxu0 %v4620_v48  ;;  %v281_v48 = vld [vmem:[#allocation2 + $0x778] sm:$0xff] }
 0x1c1   :  { %3868 = vmatpush2.bf16.msra.mxu1 %v4622_v49  ;;  %3826 = vmatprep.subr.bf16.mxu0 %v4589_v50  ;;  %v297_v49 = vld [vmem:[#allocation2 + $0x7f8] sm:$0xff]  ;;  %v4396_v50 = vcombine.low %v310_v40, %v326_v41 }
 0x1c2   :  { %3869 = vmatprep.subr.bf16.mxu1 %v4591_v51  ;;  %v4398_v51 = vcombine.low %v311_v42, %v327_v43  ;;  %v4371_v53 = vcombine.high %v281_v48, %v297_v49  ;;  %v4370_v62 = vcombine.low %v281_v48, %v297_v49  ;;  %v168_v48 = vld [vmem:[#allocation2 + $0x3f0] sm:$0xff] }
 0x1c4   :  { %3827 = vmatpush2.bf16.msra.mxu0 %v4588_v57  ;;  %v249_v57 = vld [vmem:[#allocation2 + $0x678] sm:$0xff] }
 0x1c5   :  { %3870 = vmatpush2.bf16.msra.mxu1 %v4590_v33  ;;  %3828 = vmatprep.subr.bf16.mxu0 %v4557_v59  ;;  %v265_v33 = vld [vmem:[#allocation2 + $0x6f8] sm:$0xff]  ;;  %v613_v59 = vrot.slane %v4847_v58, %v4800_v2  ;;  %v184_v58 = vld [vmem:[#allocation2 + $0x470] sm:$0xff] }
 0x1c6   :  { %3871 = vmatprep.subr.bf16.mxu1 %v4559_v60  ;;  %v4368_v60 = vcombine.low %v280_v46, %v296_v47  ;;  %v4338_v24 = vcombine.low %v249_v57, %v265_v33  ;;  %v152_v47 = vld [vmem:[#allocation2 + $0x370] sm:$0xff] }
 0x1c8   :  { %3829 = vmatpush2.bf16.msra.mxu0 %v4556_v1  ;;  %v4339_v1 = vcombine.high %v249_v57, %v265_v33  ;;  %v4241_v33 = vcombine.high %v152_v47, %v168_v48 }
 0x1c9   :  { %3872 = vmatpush2.bf16.msra.mxu1 %v4558_v3  ;;  %3830 = vmatprep.subr.bf16.mxu0 %v4525_v5  ;;  %v216_v3 = vld [vmem:[#allocation2 + $0x570] sm:$0xff] }
 0x1ca   :  { %3873 = vmatprep.subr.bf16.mxu1 %v4527_v7  ;;  %v232_v5 = vld [vmem:[#allocation2 + $0x5f0] sm:$0xff] }
 0x1cb   :  { %v4305_v6 = vcombine.high %v216_v3, %v232_v5  ;;  %v4304_v40 = vcombine.low %v216_v3, %v232_v5 }
 0x1cc   :  { %3831 = vmatpush2.bf16.msra.mxu0 %v4524_v15 }
 0x1cd   :  { %3874 = vmatpush2.bf16.msra.mxu1 %v4526_v17  ;;  %3832 = vmatprep.subr.bf16.mxu0 %v4493_v20  ;;  %v4336_v20 = vcombine.low %v248_v54, %v264_v55 }
 0x1ce   :  { %3875 = vmatprep.subr.bf16.mxu1 %v4495_v21 }
 0x1d0   :  { %3833 = vmatpush2.bf16.msra.mxu0 %v4492_v27 }
 0x1d1   :  { %3876 = vmatpush2.bf16.msra.mxu1 %v4494_v28  ;;  %3834 = vmatprep.subr.bf16.mxu0 %v4461_v29  ;;  %v4307_v29 = vcombine.high %v217_v13, %v233_v14 }
 0x1d2   :  { %3877 = vmatprep.subr.bf16.mxu1 %v4463_v30  ;;  %v200_v30 = vld [vmem:[#allocation2 + $0x4f0] sm:$0xff] }
 0x1d3   :  { %v4272_v54 = vcombine.low %v184_v58, %v200_v30 }
 0x1d4   :  { %3835 = vmatpush2.bf16.msra.mxu0 %v4460_v10  ;;  %v201_v10 = vld [vmem:[#allocation2 + $0x4f8] sm:$0xff] }
 0x1d5   :  { %3878 = vmatpush2.bf16.msra.mxu1 %v4462_v36  ;;  %3836 = vmatprep.subr.bf16.mxu0 %v4429_v38  ;;  %v4275_v46 = vcombine.high %v185_v35, %v201_v10  ;;  %v4274_v57 = vcombine.low %v185_v35, %v201_v10 }
 0x1d6   :  { %3879 = vmatprep.subr.bf16.mxu1 %v4431_v39 }
 0x1d8   :  { %3837 = vmatpush2.bf16.msra.mxu0 %v4428_v18  ;;  %v4306_v18 = vcombine.low %v217_v13, %v233_v14  ;;  %v89_v13 = vld [vmem:[#allocation2 + $0x178] sm:$0xff] }
 0x1d9   :  { %3880 = vmatpush2.bf16.msra.mxu1 %v4430_v56  ;;  %3838 = vmatprep.subr.bf16.mxu0 %v4397_v44  ;;  %v105_v14 = vld [vmem:[#allocation2 + $0x1f8] sm:$0xff] }
 0x1da   :  { %3881 = vmatprep.subr.bf16.mxu1 %v4399_v45 }
 0x1dc   :  { %3839 = vmatpush2.bf16.msra.mxu0 %v4396_v50 }
 0x1dd   :  { %3882 = vmatpush2.bf16.msra.mxu1 %v4398_v51  ;;  %3894 = vmatprep.subr.bf16.mxu0 %v4369_v52  ;;  %v153_v51 = vld [vmem:[#allocation2 + $0x378] sm:$0xff] }
 0x1de   :  { %3937 = vmatprep.subr.bf16.mxu1 %v4371_v53  ;;  %v169_v52 = vld [vmem:[#allocation2 + $0x3f8] sm:$0xff] }
 0x1df   :  { %v3584_v7 = vpop.f32.mrf.mxu0  ;;  %3841 = vmatmul.mubr.bf16.vlgmr.msra.gmra.mxu0 %v4899_v9  ;;  %v3627_v17 = vpop.f32.mrf.mxu1 }
 0x1e0   :  { %v3585_v15 = vadd.f32 %v3584_v7, %v613_v59  ;;  %3884 = vmatmul.mubr.bf16.vlgmr.msra.gmra.mxu1 %v4899_v9  ;;  %3895 = vmatpush1.bf16.msra.mxu0 %v4368_v60  ;;  %v3628_v21 = vadd.f32 %v3627_v17, %v621_v61  ;;  %v120_v60 = vld [vmem:[#allocation2 + $0x270] sm:$0xff] }
 0x1e1   :  { %3938 = vmatpush1.bf16.msra.mxu1 %v4370_v62  ;;  %v3586_v23 = vpop.f32.mrf.mxu0  ;;  %3896 = vmatprep.subr.bf16.mxu0 %v4337_v63  ;;  %v3629_v28 = vpop.f32.mrf.mxu1  ;;  %v121_v62 = vld [vmem:[#allocation2 + $0x278] sm:$0xff]  ;;  %v88_v7 = vld [vmem:[#allocation2 + $0x170] sm:$0xff] }
 0x1e2   :  { %v3992_v26 = vmax.f32 %v3585_v15, 0.0  ;;  %v3587_v27 = vadd.f32 %v3586_v23, %v617_v0  ;;  %3939 = vmatprep.subr.bf16.mxu1 %v4339_v1  ;;  %3926 = vmatprep.mubr.bf16.mxu0 %v4862_v37  ;;  %v3994_v31 = vmax.f32 %v3628_v21, 0.0  ;;  %v3630_v32 = vadd.f32 %v3629_v28, %v625_v11  ;;  %v137_v63 = vld [vmem:[#allocation2 + $0x2f8] sm:$0xff]  ;;  %v56_v23 = vld [vmem:[#allocation2 + $0x70] sm:$0xff] }
 0x1e3   :  { %v3588_v34 = vpop.f32.mrf.mxu0  ;;  %3969 = vmatprep.mubr.bf16.mxu1 %v4862_v37  ;;  %v3631_v39 = vpop.f32.mrf.mxu1  ;;  %v4273_v37 = vcombine.high %v184_v58, %v200_v30  ;;  %v4242_v1 = vcombine.low %v153_v51, %v169_v52  ;;  %v4211_v5 = vcombine.high %v121_v62, %v137_v63  ;;  %v4210_v17 = vcombine.low %v121_v62, %v137_v63  ;;  %v536_v30 = vld [vmem:[#allocation2 + $0xf70] sm:$0xff]  ;;  %v409_v63 = vld [vmem:[#allocation2 + $0xb78] sm:$0xff] }
 0x1e4   :  { %4056 = vst [vmem:[%s5048_s3 + $0x60] sm:$0xff] %v3992_v26  ;;  %v3993_v36 = vmax.f32 %v3587_v27, 0.0  ;;  %v3589_v38 = vadd.f32 %v3588_v34, %v613_v59  ;;  %3897 = vmatpush1.bf16.msra.mxu0 %v4336_v20  ;;  %4058 = vst [vmem:[%s5048_s3 + $0x70] sm:$0xff] %v3994_v31  ;;  %v3995_v41 = vmax.f32 %v3630_v32, 0.0  ;;  %v3632_v42 = vadd.f32 %v3631_v39, %v621_v61  ;;  %v136_v61 = vld [vmem:[#allocation2 + $0x2f0] sm:$0xff]  ;;  %v73_v26 = vld [vmem:[#allocation2 + $0xf8] sm:$0xff] }
 0x1e5   :  { %3940 = vmatpush1.bf16.msra.mxu1 %v4338_v24  ;;  %v3590_v43 = vpop.f32.mrf.mxu0  ;;  %3898 = vmatprep.subr.bf16.mxu0 %v4305_v6  ;;  %v3633_v45 = vpop.f32.mrf.mxu1  ;;  %v4243_v59 = vcombine.high %v153_v51, %v169_v52  ;;  %v4209_v3 = vcombine.high %v120_v60, %v136_v61  ;;  %v4208_v15 = vcombine.low %v120_v60, %v136_v61  ;;  %v72_v24 = vld [vmem:[#allocation2 + $0xf0] sm:$0xff]  ;;  %v57_v6 = vld [vmem:[#allocation2 + $0x78] sm:$0xff] }
 0x1e6   :  { %4057 = vst [vmem:[%s5048_s3 + $0x68] sm:$0xff] %v3993_v36  ;;  %v4024_v56 = vmax.f32 %v3589_v38, 0.0  ;;  %v3591_v44 = vadd.f32 %v3590_v43, %v617_v0  ;;  %3941 = vmatprep.subr.bf16.mxu1 %v4307_v29  ;;  %4059 = vst [vmem:[%s5048_s3 + $0x78] sm:$0xff] %v3995_v41  ;;  %v4026_v49 = vmax.f32 %v3632_v42, 0.0  ;;  %v3634_v50 = vadd.f32 %v3633_v45, %v625_v11  ;;  %v104_v11 = vld [vmem:[#allocation2 + $0x1f0] sm:$0xff]  ;;  %v537_v32 = vld [vmem:[#allocation2 + $0xf78] sm:$0xff] }
 0x1e7   :  { %v4240_v0 = vcombine.low %v152_v47, %v168_v48  ;;  %v4177_v20 = vcombine.high %v88_v7, %v104_v11  ;;  %v4179_v21 = vcombine.high %v89_v13, %v105_v14  ;;  %v4176_v27 = vcombine.low %v88_v7, %v104_v11  ;;  %v552_v31 = vld [vmem:[#allocation2 + $0xff0] sm:$0xff]  ;;  %v553_v34 = vld [vmem:[#allocation2 + $0xff8] sm:$0xff] }
 0x1e8   :  { %4088 = vst [vmem:[%s5048_s3 + $0x160] sm:$0xff] %v4024_v56  ;;  %v4025_v53 = vmax.f32 %v3591_v44, 0.0  ;;  %3899 = vmatpush1.bf16.msra.mxu0 %v4304_v40  ;;  %4090 = vst [vmem:[%s5048_s3 + $0x170] sm:$0xff] %v4026_v49  ;;  %v4027_v55 = vmax.f32 %v3634_v50, 0.0  ;;  %v4178_v28 = vcombine.low %v89_v13, %v105_v14  ;;  %v4145_v29 = vcombine.high %v56_v23, %v72_v24  ;;  %v504_v39 = vld [vmem:[#allocation2 + $0xe70] sm:$0xff]  ;;  %v505_v41 = vld [vmem:[#allocation2 + $0xe78] sm:$0xff] }
 0x1e9   :  { %3942 = vmatpush1.bf16.msra.mxu1 %v4306_v18  ;;  %3900 = vmatprep.subr.bf16.mxu0 %v4273_v37  ;;  %v4147_v58 = vcombine.high %v57_v6, %v73_v26  ;;  %v4144_v35 = vcombine.low %v56_v23, %v72_v24  ;;  %v4146_v10 = vcombine.low %v57_v6, %v73_v26  ;;  %v520_v40 = vld [vmem:[#allocation2 + $0xef0] sm:$0xff]  ;;  %v521_v42 = vld [vmem:[#allocation2 + $0xef8] sm:$0xff] }
 0x1ea   :  { %4089 = vst [vmem:[%s5048_s3 + $0x168] sm:$0xff] %v4025_v53  ;;  %3943 = vmatprep.subr.bf16.mxu1 %v4275_v46  ;;  %4091 = vst [vmem:[%s5048_s3 + $0x178] sm:$0xff] %v4027_v55  ;;  %v4625_v36 = vcombine.high %v536_v30, %v552_v31  ;;  %v4627_v38 = vcombine.high %v537_v32, %v553_v34  ;;  %v4624_v43 = vcombine.low %v536_v30, %v552_v31  ;;  %v472_v44 = vld [vmem:[#allocation2 + $0xd70] sm:$0xff]  ;;  %v473_v46 = vld [vmem:[#allocation2 + $0xd78] sm:$0xff] }
 0x1eb   :  { %v4626_v18 = vcombine.low %v537_v32, %v553_v34  ;;  %v4593_v37 = vcombine.high %v504_v39, %v520_v40  ;;  %v4595_v56 = vcombine.high %v505_v41, %v521_v42  ;;  %v488_v45 = vld [vmem:[#allocation2 + $0xdf0] sm:$0xff]  ;;  %v489_v47 = vld [vmem:[#allocation2 + $0xdf8] sm:$0xff]  ;;  %v4592_v48 = vcombine.low %v504_v39, %v520_v40 }
 0x1ec   :  { %3901 = vmatpush1.bf16.msra.mxu0 %v4272_v54  ;;  %v4594_v49 = vcombine.low %v505_v41, %v521_v42  ;;  %v4561_v50 = vcombine.high %v472_v44, %v488_v45  ;;  %v4563_v51 = vcombine.high %v473_v46, %v489_v47  ;;  %v440_v52 = vld [vmem:[#allocation2 + $0xc70] sm:$0xff]  ;;  %v441_v54 = vld [vmem:[#allocation2 + $0xc78] sm:$0xff] }
 0x1ed   :  { %3944 = vmatpush1.bf16.msra.mxu1 %v4274_v57  ;;  %3902 = vmatprep.subr.bf16.mxu0 %v4241_v33  ;;  %v456_v53 = vld [vmem:[#allocation2 + $0xcf0] sm:$0xff]  ;;  %v457_v55 = vld [vmem:[#allocation2 + $0xcf8] sm:$0xff]  ;;  %v4560_v57 = vcombine.low %v472_v44, %v488_v45  ;;  %v4562_v33 = vcombine.low %v473_v46, %v489_v47 }
 0x1ee   :  { %3945 = vmatprep.subr.bf16.mxu1 %v4243_v59  ;;  %v4529_v59 = vcombine.high %v440_v52, %v456_v53  ;;  %v4531_v60 = vcombine.high %v441_v54, %v457_v55  ;;  %v408_v61 = vld [vmem:[#allocation2 + $0xb70] sm:$0xff]  ;;  %v377_v14 = vld [vmem:[#allocation2 + $0xa78] sm:$0xff] }
 0x1ef   :  { %v424_v62 = vld [vmem:[#allocation2 + $0xbf0] sm:$0xff]  ;;  %v345_v26 = vld [vmem:[#allocation2 + $0x978] sm:$0xff] }
 0x1f0   :  { %3903 = vmatpush1.bf16.msra.mxu0 %v4240_v0  ;;  %v425_v0 = vld [vmem:[#allocation2 + $0xbf8] sm:$0xff]  ;;  %v376_v11 = vld [vmem:[#allocation2 + $0xa70] sm:$0xff] }
 0x1f1   :  { %3946 = vmatpush1.bf16.msra.mxu1 %v4242_v1  ;;  %3904 = vmatprep.subr.bf16.mxu0 %v4209_v3  ;;  %v4528_v1 = vcombine.low %v440_v52, %v456_v53  ;;  %v4530_v3 = vcombine.low %v441_v54, %v457_v55  ;;  %v4499_v7 = vcombine.high %v409_v63, %v425_v0  ;;  %v392_v13 = vld [vmem:[#allocation2 + $0xaf0] sm:$0xff]  ;;  %v313_v34 = vld [vmem:[#allocation2 + $0x878] sm:$0xff] }
 0x1f2   :  { %3947 = vmatprep.subr.bf16.mxu1 %v4211_v5  ;;  %v4497_v5 = vcombine.high %v408_v61, %v424_v62  ;;  %v344_v24 = vld [vmem:[#allocation2 + $0x970] sm:$0xff] }
 0x1f3   :  { %v360_v6 = vld [vmem:[#allocation2 + $0x9f0] sm:$0xff] }
 0x1f4   :  { %3905 = vmatpush1.bf16.msra.mxu0 %v4208_v15  ;;  %v393_v15 = vld [vmem:[#allocation2 + $0xaf8] sm:$0xff]  ;;  %v312_v31 = vld [vmem:[#allocation2 + $0x870] sm:$0xff] }
 0x1f5   :  { %3948 = vmatpush1.bf16.msra.mxu1 %v4210_v17  ;;  %3906 = vmatprep.subr.bf16.mxu0 %v4177_v20  ;;  %v4496_v17 = vcombine.low %v408_v61, %v424_v62  ;;  %v4498_v20 = vcombine.low %v409_v63, %v425_v0  ;;  %v4467_v23 = vcombine.high %v377_v14, %v393_v15  ;;  %v328_v32 = vld [vmem:[#allocation2 + $0x8f0] sm:$0xff] }
 0x1f6   :  { %3949 = vmatprep.subr.bf16.mxu1 %v4179_v21  ;;  %v4465_v21 = vcombine.high %v376_v11, %v392_v13  ;;  %v4400_v40 = vcombine.low %v312_v31, %v328_v32  ;;  %v556_v42 = vld [vmem:[#allocation4 + $0x10] sm:$0xff] }
 0x1f7   :  { %v641_v44 = vrot.slane %v556_v42, %v4756_v25 }
 0x1f8   :  { %3907 = vmatpush1.bf16.msra.mxu0 %v4176_v27  ;;  %v361_v27 = vld [vmem:[#allocation2 + $0x9f8] sm:$0xff] }
 0x1f9   :  { %3950 = vmatpush1.bf16.msra.mxu1 %v4178_v28  ;;  %3908 = vmatprep.subr.bf16.mxu0 %v4145_v29  ;;  %v4464_v28 = vcombine.low %v376_v11, %v392_v13  ;;  %v4466_v29 = vcombine.low %v377_v14, %v393_v15  ;;  %v4435_v30 = vcombine.high %v345_v26, %v361_v27 }
 0x1fa   :  { %3951 = vmatprep.subr.bf16.mxu1 %v4147_v58  ;;  %v4433_v58 = vcombine.high %v344_v24, %v360_v6  ;;  %v653_v11 = vrot.slane %v556_v42, %v4803_v4  ;;  %v649_v13 = vrot.slane %v556_v42, %v4806_v8  ;;  %v657_v15 = vrot.slane %v556_v42, %v4809_v12 }
 0x1fc   :  { %3909 = vmatpush1.bf16.msra.mxu0 %v4144_v35  ;;  %v329_v35 = vld [vmem:[#allocation2 + $0x8f8] sm:$0xff] }
 0x1fd   :  { %3952 = vmatpush1.bf16.msra.mxu1 %v4146_v10  ;;  %3910 = vmatprep.subr.bf16.mxu0 %v4625_v36  ;;  %v4432_v10 = vcombine.low %v344_v24, %v360_v6  ;;  %v4434_v36 = vcombine.low %v345_v26, %v361_v27  ;;  %v4403_v39 = vcombine.high %v313_v34, %v329_v35 }
 0x1fe   :  { %3953 = vmatprep.subr.bf16.mxu1 %v4627_v38  ;;  %v4401_v38 = vcombine.high %v312_v31, %v328_v32  ;;  %v4402_v41 = vcombine.low %v313_v34, %v329_v35 }
 0x200   :  { %3911 = vmatpush2.bf16.msra.mxu0 %v4624_v43  ;;  %v629_v43 = vrot.slane %v556_v42, %v4745_v16 }
 0x201   :  { %3954 = vmatpush2.bf16.msra.mxu1 %v4626_v18  ;;  %3912 = vmatprep.subr.bf16.mxu0 %v4593_v37  ;;  %v637_v18 = vrot.slane %v556_v42, %v4750_v19  ;;  %v633_v37 = vrot.slane %v556_v42, %v4753_v22 }
 0x202   :  { %3955 = vmatprep.subr.bf16.mxu1 %v4595_v56 }
 0x204   :  { %3913 = vmatpush2.bf16.msra.mxu0 %v4592_v48 }
 0x205   :  { %3956 = vmatpush2.bf16.msra.mxu1 %v4594_v49  ;;  %3914 = vmatprep.subr.bf16.mxu0 %v4561_v50 }
 0x206   :  { %3957 = vmatprep.subr.bf16.mxu1 %v4563_v51 }
 0x208   :  { %3915 = vmatpush2.bf16.msra.mxu0 %v4560_v57 }
 0x209   :  { %3958 = vmatpush2.bf16.msra.mxu1 %v4562_v33  ;;  %3916 = vmatprep.subr.bf16.mxu0 %v4529_v59 }
 0x20a   :  { %3959 = vmatprep.subr.bf16.mxu1 %v4531_v60 }
 0x20c   :  { %3917 = vmatpush2.bf16.msra.mxu0 %v4528_v1 }
 0x20d   :  { %3960 = vmatpush2.bf16.msra.mxu1 %v4530_v3  ;;  %3918 = vmatprep.subr.bf16.mxu0 %v4497_v5 }
 0x20e   :  { %3961 = vmatprep.subr.bf16.mxu1 %v4499_v7  ;;  %v645_v7 = vrot.slane %v556_v42, %v4800_v2 }
 0x210   :  { %3919 = vmatpush2.bf16.msra.mxu0 %v4496_v17 }
 0x211   :  { %3962 = vmatpush2.bf16.msra.mxu1 %v4498_v20  ;;  %3920 = vmatprep.subr.bf16.mxu0 %v4465_v21 }
 0x212   :  { %3963 = vmatprep.subr.bf16.mxu1 %v4467_v23 }
 0x214   :  { %3921 = vmatpush2.bf16.msra.mxu0 %v4464_v28 }
 0x215   :  { %3964 = vmatpush2.bf16.msra.mxu1 %v4466_v29  ;;  %3922 = vmatprep.subr.bf16.mxu0 %v4433_v58 }
 0x216   :  { %3965 = vmatprep.subr.bf16.mxu1 %v4435_v30 }
 0x218   :  { %3923 = vmatpush2.bf16.msra.mxu0 %v4432_v10 }
 0x219   :  { %3966 = vmatpush2.bf16.msra.mxu1 %v4434_v36  ;;  %3924 = vmatprep.subr.bf16.mxu0 %v4401_v38 }
 0x21a   :  { %3967 = vmatprep.subr.bf16.mxu1 %v4403_v39 }
 0x21c   :  { %3925 = vmatpush2.bf16.msra.mxu0 %v4400_v40 }
 0x21d   :  { %3968 = vmatpush2.bf16.msra.mxu1 %v4402_v41 }
 0x21f   :  { %v3670_v56 = vpop.f32.mrf.mxu0  ;;  %3927 = vmatmul.mubr.bf16.vlgmr.msra.gmra.mxu0 %v4899_v9 }
 0x220   :  { %v3671_v45 = vadd.f32 %v3670_v56, %v629_v43  ;;  %v3713_v46 = vpop.f32.mrf.mxu1  ;;  %3970 = vmatmul.mubr.bf16.vlgmr.msra.gmra.mxu1 %v4899_v9 }
 0x221   :  { %v3714_v47 = vadd.f32 %v3713_v46, %v637_v18  ;;  %v3672_v48 = vpop.f32.mrf.mxu0 }
 0x222   :  { %v3996_v49 = vmax.f32 %v3671_v45, 0.0  ;;  %v3673_v50 = vadd.f32 %v3672_v48, %v633_v37  ;;  %v3715_v51 = vpop.f32.mrf.mxu1 }
 0x223   :  { %v3998_v52 = vmax.f32 %v3714_v47, 0.0  ;;  %v3716_v53 = vadd.f32 %v3715_v51, %v641_v44  ;;  %v3674_v54 = vpop.f32.mrf.mxu0 }
 0x224   :  { %4060 = vst [vmem:[%s5048_s3 + $0x80] sm:$0xff] %v3996_v49  ;;  %v3997_v55 = vmax.f32 %v3673_v50, 0.0  ;;  %v3675_v57 = vadd.f32 %v3674_v54, %v629_v43  ;;  %v3717_v33 = vpop.f32.mrf.mxu1  ;;  %v557_v43 = vld [vmem:[#allocation4 + $0x18] sm:$0xff] }
 0x225   :  { %4062 = vst [vmem:[%s5048_s3 + $0x90] sm:$0xff] %v3998_v52  ;;  %v3999_v9 = vmax.f32 %v3716_v53, 0.0  ;;  %v3718_v59 = vadd.f32 %v3717_v33, %v637_v18  ;;  %v3676_v60 = vpop.f32.mrf.mxu0  ;;  %v661_v18 = vrot.slane %v557_v43, %v4745_v16  ;;  %v665_v56 = vrot.slane %v557_v43, %v4753_v22 }
 0x226   :  { %4061 = vst [vmem:[%s5048_s3 + $0x88] sm:$0xff] %v3997_v55  ;;  %v4028_v61 = vmax.f32 %v3675_v57, 0.0  ;;  %v3677_v62 = vadd.f32 %v3676_v60, %v633_v37  ;;  %v3719_v63 = vpop.f32.mrf.mxu1  ;;  %v669_v37 = vrot.slane %v557_v43, %v4750_v19  ;;  %v673_v45 = vrot.slane %v557_v43, %v4756_v25 }
 0x227   :  { %4063 = vst [vmem:[%s5048_s3 + $0x98] sm:$0xff] %v3999_v9  ;;  %v4030_v0 = vmax.f32 %v3718_v59, 0.0  ;;  %v3720_v1 = vadd.f32 %v3719_v63, %v641_v44 }
 0x228   :  { %4092 = vst [vmem:[%s5048_s3 + $0x180] sm:$0xff] %v4028_v61  ;;  %v4029_v3 = vmax.f32 %v3677_v62, 0.0 }
 0x229   :  { %4094 = vst [vmem:[%s5048_s3 + $0x190] sm:$0xff] %v4030_v0  ;;  %v4031_v5 = vmax.f32 %v3720_v1, 0.0  ;;  %v677_v1 = vrot.slane %v557_v43, %v4800_v2 }
 0x22a   :  { %4093 = vst [vmem:[%s5048_s3 + $0x188] sm:$0xff] %v4029_v3  ;;  %v685_v3 = vrot.slane %v557_v43, %v4803_v4 }
 0x22b   :  { %4095 = vst [vmem:[%s5048_s3 + $0x198] sm:$0xff] %v4031_v5  ;;  %v681_v5 = vrot.slane %v557_v43, %v4806_v8 }
 0x25f   :  { %v3756_v14 = vpop.f32.mrf.mxu0 }
 0x260   :  { %v3757_v17 = vadd.f32 %v3756_v14, %v645_v7  ;;  %v3799_v20 = vpop.f32.mrf.mxu1 }
 0x261   :  { %v3800_v21 = vadd.f32 %v3799_v20, %v653_v11  ;;  %v3758_v23 = vpop.f32.mrf.mxu0 }
 0x262   :  { %v4000_v24 = vmax.f32 %v3757_v17, 0.0  ;;  %v3759_v6 = vadd.f32 %v3758_v23, %v649_v13  ;;  %v3801_v26 = vpop.f32.mrf.mxu1 }
 0x263   :  { %v4002_v27 = vmax.f32 %v3800_v21, 0.0  ;;  %v3802_v28 = vadd.f32 %v3801_v26, %v657_v15  ;;  %v3760_v29 = vpop.f32.mrf.mxu0 }
 0x264   :  { %4064 = vst [vmem:[%s5048_s3 + $0xa0] sm:$0xff] %v4000_v24  ;;  %v4001_v58 = vmax.f32 %v3759_v6, 0.0  ;;  %v3761_v30 = vadd.f32 %v3760_v29, %v645_v7  ;;  %v3803_v31 = vpop.f32.mrf.mxu1 }
 0x265   :  { %4066 = vst [vmem:[%s5048_s3 + $0xb0] sm:$0xff] %v4002_v27  ;;  %v4003_v32 = vmax.f32 %v3802_v28, 0.0  ;;  %v3804_v34 = vadd.f32 %v3803_v31, %v653_v11  ;;  %v3762_v35 = vpop.f32.mrf.mxu0  ;;  %v689_v11 = vrot.slane %v557_v43, %v4809_v12 }
 0x266   :  { %4065 = vst [vmem:[%s5048_s3 + $0xa8] sm:$0xff] %v4001_v58  ;;  %v4032_v10 = vmax.f32 %v3761_v30, 0.0  ;;  %v3763_v36 = vadd.f32 %v3762_v35, %v649_v13  ;;  %v3805_v38 = vpop.f32.mrf.mxu1 }
 0x267   :  { %4067 = vst [vmem:[%s5048_s3 + $0xb8] sm:$0xff] %v4003_v32  ;;  %v4034_v39 = vmax.f32 %v3804_v34, 0.0  ;;  %v3806_v40 = vadd.f32 %v3805_v38, %v657_v15 }
 0x268   :  { %4096 = vst [vmem:[%s5048_s3 + $0x1a0] sm:$0xff] %v4032_v10  ;;  %v4033_v41 = vmax.f32 %v3763_v36, 0.0 }
 0x269   :  { %4098 = vst [vmem:[%s5048_s3 + $0x1b0] sm:$0xff] %v4034_v39  ;;  %v4035_v42 = vmax.f32 %v3806_v40, 0.0 }
 0x26a   :  { %4097 = vst [vmem:[%s5048_s3 + $0x1a8] sm:$0xff] %v4033_v41 }
 0x26b   :  { %4099 = vst [vmem:[%s5048_s3 + $0x1b8] sm:$0xff] %v4035_v42 }
 0x29f   :  { %v3842_v44 = vpop.f32.mrf.mxu0 }
 0x2a0   :  { %v3843_v46 = vadd.f32 %v3842_v44, %v661_v18  ;;  %v3885_v47 = vpop.f32.mrf.mxu1 }
 0x2a1   :  { %v3886_v48 = vadd.f32 %v3885_v47, %v669_v37  ;;  %v3844_v49 = vpop.f32.mrf.mxu0 }
 0x2a2   :  { %v4004_v50 = vmax.f32 %v3843_v46, 0.0  ;;  %v3845_v51 = vadd.f32 %v3844_v49, %v665_v56  ;;  %v3887_v52 = vpop.f32.mrf.mxu1 }
 0x2a3   :  { %v4006_v53 = vmax.f32 %v3886_v48, 0.0  ;;  %v3888_v54 = vadd.f32 %v3887_v52, %v673_v45  ;;  %v3846_v55 = vpop.f32.mrf.mxu0 }
 0x2a4   :  { %4068 = vst [vmem:[%s5048_s3 + $0xc0] sm:$0xff] %v4004_v50  ;;  %v4005_v16 = vmax.f32 %v3845_v51, 0.0  ;;  %v3847_v19 = vadd.f32 %v3846_v55, %v661_v18  ;;  %v3889_v22 = vpop.f32.mrf.mxu1 }
 0x2a5   :  { %4070 = vst [vmem:[%s5048_s3 + $0xd0] sm:$0xff] %v4006_v53  ;;  %v4007_v25 = vmax.f32 %v3888_v54, 0.0  ;;  %v3890_v57 = vadd.f32 %v3889_v22, %v669_v37  ;;  %v3848_v33 = vpop.f32.mrf.mxu0 }
 0x2a6   :  { %4069 = vst [vmem:[%s5048_s3 + $0xc8] sm:$0xff] %v4005_v16  ;;  %v4036_v9 = vmax.f32 %v3847_v19, 0.0  ;;  %v3849_v59 = vadd.f32 %v3848_v33, %v665_v56  ;;  %v3891_v60 = vpop.f32.mrf.mxu1 }
 0x2a7   :  { %4071 = vst [vmem:[%s5048_s3 + $0xd8] sm:$0xff] %v4007_v25  ;;  %v4038_v61 = vmax.f32 %v3890_v57, 0.0  ;;  %v3892_v62 = vadd.f32 %v3891_v60, %v673_v45 }
 0x2a8   :  { %4100 = vst [vmem:[%s5048_s3 + $0x1c0] sm:$0xff] %v4036_v9  ;;  %v4037_v63 = vmax.f32 %v3849_v59, 0.0 }
 0x2a9   :  { %4102 = vst [vmem:[%s5048_s3 + $0x1d0] sm:$0xff] %v4038_v61  ;;  %v4039_v0 = vmax.f32 %v3892_v62, 0.0 }
 0x2aa   :  { %4101 = vst [vmem:[%s5048_s3 + $0x1c8] sm:$0xff] %v4037_v63 }
 0x2ab   :  { %4103 = vst [vmem:[%s5048_s3 + $0x1d8] sm:$0xff] %v4039_v0 }
 0x2df   :  { %v3928_v7 = vpop.f32.mrf.mxu0 }
 0x2e0   :  { %v3929_v13 = vadd.f32 %v3928_v7, %v677_v1  ;;  %v3971_v14 = vpop.f32.mrf.mxu1 }
 0x2e1   :  { %v3972_v15 = vadd.f32 %v3971_v14, %v685_v3  ;;  %v3930_v17 = vpop.f32.mrf.mxu0 }
 0x2e2   :  { %v4008_v20 = vmax.f32 %v3929_v13, 0.0  ;;  %v3931_v21 = vadd.f32 %v3930_v17, %v681_v5  ;;  %v3973_v23 = vpop.f32.mrf.mxu1 }
 0x2e3   :  { %v4010_v24 = vmax.f32 %v3972_v15, 0.0  ;;  %v3974_v6 = vadd.f32 %v3973_v23, %v689_v11  ;;  %v3932_v26 = vpop.f32.mrf.mxu0 }
 0x2e4   :  { %4072 = vst [vmem:[%s5048_s3 + $0xe0] sm:$0xff] %v4008_v20  ;;  %v4009_v2 = vmax.f32 %v3931_v21, 0.0  ;;  %v3933_v4 = vadd.f32 %v3932_v26, %v677_v1  ;;  %v3975_v8 = vpop.f32.mrf.mxu1 }
 0x2e5   :  { %4074 = vst [vmem:[%s5048_s3 + $0xf0] sm:$0xff] %v4010_v24  ;;  %v4011_v12 = vmax.f32 %v3974_v6, 0.0  ;;  %v3976_v27 = vadd.f32 %v3975_v8, %v685_v3  ;;  %v3934_v28 = vpop.f32.mrf.mxu0 }
 0x2e6   :  { %4073 = vst [vmem:[%s5048_s3 + $0xe8] sm:$0xff] %v4009_v2  ;;  %v4040_v29 = vmax.f32 %v3933_v4, 0.0  ;;  %v3935_v58 = vadd.f32 %v3934_v28, %v681_v5  ;;  %v3977_v30 = vpop.f32.mrf.mxu1 }
 0x2e7   :  { %4075 = vst [vmem:[%s5048_s3 + $0xf8] sm:$0xff] %v4011_v12  ;;  %v4042_v31 = vmax.f32 %v3976_v27, 0.0  ;;  %v3978_v32 = vadd.f32 %v3977_v30, %v689_v11 }
 0x2e8   :  { %4104 = vst [vmem:[%s5048_s3 + $0x1e0] sm:$0xff] %v4040_v29  ;;  %v4041_v34 = vmax.f32 %v3935_v58, 0.0 }
 0x2e9   :  { %4106 = vst [vmem:[%s5048_s3 + $0x1f0] sm:$0xff] %v4042_v31  ;;  %v4043_v35 = vmax.f32 %v3978_v32, 0.0 }
 0x2ea   :  { %4105 = vst [vmem:[%s5048_s3 + $0x1e8] sm:$0xff] %v4041_v34 }
 0x2eb   :  { %4107 = vst [vmem:[%s5048_s3 + $0x1f8] sm:$0xff] %v4043_v35 }
 0x2ec   :  { %4112 = vsyncpa [#allocation3], 1 }
 0x2ed   :  { %4113 = vsyncpa [#allocation5], 1 }

// kernel: generator_forward.11
= control target key start
LH: loop header
LB: loop body
LE: loop exit
PB: predicated region body
PF: predicated region fallthrough
CT: control target
= control target key end

     0   :  { %s1579_s1 = inlined_call_operand.vmem [shape: bf16[512,256], index: 1, kind: input, shape index: {}]   ;;  %s1580_s0 = inlined_call_operand.vmem [shape: bf16[128,512], index: 0, kind: input, shape index: {}]   ;;  %s1581_s2 = inlined_call_operand.vmem [shape: f32[1,256], index: 2, kind: input, shape index: {}]   ;;  %s1582_s3 = inlined_call_operand.vmem [shape: f32[128,256], index: 3, kind: output, shape index: {}]  }
   0x1   :  { %v992_v0 = vld [vmem:[%s1579_s1 + $0x74] ss:$8 sps:$4 sm:$0xff]   ;;  %v996_v2 = vld [vmem:[%s1579_s1 + $0x70] ss:$8 sps:$4 sm:$0xff]   ;;  %v998_v4 = vld [vmem:[%s1579_s1 + $0x64] ss:$8 sps:$4 sm:$0xff]  }
   0x2   :  { %v994_v1 = vld [vmem:[%s1579_s1 + $0x174] ss:$8 sps:$4 sm:$0xff]   ;;  %602 = vmatprep.subr.bf16.mxu0 %v992_v0  ;;  %v997_v3 = vld [vmem:[%s1579_s1 + $0x170] ss:$8 sps:$4 sm:$0xff]   ;;  %v1000_v5 = vld [vmem:[%s1579_s1 + $0x164] ss:$8 sps:$4 sm:$0xff]  }
   0x3   :  { %715 = vmatprep.subr.bf16.mxu1 %v994_v1  ;;  %603 = vmatpush1.bf16.msra.mxu0 %v996_v2  ;;  %v1002_v6 = vld [vmem:[%s1579_s1 + $0x60] ss:$8 sps:$4 sm:$0xff]   ;;  %v1004_v8 = vld [vmem:[%s1579_s1 + $0x54] ss:$8 sps:$4 sm:$0xff]   ;;  %v1008_v10 = vld [vmem:[%s1579_s1 + $0x50] ss:$8 sps:$4 sm:$0xff]  }
   0x4   :  { %716 = vmatpush1.bf16.msra.mxu1 %v997_v3  ;;  %604 = vmatprep.subr.bf16.mxu0 %v998_v4  ;;  %v1003_v7 = vld [vmem:[%s1579_s1 + $0x160] ss:$8 sps:$4 sm:$0xff]   ;;  %v1006_v9 = vld [vmem:[%s1579_s1 + $0x154] ss:$8 sps:$4 sm:$0xff]   ;;  %v1009_v11 = vld [vmem:[%s1579_s1 + $0x150] ss:$8 sps:$4 sm:$0xff]  }
   0x5   :  { %717 = vmatprep.subr.bf16.mxu1 %v1000_v5  ;;  %v1010_v12 = vld [vmem:[%s1579_s1 + $0x44] ss:$8 sps:$4 sm:$0xff]   ;;  %v1014_v14 = vld [vmem:[%s1579_s1 + $0x40] ss:$8 sps:$4 sm:$0xff]   ;;  %v1016_v16 = vld [vmem:[%s1579_s1 + $0x34] ss:$8 sps:$4 sm:$0xff]  }
   0x6   :  { %v1012_v13 = vld [vmem:[%s1579_s1 + $0x144] ss:$8 sps:$4 sm:$0xff]   ;;  %v1015_v15 = vld [vmem:[%s1579_s1 + $0x140] ss:$8 sps:$4 sm:$0xff]   ;;  %v1018_v17 = vld [vmem:[%s1579_s1 + $0x134] ss:$8 sps:$4 sm:$0xff]  }
   0x7   :  { %605 = vmatpush1.bf16.msra.mxu0 %v1002_v6  ;;  %v1020_v18 = vld [vmem:[%s1579_s1 + $0x30] ss:$8 sps:$4 sm:$0xff]   ;;  %v1022_v20 = vld [vmem:[%s1579_s1 + $0x24] ss:$8 sps:$4 sm:$0xff]   ;;  %v1026_v22 = vld [vmem:[%s1579_s1 + $0x20] ss:$8 sps:$4 sm:$0xff]  }
   0x8   :  { %718 = vmatpush1.bf16.msra.mxu1 %v1003_v7  ;;  %606 = vmatprep.subr.bf16.mxu0 %v1004_v8  ;;  %v1021_v19 = vld [vmem:[%s1579_s1 + $0x130] ss:$8 sps:$4 sm:$0xff]   ;;  %v1024_v21 = vld [vmem:[%s1579_s1 + $0x124] ss:$8 sps:$4 sm:$0xff]   ;;  %v1027_v23 = vld [vmem:[%s1579_s1 + $0x120] ss:$8 sps:$4 sm:$0xff]  }
   0x9   :  { %719 = vmatprep.subr.bf16.mxu1 %v1006_v9  ;;  %v1028_v24 = vld [vmem:[%s1579_s1 + $0x14] ss:$8 sps:$4 sm:$0xff]   ;;  %v1032_v26 = vld [vmem:[%s1579_s1 + $0x10] ss:$8 sps:$4 sm:$0xff]   ;;  %v1034_v28 = vld [vmem:[%s1579_s1 + $0x4] ss:$8 sps:$4 sm:$0xff]  }
   0xa   :  { %v1030_v25 = vld [vmem:[%s1579_s1 + $0x114] ss:$8 sps:$4 sm:$0xff]   ;;  %v1033_v27 = vld [vmem:[%s1579_s1 + $0x110] ss:$8 sps:$4 sm:$0xff]   ;;  %v1036_v29 = vld [vmem:[%s1579_s1 + $0x104] ss:$8 sps:$4 sm:$0xff]  }
   0xb   :  { %607 = vmatpush1.bf16.msra.mxu0 %v1008_v10  ;;  %v1038_v30 = vld [vmem:[%s1579_s1] ss:$8 sps:$4 sm:$0xff]   ;;  %v1040_v32 = vld [vmem:[%s1579_s1 + $0xf4] ss:$8 sps:$4 sm:$0xff]   ;;  %v1044_v34 = vld [vmem:[%s1579_s1 + $0xf0] ss:$8 sps:$4 sm:$0xff]  }
   0xc   :  { %720 = vmatpush1.bf16.msra.mxu1 %v1009_v11  ;;  %608 = vmatprep.subr.bf16.mxu0 %v1010_v12  ;;  %v1039_v31 = vld [vmem:[%s1579_s1 + $0x100] ss:$8 sps:$4 sm:$0xff]   ;;  %v1042_v33 = vld [vmem:[%s1579_s1 + $0x1f4] ss:$8 sps:$4 sm:$0xff]   ;;  %v1045_v35 = vld [vmem:[%s1579_s1 + $0x1f0] ss:$8 sps:$4 sm:$0xff]  }
   0xd   :  { %721 = vmatprep.subr.bf16.mxu1 %v1012_v13  ;;  %v1046_v36 = vld [vmem:[%s1579_s1 + $0xe4] ss:$8 sps:$4 sm:$0xff]   ;;  %v1050_v38 = vld [vmem:[%s1579_s1 + $0xe0] ss:$8 sps:$4 sm:$0xff]   ;;  %v1052_v40 = vld [vmem:[%s1579_s1 + $0xd4] ss:$8 sps:$4 sm:$0xff]  }
   0xe   :  { %v1048_v37 = vld [vmem:[%s1579_s1 + $0x1e4] ss:$8 sps:$4 sm:$0xff]   ;;  %v1051_v39 = vld [vmem:[%s1579_s1 + $0x1e0] ss:$8 sps:$4 sm:$0xff]   ;;  %v1054_v41 = vld [vmem:[%s1579_s1 + $0x1d4] ss:$8 sps:$4 sm:$0xff]  }
   0xf   :  { %609 = vmatpush1.bf16.msra.mxu0 %v1014_v14  ;;  %v1056_v42 = vld [vmem:[%s1579_s1 + $0xd0] ss:$8 sps:$4 sm:$0xff]   ;;  %v1058_v44 = vld [vmem:[%s1579_s1 + $0xc4] ss:$8 sps:$4 sm:$0xff]   ;;  %v1062_v46 = vld [vmem:[%s1579_s1 + $0xc0] ss:$8 sps:$4 sm:$0xff]  }
  0x10   :  { %722 = vmatpush1.bf16.msra.mxu1 %v1015_v15  ;;  %610 = vmatprep.subr.bf16.mxu0 %v1016_v16  ;;  %v1057_v43 = vld [vmem:[%s1579_s1 + $0x1d0] ss:$8 sps:$4 sm:$0xff]   ;;  %v1060_v45 = vld [vmem:[%s1579_s1 + $0x1c4] ss:$8 sps:$4 sm:$0xff]   ;;  %v1063_v47 = vld [vmem:[%s1579_s1 + $0x1c0] ss:$8 sps:$4 sm:$0xff]  }
  0x11   :  { %723 = vmatprep.subr.bf16.mxu1 %v1018_v17  ;;  %v1064_v48 = vld [vmem:[%s1579_s1 + $0xb4] ss:$8 sps:$4 sm:$0xff]   ;;  %v1068_v52 = vld [vmem:[%s1579_s1 + $0xb0] ss:$8 sps:$4 sm:$0xff]   ;;  %v1070_v54 = vld [vmem:[%s1579_s1 + $0xa4] ss:$8 sps:$4 sm:$0xff]  }
  0x12   :  { %v1090_v49 = vld [vmem:[%s1580_s0 + $0x4] ss:$16 sps:$4 sm:$0xff]   ;;  %v1093_v51 = vld [vmem:[%s1580_s0 + $0xc] ss:$16 sps:$4 sm:$0xff]   ;;  %v1069_v53 = vld [vmem:[%s1579_s1 + $0x1b0] ss:$8 sps:$4 sm:$0xff]  }
  0x13   :  { %611 = vmatpush1.bf16.msra.mxu0 %v1020_v18  ;;  %v1066_v50 = vld [vmem:[%s1579_s1 + $0x1b4] ss:$8 sps:$4 sm:$0xff]   ;;  %634 = vmatprep.mubr.bf16.mxu0 %v1090_v49  ;;  %v1072_v55 = vld [vmem:[%s1579_s1 + $0x1a4] ss:$8 sps:$4 sm:$0xff]   ;;  %v1074_v56 = vld [vmem:[%s1579_s1 + $0xa0] ss:$8 sps:$4 sm:$0xff]  }
  0x14   :  { %724 = vmatpush1.bf16.msra.mxu1 %v1021_v19  ;;  %612 = vmatprep.subr.bf16.mxu0 %v1022_v20  ;;  %v1075_v57 = vld [vmem:[%s1579_s1 + $0x1a0] ss:$8 sps:$4 sm:$0xff]   ;;  %v1076_v58 = vld [vmem:[%s1579_s1 + $0x94] ss:$8 sps:$4 sm:$0xff]   ;;  %v1080_v60 = vld [vmem:[%s1579_s1 + $0x90] ss:$8 sps:$4 sm:$0xff]  }
  0x15   :  { %725 = vmatprep.subr.bf16.mxu1 %v1024_v21  ;;  %747 = vmatprep.mubr.bf16.mxu1 %v1093_v51  ;;  %v1078_v59 = vld [vmem:[%s1579_s1 + $0x194] ss:$8 sps:$4 sm:$0xff]   ;;  %v1081_v61 = vld [vmem:[%s1579_s1 + $0x190] ss:$8 sps:$4 sm:$0xff]   ;;  %v1082_v62 = vld [vmem:[%s1579_s1 + $0x84] ss:$8 sps:$4 sm:$0xff]  }
  0x16   :  { %v1084_v63 = vld [vmem:[%s1579_s1 + $0x184] ss:$8 sps:$4 sm:$0xff]   ;;  %v1086_v0 = vld [vmem:[%s1579_s1 + $0x80] ss:$8 sps:$4 sm:$0xff]  }
  0x17   :  { %613 = vmatpush1.bf16.msra.mxu0 %v1026_v22  ;;  %v1087_v1 = vld [vmem:[%s1579_s1 + $0x180] ss:$8 sps:$4 sm:$0xff]   ;;  %v1094_v4 = vld [vmem:[%s1580_s0 + $0x24] ss:$16 sps:$4 sm:$0xff]   ;;  %v1096_v5 = vld [vmem:[%s1580_s0 + $0x2c] ss:$16 sps:$4 sm:$0xff]  }
  0x18   :  { %726 = vmatpush1.bf16.msra.mxu1 %v1027_v23  ;;  %614 = vmatprep.subr.bf16.mxu0 %v1028_v24  ;;  %v1088_v2 = vld [vmem:[%s1580_s0] ss:$16 sps:$4 sm:$0xff]   ;;  %v1091_v3 = vld [vmem:[%s1580_s0 + $0x8] ss:$16 sps:$4 sm:$0xff]   ;;  %v1100_v8 = vld [vmem:[%s1580_s0 + $0x44] ss:$16 sps:$4 sm:$0xff]  }
  0x19   :  { %727 = vmatprep.subr.bf16.mxu1 %v1030_v25  ;;  %v1098_v6 = vld [vmem:[%s1580_s0 + $0x20] ss:$16 sps:$4 sm:$0xff]   ;;  %v1099_v7 = vld [vmem:[%s1580_s0 + $0x28] ss:$16 sps:$4 sm:$0xff]   ;;  %v1102_v9 = vld [vmem:[%s1580_s0 + $0x4c] ss:$16 sps:$4 sm:$0xff]  }
  0x1a   :  { %v1104_v10 = vld [vmem:[%s1580_s0 + $0x40] ss:$16 sps:$4 sm:$0xff]   ;;  %v1105_v11 = vld [vmem:[%s1580_s0 + $0x48] ss:$16 sps:$4 sm:$0xff]   ;;  %v1106_v12 = vld [vmem:[%s1580_s0 + $0x64] ss:$16 sps:$4 sm:$0xff]  }
  0x1b   :  { %615 = vmatpush1.bf16.msra.mxu0 %v1032_v26  ;;  %v1108_v13 = vld [vmem:[%s1580_s0 + $0x6c] ss:$16 sps:$4 sm:$0xff]   ;;  %v1110_v14 = vld [vmem:[%s1580_s0 + $0x60] ss:$16 sps:$4 sm:$0xff]   ;;  %v1111_v15 = vld [vmem:[%s1580_s0 + $0x68] ss:$16 sps:$4 sm:$0xff]  }
  0x1c   :  { %728 = vmatpush1.bf16.msra.mxu1 %v1033_v27  ;;  %616 = vmatprep.subr.bf16.mxu0 %v1034_v28  ;;  %v1112_v16 = vld [vmem:[%s1580_s0 + $0x84] ss:$16 sps:$4 sm:$0xff]   ;;  %v1114_v17 = vld [vmem:[%s1580_s0 + $0x8c] ss:$16 sps:$4 sm:$0xff]   ;;  %v1116_v18 = vld [vmem:[%s1580_s0 + $0x80] ss:$16 sps:$4 sm:$0xff]  }
  0x1d   :  { %729 = vmatprep.subr.bf16.mxu1 %v1036_v29  ;;  %v1117_v19 = vld [vmem:[%s1580_s0 + $0x88] ss:$16 sps:$4 sm:$0xff]   ;;  %v1118_v20 = vld [vmem:[%s1580_s0 + $0xa4] ss:$16 sps:$4 sm:$0xff]   ;;  %v1120_v21 = vld [vmem:[%s1580_s0 + $0xac] ss:$16 sps:$4 sm:$0xff]  }
  0x1e   :  { %v1122_v22 = vld [vmem:[%s1580_s0 + $0xa0] ss:$16 sps:$4 sm:$0xff]   ;;  %v1123_v23 = vld [vmem:[%s1580_s0 + $0xa8] ss:$16 sps:$4 sm:$0xff]   ;;  %v1124_v24 = vld [vmem:[%s1580_s0 + $0xc4] ss:$16 sps:$4 sm:$0xff]  }
  0x1f   :  { %617 = vmatpush1.bf16.msra.mxu0 %v1038_v30  ;;  %v1126_v25 = vld [vmem:[%s1580_s0 + $0xcc] ss:$16 sps:$4 sm:$0xff]   ;;  %v1128_v26 = vld [vmem:[%s1580_s0 + $0xc0] ss:$16 sps:$4 sm:$0xff]   ;;  %v1129_v27 = vld [vmem:[%s1580_s0 + $0xc8] ss:$16 sps:$4 sm:$0xff]  }
  0x20   :  { %730 = vmatpush1.bf16.msra.mxu1 %v1039_v31  ;;  %618 = vmatprep.subr.bf16.mxu0 %v1040_v32  ;;  %v1130_v28 = vld [vmem:[%s1580_s0 + $0xe4] ss:$16 sps:$4 sm:$0xff]   ;;  %v1132_v29 = vld [vmem:[%s1580_s0 + $0xec] ss:$16 sps:$4 sm:$0xff]   ;;  %v1134_v30 = vld [vmem:[%s1580_s0 + $0xe0] ss:$16 sps:$4 sm:$0xff]   ;;  %v112_v32 = vlaneseq }
  0x21   :  { %731 = vmatprep.subr.bf16.mxu1 %v1042_v33  ;;  %v1135_v31 = vld [vmem:[%s1580_s0 + $0xe8] ss:$16 sps:$4 sm:$0xff]  }
  0x22   :  { %v113_v33 = vshrl.u32 %v112_v32, 7 }
  0x23   :  { %619 = vmatpush2.bf16.msra.mxu0 %v1044_v34 }
  0x24   :  { %732 = vmatpush2.bf16.msra.mxu1 %v1045_v35  ;;  %620 = vmatprep.subr.bf16.mxu0 %v1046_v36  ;;  %v114_v34 = vsub.s32 0, %v113_v33  ;;  %v110_v35 = vld [vmem:[%s1581_s2] sm:$0x3]  ;;  %v118_v36 = vsub.s32 1, %v113_v33 }
  0x25   :  { %733 = vmatprep.subr.bf16.mxu1 %v1048_v37 }
  0x26   :  { %v1447_v37 = vrot.slane %v110_v35, %v114_v34 }
  0x27   :  { %621 = vmatpush2.bf16.msra.mxu0 %v1050_v38  ;;  %v1449_v38 = vrot.slane %v110_v35, %v118_v36 }
  0x28   :  { %734 = vmatpush2.bf16.msra.mxu1 %v1051_v39  ;;  %622 = vmatprep.subr.bf16.mxu0 %v1052_v40 }
  0x29   :  { %735 = vmatprep.subr.bf16.mxu1 %v1054_v41 }
  0x2b   :  { %623 = vmatpush2.bf16.msra.mxu0 %v1056_v42 }
  0x2c   :  { %736 = vmatpush2.bf16.msra.mxu1 %v1057_v43  ;;  %624 = vmatprep.subr.bf16.mxu0 %v1058_v44 }
  0x2d   :  { %737 = vmatprep.subr.bf16.mxu1 %v1060_v45 }
  0x2f   :  { %625 = vmatpush2.bf16.msra.mxu0 %v1062_v46 }
  0x30   :  { %738 = vmatpush2.bf16.msra.mxu1 %v1063_v47  ;;  %626 = vmatprep.subr.bf16.mxu0 %v1064_v48 }
  0x31   :  { %739 = vmatprep.subr.bf16.mxu1 %v1066_v50 }
  0x33   :  { %627 = vmatpush2.bf16.msra.mxu0 %v1068_v52 }
  0x34   :  { %740 = vmatpush2.bf16.msra.mxu1 %v1069_v53  ;;  %628 = vmatprep.subr.bf16.mxu0 %v1070_v54 }
  0x35   :  { %741 = vmatprep.subr.bf16.mxu1 %v1072_v55 }
  0x37   :  { %629 = vmatpush2.bf16.msra.mxu0 %v1074_v56 }
  0x38   :  { %742 = vmatpush2.bf16.msra.mxu1 %v1075_v57  ;;  %630 = vmatprep.subr.bf16.mxu0 %v1076_v58 }
  0x39   :  { %743 = vmatprep.subr.bf16.mxu1 %v1078_v59 }
  0x3b   :  { %631 = vmatpush2.bf16.msra.mxu0 %v1080_v60 }
  0x3c   :  { %744 = vmatpush2.bf16.msra.mxu1 %v1081_v61  ;;  %632 = vmatprep.subr.bf16.mxu0 %v1082_v62 }
  0x3d   :  { %745 = vmatprep.subr.bf16.mxu1 %v1084_v63 }
  0x3f   :  { %633 = vmatpush2.bf16.msra.mxu0 %v1086_v0 }
  0x40   :  { %746 = vmatpush2.bf16.msra.mxu1 %v1087_v1 }
  0x42   :  { %635 = vmatmul.mubr.bf16.vlgmr.msra.gmra.mxu0 %v1088_v2 }
  0x43   :  { %748 = vmatmul.mubr.bf16.vlgmr.msra.gmra.mxu1 %v1091_v3  ;;  %644 = vmatprep.mubr.bf16.mxu0 %v1094_v4 }
  0x44   :  { %757 = vmatprep.mubr.bf16.mxu1 %v1096_v5 }
  0x4a   :  { %645 = vmatmul.mubr.bf16.gmra.mxu0 %v1098_v6 }
  0x4b   :  { %758 = vmatmul.mubr.bf16.gmra.mxu1 %v1099_v7  ;;  %654 = vmatprep.mubr.bf16.mxu0 %v1100_v8 }
  0x4c   :  { %767 = vmatprep.mubr.bf16.mxu1 %v1102_v9 }
  0x52   :  { %655 = vmatmul.mubr.bf16.gmra.mxu0 %v1104_v10 }
  0x53   :  { %768 = vmatmul.mubr.bf16.gmra.mxu1 %v1105_v11  ;;  %664 = vmatprep.mubr.bf16.mxu0 %v1106_v12 }
  0x54   :  { %777 = vmatprep.mubr.bf16.mxu1 %v1108_v13 }
  0x5a   :  { %665 = vmatmul.mubr.bf16.gmra.mxu0 %v1110_v14 }
  0x5b   :  { %778 = vmatmul.mubr.bf16.gmra.mxu1 %v1111_v15  ;;  %674 = vmatprep.mubr.bf16.mxu0 %v1112_v16 }
  0x5c   :  { %787 = vmatprep.mubr.bf16.mxu1 %v1114_v17 }
  0x62   :  { %675 = vmatmul.mubr.bf16.gmra.mxu0 %v1116_v18 }
  0x63   :  { %788 = vmatmul.mubr.bf16.gmra.mxu1 %v1117_v19  ;;  %684 = vmatprep.mubr.bf16.mxu0 %v1118_v20 }
  0x64   :  { %797 = vmatprep.mubr.bf16.mxu1 %v1120_v21 }
  0x6a   :  { %685 = vmatmul.mubr.bf16.gmra.mxu0 %v1122_v22 }
  0x6b   :  { %798 = vmatmul.mubr.bf16.gmra.mxu1 %v1123_v23  ;;  %694 = vmatprep.mubr.bf16.mxu0 %v1124_v24 }
  0x6c   :  { %807 = vmatprep.mubr.bf16.mxu1 %v1126_v25 }
  0x72   :  { %695 = vmatmul.mubr.bf16.gmra.mxu0 %v1128_v26 }
  0x73   :  { %808 = vmatmul.mubr.bf16.gmra.mxu1 %v1129_v27  ;;  %704 = vmatprep.mubr.bf16.mxu0 %v1130_v28 }
  0x74   :  { %817 = vmatprep.mubr.bf16.mxu1 %v1132_v29 }
  0x7a   :  { %705 = vmatmul.mubr.bf16.gmra.mxu0 %v1134_v30 }
  0x7b   :  { %818 = vmatmul.mubr.bf16.gmra.mxu1 %v1135_v31 }
 0x102   :  { %v636_v39 = vpop.f32.mrf.mxu0 }
 0x103   :  { %v749_v40 = vpop.f32.mrf.mxu1  ;;  %v637_v41 = vadd.f32 %v636_v39, %v1447_v37 }
 0x104   :  { %v638_v42 = vpop.f32.mrf.mxu0 }
 0x105   :  { %v751_v43 = vpop.f32.mrf.mxu1  ;;  %v750_v44 = vadd.f32 %v749_v40, %v637_v41  ;;  %v639_v45 = vadd.f32 %v638_v42, %v1449_v38 }
 0x106   :  { %v640_v46 = vpop.f32.mrf.mxu0 }
 0x107   :  { %v753_v47 = vpop.f32.mrf.mxu1  ;;  %v828_v48 = vmax.f32 %v750_v44, 0.0  ;;  %v752_v49 = vadd.f32 %v751_v43, %v639_v45  ;;  %v641_v50 = vadd.f32 %v640_v46, %v1447_v37 }
 0x108   :  { %v642_v51 = vpop.f32.mrf.mxu0 }
 0x109   :  { %v755_v52 = vpop.f32.mrf.mxu1  ;;  %860 = vst [vmem:[%s1582_s3] sm:$0xff] %v828_v48  ;;  %v829_v53 = vmax.f32 %v752_v49, 0.0  ;;  %v754_v54 = vadd.f32 %v753_v47, %v641_v50  ;;  %v643_v55 = vadd.f32 %v642_v51, %v1449_v38 }
 0x10a   :  { %v646_v56 = vpop.f32.mrf.mxu0 }
 0x10b   :  { %v759_v57 = vpop.f32.mrf.mxu1  ;;  %861 = vst [vmem:[%s1582_s3 + $0x8] sm:$0xff] %v829_v53  ;;  %v830_v58 = vmax.f32 %v754_v54, 0.0  ;;  %v756_v59 = vadd.f32 %v755_v52, %v643_v55  ;;  %v647_v60 = vadd.f32 %v646_v56, %v1447_v37 }
 0x10c   :  { %v648_v61 = vpop.f32.mrf.mxu0 }
 0x10d   :  { %v761_v62 = vpop.f32.mrf.mxu1  ;;  %862 = vst [vmem:[%s1582_s3 + $0x10] sm:$0xff] %v830_v58  ;;  %v831_v63 = vmax.f32 %v756_v59, 0.0  ;;  %v760_v0 = vadd.f32 %v759_v57, %v647_v60  ;;  %v649_v1 = vadd.f32 %v648_v61, %v1449_v38 }
 0x10e   :  { %v650_v2 = vpop.f32.mrf.mxu0 }
 0x10f   :  { %v763_v3 = vpop.f32.mrf.mxu1  ;;  %863 = vst [vmem:[%s1582_s3 + $0x18] sm:$0xff] %v831_v63  ;;  %v832_v4 = vmax.f32 %v760_v0, 0.0  ;;  %v762_v5 = vadd.f32 %v761_v62, %v649_v1  ;;  %v651_v6 = vadd.f32 %v650_v2, %v1447_v37 }
 0x110   :  { %v652_v7 = vpop.f32.mrf.mxu0 }
 0x111   :  { %v765_v8 = vpop.f32.mrf.mxu1  ;;  %864 = vst [vmem:[%s1582_s3 + $0x20] sm:$0xff] %v832_v4  ;;  %v833_v9 = vmax.f32 %v762_v5, 0.0  ;;  %v764_v10 = vadd.f32 %v763_v3, %v651_v6  ;;  %v653_v11 = vadd.f32 %v652_v7, %v1449_v38 }
 0x112   :  { %v656_v12 = vpop.f32.mrf.mxu0 }
 0x113   :  { %v769_v13 = vpop.f32.mrf.mxu1  ;;  %865 = vst [vmem:[%s1582_s3 + $0x28] sm:$0xff] %v833_v9  ;;  %v834_v14 = vmax.f32 %v764_v10, 0.0  ;;  %v766_v15 = vadd.f32 %v765_v8, %v653_v11  ;;  %v657_v16 = vadd.f32 %v656_v12, %v1447_v37 }
 0x114   :  { %v658_v17 = vpop.f32.mrf.mxu0 }
 0x115   :  { %v771_v18 = vpop.f32.mrf.mxu1  ;;  %866 = vst [vmem:[%s1582_s3 + $0x30] sm:$0xff] %v834_v14  ;;  %v835_v19 = vmax.f32 %v766_v15, 0.0  ;;  %v770_v20 = vadd.f32 %v769_v13, %v657_v16  ;;  %v659_v21 = vadd.f32 %v658_v17, %v1449_v38 }
 0x116   :  { %v660_v22 = vpop.f32.mrf.mxu0 }
 0x117   :  { %v773_v23 = vpop.f32.mrf.mxu1  ;;  %867 = vst [vmem:[%s1582_s3 + $0x38] sm:$0xff] %v835_v19  ;;  %v836_v24 = vmax.f32 %v770_v20, 0.0  ;;  %v772_v25 = vadd.f32 %v771_v18, %v659_v21  ;;  %v661_v26 = vadd.f32 %v660_v22, %v1447_v37 }
 0x118   :  { %v662_v27 = vpop.f32.mrf.mxu0 }
 0x119   :  { %v775_v28 = vpop.f32.mrf.mxu1  ;;  %868 = vst [vmem:[%s1582_s3 + $0x40] sm:$0xff] %v836_v24  ;;  %v837_v29 = vmax.f32 %v772_v25, 0.0  ;;  %v774_v30 = vadd.f32 %v773_v23, %v661_v26  ;;  %v663_v31 = vadd.f32 %v662_v27, %v1449_v38 }
 0x11a   :  { %v666_v32 = vpop.f32.mrf.mxu0 }
 0x11b   :  { %v779_v33 = vpop.f32.mrf.mxu1  ;;  %869 = vst [vmem:[%s1582_s3 + $0x48] sm:$0xff] %v837_v29  ;;  %v838_v34 = vmax.f32 %v774_v30, 0.0  ;;  %v776_v35 = vadd.f32 %v775_v28, %v663_v31  ;;  %v667_v36 = vadd.f32 %v666_v32, %v1447_v37 }
 0x11c   :  { %v668_v39 = vpop.f32.mrf.mxu0 }
 0x11d   :  { %v781_v40 = vpop.f32.mrf.mxu1  ;;  %870 = vst [vmem:[%s1582_s3 + $0x50] sm:$0xff] %v838_v34  ;;  %v839_v41 = vmax.f32 %v776_v35, 0.0  ;;  %v780_v42 = vadd.f32 %v779_v33, %v667_v36  ;;  %v669_v43 = vadd.f32 %v668_v39, %v1449_v38 }
 0x11e   :  { %v670_v44 = vpop.f32.mrf.mxu0 }
 0x11f   :  { %v783_v45 = vpop.f32.mrf.mxu1  ;;  %871 = vst [vmem:[%s1582_s3 + $0x58] sm:$0xff] %v839_v41  ;;  %v840_v46 = vmax.f32 %v780_v42, 0.0  ;;  %v782_v47 = vadd.f32 %v781_v40, %v669_v43  ;;  %v671_v48 = vadd.f32 %v670_v44, %v1447_v37 }
 0x120   :  { %v672_v49 = vpop.f32.mrf.mxu0 }
 0x121   :  { %v785_v50 = vpop.f32.mrf.mxu1  ;;  %872 = vst [vmem:[%s1582_s3 + $0x60] sm:$0xff] %v840_v46  ;;  %v841_v51 = vmax.f32 %v782_v47, 0.0  ;;  %v784_v52 = vadd.f32 %v783_v45, %v671_v48  ;;  %v673_v53 = vadd.f32 %v672_v49, %v1449_v38 }
 0x122   :  { %v676_v54 = vpop.f32.mrf.mxu0 }
 0x123   :  { %v789_v55 = vpop.f32.mrf.mxu1  ;;  %873 = vst [vmem:[%s1582_s3 + $0x68] sm:$0xff] %v841_v51  ;;  %v842_v56 = vmax.f32 %v784_v52, 0.0  ;;  %v786_v57 = vadd.f32 %v785_v50, %v673_v53  ;;  %v677_v58 = vadd.f32 %v676_v54, %v1447_v37 }
 0x124   :  { %v678_v59 = vpop.f32.mrf.mxu0 }
 0x125   :  { %v791_v60 = vpop.f32.mrf.mxu1  ;;  %874 = vst [vmem:[%s1582_s3 + $0x70] sm:$0xff] %v842_v56  ;;  %v843_v61 = vmax.f32 %v786_v57, 0.0  ;;  %v790_v62 = vadd.f32 %v789_v55, %v677_v58  ;;  %v679_v63 = vadd.f32 %v678_v59, %v1449_v38 }
 0x126   :  { %v680_v0 = vpop.f32.mrf.mxu0 }
 0x127   :  { %v793_v1 = vpop.f32.mrf.mxu1  ;;  %875 = vst [vmem:[%s1582_s3 + $0x78] sm:$0xff] %v843_v61  ;;  %v844_v2 = vmax.f32 %v790_v62, 0.0  ;;  %v792_v3 = vadd.f32 %v791_v60, %v679_v63  ;;  %v681_v4 = vadd.f32 %v680_v0, %v1447_v37 }
 0x128   :  { %v682_v5 = vpop.f32.mrf.mxu0 }
 0x129   :  { %v795_v6 = vpop.f32.mrf.mxu1  ;;  %876 = vst [vmem:[%s1582_s3 + $0x80] sm:$0xff] %v844_v2  ;;  %v845_v7 = vmax.f32 %v792_v3, 0.0  ;;  %v794_v8 = vadd.f32 %v793_v1, %v681_v4  ;;  %v683_v9 = vadd.f32 %v682_v5, %v1449_v38 }
 0x12a   :  { %v686_v10 = vpop.f32.mrf.mxu0 }
 0x12b   :  { %v799_v11 = vpop.f32.mrf.mxu1  ;;  %877 = vst [vmem:[%s1582_s3 + $0x88] sm:$0xff] %v845_v7  ;;  %v846_v12 = vmax.f32 %v794_v8, 0.0  ;;  %v796_v13 = vadd.f32 %v795_v6, %v683_v9  ;;  %v687_v14 = vadd.f32 %v686_v10, %v1447_v37 }
 0x12c   :  { %v688_v15 = vpop.f32.mrf.mxu0 }
 0x12d   :  { %v801_v16 = vpop.f32.mrf.mxu1  ;;  %878 = vst [vmem:[%s1582_s3 + $0x90] sm:$0xff] %v846_v12  ;;  %v847_v17 = vmax.f32 %v796_v13, 0.0  ;;  %v800_v18 = vadd.f32 %v799_v11, %v687_v14  ;;  %v689_v19 = vadd.f32 %v688_v15, %v1449_v38 }
 0x12e   :  { %v690_v20 = vpop.f32.mrf.mxu0 }
 0x12f   :  { %v803_v21 = vpop.f32.mrf.mxu1  ;;  %879 = vst [vmem:[%s1582_s3 + $0x98] sm:$0xff] %v847_v17  ;;  %v848_v22 = vmax.f32 %v800_v18, 0.0  ;;  %v802_v23 = vadd.f32 %v801_v16, %v689_v19  ;;  %v691_v24 = vadd.f32 %v690_v20, %v1447_v37 }
 0x130   :  { %v692_v25 = vpop.f32.mrf.mxu0 }
 0x131   :  { %v805_v26 = vpop.f32.mrf.mxu1  ;;  %880 = vst [vmem:[%s1582_s3 + $0xa0] sm:$0xff] %v848_v22  ;;  %v849_v27 = vmax.f32 %v802_v23, 0.0  ;;  %v804_v28 = vadd.f32 %v803_v21, %v691_v24  ;;  %v693_v29 = vadd.f32 %v692_v25, %v1449_v38 }
 0x132   :  { %v696_v30 = vpop.f32.mrf.mxu0 }
 0x133   :  { %v809_v31 = vpop.f32.mrf.mxu1  ;;  %881 = vst [vmem:[%s1582_s3 + $0xa8] sm:$0xff] %v849_v27  ;;  %v850_v32 = vmax.f32 %v804_v28, 0.0  ;;  %v806_v33 = vadd.f32 %v805_v26, %v693_v29  ;;  %v697_v34 = vadd.f32 %v696_v30, %v1447_v37 }
 0x134   :  { %v698_v35 = vpop.f32.mrf.mxu0 }
 0x135   :  { %v811_v36 = vpop.f32.mrf.mxu1  ;;  %882 = vst [vmem:[%s1582_s3 + $0xb0] sm:$0xff] %v850_v32  ;;  %v851_v39 = vmax.f32 %v806_v33, 0.0  ;;  %v810_v40 = vadd.f32 %v809_v31, %v697_v34  ;;  %v699_v41 = vadd.f32 %v698_v35, %v1449_v38 }
 0x136   :  { %v700_v42 = vpop.f32.mrf.mxu0 }
 0x137   :  { %v813_v43 = vpop.f32.mrf.mxu1  ;;  %883 = vst [vmem:[%s1582_s3 + $0xb8] sm:$0xff] %v851_v39  ;;  %v852_v44 = vmax.f32 %v810_v40, 0.0  ;;  %v812_v45 = vadd.f32 %v811_v36, %v699_v41  ;;  %v701_v46 = vadd.f32 %v700_v42, %v1447_v37 }
 0x138   :  { %v702_v47 = vpop.f32.mrf.mxu0 }
 0x139   :  { %v815_v48 = vpop.f32.mrf.mxu1  ;;  %884 = vst [vmem:[%s1582_s3 + $0xc0] sm:$0xff] %v852_v44  ;;  %v853_v49 = vmax.f32 %v812_v45, 0.0  ;;  %v814_v50 = vadd.f32 %v813_v43, %v701_v46  ;;  %v703_v51 = vadd.f32 %v702_v47, %v1449_v38 }
 0x13a   :  { %v706_v52 = vpop.f32.mrf.mxu0 }
 0x13b   :  { %v819_v53 = vpop.f32.mrf.mxu1  ;;  %885 = vst [vmem:[%s1582_s3 + $0xc8] sm:$0xff] %v853_v49  ;;  %v854_v54 = vmax.f32 %v814_v50, 0.0  ;;  %v816_v55 = vadd.f32 %v815_v48, %v703_v51  ;;  %v707_v56 = vadd.f32 %v706_v52, %v1447_v37 }
 0x13c   :  { %v708_v57 = vpop.f32.mrf.mxu0 }
 0x13d   :  { %v821_v58 = vpop.f32.mrf.mxu1  ;;  %886 = vst [vmem:[%s1582_s3 + $0xd0] sm:$0xff] %v854_v54  ;;  %v855_v59 = vmax.f32 %v816_v55, 0.0  ;;  %v820_v60 = vadd.f32 %v819_v53, %v707_v56  ;;  %v709_v61 = vadd.f32 %v708_v57, %v1449_v38 }
 0x13e   :  { %v710_v62 = vpop.f32.mrf.mxu0 }
 0x13f   :  { %v823_v63 = vpop.f32.mrf.mxu1  ;;  %887 = vst [vmem:[%s1582_s3 + $0xd8] sm:$0xff] %v855_v59  ;;  %v856_v0 = vmax.f32 %v820_v60, 0.0  ;;  %v822_v1 = vadd.f32 %v821_v58, %v709_v61  ;;  %v711_v2 = vadd.f32 %v710_v62, %v1447_v37 }
 0x140   :  { %v712_v3 = vpop.f32.mrf.mxu0 }
 0x141   :  { %888 = vst [vmem:[%s1582_s3 + $0xe0] sm:$0xff] %v856_v0  ;;  %v857_v4 = vmax.f32 %v822_v1, 0.0  ;;  %v824_v5 = vadd.f32 %v823_v63, %v711_v2  ;;  %v713_v6 = vadd.f32 %v712_v3, %v1449_v38  ;;  %v825_v7 = vpop.f32.mrf.mxu1 }
 0x143   :  { %889 = vst [vmem:[%s1582_s3 + $0xe8] sm:$0xff] %v857_v4  ;;  %v858_v8 = vmax.f32 %v824_v5, 0.0  ;;  %v826_v9 = vadd.f32 %v825_v7, %v713_v6 }
 0x145   :  { %890 = vst [vmem:[%s1582_s3 + $0xf0] sm:$0xff] %v858_v8  ;;  %v859_v37 = vmax.f32 %v826_v9, 0.0 }
 0x147   :  { %891 = vst [vmem:[%s1582_s3 + $0xf8] sm:$0xff] %v859_v37 }

// kernel: generator_forward.10
= control target key start
LH: loop header
LB: loop body
LE: loop exit
PB: predicated region body
PF: predicated region fallthrough
CT: control target
= control target key end

     0   :  { %s8674_s1 = inlined_call_operand.vmem [shape: bf16[4096,128], index: 1, kind: input, shape index: {}]   ;;  %s8675_s0 = inlined_call_operand.vmem [shape: bf16[112,4096], index: 0, kind: input, shape index: {}]   ;;  %s8676_s2 = inlined_call_operand.vmem [shape: f32[1,128], index: 2, kind: input, shape index: {}]   ;;  %s8677_s3 = inlined_call_operand.vmem [shape: f32[112,128], index: 3, kind: output, shape index: {}]  }
   0x1   :  { %v6279_v0 = vld [vmem:[%s8674_s1 + $0x78] sm:$0xff]   ;;  %v6283_v4 = vld [vmem:[%s8674_s1 + $0x70] sm:$0xff]   ;;  %v6287_v8 = vld [vmem:[%s8674_s1 + $0x68] sm:$0xff]  }
   0x2   :  { %v6280_v1 = vld [vmem:[%s8674_s1 + $0xf8] sm:$0xff]   ;;  %5351 = vmatprep.subr.bf16.mxu0 %v6279_v0  ;;  %v6284_v5 = vld [vmem:[%s8674_s1 + $0xf0] sm:$0xff]   ;;  %v6288_v9 = vld [vmem:[%s8674_s1 + $0xe8] sm:$0xff]  }
   0x3   :  { %v6281_v2 = vld [vmem:[%s8674_s1 + $0x38] sm:$0xff]   ;;  %5409 = vmatprep.subr.bf16.mxu1 %v6280_v1  ;;  %v6285_v6 = vld [vmem:[%s8674_s1 + $0x30] sm:$0xff]   ;;  %v6289_v10 = vld [vmem:[%s8674_s1 + $0x28] sm:$0xff]  }
   0x4   :  { %v6282_v3 = vld [vmem:[%s8674_s1 + $0xb8] sm:$0xff]   ;;  %5352 = vmatpush3.bf16.msra.mxu0 %v6281_v2  ;;  %v6286_v7 = vld [vmem:[%s8674_s1 + $0xb0] sm:$0xff]   ;;  %v6290_v11 = vld [vmem:[%s8674_s1 + $0xa8] sm:$0xff]  }
   0x5   :  { %5410 = vmatpush3.bf16.msra.mxu1 %v6282_v3  ;;  %5353 = vmatprep.subr.bf16.mxu0 %v6283_v4  ;;  %v6291_v12 = vld [vmem:[%s8674_s1 + $0x60] sm:$0xff]   ;;  %v6295_v16 = vld [vmem:[%s8674_s1 + $0x58] sm:$0xff]   ;;  %v6299_v20 = vld [vmem:[%s8674_s1 + $0x50] sm:$0xff]  }
   0x6   :  { %5411 = vmatprep.subr.bf16.mxu1 %v6284_v5  ;;  %v6292_v13 = vld [vmem:[%s8674_s1 + $0xe0] sm:$0xff]   ;;  %v6296_v17 = vld [vmem:[%s8674_s1 + $0xd8] sm:$0xff]   ;;  %v6300_v21 = vld [vmem:[%s8674_s1 + $0xd0] sm:$0xff]  }
   0x7   :  { %v6293_v14 = vld [vmem:[%s8674_s1 + $0x20] sm:$0xff]   ;;  %v6297_v18 = vld [vmem:[%s8674_s1 + $0x18] sm:$0xff]   ;;  %v6301_v22 = vld [vmem:[%s8674_s1 + $0x10] sm:$0xff]  }
   0x8   :  { %5354 = vmatpush3.bf16.msra.mxu0 %v6285_v6  ;;  %v6294_v15 = vld [vmem:[%s8674_s1 + $0xa0] sm:$0xff]   ;;  %v6298_v19 = vld [vmem:[%s8674_s1 + $0x98] sm:$0xff]   ;;  %v6302_v23 = vld [vmem:[%s8674_s1 + $0x90] sm:$0xff]  }
   0x9   :  { %5412 = vmatpush3.bf16.msra.mxu1 %v6286_v7  ;;  %5355 = vmatprep.subr.bf16.mxu0 %v6287_v8  ;;  %v6303_v24 = vld [vmem:[%s8674_s1 + $0x48] sm:$0xff]   ;;  %v6307_v28 = vld [vmem:[%s8674_s1 + $0x40] sm:$0xff]   ;;  %v6311_v40 = vld [vmem:[%s8674_s1 + $0x178] sm:$0xff]  }
   0xa   :  { %5413 = vmatprep.subr.bf16.mxu1 %v6288_v9  ;;  %v6304_v25 = vld [vmem:[%s8674_s1 + $0xc8] sm:$0xff]   ;;  %v6308_v29 = vld [vmem:[%s8674_s1 + $0xc0] sm:$0xff]   ;;  %v6312_v41 = vld [vmem:[%s8674_s1 + $0x138] sm:$0xff]  }
   0xb   :  { %v6305_v26 = vld [vmem:[%s8674_s1 + $0x8] sm:$0xff]   ;;  %v6309_v30 = vld [vmem:[%s8674_s1] sm:$0xff]   ;;  %v6313_v42 = vld [vmem:[%s8674_s1 + $0x1f8] sm:$0xff]  }
   0xc   :  { %5356 = vmatpush3.bf16.msra.mxu0 %v6289_v10  ;;  %v6306_v27 = vld [vmem:[%s8674_s1 + $0x88] sm:$0xff]   ;;  %v6310_v31 = vld [vmem:[%s8674_s1 + $0x80] sm:$0xff]   ;;  %v6314_v43 = vld [vmem:[%s8674_s1 + $0x1b8] sm:$0xff]  }
   0xd   :  { %5414 = vmatpush3.bf16.msra.mxu1 %v6290_v11  ;;  %5357 = vmatprep.subr.bf16.mxu0 %v6291_v12  ;;  %v15_v32 = vld [vmem:[%s8675_s0] sm:$0xff]  ;;  %v16_v34 = vld [vmem:[%s8675_s0 + $0x8] sm:$0xff]  ;;  %v6315_v50 = vld [vmem:[%s8674_s1 + $0x170] sm:$0xff]  }
   0xe   :  { %5415 = vmatprep.subr.bf16.mxu1 %v6292_v13  ;;  %v31_v33 = vld [vmem:[%s8675_s0 + $0x80] sm:$0xff]  ;;  %v32_v37 = vld [vmem:[%s8675_s0 + $0x88] sm:$0xff]  ;;  %v6316_v52 = vld [vmem:[%s8674_s1 + $0x130] sm:$0xff]  }
   0xf   :  { %v4871_v35 = vcombine.low %v15_v32, %v31_v33  ;;  %v4872_v36 = vcombine.high %v15_v32, %v31_v33  ;;  %v4873_v38 = vcombine.low %v16_v34, %v32_v37  ;;  %v4874_v39 = vcombine.high %v16_v34, %v32_v37  ;;  %v47_v44 = vld [vmem:[%s8675_s0 + $0x100] sm:$0xff]  ;;  %v48_v47 = vld [vmem:[%s8675_s0 + $0x108] sm:$0xff]  ;;  %v6317_v54 = vld [vmem:[%s8674_s1 + $0x1f0] sm:$0xff]  }
  0x10   :  { %5358 = vmatpush3.bf16.msra.mxu0 %v6293_v14  ;;  %v63_v45 = vld [vmem:[%s8675_s0 + $0x180] sm:$0xff]  ;;  %v64_v48 = vld [vmem:[%s8675_s0 + $0x188] sm:$0xff]  ;;  %v6318_v55 = vld [vmem:[%s8674_s1 + $0x1b0] sm:$0xff]  }
  0x11   :  { %5416 = vmatpush3.bf16.msra.mxu1 %v6294_v15  ;;  %5359 = vmatprep.subr.bf16.mxu0 %v6295_v16  ;;  %v4904_v46 = vcombine.high %v47_v44, %v63_v45  ;;  %v4906_v49 = vcombine.high %v48_v47, %v64_v48  ;;  %v4903_v51 = vcombine.low %v47_v44, %v63_v45  ;;  %v6319_v56 = vld [vmem:[%s8674_s1 + $0x168] sm:$0xff]   ;;  %v79_v57 = vld [vmem:[%s8675_s0 + $0x200] sm:$0xff]  ;;  %v6327_v14 = vld [vmem:[%s8674_s1 + $0x158] sm:$0xff]  }
  0x12   :  { %5417 = vmatprep.subr.bf16.mxu1 %v6296_v17  ;;  %3446 = vmatprep.mubr.bf16.mxu0 %v4872_v36  ;;  %v4905_v53 = vcombine.low %v48_v47, %v64_v48  ;;  %v95_v58 = vld [vmem:[%s8675_s0 + $0x280] sm:$0xff]  ;;  %v80_v59 = vld [vmem:[%s8675_s0 + $0x208] sm:$0xff]  ;;  %v6328_v15 = vld [vmem:[%s8674_s1 + $0x118] sm:$0xff]  }
  0x13   :  { %3535 = vmatprep.mubr.bf16.mxu1 %v4874_v39  ;;  %v96_v60 = vld [vmem:[%s8675_s0 + $0x288] sm:$0xff]  ;;  %v4936_v61 = vcombine.high %v79_v57, %v95_v58  ;;  %v4935_v2 = vcombine.low %v79_v57, %v95_v58  ;;  %v6323_v3 = vld [vmem:[%s8674_s1 + $0x160] sm:$0xff]   ;;  %v6329_v17 = vld [vmem:[%s8674_s1 + $0x1d8] sm:$0xff]  }
  0x14   :  { %5360 = vmatpush3.bf16.msra.mxu0 %v6297_v18  ;;  %v4938_v62 = vcombine.high %v80_v59, %v96_v60  ;;  %v6320_v63 = vld [vmem:[%s8674_s1 + $0x128] sm:$0xff]   ;;  %v4937_v4 = vcombine.low %v80_v59, %v96_v60  ;;  %v6324_v5 = vld [vmem:[%s8674_s1 + $0x120] sm:$0xff]   ;;  %v33_v57 = vld [vmem:[%s8675_s0 + $0x90] sm:$0xff] }
  0x15   :  { %5418 = vmatpush3.bf16.msra.mxu1 %v6298_v19  ;;  %5361 = vmatprep.subr.bf16.mxu0 %v6299_v20  ;;  %v6321_v0 = vld [vmem:[%s8674_s1 + $0x1e8] sm:$0xff]   ;;  %v111_v6 = vld [vmem:[%s8675_s0 + $0x300] sm:$0xff]  ;;  %v18_v58 = vld [vmem:[%s8675_s0 + $0x18] sm:$0xff] }
  0x16   :  { %5419 = vmatprep.subr.bf16.mxu1 %v6300_v21  ;;  %v6322_v1 = vld [vmem:[%s8674_s1 + $0x1a8] sm:$0xff]   ;;  %v127_v7 = vld [vmem:[%s8675_s0 + $0x380] sm:$0xff]  ;;  %v34_v59 = vld [vmem:[%s8675_s0 + $0x98] sm:$0xff] }
  0x17   :  { %v112_v8 = vld [vmem:[%s8675_s0 + $0x308] sm:$0xff]  ;;  %v4968_v9 = vcombine.high %v111_v6, %v127_v7  ;;  %v6325_v12 = vld [vmem:[%s8674_s1 + $0x1e0] sm:$0xff]   ;;  %v4967_v16 = vcombine.low %v111_v6, %v127_v7  ;;  %v6344_v6 = vld [vmem:[%s8674_s1 + $0x238] sm:$0xff]  }
  0x18   :  { %5362 = vmatpush3.bf16.msra.mxu0 %v6301_v22  ;;  %v128_v10 = vld [vmem:[%s8675_s0 + $0x388] sm:$0xff]  ;;  %v6326_v13 = vld [vmem:[%s8674_s1 + $0x1a0] sm:$0xff]   ;;  %v6346_v7 = vld [vmem:[%s8674_s1 + $0x2b8] sm:$0xff]  }
  0x19   :  { %5420 = vmatpush3.bf16.msra.mxu1 %v6302_v23  ;;  %5363 = vmatprep.subr.bf16.mxu0 %v6303_v24  ;;  %v4970_v11 = vcombine.high %v112_v8, %v128_v10  ;;  %v143_v18 = vld [vmem:[%s8675_s0 + $0x400] sm:$0xff]  ;;  %v4969_v20 = vcombine.low %v112_v8, %v128_v10  ;;  %v144_v22 = vld [vmem:[%s8675_s0 + $0x408] sm:$0xff]  ;;  %v6347_v10 = vld [vmem:[%s8674_s1 + $0x270] sm:$0xff]  }
  0x1a   :  { %5421 = vmatprep.subr.bf16.mxu1 %v6304_v25  ;;  %v159_v19 = vld [vmem:[%s8675_s0 + $0x480] sm:$0xff]  ;;  %v160_v23 = vld [vmem:[%s8675_s0 + $0x488] sm:$0xff]  ;;  %v6330_v25 = vld [vmem:[%s8674_s1 + $0x198] sm:$0xff]  }
  0x1b   :  { %v5000_v21 = vcombine.high %v143_v18, %v159_v19  ;;  %v5002_v24 = vcombine.high %v144_v22, %v160_v23  ;;  %v176_v32 = vld [vmem:[%s8675_s0 + $0x508] sm:$0xff]  ;;  %v4999_v34 = vcombine.low %v143_v18, %v159_v19  ;;  %v5001_v36 = vcombine.low %v144_v22, %v160_v23  ;;  %v6340_v47 = vld [vmem:[%s8674_s1 + $0x100] sm:$0xff]   ;;  %v98_v18 = vld [vmem:[%s8675_s0 + $0x298] sm:$0xff] }
  0x1c   :  { %5364 = vmatpush3.bf16.msra.mxu0 %v6305_v26  ;;  %v6331_v26 = vld [vmem:[%s8674_s1 + $0x150] sm:$0xff]   ;;  %v192_v33 = vld [vmem:[%s8675_s0 + $0x588] sm:$0xff] }
  0x1d   :  { %5422 = vmatpush3.bf16.msra.mxu1 %v6306_v27  ;;  %5365 = vmatprep.subr.bf16.mxu0 %v6307_v28  ;;  %v6332_v27 = vld [vmem:[%s8674_s1 + $0x110] sm:$0xff]   ;;  %v5034_v39 = vcombine.high %v176_v32, %v192_v33  ;;  %v208_v44 = vld [vmem:[%s8675_s0 + $0x608] sm:$0xff] }
  0x1e   :  { %5423 = vmatprep.subr.bf16.mxu1 %v6308_v29  ;;  %v6333_v28 = vld [vmem:[%s8674_s1 + $0x1d0] sm:$0xff]   ;;  %v224_v45 = vld [vmem:[%s8675_s0 + $0x688] sm:$0xff] }
  0x1f   :  { %v6334_v29 = vld [vmem:[%s8674_s1 + $0x190] sm:$0xff]   ;;  %v6353_v19 = vld [vmem:[%s8674_s1 + $0x2e8] sm:$0xff]  }
  0x20   :  { %5366 = vmatpush3.bf16.msra.mxu0 %v6309_v30  ;;  %v175_v30 = vld [vmem:[%s8675_s0 + $0x500] sm:$0xff] }
  0x21   :  { %5424 = vmatpush3.bf16.msra.mxu1 %v6310_v31  ;;  %5467 = vmatprep.subr.bf16.mxu0 %v6311_v40  ;;  %v191_v31 = vld [vmem:[%s8675_s0 + $0x580] sm:$0xff]  ;;  %v6337_v40 = vld [vmem:[%s8674_s1 + $0x1c8] sm:$0xff]  }
  0x22   :  { %5525 = vmatprep.subr.bf16.mxu1 %v6313_v42  ;;  %v5032_v37 = vcombine.high %v175_v30, %v191_v31  ;;  %v207_v42 = vld [vmem:[%s8675_s0 + $0x600] sm:$0xff]  ;;  %v5031_v48 = vcombine.low %v175_v30, %v191_v31  ;;  %v114_v31 = vld [vmem:[%s8675_s0 + $0x318] sm:$0xff] }
  0x23   :  { %3447 = vmatmul.mubr.bf16.vlgmr.msra.gmra.mxu0 %v4871_v35  ;;  %v6335_v35 = vld [vmem:[%s8674_s1 + $0x148] sm:$0xff]   ;;  %v6357_v30 = vld [vmem:[%s8674_s1 + $0x2e0] sm:$0xff]  }
  0x24   :  { %3536 = vmatmul.mubr.bf16.vlgmr.msra.gmra.mxu1 %v4873_v38  ;;  %5468 = vmatpush3.bf16.msra.mxu0 %v6312_v41  ;;  %v6336_v38 = vld [vmem:[%s8674_s1 + $0x108] sm:$0xff]  }
  0x25   :  { %5526 = vmatpush3.bf16.msra.mxu1 %v6314_v43  ;;  %3454 = vmatprep.mubr.bf16.mxu0 %v4904_v46  ;;  %v6338_v41 = vld [vmem:[%s8674_s1 + $0x188] sm:$0xff]   ;;  %v223_v43 = vld [vmem:[%s8675_s0 + $0x680] sm:$0xff] }
  0x26   :  { %3543 = vmatprep.mubr.bf16.mxu1 %v4906_v49  ;;  %5469 = vmatprep.subr.bf16.mxu0 %v6315_v50  ;;  %v6339_v46 = vld [vmem:[%s8674_s1 + $0x140] sm:$0xff]   ;;  %v5033_v50 = vcombine.low %v176_v32, %v192_v33  ;;  %v5063_v60 = vcombine.low %v207_v42, %v223_v43  ;;  %v130_v32 = vld [vmem:[%s8675_s0 + $0x398] sm:$0xff] }
  0x27   :  { %5527 = vmatprep.subr.bf16.mxu1 %v6317_v54  ;;  %v6341_v49 = vld [vmem:[%s8674_s1 + $0x1c0] sm:$0xff]   ;;  %v6343_v54 = vld [vmem:[%s8674_s1 + $0x278] sm:$0xff]  }
  0x28   :  { %5470 = vmatpush3.bf16.msra.mxu0 %v6316_v52  ;;  %v6342_v52 = vld [vmem:[%s8674_s1 + $0x180] sm:$0xff]  }
  0x29   :  { %5528 = vmatpush3.bf16.msra.mxu1 %v6318_v55  ;;  %5471 = vmatprep.subr.bf16.mxu0 %v6319_v56  ;;  %v6345_v55 = vld [vmem:[%s8674_s1 + $0x2f8] sm:$0xff]   ;;  %v17_v56 = vld [vmem:[%s8675_s0 + $0x10] sm:$0xff]  ;;  %v6358_v33 = vld [vmem:[%s8674_s1 + $0x2a0] sm:$0xff]  }
  0x2a   :  { %5529 = vmatprep.subr.bf16.mxu1 %v6321_v0  ;;  %v49_v0 = vld [vmem:[%s8675_s0 + $0x110] sm:$0xff] }
  0x2b   :  { %3455 = vmatmul.mubr.bf16.gmra.mxu0 %v4903_v51  ;;  %v5064_v51 = vcombine.high %v207_v42, %v223_v43  ;;  %v6363_v42 = vld [vmem:[%s8674_s1 + $0x250] sm:$0xff]  }
  0x2c   :  { %3544 = vmatmul.mubr.bf16.gmra.mxu1 %v4905_v53  ;;  %3462 = vmatprep.mubr.bf16.mxu0 %v4936_v61  ;;  %v5066_v53 = vcombine.high %v208_v44, %v224_v45  ;;  %v5065_v61 = vcombine.low %v208_v44, %v224_v45  ;;  %v145_v43 = vld [vmem:[%s8675_s0 + $0x410] sm:$0xff] }
  0x2d   :  { %3551 = vmatprep.mubr.bf16.mxu1 %v4938_v62  ;;  %5472 = vmatpush3.bf16.msra.mxu0 %v6320_v63  ;;  %v4876_v62 = vcombine.high %v17_v56, %v33_v57  ;;  %v4878_v63 = vcombine.high %v18_v58, %v34_v59  ;;  %v6365_v44 = vld [vmem:[%s8674_s1 + $0x2d0] sm:$0xff]  }
  0x2e   :  { %5530 = vmatpush3.bf16.msra.mxu1 %v6322_v1  ;;  %5473 = vmatprep.subr.bf16.mxu0 %v6323_v3  ;;  %v65_v1 = vld [vmem:[%s8675_s0 + $0x190] sm:$0xff]  ;;  %v4875_v3 = vcombine.low %v17_v56, %v33_v57  ;;  %v6368_v56 = vld [vmem:[%s8674_s1 + $0x208] sm:$0xff]  }
  0x2f   :  { %5531 = vmatprep.subr.bf16.mxu1 %v6325_v12  ;;  %v4908_v8 = vcombine.high %v49_v0, %v65_v1  ;;  %v6349_v12 = vld [vmem:[%s8674_s1 + $0x2f0] sm:$0xff]   ;;  %v6370_v57 = vld [vmem:[%s8674_s1 + $0x288] sm:$0xff]  }
  0x30   :  { %v161_v45 = vld [vmem:[%s8675_s0 + $0x490] sm:$0xff] }
  0x31   :  { %5474 = vmatpush3.bf16.msra.mxu0 %v6324_v5  ;;  %v4877_v5 = vcombine.low %v18_v58, %v34_v59  ;;  %v6371_v58 = vld [vmem:[%s8674_s1 + $0x240] sm:$0xff]   ;;  %v177_v59 = vld [vmem:[%s8675_s0 + $0x510] sm:$0xff] }
  0x32   :  { %5532 = vmatpush3.bf16.msra.mxu1 %v6326_v13  ;;  %5475 = vmatprep.subr.bf16.mxu0 %v6327_v14  ;;  %v6350_v13 = vld [vmem:[%s8674_s1 + $0x2b0] sm:$0xff]   ;;  %v6351_v14 = vld [vmem:[%s8674_s1 + $0x268] sm:$0xff]  }
  0x33   :  { %3463 = vmatmul.mubr.bf16.gmra.mxu0 %v4935_v2  ;;  %5533 = vmatprep.subr.bf16.mxu1 %v6329_v17  ;;  %v50_v2 = vld [vmem:[%s8675_s0 + $0x118] sm:$0xff] }
  0x34   :  { %3552 = vmatmul.mubr.bf16.gmra.mxu1 %v4937_v4  ;;  %3470 = vmatprep.mubr.bf16.mxu0 %v4968_v9  ;;  %v66_v4 = vld [vmem:[%s8675_s0 + $0x198] sm:$0xff] }
  0x35   :  { %3559 = vmatprep.mubr.bf16.mxu1 %v4970_v11  ;;  %5476 = vmatpush3.bf16.msra.mxu0 %v6328_v15  ;;  %v4910_v9 = vcombine.high %v50_v2, %v66_v4  ;;  %v6348_v11 = vld [vmem:[%s8674_s1 + $0x230] sm:$0xff]   ;;  %v82_v17 = vld [vmem:[%s8675_s0 + $0x218] sm:$0xff] }
  0x36   :  { %5534 = vmatpush3.bf16.msra.mxu1 %v6330_v25  ;;  %5477 = vmatprep.subr.bf16.mxu0 %v6331_v26  ;;  %v81_v15 = vld [vmem:[%s8675_s0 + $0x210] sm:$0xff]  ;;  %v4942_v23 = vcombine.high %v82_v17, %v98_v18  ;;  %v6354_v25 = vld [vmem:[%s8674_s1 + $0x2a8] sm:$0xff]   ;;  %v6355_v26 = vld [vmem:[%s8674_s1 + $0x260] sm:$0xff]  }
  0x37   :  { %5535 = vmatprep.subr.bf16.mxu1 %v6333_v28  ;;  %v113_v28 = vld [vmem:[%s8675_s0 + $0x310] sm:$0xff] }
  0x39   :  { %5478 = vmatpush3.bf16.msra.mxu0 %v6332_v27  ;;  %v6356_v27 = vld [vmem:[%s8674_s1 + $0x220] sm:$0xff]  }
  0x3a   :  { %5536 = vmatpush3.bf16.msra.mxu1 %v6334_v29  ;;  %5479 = vmatprep.subr.bf16.mxu0 %v6335_v35  ;;  %v129_v29 = vld [vmem:[%s8675_s0 + $0x390] sm:$0xff] }
  0x3b   :  { %3471 = vmatmul.mubr.bf16.gmra.mxu0 %v4967_v16  ;;  %5537 = vmatprep.subr.bf16.mxu1 %v6337_v40  ;;  %v97_v16 = vld [vmem:[%s8675_s0 + $0x290] sm:$0xff]  ;;  %v4974_v40 = vcombine.high %v114_v31, %v130_v32 }
  0x3c   :  { %3560 = vmatmul.mubr.bf16.gmra.mxu1 %v4969_v20  ;;  %3478 = vmatprep.mubr.bf16.mxu0 %v5000_v21  ;;  %v4907_v20 = vcombine.low %v49_v0, %v65_v1  ;;  %v4909_v21 = vcombine.low %v50_v2, %v66_v4  ;;  %v4940_v22 = vcombine.high %v81_v15, %v97_v16  ;;  %v6372_v0 = vld [vmem:[%s8674_s1 + $0x200] sm:$0xff]   ;;  %v6375_v2 = vld [vmem:[%s8674_s1 + $0x378] sm:$0xff]  }
  0x3d   :  { %3567 = vmatprep.mubr.bf16.mxu1 %v5002_v24  ;;  %5480 = vmatpush3.bf16.msra.mxu0 %v6336_v38  ;;  %v6352_v24 = vld [vmem:[%s8674_s1 + $0x228] sm:$0xff]   ;;  %v4939_v35 = vcombine.low %v81_v15, %v97_v16  ;;  %v4972_v38 = vcombine.high %v113_v28, %v129_v29  ;;  %v6374_v1 = vld [vmem:[%s8674_s1 + $0x280] sm:$0xff]   ;;  %v6377_v4 = vld [vmem:[%s8674_s1 + $0x3f8] sm:$0xff]  }
  0x3e   :  { %5538 = vmatpush3.bf16.msra.mxu1 %v6338_v41  ;;  %5481 = vmatprep.subr.bf16.mxu0 %v6339_v46  ;;  %v6362_v41 = vld [vmem:[%s8674_s1 + $0x298] sm:$0xff]   ;;  %v19_v16 = vld [vmem:[%s8675_s0 + $0x20] sm:$0xff] }
  0x3f   :  { %5539 = vmatprep.subr.bf16.mxu1 %v6341_v49  ;;  %v146_v46 = vld [vmem:[%s8675_s0 + $0x418] sm:$0xff]  ;;  %v6366_v49 = vld [vmem:[%s8674_s1 + $0x290] sm:$0xff]  }
  0x41   :  { %5482 = vmatpush3.bf16.msra.mxu0 %v6340_v47  ;;  %v162_v47 = vld [vmem:[%s8675_s0 + $0x498] sm:$0xff] }
  0x42   :  { %5540 = vmatpush3.bf16.msra.mxu1 %v6342_v52  ;;  %5583 = vmatprep.subr.bf16.mxu0 %v6343_v54  ;;  %v6369_v52 = vld [vmem:[%s8674_s1 + $0x2c8] sm:$0xff]   ;;  %v5004_v54 = vcombine.high %v145_v43, %v161_v45 }
  0x43   :  { %3479 = vmatmul.mubr.bf16.gmra.mxu0 %v4999_v34  ;;  %5641 = vmatprep.subr.bf16.mxu1 %v6345_v55  ;;  %v6359_v34 = vld [vmem:[%s8674_s1 + $0x258] sm:$0xff]   ;;  %v5006_v55 = vcombine.high %v146_v46, %v162_v47 }
  0x44   :  { %3568 = vmatmul.mubr.bf16.gmra.mxu1 %v5001_v36  ;;  %3486 = vmatprep.mubr.bf16.mxu0 %v5032_v37  ;;  %v6361_v36 = vld [vmem:[%s8674_s1 + $0x2d8] sm:$0xff]   ;;  %v4941_v37 = vcombine.low %v82_v17, %v98_v18  ;;  %v35_v17 = vld [vmem:[%s8675_s0 + $0xa0] sm:$0xff]  ;;  %v20_v18 = vld [vmem:[%s8675_s0 + $0x28] sm:$0xff] }
  0x45   :  { %3575 = vmatprep.mubr.bf16.mxu1 %v5034_v39  ;;  %v6360_v39 = vld [vmem:[%s8674_s1 + $0x218] sm:$0xff]  }
  0x4b   :  { %3487 = vmatmul.mubr.bf16.gmra.mxu0 %v5031_v48  ;;  %v6364_v48 = vld [vmem:[%s8674_s1 + $0x210] sm:$0xff]  }
  0x4c   :  { %3576 = vmatmul.mubr.bf16.gmra.mxu1 %v5033_v50  ;;  %3494 = vmatprep.mubr.bf16.mxu0 %v5064_v51  ;;  %v6367_v50 = vld [vmem:[%s8674_s1 + $0x248] sm:$0xff]   ;;  %v4971_v51 = vcombine.low %v113_v28, %v129_v29 }
  0x4d   :  { %3583 = vmatprep.mubr.bf16.mxu1 %v5066_v53  ;;  %v4973_v53 = vcombine.low %v114_v31, %v130_v32  ;;  %v68_v28 = vld [vmem:[%s8675_s0 + $0x1a8] sm:$0xff]  ;;  %v6378_v31 = vld [vmem:[%s8674_s1 + $0x3b8] sm:$0xff]  }
  0x53   :  { %3495 = vmatmul.mubr.bf16.gmra.mxu0 %v5063_v60  ;;  %v193_v60 = vld [vmem:[%s8675_s0 + $0x590] sm:$0xff] }
  0x54   :  { %3584 = vmatmul.mubr.bf16.gmra.mxu1 %v5065_v61  ;;  %3624 = vmatprep.mubr.bf16.mxu0 %v4876_v62  ;;  %v6373_v61 = vld [vmem:[%s8674_s1 + $0x2c0] sm:$0xff]   ;;  %v178_v62 = vld [vmem:[%s8675_s0 + $0x518] sm:$0xff] }
  0x55   :  { %3713 = vmatprep.mubr.bf16.mxu1 %v4878_v63  ;;  %v194_v63 = vld [vmem:[%s8675_s0 + $0x598] sm:$0xff] }
  0x5b   :  { %3625 = vmatmul.mubr.bf16.vlgmr.msra.gmra.mxu0 %v4875_v3  ;;  %v5003_v3 = vcombine.low %v145_v43, %v161_v45  ;;  %v6385_v43 = vld [vmem:[%s8674_s1 + $0x3e8] sm:$0xff]  }
  0x5c   :  { %3714 = vmatmul.mubr.bf16.vlgmr.msra.gmra.mxu1 %v4877_v5  ;;  %5584 = vmatpush3.bf16.msra.mxu0 %v6344_v6  ;;  %v5005_v5 = vcombine.low %v146_v46, %v162_v47  ;;  %v5036_v6 = vcombine.high %v177_v59, %v193_v60  ;;  %v6384_v47 = vld [vmem:[%s8674_s1 + $0x328] sm:$0xff]  }
  0x5d   :  { %5642 = vmatpush3.bf16.msra.mxu1 %v6346_v7  ;;  %3632 = vmatprep.mubr.bf16.mxu0 %v4908_v8  ;;  %v5038_v7 = vcombine.high %v178_v62, %v194_v63  ;;  %v209_v8 = vld [vmem:[%s8675_s0 + $0x610] sm:$0xff] }
  0x5e   :  { %3721 = vmatprep.mubr.bf16.mxu1 %v4910_v9  ;;  %5585 = vmatprep.subr.bf16.mxu0 %v6347_v10  ;;  %v225_v9 = vld [vmem:[%s8675_s0 + $0x690] sm:$0xff]  ;;  %v210_v10 = vld [vmem:[%s8675_s0 + $0x618] sm:$0xff] }
  0x5f   :  { %5643 = vmatprep.subr.bf16.mxu1 %v6349_v12  ;;  %v5035_v12 = vcombine.low %v177_v59, %v193_v60  ;;  %v6393_v60 = vld [vmem:[%s8674_s1 + $0x3d8] sm:$0xff]  }
  0x60   :  { %5586 = vmatpush3.bf16.msra.mxu0 %v6348_v11  ;;  %v226_v11 = vld [vmem:[%s8675_s0 + $0x698] sm:$0xff] }
  0x61   :  { %5644 = vmatpush3.bf16.msra.mxu1 %v6350_v13  ;;  %5587 = vmatprep.subr.bf16.mxu0 %v6351_v14  ;;  %v5037_v13 = vcombine.low %v178_v62, %v194_v63  ;;  %v5068_v14 = vcombine.high %v209_v8, %v225_v9  ;;  %v5070_v15 = vcombine.high %v210_v10, %v226_v11 }
  0x62   :  { %5645 = vmatprep.subr.bf16.mxu1 %v6353_v19  ;;  %v36_v19 = vld [vmem:[%s8675_s0 + $0xa8] sm:$0xff] }
  0x63   :  { %3633 = vmatmul.mubr.bf16.gmra.mxu0 %v4907_v20  ;;  %v5067_v20 = vcombine.low %v209_v8, %v225_v9  ;;  %v4881_v29 = vcombine.low %v20_v18, %v36_v19  ;;  %v6396_v8 = vld [vmem:[%s8674_s1 + $0x310] sm:$0xff]  }
  0x64   :  { %3722 = vmatmul.mubr.bf16.gmra.mxu1 %v4909_v21  ;;  %3640 = vmatprep.mubr.bf16.mxu0 %v4940_v22  ;;  %v5069_v21 = vcombine.low %v210_v10, %v226_v11  ;;  %v4880_v22 = vcombine.high %v19_v16, %v35_v17  ;;  %v6398_v9 = vld [vmem:[%s8674_s1 + $0x390] sm:$0xff]   ;;  %v6399_v10 = vld [vmem:[%s8674_s1 + $0x348] sm:$0xff]  }
  0x65   :  { %3729 = vmatprep.mubr.bf16.mxu1 %v4942_v23  ;;  %5588 = vmatpush3.bf16.msra.mxu0 %v6352_v24  ;;  %v4882_v23 = vcombine.high %v20_v18, %v36_v19  ;;  %v51_v24 = vld [vmem:[%s8675_s0 + $0x120] sm:$0xff] }
  0x66   :  { %5646 = vmatpush3.bf16.msra.mxu1 %v6354_v25  ;;  %5589 = vmatprep.subr.bf16.mxu0 %v6355_v26  ;;  %v67_v25 = vld [vmem:[%s8675_s0 + $0x1a0] sm:$0xff]  ;;  %v52_v26 = vld [vmem:[%s8675_s0 + $0x128] sm:$0xff] }
  0x67   :  { %5647 = vmatprep.subr.bf16.mxu1 %v6357_v30  ;;  %v6376_v30 = vld [vmem:[%s8674_s1 + $0x338] sm:$0xff]   ;;  %v4912_v32 = vcombine.high %v51_v24, %v67_v25  ;;  %v4913_v45 = vcombine.low %v52_v26, %v68_v28  ;;  %v6403_v18 = vld [vmem:[%s8674_s1 + $0x340] sm:$0xff]  }
  0x68   :  { %v179_v19 = vld [vmem:[%s8675_s0 + $0x520] sm:$0xff] }
  0x69   :  { %5590 = vmatpush3.bf16.msra.mxu0 %v6356_v27  ;;  %v4879_v27 = vcombine.low %v19_v16, %v35_v17  ;;  %v6402_v17 = vld [vmem:[%s8674_s1 + $0x388] sm:$0xff]  }
  0x6a   :  { %5648 = vmatpush3.bf16.msra.mxu1 %v6358_v33  ;;  %5591 = vmatprep.subr.bf16.mxu0 %v6359_v34  ;;  %v6379_v33 = vld [vmem:[%s8674_s1 + $0x370] sm:$0xff]   ;;  %v4914_v34 = vcombine.high %v52_v26, %v68_v28  ;;  %v6407_v26 = vld [vmem:[%s8674_s1 + $0x478] sm:$0xff]  }
  0x6b   :  { %3641 = vmatmul.mubr.bf16.gmra.mxu0 %v4939_v35  ;;  %5649 = vmatprep.subr.bf16.mxu1 %v6361_v36  ;;  %v6380_v35 = vld [vmem:[%s8674_s1 + $0x330] sm:$0xff]   ;;  %v6409_v28 = vld [vmem:[%s8674_s1 + $0x4f8] sm:$0xff]  }
  0x6c   :  { %3730 = vmatmul.mubr.bf16.gmra.mxu1 %v4941_v37  ;;  %3648 = vmatprep.mubr.bf16.mxu0 %v4972_v38  ;;  %v6381_v36 = vld [vmem:[%s8674_s1 + $0x3f0] sm:$0xff]   ;;  %v6383_v38 = vld [vmem:[%s8674_s1 + $0x368] sm:$0xff]  }
  0x6d   :  { %3737 = vmatprep.mubr.bf16.mxu1 %v4974_v40  ;;  %5592 = vmatpush3.bf16.msra.mxu0 %v6360_v39  ;;  %v6382_v37 = vld [vmem:[%s8674_s1 + $0x3b0] sm:$0xff]   ;;  %v83_v39 = vld [vmem:[%s8675_s0 + $0x220] sm:$0xff] }
  0x6e   :  { %5650 = vmatpush3.bf16.msra.mxu1 %v6362_v41  ;;  %5593 = vmatprep.subr.bf16.mxu0 %v6363_v42  ;;  %v99_v40 = vld [vmem:[%s8675_s0 + $0x2a0] sm:$0xff]  ;;  %v84_v41 = vld [vmem:[%s8675_s0 + $0x228] sm:$0xff] }
  0x6f   :  { %5651 = vmatprep.subr.bf16.mxu1 %v6365_v44  ;;  %v100_v42 = vld [vmem:[%s8675_s0 + $0x2a8] sm:$0xff]  ;;  %v4911_v44 = vcombine.low %v51_v24, %v67_v25  ;;  %v4944_v46 = vcombine.high %v83_v39, %v99_v40  ;;  %v4943_v59 = vcombine.low %v83_v39, %v99_v40  ;;  %v6404_v24 = vld [vmem:[%s8674_s1 + $0x300] sm:$0xff]   ;;  %v21_v40 = vld [vmem:[%s8675_s0 + $0x30] sm:$0xff] }
  0x70   :  { %v6406_v25 = vld [vmem:[%s8674_s1 + $0x380] sm:$0xff]  }
  0x71   :  { %5594 = vmatpush3.bf16.msra.mxu0 %v6364_v48  ;;  %v4946_v48 = vcombine.high %v84_v41, %v100_v42 }
  0x72   :  { %5652 = vmatpush3.bf16.msra.mxu1 %v6366_v49  ;;  %5595 = vmatprep.subr.bf16.mxu0 %v6367_v50  ;;  %v6386_v49 = vld [vmem:[%s8674_s1 + $0x3a8] sm:$0xff]   ;;  %v6387_v50 = vld [vmem:[%s8674_s1 + $0x360] sm:$0xff]  }
  0x73   :  { %3649 = vmatmul.mubr.bf16.gmra.mxu0 %v4971_v51  ;;  %5653 = vmatprep.subr.bf16.mxu1 %v6369_v52  ;;  %v6388_v51 = vld [vmem:[%s8674_s1 + $0x320] sm:$0xff]  }
  0x74   :  { %3738 = vmatmul.mubr.bf16.gmra.mxu1 %v4973_v53  ;;  %3656 = vmatprep.mubr.bf16.mxu0 %v5004_v54  ;;  %v115_v52 = vld [vmem:[%s8675_s0 + $0x320] sm:$0xff] }
  0x75   :  { %3745 = vmatprep.mubr.bf16.mxu1 %v5006_v55  ;;  %5596 = vmatpush3.bf16.msra.mxu0 %v6368_v56  ;;  %v131_v53 = vld [vmem:[%s8675_s0 + $0x3a0] sm:$0xff]  ;;  %v116_v55 = vld [vmem:[%s8675_s0 + $0x328] sm:$0xff] }
  0x76   :  { %5654 = vmatpush3.bf16.msra.mxu1 %v6370_v57  ;;  %5597 = vmatprep.subr.bf16.mxu0 %v6371_v58  ;;  %v6389_v54 = vld [vmem:[%s8674_s1 + $0x3e0] sm:$0xff]   ;;  %v132_v56 = vld [vmem:[%s8675_s0 + $0x3a8] sm:$0xff]  ;;  %v6391_v58 = vld [vmem:[%s8674_s1 + $0x358] sm:$0xff]   ;;  %v4976_v62 = vcombine.high %v115_v52, %v131_v53  ;;  %v4975_v11 = vcombine.low %v115_v52, %v131_v53 }
  0x77   :  { %5655 = vmatprep.subr.bf16.mxu1 %v6373_v61  ;;  %v6390_v57 = vld [vmem:[%s8674_s1 + $0x3a0] sm:$0xff]   ;;  %v4945_v61 = vcombine.low %v84_v41, %v100_v42  ;;  %v4978_v63 = vcombine.high %v116_v55, %v132_v56  ;;  %v37_v41 = vld [vmem:[%s8675_s0 + $0xb0] sm:$0xff]  ;;  %v22_v42 = vld [vmem:[%s8675_s0 + $0x38] sm:$0xff] }
  0x78   :  { %v70_v52 = vld [vmem:[%s8675_s0 + $0x1b8] sm:$0xff] }
  0x79   :  { %5598 = vmatpush3.bf16.msra.mxu0 %v6372_v0  ;;  %v6392_v0 = vld [vmem:[%s8674_s1 + $0x318] sm:$0xff]  }
  0x7a   :  { %5656 = vmatpush3.bf16.msra.mxu1 %v6374_v1  ;;  %5699 = vmatprep.subr.bf16.mxu0 %v6375_v2  ;;  %v6394_v1 = vld [vmem:[%s8674_s1 + $0x398] sm:$0xff]   ;;  %v6395_v2 = vld [vmem:[%s8674_s1 + $0x350] sm:$0xff]  }
  0x7b   :  { %3657 = vmatmul.mubr.bf16.gmra.mxu0 %v5003_v3  ;;  %5757 = vmatprep.subr.bf16.mxu1 %v6377_v4  ;;  %v147_v3 = vld [vmem:[%s8675_s0 + $0x420] sm:$0xff] }
  0x7c   :  { %3746 = vmatmul.mubr.bf16.gmra.mxu1 %v5005_v5  ;;  %3664 = vmatprep.mubr.bf16.mxu0 %v5036_v6  ;;  %v163_v4 = vld [vmem:[%s8675_s0 + $0x4a0] sm:$0xff]  ;;  %v6397_v5 = vld [vmem:[%s8674_s1 + $0x3d0] sm:$0xff]   ;;  %v148_v6 = vld [vmem:[%s8675_s0 + $0x428] sm:$0xff] }
  0x7d   :  { %3753 = vmatprep.mubr.bf16.mxu1 %v5038_v7  ;;  %v164_v7 = vld [vmem:[%s8675_s0 + $0x4a8] sm:$0xff] }
  0x7e   :  { %v5010_v16 = vcombine.high %v148_v6, %v164_v7 }
  0x83   :  { %3665 = vmatmul.mubr.bf16.gmra.mxu0 %v5035_v12  ;;  %v6401_v12 = vld [vmem:[%s8674_s1 + $0x3c8] sm:$0xff]  }
  0x84   :  { %3754 = vmatmul.mubr.bf16.gmra.mxu1 %v5037_v13  ;;  %3672 = vmatprep.mubr.bf16.mxu0 %v5068_v14  ;;  %v4977_v13 = vcombine.low %v116_v55, %v132_v56  ;;  %v5008_v14 = vcombine.high %v147_v3, %v163_v4  ;;  %v6410_v55 = vld [vmem:[%s8674_s1 + $0x4b8] sm:$0xff]  }
  0x85   :  { %3761 = vmatprep.mubr.bf16.mxu1 %v5070_v15  ;;  %v6400_v15 = vld [vmem:[%s8674_s1 + $0x308] sm:$0xff]  }
  0x8b   :  { %3673 = vmatmul.mubr.bf16.gmra.mxu0 %v5067_v20  ;;  %v195_v20 = vld [vmem:[%s8675_s0 + $0x5a0] sm:$0xff] }
  0x8c   :  { %3762 = vmatmul.mubr.bf16.gmra.mxu1 %v5069_v21  ;;  %3802 = vmatprep.mubr.bf16.mxu0 %v4880_v22  ;;  %v6405_v21 = vld [vmem:[%s8674_s1 + $0x3c0] sm:$0xff]   ;;  %v180_v22 = vld [vmem:[%s8675_s0 + $0x528] sm:$0xff] }
  0x8d   :  { %3891 = vmatprep.mubr.bf16.mxu1 %v4882_v23  ;;  %v196_v23 = vld [vmem:[%s8675_s0 + $0x5a8] sm:$0xff] }
  0x93   :  { %3803 = vmatmul.mubr.bf16.vlgmr.msra.gmra.mxu0 %v4879_v27  ;;  %v5007_v27 = vcombine.low %v147_v3, %v163_v4  ;;  %v6417_v3 = vld [vmem:[%s8674_s1 + $0x4e8] sm:$0xff]  }
  0x94   :  { %3892 = vmatmul.mubr.bf16.vlgmr.msra.gmra.mxu1 %v4881_v29  ;;  %5700 = vmatpush3.bf16.msra.mxu0 %v6376_v30  ;;  %v5009_v29 = vcombine.low %v148_v6, %v164_v7  ;;  %v5040_v30 = vcombine.high %v179_v19, %v195_v20 }
  0x95   :  { %5758 = vmatpush3.bf16.msra.mxu1 %v6378_v31  ;;  %3810 = vmatprep.mubr.bf16.mxu0 %v4912_v32  ;;  %v5042_v31 = vcombine.high %v180_v22, %v196_v23  ;;  %v211_v32 = vld [vmem:[%s8675_s0 + $0x620] sm:$0xff] }
  0x96   :  { %3899 = vmatprep.mubr.bf16.mxu1 %v4914_v34  ;;  %5701 = vmatprep.subr.bf16.mxu0 %v6379_v33  ;;  %v227_v33 = vld [vmem:[%s8675_s0 + $0x6a0] sm:$0xff]  ;;  %v212_v34 = vld [vmem:[%s8675_s0 + $0x628] sm:$0xff] }
  0x97   :  { %5759 = vmatprep.subr.bf16.mxu1 %v6381_v36  ;;  %v5039_v36 = vcombine.low %v179_v19, %v195_v20  ;;  %v6425_v20 = vld [vmem:[%s8674_s1 + $0x4d8] sm:$0xff]  }
  0x98   :  { %5702 = vmatpush3.bf16.msra.mxu0 %v6380_v35  ;;  %v228_v35 = vld [vmem:[%s8675_s0 + $0x6a8] sm:$0xff] }
  0x99   :  { %5760 = vmatpush3.bf16.msra.mxu1 %v6382_v37  ;;  %5703 = vmatprep.subr.bf16.mxu0 %v6383_v38  ;;  %v5041_v37 = vcombine.low %v180_v22, %v196_v23  ;;  %v5072_v38 = vcombine.high %v211_v32, %v227_v33  ;;  %v5074_v39 = vcombine.high %v212_v34, %v228_v35  ;;  %v6424_v23 = vld [vmem:[%s8674_s1 + $0x418] sm:$0xff]  }
  0x9a   :  { %5761 = vmatprep.subr.bf16.mxu1 %v6385_v43  ;;  %v38_v43 = vld [vmem:[%s8675_s0 + $0xb8] sm:$0xff] }
  0x9b   :  { %3811 = vmatmul.mubr.bf16.gmra.mxu0 %v4911_v44  ;;  %v5071_v44 = vcombine.low %v211_v32, %v227_v33  ;;  %v4885_v53 = vcombine.low %v22_v42, %v38_v43  ;;  %v6428_v32 = vld [vmem:[%s8674_s1 + $0x410] sm:$0xff]  }
  0x9c   :  { %3900 = vmatmul.mubr.bf16.gmra.mxu1 %v4913_v45  ;;  %3818 = vmatprep.mubr.bf16.mxu0 %v4944_v46  ;;  %v5073_v45 = vcombine.low %v212_v34, %v228_v35  ;;  %v4884_v46 = vcombine.high %v21_v40, %v37_v41  ;;  %v6430_v33 = vld [vmem:[%s8674_s1 + $0x490] sm:$0xff]   ;;  %v6431_v34 = vld [vmem:[%s8674_s1 + $0x448] sm:$0xff]  }
  0x9d   :  { %3907 = vmatprep.mubr.bf16.mxu1 %v4946_v48  ;;  %5704 = vmatpush3.bf16.msra.mxu0 %v6384_v47  ;;  %v4886_v47 = vcombine.high %v22_v42, %v38_v43  ;;  %v53_v48 = vld [vmem:[%s8675_s0 + $0x130] sm:$0xff]  ;;  %v6435_v42 = vld [vmem:[%s8674_s1 + $0x440] sm:$0xff]  }
  0x9e   :  { %5762 = vmatpush3.bf16.msra.mxu1 %v6386_v49  ;;  %5705 = vmatprep.subr.bf16.mxu0 %v6387_v50  ;;  %v69_v49 = vld [vmem:[%s8675_s0 + $0x1b0] sm:$0xff]  ;;  %v54_v50 = vld [vmem:[%s8675_s0 + $0x138] sm:$0xff] }
  0x9f   :  { %5763 = vmatprep.subr.bf16.mxu1 %v6389_v54  ;;  %v6408_v54 = vld [vmem:[%s8674_s1 + $0x438] sm:$0xff]   ;;  %v4916_v56 = vcombine.high %v53_v48, %v69_v49  ;;  %v4915_v4 = vcombine.low %v53_v48, %v69_v49 }
  0xa0   :  { %v7371_v49 = vld [vmem:[%s8675_s0 + $0x538] sm:$0xff] }
  0xa1   :  { %5706 = vmatpush3.bf16.msra.mxu0 %v6388_v51  ;;  %v4883_v51 = vcombine.low %v21_v40, %v37_v41  ;;  %v6434_v41 = vld [vmem:[%s8674_s1 + $0x488] sm:$0xff]  }
  0xa2   :  { %5764 = vmatpush3.bf16.msra.mxu1 %v6390_v57  ;;  %5707 = vmatprep.subr.bf16.mxu0 %v6391_v58  ;;  %v4918_v57 = vcombine.high %v54_v50, %v70_v52  ;;  %v6411_v58 = vld [vmem:[%s8674_s1 + $0x470] sm:$0xff]  }
  0xa3   :  { %3819 = vmatmul.mubr.bf16.gmra.mxu0 %v4943_v59  ;;  %5765 = vmatprep.subr.bf16.mxu1 %v6393_v60  ;;  %v6412_v59 = vld [vmem:[%s8674_s1 + $0x430] sm:$0xff]  }
  0xa4   :  { %3908 = vmatmul.mubr.bf16.gmra.mxu1 %v4945_v61  ;;  %3826 = vmatprep.mubr.bf16.mxu0 %v4976_v62  ;;  %v6413_v60 = vld [vmem:[%s8674_s1 + $0x4f0] sm:$0xff]   ;;  %v6415_v62 = vld [vmem:[%s8674_s1 + $0x468] sm:$0xff]  }
  0xa5   :  { %3915 = vmatprep.mubr.bf16.mxu1 %v4978_v63  ;;  %5708 = vmatpush3.bf16.msra.mxu0 %v6392_v0  ;;  %v6414_v61 = vld [vmem:[%s8674_s1 + $0x4b0] sm:$0xff]  }
  0xa6   :  { %5766 = vmatpush3.bf16.msra.mxu1 %v6394_v1  ;;  %5709 = vmatprep.subr.bf16.mxu0 %v6395_v2  ;;  %v85_v63 = vld [vmem:[%s8675_s0 + $0x230] sm:$0xff]  ;;  %v86_v1 = vld [vmem:[%s8675_s0 + $0x238] sm:$0xff] }
  0xa7   :  { %5767 = vmatprep.subr.bf16.mxu1 %v6397_v5  ;;  %v101_v0 = vld [vmem:[%s8675_s0 + $0x2b0] sm:$0xff]  ;;  %v102_v2 = vld [vmem:[%s8675_s0 + $0x2b8] sm:$0xff]  ;;  %v4917_v5 = vcombine.low %v54_v50, %v70_v52 }
  0xa8   :  { %v4948_v6 = vcombine.high %v85_v63, %v101_v0  ;;  %v4950_v7 = vcombine.high %v86_v1, %v102_v2  ;;  %v4947_v19 = vcombine.low %v85_v63, %v101_v0  ;;  %v198_v50 = vld [vmem:[%s8675_s0 + $0x5b8] sm:$0xff] }
  0xa9   :  { %5710 = vmatpush3.bf16.msra.mxu0 %v6396_v8  ;;  %v6416_v8 = vld [vmem:[%s8674_s1 + $0x428] sm:$0xff]  }
  0xaa   :  { %5768 = vmatpush3.bf16.msra.mxu1 %v6398_v9  ;;  %5711 = vmatprep.subr.bf16.mxu0 %v6399_v10  ;;  %v6418_v9 = vld [vmem:[%s8674_s1 + $0x4a8] sm:$0xff]   ;;  %v6419_v10 = vld [vmem:[%s8674_s1 + $0x460] sm:$0xff]  }
  0xab   :  { %3827 = vmatmul.mubr.bf16.gmra.mxu0 %v4975_v11  ;;  %5769 = vmatprep.subr.bf16.mxu1 %v6401_v12  ;;  %v6420_v11 = vld [vmem:[%s8674_s1 + $0x420] sm:$0xff]   ;;  %v117_v12 = vld [vmem:[%s8675_s0 + $0x330] sm:$0xff] }
  0xac   :  { %3916 = vmatmul.mubr.bf16.gmra.mxu1 %v4977_v13  ;;  %3834 = vmatprep.mubr.bf16.mxu0 %v5008_v14  ;;  %v133_v13 = vld [vmem:[%s8675_s0 + $0x3b0] sm:$0xff]  ;;  %v6421_v14 = vld [vmem:[%s8674_s1 + $0x4e0] sm:$0xff]  }
  0xad   :  { %3923 = vmatprep.mubr.bf16.mxu1 %v5010_v16  ;;  %5712 = vmatpush3.bf16.msra.mxu0 %v6400_v15  ;;  %v118_v15 = vld [vmem:[%s8675_s0 + $0x338] sm:$0xff]  ;;  %v4980_v22 = vcombine.high %v117_v12, %v133_v13  ;;  %v4979_v35 = vcombine.low %v117_v12, %v133_v13  ;;  %v229_v12 = vld [vmem:[%s8675_s0 + $0x6b0] sm:$0xff] }
  0xae   :  { %5770 = vmatpush3.bf16.msra.mxu1 %v6402_v17  ;;  %5713 = vmatprep.subr.bf16.mxu0 %v6403_v18  ;;  %v134_v16 = vld [vmem:[%s8675_s0 + $0x3b8] sm:$0xff]  ;;  %v6422_v17 = vld [vmem:[%s8674_s1 + $0x4a0] sm:$0xff]  }
  0xaf   :  { %5771 = vmatprep.subr.bf16.mxu1 %v6405_v21  ;;  %v6423_v18 = vld [vmem:[%s8674_s1 + $0x458] sm:$0xff]   ;;  %v4949_v21 = vcombine.low %v86_v1, %v102_v2  ;;  %v5046_v2 = vcombine.high %v7371_v49, %v198_v50 }
  0xb1   :  { %5714 = vmatpush3.bf16.msra.mxu0 %v6404_v24  ;;  %v4982_v24 = vcombine.high %v118_v15, %v134_v16 }
  0xb2   :  { %5772 = vmatpush3.bf16.msra.mxu1 %v6406_v25  ;;  %5815 = vmatprep.subr.bf16.mxu0 %v6407_v26  ;;  %v6426_v25 = vld [vmem:[%s8674_s1 + $0x498] sm:$0xff]   ;;  %v6427_v26 = vld [vmem:[%s8674_s1 + $0x450] sm:$0xff]  }
  0xb3   :  { %3835 = vmatmul.mubr.bf16.gmra.mxu0 %v5007_v27  ;;  %5873 = vmatprep.subr.bf16.mxu1 %v6409_v28  ;;  %v7305_v27 = vld [vmem:[%s8675_s0 + $0x430] sm:$0xff] }
  0xb4   :  { %3924 = vmatmul.mubr.bf16.gmra.mxu1 %v5009_v29  ;;  %3842 = vmatprep.mubr.bf16.mxu0 %v5040_v30  ;;  %v7310_v28 = vld [vmem:[%s8675_s0 + $0x4b0] sm:$0xff]  ;;  %v7318_v30 = vld [vmem:[%s8675_s0 + $0x438] sm:$0xff] }
  0xb5   :  { %3931 = vmatprep.mubr.bf16.mxu1 %v5042_v31  ;;  %v6429_v29 = vld [vmem:[%s8674_s1 + $0x4d0] sm:$0xff]   ;;  %v7323_v31 = vld [vmem:[%s8675_s0 + $0x4b8] sm:$0xff] }
  0xb6   :  { %v5014_v40 = vcombine.high %v7318_v30, %v7323_v31  ;;  %v5013_v63 = vcombine.low %v7318_v30, %v7323_v31 }
  0xbb   :  { %3843 = vmatmul.mubr.bf16.gmra.mxu0 %v5039_v36  ;;  %v6433_v36 = vld [vmem:[%s8674_s1 + $0x4c8] sm:$0xff]  }
  0xbc   :  { %3932 = vmatmul.mubr.bf16.gmra.mxu1 %v5041_v37  ;;  %3850 = vmatprep.mubr.bf16.mxu0 %v5072_v38  ;;  %v4981_v37 = vcombine.low %v118_v15, %v134_v16  ;;  %v5012_v38 = vcombine.high %v7305_v27, %v7310_v28  ;;  %v214_v16 = vld [vmem:[%s8675_s0 + $0x638] sm:$0xff] }
  0xbd   :  { %3939 = vmatprep.mubr.bf16.mxu1 %v5074_v39  ;;  %v6432_v39 = vld [vmem:[%s8674_s1 + $0x408] sm:$0xff]  }
  0xc3   :  { %3851 = vmatmul.mubr.bf16.gmra.mxu0 %v5071_v44  ;;  %v7353_v44 = vld [vmem:[%s8676_s2] ss:$0 sm:$0xff] }
  0xc4   :  { %3940 = vmatmul.mubr.bf16.gmra.mxu1 %v5073_v45  ;;  %3980 = vmatprep.mubr.bf16.mxu0 %v4884_v46  ;;  %v7358_v45 = vld [vmem:[%s8675_s0 + $0x530] sm:$0xff] }
  0xc5   :  { %4069 = vmatprep.mubr.bf16.mxu1 %v4886_v47  ;;  %v7363_v46 = vld [vmem:[%s8675_s0 + $0x5b0] sm:$0xff]  ;;  %v6437_v47 = vld [vmem:[%s8674_s1 + $0x4c0] sm:$0xff]  }
  0xc6   :  { %v5044_v0 = vcombine.high %v7358_v45, %v7363_v46 }
  0xcb   :  { %3981 = vmatmul.mubr.bf16.vlgmr.msra.gmra.mxu0 %v4883_v51  ;;  %v6436_v51 = vld [vmem:[%s8674_s1 + $0x400] sm:$0xff]  }
  0xcc   :  { %4070 = vmatmul.mubr.bf16.vlgmr.msra.gmra.mxu1 %v4885_v53  ;;  %5816 = vmatpush3.bf16.msra.mxu0 %v6408_v54  ;;  %v6438_v53 = vld [vmem:[%s8674_s1 + $0x480] sm:$0xff]  }
  0xcd   :  { %5874 = vmatpush3.bf16.msra.mxu1 %v6410_v55  ;;  %3988 = vmatprep.mubr.bf16.mxu0 %v4916_v56  ;;  %v6439_v56 = vld [vmem:[%s8674_s1 + $0x578] sm:$0xff]  }
  0xce   :  { %4077 = vmatprep.mubr.bf16.mxu1 %v4918_v57  ;;  %5817 = vmatprep.subr.bf16.mxu0 %v6411_v58 }
  0xcf   :  { %5875 = vmatprep.subr.bf16.mxu1 %v6413_v60  ;;  %v6441_v60 = vld [vmem:[%s8674_s1 + $0x5f8] sm:$0xff]  }
  0xd0   :  { %5818 = vmatpush3.bf16.msra.mxu0 %v6412_v59  ;;  %v5011_v59 = vcombine.low %v7305_v27, %v7310_v28 }
  0xd1   :  { %5876 = vmatpush3.bf16.msra.mxu1 %v6414_v61  ;;  %5819 = vmatprep.subr.bf16.mxu0 %v6415_v62 }
  0xd2   :  { %5877 = vmatprep.subr.bf16.mxu1 %v6417_v3 }
  0xd3   :  { %3989 = vmatmul.mubr.bf16.gmra.mxu0 %v4915_v4 }
  0xd4   :  { %4078 = vmatmul.mubr.bf16.gmra.mxu1 %v4917_v5  ;;  %3996 = vmatprep.mubr.bf16.mxu0 %v4948_v6 }
  0xd5   :  { %4085 = vmatprep.mubr.bf16.mxu1 %v4950_v7  ;;  %5820 = vmatpush3.bf16.msra.mxu0 %v6416_v8 }
  0xd6   :  { %5878 = vmatpush3.bf16.msra.mxu1 %v6418_v9  ;;  %5821 = vmatprep.subr.bf16.mxu0 %v6419_v10  ;;  %v213_v10 = vld [vmem:[%s8675_s0 + $0x630] sm:$0xff] }
  0xd7   :  { %5879 = vmatprep.subr.bf16.mxu1 %v6421_v14 }
  0xd9   :  { %5822 = vmatpush3.bf16.msra.mxu0 %v6420_v11 }
  0xda   :  { %5880 = vmatpush3.bf16.msra.mxu1 %v6422_v17  ;;  %5823 = vmatprep.subr.bf16.mxu0 %v6423_v18  ;;  %v230_v17 = vld [vmem:[%s8675_s0 + $0x6b8] sm:$0xff] }
  0xdb   :  { %3997 = vmatmul.mubr.bf16.gmra.mxu0 %v4947_v19  ;;  %5881 = vmatprep.subr.bf16.mxu1 %v6425_v20  ;;  %v5043_v20 = vcombine.low %v7358_v45, %v7363_v46  ;;  %v5075_v45 = vcombine.low %v213_v10, %v229_v12 }
  0xdc   :  { %4086 = vmatmul.mubr.bf16.gmra.mxu1 %v4949_v21  ;;  %4004 = vmatprep.mubr.bf16.mxu0 %v4980_v22 }
  0xdd   :  { %4093 = vmatprep.mubr.bf16.mxu1 %v4982_v24  ;;  %5824 = vmatpush3.bf16.msra.mxu0 %v6424_v23  ;;  %v5045_v23 = vcombine.low %v7371_v49, %v198_v50  ;;  %v5076_v24 = vcombine.high %v213_v10, %v229_v12  ;;  %v6440_v10 = vld [vmem:[%s8674_s1 + $0x538] sm:$0xff]  }
  0xde   :  { %5882 = vmatpush3.bf16.msra.mxu1 %v6426_v25  ;;  %5825 = vmatprep.subr.bf16.mxu0 %v6427_v26  ;;  %v5078_v26 = vcombine.high %v214_v16, %v230_v17 }
  0xdf   :  { %5883 = vmatprep.subr.bf16.mxu1 %v6429_v29 }
  0xe1   :  { %5826 = vmatpush3.bf16.msra.mxu0 %v6428_v32 }
  0xe2   :  { %5884 = vmatpush3.bf16.msra.mxu1 %v6430_v33  ;;  %5827 = vmatprep.subr.bf16.mxu0 %v6431_v34  ;;  %v23_v34 = vld [vmem:[%s8675_s0 + $0x40] sm:$0xff] }
  0xe3   :  { %v5367_v43 = vpop.f32.mrf.mxu0  ;;  %4005 = vmatmul.mubr.bf16.gmra.mxu0 %v4979_v35  ;;  %5885 = vmatprep.subr.bf16.mxu1 %v6433_v36  ;;  %v39_v35 = vld [vmem:[%s8675_s0 + $0xc0] sm:$0xff] }
  0xe4   :  { %v5425_v48 = vpop.f32.mrf.mxu1  ;;  %4094 = vmatmul.mubr.bf16.gmra.mxu1 %v4981_v37  ;;  %4012 = vmatprep.mubr.bf16.mxu0 %v5012_v38  ;;  %v24_v37 = vld [vmem:[%s8675_s0 + $0x48] sm:$0xff]  ;;  %v4888_v49 = vcombine.high %v23_v34, %v39_v35 }
  0xe5   :  { %v5368_v52 = vpop.f32.mrf.mxu0  ;;  %4101 = vmatprep.mubr.bf16.mxu1 %v5014_v40  ;;  %5828 = vmatpush3.bf16.msra.mxu0 %v6432_v39 }
  0xe6   :  { %v5369_v54 = vadd.f32 %v5368_v52, %v5367_v43  ;;  %v5426_v55 = vpop.f32.mrf.mxu1  ;;  %5886 = vmatpush3.bf16.msra.mxu1 %v6434_v41  ;;  %5829 = vmatprep.subr.bf16.mxu0 %v6435_v42  ;;  %v40_v41 = vld [vmem:[%s8675_s0 + $0xc8] sm:$0xff] }
  0xe7   :  { %v5427_v57 = vadd.f32 %v5426_v55, %v5425_v48  ;;  %v5370_v58 = vpop.f32.mrf.mxu0  ;;  %5887 = vmatprep.subr.bf16.mxu1 %v6437_v47  ;;  %v5077_v48 = vcombine.low %v214_v16, %v230_v17 }
  0xe8   :  { %v3449_v61 = vadd.f32 %v5369_v54, %v7353_v44  ;;  %v5428_v62 = vpop.f32.mrf.mxu1 }
  0xe9   :  { %v5371_v1 = vpop.f32.mrf.mxu0  ;;  %5830 = vmatpush3.bf16.msra.mxu0 %v6436_v51  ;;  %v4890_v51 = vcombine.high %v24_v37, %v40_v41 }
  0xea   :  { %v7396_v3 = vadd.f32 %v5427_v57, %v3449_v61  ;;  %v5372_v4 = vadd.f32 %v5371_v1, %v5370_v58  ;;  %v5429_v5 = vpop.f32.mrf.mxu1  ;;  %5888 = vmatpush3.bf16.msra.mxu1 %v6438_v53  ;;  %5931 = vmatprep.subr.bf16.mxu0 %v6439_v56  ;;  %v7446_v61 = vld [vmem:[%s8675_s0 + $0x1c0] sm:$0xff]  ;;  %v7453_v1 = vld [vmem:[%s8675_s0 + $0x148] sm:$0xff] }
  0xeb   :  { %v5430_v6 = vadd.f32 %v5429_v5, %v5428_v62  ;;  %v5373_v7 = vpop.f32.mrf.mxu0  ;;  %4013 = vmatmul.mubr.bf16.gmra.mxu0 %v5011_v59  ;;  %5989 = vmatprep.subr.bf16.mxu1 %v6441_v60  ;;  %v7441_v59 = vld [vmem:[%s8675_s0 + $0x140] sm:$0xff]  ;;  %v4887_v5 = vcombine.low %v23_v34, %v39_v35  ;;  %v7504_v35 = vld [vmem:[%s8675_s0 + $0x248] sm:$0xff] }
  0xec   :  { %v3452_v8 = vadd.f32 %v5372_v4, %v7353_v44  ;;  %v5431_v9 = vpop.f32.mrf.mxu1  ;;  %4102 = vmatmul.mubr.bf16.gmra.mxu1 %v5013_v63  ;;  %4020 = vmatprep.mubr.bf16.mxu0 %v5044_v0 }
  0xed   :  { %v5374_v11 = vpop.f32.mrf.mxu0  ;;  %4109 = vmatprep.mubr.bf16.mxu1 %v5046_v2 }
  0xee   :  { %v7405_v13 = vadd.f32 %v5430_v6, %v3452_v8  ;;  %v5375_v14 = vadd.f32 %v5374_v11, %v5373_v7  ;;  %v5432_v15 = vpop.f32.mrf.mxu1  ;;  %v7458_v6 = vld [vmem:[%s8675_s0 + $0x1c8] sm:$0xff]  ;;  %v6442_v11 = vld [vmem:[%s8674_s1 + $0x5b8] sm:$0xff]  }
  0xef   :  { %v5433_v18 = vadd.f32 %v5432_v15, %v5431_v9  ;;  %v5376_v19 = vpop.f32.mrf.mxu0  ;;  %v4889_v9 = vcombine.low %v24_v37, %v40_v41  ;;  %v6443_v15 = vld [vmem:[%s8674_s1 + $0x570] sm:$0xff]   ;;  %v6449_v37 = vld [vmem:[%s8674_s1 + $0x5e8] sm:$0xff]   ;;  %v4919_v41 = vcombine.low %v7441_v59, %v7446_v61 }
  0xf0   :  { %v3457_v21 = vadd.f32 %v5375_v14, %v7353_v44  ;;  %v5434_v22 = vpop.f32.mrf.mxu1  ;;  %v4920_v14 = vcombine.high %v7441_v59, %v7446_v61  ;;  %v6453_v59 = vld [vmem:[%s8674_s1 + $0x5e0] sm:$0xff]  }
  0xf1   :  { %v5377_v25 = vpop.f32.mrf.mxu0 }
  0xf2   :  { %v7417_v27 = vadd.f32 %v5433_v18, %v3457_v21  ;;  %v5378_v28 = vadd.f32 %v5377_v25, %v5376_v19  ;;  %v5435_v29 = vpop.f32.mrf.mxu1  ;;  %v4922_v19 = vcombine.high %v7453_v1, %v7458_v6  ;;  %v6445_v21 = vld [vmem:[%s8674_s1 + $0x5f0] sm:$0xff]   ;;  %v6447_v25 = vld [vmem:[%s8674_s1 + $0x568] sm:$0xff]  }
  0xf3   :  { %v5436_v30 = vadd.f32 %v5435_v29, %v5434_v22  ;;  %v5379_v31 = vpop.f32.mrf.mxu0  ;;  %4021 = vmatmul.mubr.bf16.gmra.mxu0 %v5043_v20  ;;  %v6444_v20 = vld [vmem:[%s8674_s1 + $0x530] sm:$0xff]   ;;  %v7492_v29 = vld [vmem:[%s8675_s0 + $0x240] sm:$0xff] }
  0xf4   :  { %v3460_v32 = vadd.f32 %v5378_v28, %v7353_v44  ;;  %v5437_v33 = vpop.f32.mrf.mxu1  ;;  %4110 = vmatmul.mubr.bf16.gmra.mxu1 %v5045_v23  ;;  %4028 = vmatprep.mubr.bf16.mxu0 %v5076_v24  ;;  %v6446_v24 = vld [vmem:[%s8674_s1 + $0x5b0] sm:$0xff]  }
  0xf5   :  { %v5380_v36 = vpop.f32.mrf.mxu0  ;;  %4117 = vmatprep.mubr.bf16.mxu1 %v5078_v26 }
  0xf6   :  { %v7429_v38 = vadd.f32 %v5436_v30, %v3460_v32  ;;  %v5381_v39 = vadd.f32 %v5380_v36, %v5379_v31  ;;  %v5438_v40 = vpop.f32.mrf.mxu1  ;;  %v7497_v31 = vld [vmem:[%s8675_s0 + $0x2c0] sm:$0xff]  ;;  %v7509_v36 = vld [vmem:[%s8675_s0 + $0x2c8] sm:$0xff] }
  0xf7   :  { %v5439_v42 = vadd.f32 %v5438_v40, %v5437_v33  ;;  %v5382_v43 = vpop.f32.mrf.mxu0 }
  0xf8   :  { %v3465_v46 = vadd.f32 %v5381_v39, %v7353_v44  ;;  %v5440_v47 = vpop.f32.mrf.mxu1 }
  0xf9   :  { %v5383_v50 = vpop.f32.mrf.mxu0 }
  0xfa   :  { %v7435_v52 = vadd.f32 %v5439_v42, %v3465_v46  ;;  %v5384_v53 = vadd.f32 %v5383_v50, %v5382_v43  ;;  %v5441_v54 = vpop.f32.mrf.mxu1  ;;  %v4952_v46 = vcombine.high %v7492_v29, %v7497_v31  ;;  %v6450_v50 = vld [vmem:[%s8674_s1 + $0x5a8] sm:$0xff]  }
  0xfb   :  { %v5442_v55 = vadd.f32 %v5441_v54, %v5440_v47  ;;  %v5385_v56 = vpop.f32.mrf.mxu0  ;;  %4029 = vmatmul.mubr.bf16.gmra.mxu0 %v5075_v45  ;;  %v4921_v45 = vcombine.low %v7453_v1, %v7458_v6  ;;  %v6448_v47 = vld [vmem:[%s8674_s1 + $0x528] sm:$0xff]  }
  0xfc   :  { %v3468_v57 = vadd.f32 %v5384_v53, %v7353_v44  ;;  %v5443_v58 = vpop.f32.mrf.mxu1  ;;  %4118 = vmatmul.mubr.bf16.gmra.mxu1 %v5077_v48  ;;  %4158 = vmatprep.mubr.bf16.mxu0 %v4888_v49  ;;  %v4954_v49 = vcombine.high %v7504_v35, %v7509_v36 }
  0xfd   :  { %v5386_v60 = vpop.f32.mrf.mxu0  ;;  %4247 = vmatprep.mubr.bf16.mxu1 %v4890_v51 }
  0xfe   :  { %v7448_v62 = vadd.f32 %v5442_v55, %v3468_v57  ;;  %v5387_v63 = vadd.f32 %v5386_v60, %v5385_v56  ;;  %v5444_v0 = vpop.f32.mrf.mxu1  ;;  %v6451_v55 = vld [vmem:[%s8674_s1 + $0x560] sm:$0xff]  }
  0xff   :  { %v5445_v2 = vadd.f32 %v5444_v0, %v5443_v58  ;;  %v5388_v4 = vpop.f32.mrf.mxu0  ;;  %v6452_v58 = vld [vmem:[%s8674_s1 + $0x520] sm:$0xff]  }
 0x100   :  { %v3473_v7 = vadd.f32 %v5387_v63, %v7353_v44  ;;  %v5446_v8 = vpop.f32.mrf.mxu1  ;;  %v7544_v63 = vld [vmem:[%s8675_s0 + $0x340] sm:$0xff] }
 0x101   :  { %v5389_v12 = vpop.f32.mrf.mxu0  ;;  %v7549_v0 = vld [vmem:[%s8675_s0 + $0x3c0] sm:$0xff] }
 0x102   :  { %v7472_v16 = vadd.f32 %v5445_v2, %v3473_v7  ;;  %v5390_v17 = vadd.f32 %v5389_v12, %v5388_v4  ;;  %v5447_v18 = vpop.f32.mrf.mxu1  ;;  %v7554_v2 = vld [vmem:[%s8675_s0 + $0x348] sm:$0xff]  ;;  %v4951_v12 = vcombine.low %v7492_v29, %v7497_v31  ;;  %v7595_v31 = vld [vmem:[%s8675_s0 + $0x440] sm:$0xff] }
 0x103   :  { %v5448_v22 = vadd.f32 %v5447_v18, %v5446_v8  ;;  %v5391_v23 = vpop.f32.mrf.mxu0  ;;  %4159 = vmatmul.mubr.bf16.vlgmr.msra.gmra.mxu0 %v4887_v5  ;;  %v7559_v4 = vld [vmem:[%s8675_s0 + $0x3c8] sm:$0xff]  ;;  %v6454_v5 = vld [vmem:[%s8674_s1 + $0x5a0] sm:$0xff]   ;;  %v4953_v18 = vcombine.low %v7504_v35, %v7509_v36 }
 0x104   :  { %v3476_v26 = vadd.f32 %v5390_v17, %v7353_v44  ;;  %v5449_v28 = vpop.f32.mrf.mxu1  ;;  %4248 = vmatmul.mubr.bf16.vlgmr.msra.gmra.mxu1 %v4889_v9  ;;  %5932 = vmatpush3.bf16.msra.mxu0 %v6440_v10  ;;  %v6455_v9 = vld [vmem:[%s8674_s1 + $0x558] sm:$0xff]  }
 0x105   :  { %v5392_v30 = vpop.f32.mrf.mxu0  ;;  %5990 = vmatpush3.bf16.msra.mxu1 %v6442_v11  ;;  %4166 = vmatprep.mubr.bf16.mxu0 %v4920_v14  ;;  %v6457_v14 = vld [vmem:[%s8674_s1 + $0x5d8] sm:$0xff]  }
 0x106   :  { %v7499_v32 = vadd.f32 %v5448_v22, %v3476_v26  ;;  %v5393_v33 = vadd.f32 %v5392_v30, %v5391_v23  ;;  %v5450_v34 = vpop.f32.mrf.mxu1  ;;  %4255 = vmatprep.mubr.bf16.mxu1 %v4922_v19  ;;  %5933 = vmatprep.subr.bf16.mxu0 %v6443_v15  ;;  %v4984_v19 = vcombine.high %v7544_v63, %v7549_v0  ;;  %v6456_v22 = vld [vmem:[%s8674_s1 + $0x518] sm:$0xff]  }
 0x107   :  { %v5451_v39 = vadd.f32 %v5450_v34, %v5449_v28  ;;  %v5394_v40 = vpop.f32.mrf.mxu0  ;;  %5991 = vmatprep.subr.bf16.mxu1 %v6445_v21  ;;  %v4986_v21 = vcombine.high %v7554_v2, %v7559_v4  ;;  %v6458_v26 = vld [vmem:[%s8674_s1 + $0x598] sm:$0xff]   ;;  %v6459_v28 = vld [vmem:[%s8674_s1 + $0x550] sm:$0xff]  }
 0x108   :  { %v3481_v42 = vadd.f32 %v5393_v33, %v7353_v44  ;;  %v5452_v43 = vpop.f32.mrf.mxu1  ;;  %5934 = vmatpush3.bf16.msra.mxu0 %v6444_v20  ;;  %v7600_v33 = vld [vmem:[%s8675_s0 + $0x4c0] sm:$0xff]  ;;  %v6461_v34 = vld [vmem:[%s8674_s1 + $0x5d0] sm:$0xff]  }
 0x109   :  { %v5395_v48 = vpop.f32.mrf.mxu0  ;;  %5992 = vmatpush3.bf16.msra.mxu1 %v6446_v24  ;;  %5935 = vmatprep.subr.bf16.mxu0 %v6447_v25 }
 0x10a   :  { %v7529_v51 = vadd.f32 %v5451_v39, %v3481_v42  ;;  %v5396_v53 = vadd.f32 %v5395_v48, %v5394_v40  ;;  %v5453_v54 = vpop.f32.mrf.mxu1  ;;  %5993 = vmatprep.subr.bf16.mxu1 %v6449_v37  ;;  %v7609_v37 = vld [vmem:[%s8675_s0 + $0x448] sm:$0xff]  ;;  %v6460_v40 = vld [vmem:[%s8674_s1 + $0x510] sm:$0xff]  }
 0x10b   :  { %v5454_v56 = vadd.f32 %v5453_v54, %v5452_v43  ;;  %v5397_v57 = vpop.f32.mrf.mxu0  ;;  %4167 = vmatmul.mubr.bf16.gmra.mxu0 %v4919_v41  ;;  %v7614_v39 = vld [vmem:[%s8675_s0 + $0x4c8] sm:$0xff]  ;;  %v6462_v42 = vld [vmem:[%s8674_s1 + $0x590] sm:$0xff]  }
 0x10c   :  { %v3484_v60 = vadd.f32 %v5396_v53, %v7353_v44  ;;  %v5455_v61 = vpop.f32.mrf.mxu1  ;;  %4256 = vmatmul.mubr.bf16.gmra.mxu1 %v4921_v45  ;;  %4174 = vmatprep.mubr.bf16.mxu0 %v4952_v46  ;;  %v6465_v53 = vld [vmem:[%s8674_s1 + $0x5c8] sm:$0xff]  }
 0x10d   :  { %v5398_v1 = vpop.f32.mrf.mxu0  ;;  %4263 = vmatprep.mubr.bf16.mxu1 %v4954_v49  ;;  %5936 = vmatpush3.bf16.msra.mxu0 %v6448_v47  ;;  %v6463_v47 = vld [vmem:[%s8674_s1 + $0x548] sm:$0xff]  }
 0x10e   :  { %v7564_v6 = vadd.f32 %v5454_v56, %v3484_v60  ;;  %v5399_v7 = vadd.f32 %v5398_v1, %v5397_v57  ;;  %v5456_v8 = vpop.f32.mrf.mxu1  ;;  %5994 = vmatpush3.bf16.msra.mxu1 %v6450_v50  ;;  %5937 = vmatprep.subr.bf16.mxu0 %v6451_v55  ;;  %v4983_v50 = vcombine.low %v7544_v63, %v7549_v0 }
 0x10f   :  { %v5457_v10 = vadd.f32 %v5456_v8, %v5455_v61  ;;  %v5400_v11 = vpop.f32.mrf.mxu0  ;;  %5995 = vmatprep.subr.bf16.mxu1 %v6453_v59  ;;  %v4985_v56 = vcombine.low %v7554_v2, %v7559_v4  ;;  %v5016_v57 = vcombine.high %v7595_v31, %v7600_v33  ;;  %v5018_v60 = vcombine.high %v7609_v37, %v7614_v39  ;;  %v6466_v61 = vld [vmem:[%s8674_s1 + $0x588] sm:$0xff]   ;;  %v6467_v2 = vld [vmem:[%s8674_s1 + $0x540] sm:$0xff]  }
 0x110   :  { %v3489_v15 = vadd.f32 %v5399_v7, %v7353_v44  ;;  %v5458_v17 = vpop.f32.mrf.mxu1  ;;  %v7653_v7 = vld [vmem:[%s8675_s0 + $0x540] sm:$0xff] }
 0x111   :  { %v5401_v20 = vpop.f32.mrf.mxu0  ;;  %5938 = vmatpush3.bf16.msra.mxu0 %v6452_v58  ;;  %v6464_v58 = vld [vmem:[%s8674_s1 + $0x508] sm:$0xff]   ;;  %v6469_v8 = vld [vmem:[%s8674_s1 + $0x5c0] sm:$0xff]  }
 0x112   :  { %v7584_v23 = vadd.f32 %v5457_v10, %v3489_v15  ;;  %v5402_v24 = vadd.f32 %v5401_v20, %v5400_v11  ;;  %v5459_v25 = vpop.f32.mrf.mxu1  ;;  %5996 = vmatpush3.bf16.msra.mxu1 %v6454_v5  ;;  %5939 = vmatprep.subr.bf16.mxu0 %v6455_v9  ;;  %v199_v11 = vld [vmem:[%s8675_s0 + $0x5c0] sm:$0xff]  ;;  %v200_v15 = vld [vmem:[%s8675_s0 + $0x5c8] sm:$0xff] }
 0x113   :  { %v5460_v29 = vadd.f32 %v5459_v25, %v5458_v17  ;;  %v5403_v30 = vpop.f32.mrf.mxu0  ;;  %4175 = vmatmul.mubr.bf16.gmra.mxu0 %v4951_v12  ;;  %5997 = vmatprep.subr.bf16.mxu1 %v6457_v14  ;;  %v7665_v12 = vld [vmem:[%s8675_s0 + $0x548] sm:$0xff]  ;;  %v6470_v17 = vld [vmem:[%s8674_s1 + $0x580] sm:$0xff]   ;;  %v5015_v25 = vcombine.low %v7595_v31, %v7600_v33 }
 0x114   :  { %v3492_v35 = vadd.f32 %v5402_v24, %v7353_v44  ;;  %v5461_v36 = vpop.f32.mrf.mxu1  ;;  %4264 = vmatmul.mubr.bf16.gmra.mxu1 %v4953_v18  ;;  %4182 = vmatprep.mubr.bf16.mxu0 %v4984_v19 }
 0x115   :  { %v5404_v41 = vpop.f32.mrf.mxu0  ;;  %4271 = vmatprep.mubr.bf16.mxu1 %v4986_v21  ;;  %5940 = vmatpush3.bf16.msra.mxu0 %v6456_v22  ;;  %v6471_v21 = vld [vmem:[%s8674_s1 + $0x678] sm:$0xff]  }
 0x116   :  { %v7622_v43 = vadd.f32 %v5460_v29, %v3492_v35  ;;  %v5405_v45 = vadd.f32 %v5404_v41, %v5403_v30  ;;  %v5462_v46 = vpop.f32.mrf.mxu1  ;;  %5998 = vmatpush3.bf16.msra.mxu1 %v6458_v26  ;;  %5941 = vmatprep.subr.bf16.mxu0 %v6459_v28  ;;  %v6473_v26 = vld [vmem:[%s8674_s1 + $0x6f8] sm:$0xff]   ;;  %v5017_v30 = vcombine.low %v7609_v37, %v7614_v39 }
 0x117   :  { %v5463_v48 = vadd.f32 %v5462_v46, %v5461_v36  ;;  %v5406_v49 = vpop.f32.mrf.mxu0  ;;  %5999 = vmatprep.subr.bf16.mxu1 %v6461_v34  ;;  %v5048_v34 = vcombine.high %v7653_v7, %v199_v11  ;;  %v5050_v36 = vcombine.high %v7665_v12, %v200_v15 }
 0x118   :  { %v3497_v54 = vadd.f32 %v5405_v45, %v7353_v44  ;;  %v5464_v55 = vpop.f32.mrf.mxu1  ;;  %v231_v45 = vld [vmem:[%s8675_s0 + $0x6c0] sm:$0xff] }
 0x119   :  { %v5407_v59 = vpop.f32.mrf.mxu0  ;;  %5942 = vmatpush3.bf16.msra.mxu0 %v6460_v40 }
 0x11a   :  { %v7645_v63 = vadd.f32 %v5463_v48, %v3497_v54  ;;  %v5408_v0 = vadd.f32 %v5407_v59, %v5406_v49  ;;  %v5465_v1 = vpop.f32.mrf.mxu1  ;;  %6000 = vmatpush3.bf16.msra.mxu1 %v6462_v42  ;;  %5943 = vmatprep.subr.bf16.mxu0 %v6463_v47  ;;  %v216_v47 = vld [vmem:[%s8675_s0 + $0x648] sm:$0xff] }
 0x11b   :  { %v5466_v4 = vadd.f32 %v5465_v1, %v5464_v55  ;;  %v5483_v5 = vpop.f32.mrf.mxu0  ;;  %4183 = vmatmul.mubr.bf16.gmra.mxu0 %v4983_v50  ;;  %6001 = vmatprep.subr.bf16.mxu1 %v6465_v53  ;;  %v5047_v55 = vcombine.low %v7653_v7, %v199_v11  ;;  %v26_v11 = vld [vmem:[%s8675_s0 + $0x58] sm:$0xff] }
 0x11c   :  { %v3500_v9 = vadd.f32 %v5408_v0, %v7353_v44  ;;  %v5541_v10 = vpop.f32.mrf.mxu1  ;;  %4272 = vmatmul.mubr.bf16.gmra.mxu1 %v4985_v56  ;;  %4190 = vmatprep.mubr.bf16.mxu0 %v5016_v57  ;;  %v6468_v44 = vld [vmem:[%s8674_s1 + $0x500] sm:$0xff]  }
 0x11d   :  { %v5484_v14 = vpop.f32.mrf.mxu0  ;;  %4279 = vmatprep.mubr.bf16.mxu1 %v5018_v60  ;;  %5944 = vmatpush3.bf16.msra.mxu0 %v6464_v58  ;;  %v5049_v58 = vcombine.low %v7665_v12, %v200_v15 }
 0x11e   :  { %v7676_v18 = vadd.f32 %v5466_v4, %v3500_v9  ;;  %v5485_v19 = vadd.f32 %v5484_v14, %v5483_v5  ;;  %v5542_v20 = vpop.f32.mrf.mxu1  ;;  %6002 = vmatpush3.bf16.msra.mxu1 %v6466_v61  ;;  %5945 = vmatprep.subr.bf16.mxu0 %v6467_v2  ;;  %v41_v9 = vld [vmem:[%s8675_s0 + $0xd0] sm:$0xff] }
 0x11f   :  { %v5543_v22 = vadd.f32 %v5542_v20, %v5541_v10  ;;  %v5486_v24 = vpop.f32.mrf.mxu0  ;;  %6003 = vmatprep.subr.bf16.mxu1 %v6469_v8  ;;  %v25_v8 = vld [vmem:[%s8675_s0 + $0x50] sm:$0xff] }
 0x120   :  { %v3627_v28 = vadd.f32 %v5485_v19, %v7396_v3  ;;  %v5544_v29 = vpop.f32.mrf.mxu1  ;;  %v215_v3 = vld [vmem:[%s8675_s0 + $0x640] sm:$0xff] }
 0x121   :  { %v5487_v35 = vpop.f32.mrf.mxu0  ;;  %5946 = vmatpush3.bf16.msra.mxu0 %v6468_v44  ;;  %v5080_v59 = vcombine.high %v215_v3, %v231_v45  ;;  %v5079_v19 = vcombine.low %v215_v3, %v231_v45  ;;  %v6472_v3 = vld [vmem:[%s8674_s1 + $0x638] sm:$0xff]  }
 0x122   :  { %v7691_v40 = vadd.f32 %v5543_v22, %v3627_v28  ;;  %v5488_v31 = vadd.f32 %v5487_v35, %v5486_v24  ;;  %v5545_v33 = vpop.f32.mrf.mxu1  ;;  %6004 = vmatpush3.bf16.msra.mxu1 %v6470_v17  ;;  %6047 = vmatprep.subr.bf16.mxu0 %v6471_v21  ;;  %v4892_v24 = vcombine.high %v25_v8, %v41_v9 }
 0x123   :  { %v5546_v41 = vadd.f32 %v5545_v33, %v5544_v29  ;;  %v5489_v42 = vpop.f32.mrf.mxu0  ;;  %4191 = vmatmul.mubr.bf16.gmra.mxu0 %v5015_v25  ;;  %6105 = vmatprep.subr.bf16.mxu1 %v6473_v26 }
 0x124   :  { %v3630_v37 = vadd.f32 %v5488_v31, %v7405_v13  ;;  %v5547_v39 = vpop.f32.mrf.mxu1  ;;  %4280 = vmatmul.mubr.bf16.gmra.mxu1 %v5017_v30  ;;  %4198 = vmatprep.mubr.bf16.mxu0 %v5048_v34  ;;  %v232_v13 = vld [vmem:[%s8675_s0 + $0x6c8] sm:$0xff] }
 0x125   :  { %v5490_v46 = vpop.f32.mrf.mxu0  ;;  %4287 = vmatprep.mubr.bf16.mxu1 %v5050_v36  ;;  %v5082_v61 = vcombine.high %v216_v47, %v232_v13  ;;  %v5081_v22 = vcombine.low %v216_v47, %v232_v13  ;;  %v4891_v47 = vcombine.low %v25_v8, %v41_v9  ;;  %v6479_v8 = vld [vmem:[%s8674_s1 + $0x668] sm:$0xff]  }
 0x126   :  { %v7703_v48 = vadd.f32 %v5546_v41, %v3630_v37  ;;  %v5491_v49 = vadd.f32 %v5490_v46, %v5489_v42  ;;  %v5548_v50 = vpop.f32.mrf.mxu1  ;;  %v7740_v37 = vld [vmem:[%s8675_s0 + $0x150] sm:$0xff] }
 0x127   :  { %v5549_v53 = vadd.f32 %v5548_v50, %v5547_v39  ;;  %v5492_v54 = vpop.f32.mrf.mxu0  ;;  %v7750_v39 = vld [vmem:[%s8675_s0 + $0x158] sm:$0xff] }
 0x128   :  { %v3635_v56 = vadd.f32 %v5491_v49, %v7417_v27  ;;  %v5550_v57 = vpop.f32.mrf.mxu1  ;;  %v74_v49 = vld [vmem:[%s8675_s0 + $0x1d8] sm:$0xff] }
 0x129   :  { %v5493_v60 = vpop.f32.mrf.mxu0 }
 0x12a   :  { %v7711_v0 = vadd.f32 %v5549_v53, %v3635_v56  ;;  %v5494_v1 = vadd.f32 %v5493_v60, %v5492_v54  ;;  %v5551_v2 = vpop.f32.mrf.mxu1  ;;  %v6474_v54 = vld [vmem:[%s8674_s1 + $0x6b8] sm:$0xff]  }
 0x12b   :  { %v5552_v4 = vadd.f32 %v5551_v2, %v5550_v57  ;;  %v5495_v5 = vpop.f32.mrf.mxu0  ;;  %4199 = vmatmul.mubr.bf16.gmra.mxu0 %v5047_v55  ;;  %v6475_v57 = vld [vmem:[%s8674_s1 + $0x670] sm:$0xff]  }
 0x12c   :  { %v3638_v7 = vadd.f32 %v5494_v1, %v7429_v38  ;;  %v5553_v27 = vpop.f32.mrf.mxu1  ;;  %4288 = vmatmul.mubr.bf16.gmra.mxu1 %v5049_v58  ;;  %4206 = vmatprep.mubr.bf16.mxu0 %v5080_v59  ;;  %v42_v38 = vld [vmem:[%s8675_s0 + $0xd8] sm:$0xff]  ;;  %v6477_v1 = vld [vmem:[%s8674_s1 + $0x6f0] sm:$0xff]  }
 0x12d   :  { %v5496_v10 = vpop.f32.mrf.mxu0  ;;  %4295 = vmatprep.mubr.bf16.mxu1 %v5082_v61  ;;  %v4894_v26 = vcombine.high %v26_v11, %v42_v38  ;;  %v4893_v53 = vcombine.low %v26_v11, %v42_v38  ;;  %v6476_v61 = vld [vmem:[%s8674_s1 + $0x630] sm:$0xff]   ;;  %v7793_v11 = vld [vmem:[%s8675_s0 + $0x258] sm:$0xff] }
 0x12e   :  { %v7723_v12 = vadd.f32 %v5552_v4, %v3638_v7  ;;  %v5497_v14 = vadd.f32 %v5496_v10, %v5495_v5  ;;  %v5554_v15 = vpop.f32.mrf.mxu1  ;;  %v6478_v5 = vld [vmem:[%s8674_s1 + $0x6b0] sm:$0xff]  }
 0x12f   :  { %v5555_v44 = vadd.f32 %v5554_v15, %v5553_v27  ;;  %v5498_v17 = vpop.f32.mrf.mxu0  ;;  %v7782_v7 = vld [vmem:[%s8675_s0 + $0x250] sm:$0xff] }
 0x130   :  { %v3643_v20 = vadd.f32 %v5497_v14, %v7435_v52  ;;  %v5556_v21 = vpop.f32.mrf.mxu1  ;;  %v7788_v10 = vld [vmem:[%s8675_s0 + $0x2d0] sm:$0xff] }
 0x131   :  { %v5499_v25 = vpop.f32.mrf.mxu0 }
 0x132   :  { %v7729_v28 = vadd.f32 %v5555_v44, %v3643_v20  ;;  %v5500_v29 = vadd.f32 %v5499_v25, %v5498_v17  ;;  %v5557_v30 = vpop.f32.mrf.mxu1  ;;  %v6481_v17 = vld [vmem:[%s8674_s1 + $0x6e8] sm:$0xff]   ;;  %v4925_v25 = vcombine.low %v7750_v39, %v74_v49 }
 0x133   :  { %v5558_v34 = vadd.f32 %v5557_v30, %v5556_v21  ;;  %v5501_v35 = vpop.f32.mrf.mxu0  ;;  %4207 = vmatmul.mubr.bf16.gmra.mxu0 %v5079_v19 }
 0x134   :  { %v3646_v36 = vadd.f32 %v5500_v29, %v7448_v62  ;;  %v5559_v31 = vpop.f32.mrf.mxu1  ;;  %4296 = vmatmul.mubr.bf16.gmra.mxu1 %v5081_v22  ;;  %4336 = vmatprep.mubr.bf16.mxu0 %v4892_v24  ;;  %v7745_v62 = vld [vmem:[%s8675_s0 + $0x1d0] sm:$0xff] }
 0x135   :  { %v5502_v33 = vpop.f32.mrf.mxu0  ;;  %4425 = vmatprep.mubr.bf16.mxu1 %v4894_v26  ;;  %v4924_v56 = vcombine.high %v7740_v37, %v7745_v62  ;;  %v4923_v21 = vcombine.low %v7740_v37, %v7745_v62  ;;  %v4956_v26 = vcombine.high %v7782_v7, %v7788_v10 }
 0x136   :  { %v7732_v52 = vadd.f32 %v5558_v34, %v3646_v36  ;;  %v5503_v41 = vadd.f32 %v5502_v33, %v5501_v35  ;;  %v5560_v42 = vpop.f32.mrf.mxu1  ;;  %v6480_v34 = vld [vmem:[%s8674_s1 + $0x628] sm:$0xff]   ;;  %v6483_v33 = vld [vmem:[%s8674_s1 + $0x660] sm:$0xff]  }
 0x137   :  { %v5561_v45 = vadd.f32 %v5560_v42, %v5559_v31  ;;  %v5504_v46 = vpop.f32.mrf.mxu0  ;;  %v6482_v31 = vld [vmem:[%s8674_s1 + $0x6a8] sm:$0xff]  }
 0x138   :  { %v3651_v50 = vadd.f32 %v5503_v41, %v7472_v16  ;;  %v5562_v13 = vpop.f32.mrf.mxu1  ;;  %v4926_v16 = vcombine.high %v7750_v39, %v74_v49  ;;  %v6484_v39 = vld [vmem:[%s8674_s1 + $0x620] sm:$0xff]  }
 0x139   :  { %v5505_v55 = vpop.f32.mrf.mxu0 }
 0x13a   :  { %v7764_v58 = vadd.f32 %v5561_v45, %v3651_v50  ;;  %v5506_v59 = vadd.f32 %v5505_v55, %v5504_v46  ;;  %v5563_v60 = vpop.f32.mrf.mxu1  ;;  %v7834_v46 = vld [vmem:[%s8675_s0 + $0x350] sm:$0xff]  ;;  %v6487_v55 = vld [vmem:[%s8674_s1 + $0x658] sm:$0xff]  }
 0x13b   :  { %v5564_v2 = vadd.f32 %v5563_v60, %v5562_v13  ;;  %v5507_v4 = vpop.f32.mrf.mxu0  ;;  %4337 = vmatmul.mubr.bf16.vlgmr.msra.gmra.mxu0 %v4891_v47  ;;  %v7839_v47 = vld [vmem:[%s8675_s0 + $0x3d0] sm:$0xff]  ;;  %v6489_v60 = vld [vmem:[%s8674_s1 + $0x6d8] sm:$0xff]  }
 0x13c   :  { %v3654_v27 = vadd.f32 %v5506_v59, %v7499_v32  ;;  %v5565_v9 = vpop.f32.mrf.mxu1  ;;  %4426 = vmatmul.mubr.bf16.vlgmr.msra.gmra.mxu1 %v4893_v53  ;;  %6048 = vmatpush3.bf16.msra.mxu0 %v6472_v3  ;;  %v7798_v32 = vld [vmem:[%s8675_s0 + $0x2d8] sm:$0xff]  ;;  %v6485_v3 = vld [vmem:[%s8674_s1 + $0x6e0] sm:$0xff]   ;;  %v4955_v59 = vcombine.low %v7782_v7, %v7788_v10  ;;  %v6491_v10 = vld [vmem:[%s8674_s1 + $0x650] sm:$0xff]  }
 0x13d   :  { %v5508_v14 = vpop.f32.mrf.mxu0  ;;  %6106 = vmatpush3.bf16.msra.mxu1 %v6474_v54  ;;  %4344 = vmatprep.mubr.bf16.mxu0 %v4924_v56  ;;  %v4958_v30 = vcombine.high %v7793_v11, %v7798_v32  ;;  %v7851_v53 = vld [vmem:[%s8675_s0 + $0x3d8] sm:$0xff]  ;;  %v6486_v54 = vld [vmem:[%s8674_s1 + $0x6a0] sm:$0xff]  }
 0x13e   :  { %v7800_v15 = vadd.f32 %v5564_v2, %v3654_v27  ;;  %v5509_v38 = vadd.f32 %v5508_v14, %v5507_v4  ;;  %v5566_v44 = vpop.f32.mrf.mxu1  ;;  %4433 = vmatprep.mubr.bf16.mxu1 %v4926_v16  ;;  %6049 = vmatprep.subr.bf16.mxu0 %v6475_v57  ;;  %v4988_v2 = vcombine.high %v7834_v46, %v7839_v47 }
 0x13f   :  { %v5567_v19 = vadd.f32 %v5566_v44, %v5565_v9  ;;  %v5510_v20 = vpop.f32.mrf.mxu0  ;;  %6107 = vmatprep.subr.bf16.mxu1 %v6477_v1  ;;  %v4957_v1 = vcombine.low %v7793_v11, %v7798_v32  ;;  %v6490_v9 = vld [vmem:[%s8674_s1 + $0x698] sm:$0xff]   ;;  %v6493_v32 = vld [vmem:[%s8674_s1 + $0x6d0] sm:$0xff]  }
 0x140   :  { %v3659_v22 = vadd.f32 %v5509_v38, %v7529_v51  ;;  %v5568_v24 = vpop.f32.mrf.mxu1  ;;  %6050 = vmatpush3.bf16.msra.mxu0 %v6476_v61 }
 0x141   :  { %v5511_v29 = vpop.f32.mrf.mxu0  ;;  %6108 = vmatpush3.bf16.msra.mxu1 %v6478_v5  ;;  %6051 = vmatprep.subr.bf16.mxu0 %v6479_v8  ;;  %v6488_v8 = vld [vmem:[%s8674_s1 + $0x618] sm:$0xff]  }
 0x142   :  { %v7816_v35 = vadd.f32 %v5567_v19, %v3659_v22  ;;  %v5512_v51 = vadd.f32 %v5511_v29, %v5510_v20  ;;  %v5569_v36 = vpop.f32.mrf.mxu1  ;;  %6109 = vmatprep.subr.bf16.mxu1 %v6481_v17  ;;  %v7889_v17 = vld [vmem:[%s8675_s0 + $0x450] sm:$0xff] }
 0x143   :  { %v5570_v41 = vadd.f32 %v5569_v36, %v5568_v24  ;;  %v5513_v42 = vpop.f32.mrf.mxu0  ;;  %4345 = vmatmul.mubr.bf16.gmra.mxu0 %v4923_v21  ;;  %v7894_v20 = vld [vmem:[%s8675_s0 + $0x4d0] sm:$0xff]  ;;  %v4987_v36 = vcombine.low %v7834_v46, %v7839_v47  ;;  %v6498_v47 = vld [vmem:[%s8674_s1 + $0x688] sm:$0xff]  }
 0x144   :  { %v3662_v37 = vadd.f32 %v5512_v51, %v7564_v6  ;;  %v5571_v62 = vpop.f32.mrf.mxu1  ;;  %4434 = vmatmul.mubr.bf16.gmra.mxu1 %v4925_v25  ;;  %4352 = vmatprep.mubr.bf16.mxu0 %v4956_v26  ;;  %v7844_v6 = vld [vmem:[%s8675_s0 + $0x358] sm:$0xff]  ;;  %v6492_v21 = vld [vmem:[%s8674_s1 + $0x610] sm:$0xff]  }
 0x145   :  { %v5514_v45 = vpop.f32.mrf.mxu0  ;;  %4441 = vmatprep.mubr.bf16.mxu1 %v4958_v30  ;;  %6052 = vmatpush3.bf16.msra.mxu0 %v6480_v34  ;;  %v4990_v5 = vcombine.high %v7844_v6, %v7851_v53  ;;  %v7909_v26 = vld [vmem:[%s8675_s0 + $0x4d8] sm:$0xff]  ;;  %v6494_v29 = vld [vmem:[%s8674_s1 + $0x690] sm:$0xff]   ;;  %v6495_v30 = vld [vmem:[%s8674_s1 + $0x648] sm:$0xff]  }
 0x146   :  { %v7846_v49 = vadd.f32 %v5570_v41, %v3662_v37  ;;  %v5515_v50 = vadd.f32 %v5514_v45, %v5513_v42  ;;  %v5572_v13 = vpop.f32.mrf.mxu1  ;;  %6110 = vmatpush3.bf16.msra.mxu1 %v6482_v31  ;;  %6053 = vmatprep.subr.bf16.mxu0 %v6483_v33  ;;  %v6497_v31 = vld [vmem:[%s8674_s1 + $0x6c8] sm:$0xff]   ;;  %v4989_v42 = vcombine.low %v7844_v6, %v7851_v53  ;;  %v6499_v6 = vld [vmem:[%s8674_s1 + $0x640] sm:$0xff]  }
 0x147   :  { %v5573_v56 = vadd.f32 %v5572_v13, %v5571_v62  ;;  %v5516_v57 = vpop.f32.mrf.mxu0  ;;  %6111 = vmatprep.subr.bf16.mxu1 %v6485_v3  ;;  %v5020_v3 = vcombine.high %v7889_v17, %v7894_v20  ;;  %v6501_v53 = vld [vmem:[%s8674_s1 + $0x6c0] sm:$0xff]  }
 0x148   :  { %v3667_v16 = vadd.f32 %v5515_v50, %v7584_v23  ;;  %v5574_v61 = vpop.f32.mrf.mxu1 }
 0x149   :  { %v5517_v4 = vpop.f32.mrf.mxu0  ;;  %6054 = vmatpush3.bf16.msra.mxu0 %v6484_v39  ;;  %v6496_v39 = vld [vmem:[%s8674_s1 + $0x608] sm:$0xff]  }
 0x14a   :  { %v7874_v7 = vadd.f32 %v5573_v56, %v3667_v16  ;;  %v5518_v27 = vadd.f32 %v5517_v4, %v5516_v57  ;;  %v5575_v23 = vpop.f32.mrf.mxu1  ;;  %6112 = vmatpush3.bf16.msra.mxu1 %v6486_v54  ;;  %6055 = vmatprep.subr.bf16.mxu0 %v6487_v55  ;;  %v7947_v56 = vld [vmem:[%s8675_s0 + $0x550] sm:$0xff]  ;;  %v6502_v4 = vld [vmem:[%s8674_s1 + $0x680] sm:$0xff]  }
 0x14b   :  { %v5576_v11 = vadd.f32 %v5575_v23, %v5574_v61  ;;  %v5519_v14 = vpop.f32.mrf.mxu0  ;;  %4353 = vmatmul.mubr.bf16.gmra.mxu0 %v4955_v59  ;;  %6113 = vmatprep.subr.bf16.mxu1 %v6489_v60  ;;  %v201_v59 = vld [vmem:[%s8675_s0 + $0x5d0] sm:$0xff]  ;;  %v186_v60 = vld [vmem:[%s8675_s0 + $0x558] sm:$0xff]  ;;  %v5019_v23 = vcombine.low %v7889_v17, %v7894_v20 }
 0x14c   :  { %v3670_v38 = vadd.f32 %v5518_v27, %v7622_v43  ;;  %v5577_v44 = vpop.f32.mrf.mxu1  ;;  %4442 = vmatmul.mubr.bf16.gmra.mxu1 %v4957_v1  ;;  %4360 = vmatprep.mubr.bf16.mxu0 %v4988_v2  ;;  %v7899_v43 = vld [vmem:[%s8675_s0 + $0x458] sm:$0xff] }
 0x14d   :  { %v5520_v19 = vpop.f32.mrf.mxu0  ;;  %4449 = vmatprep.mubr.bf16.mxu1 %v4990_v5  ;;  %6056 = vmatpush3.bf16.msra.mxu0 %v6488_v8  ;;  %v5022_v62 = vcombine.high %v7899_v43, %v7909_v26  ;;  %v202_v2 = vld [vmem:[%s8675_s0 + $0x5d8] sm:$0xff] }
 0x14e   :  { %v7904_v22 = vadd.f32 %v5576_v11, %v3670_v38  ;;  %v5521_v24 = vadd.f32 %v5520_v19, %v5519_v14  ;;  %v5578_v25 = vpop.f32.mrf.mxu1  ;;  %6114 = vmatpush3.bf16.msra.mxu1 %v6490_v9  ;;  %6057 = vmatprep.subr.bf16.mxu0 %v6491_v10  ;;  %v6503_v5 = vld [vmem:[%s8674_s1 + $0x778] sm:$0xff]   ;;  %v5021_v14 = vcombine.low %v7899_v43, %v7909_v26  ;;  %v217_v26 = vld [vmem:[%s8675_s0 + $0x650] sm:$0xff] }
 0x14f   :  { %v5579_v34 = vadd.f32 %v5578_v25, %v5577_v44  ;;  %v5522_v51 = vpop.f32.mrf.mxu0  ;;  %6115 = vmatprep.subr.bf16.mxu1 %v6493_v32  ;;  %v6505_v9 = vld [vmem:[%s8674_s1 + $0x7f8] sm:$0xff]   ;;  %v5052_v32 = vcombine.high %v7947_v56, %v201_v59  ;;  %v5054_v44 = vcombine.high %v186_v60, %v202_v2 }
 0x150   :  { %v3675_v33 = vadd.f32 %v5521_v24, %v7645_v63  ;;  %v5580_v41 = vpop.f32.mrf.mxu1 }
 0x151   :  { %v5523_v37 = vpop.f32.mrf.mxu0  ;;  %6058 = vmatpush3.bf16.msra.mxu0 %v6492_v21 }
 0x152   :  { %v7932_v45 = vadd.f32 %v5579_v34, %v3675_v33  ;;  %v5524_v46 = vadd.f32 %v5523_v37, %v5522_v51  ;;  %v5581_v63 = vpop.f32.mrf.mxu1  ;;  %6116 = vmatpush3.bf16.msra.mxu1 %v6494_v29  ;;  %6059 = vmatprep.subr.bf16.mxu0 %v6495_v30  ;;  %v233_v29 = vld [vmem:[%s8675_s0 + $0x6d0] sm:$0xff]  ;;  %v5053_v37 = vcombine.low %v186_v60, %v202_v2 }
 0x153   :  { %v5582_v50 = vadd.f32 %v5581_v63, %v5580_v41  ;;  %v5599_v13 = vpop.f32.mrf.mxu0  ;;  %4361 = vmatmul.mubr.bf16.gmra.mxu0 %v4987_v36  ;;  %6117 = vmatprep.subr.bf16.mxu1 %v6497_v31  ;;  %v234_v36 = vld [vmem:[%s8675_s0 + $0x6d8] sm:$0xff]  ;;  %v5051_v41 = vcombine.low %v7947_v56, %v201_v59  ;;  %v43_v56 = vld [vmem:[%s8675_s0 + $0xe0] sm:$0xff]  ;;  %v5083_v2 = vcombine.low %v217_v26, %v233_v29 }
 0x154   :  { %v3678_v54 = vadd.f32 %v5524_v46, %v7676_v18  ;;  %v5657_v55 = vpop.f32.mrf.mxu1  ;;  %4450 = vmatmul.mubr.bf16.gmra.mxu1 %v4989_v42  ;;  %4368 = vmatprep.mubr.bf16.mxu0 %v5020_v3  ;;  %v6500_v18 = vld [vmem:[%s8674_s1 + $0x600] sm:$0xff]  }
 0x155   :  { %v5600_v57 = vpop.f32.mrf.mxu0  ;;  %4457 = vmatprep.mubr.bf16.mxu1 %v5022_v62  ;;  %6060 = vmatpush3.bf16.msra.mxu0 %v6496_v39  ;;  %v5084_v62 = vcombine.high %v217_v26, %v233_v29  ;;  %v8033_v29 = vld [vmem:[%s8675_s0 + $0x168] sm:$0xff] }
 0x156   :  { %v7958_v16 = vadd.f32 %v5582_v50, %v3678_v54  ;;  %v5601_v61 = vadd.f32 %v5600_v57, %v5599_v13  ;;  %v5658_v1 = vpop.f32.mrf.mxu1  ;;  %6118 = vmatpush3.bf16.msra.mxu1 %v6498_v47  ;;  %6061 = vmatprep.subr.bf16.mxu0 %v6499_v6 }
 0x157   :  { %v5659_v8 = vadd.f32 %v5658_v1, %v5657_v55  ;;  %v5602_v27 = vpop.f32.mrf.mxu0  ;;  %6119 = vmatprep.subr.bf16.mxu1 %v6501_v53 }
 0x158   :  { %v3805_v10 = vadd.f32 %v5601_v61, %v7691_v40  ;;  %v5660_v11 = vpop.f32.mrf.mxu1 }
 0x159   :  { %v5603_v38 = vpop.f32.mrf.mxu0  ;;  %6062 = vmatpush3.bf16.msra.mxu0 %v6500_v18  ;;  %v44_v18 = vld [vmem:[%s8675_s0 + $0xe8] sm:$0xff] }
 0x15a   :  { %v7978_v19 = vadd.f32 %v5659_v8, %v3805_v10  ;;  %v5604_v21 = vadd.f32 %v5603_v38, %v5602_v27  ;;  %v5661_v17 = vpop.f32.mrf.mxu1  ;;  %6120 = vmatpush3.bf16.msra.mxu1 %v6502_v4  ;;  %6163 = vmatprep.subr.bf16.mxu0 %v6503_v5 }
 0x15b   :  { %v5662_v20 = vadd.f32 %v5661_v17, %v5660_v11  ;;  %v5605_v24 = vpop.f32.mrf.mxu0  ;;  %4369 = vmatmul.mubr.bf16.gmra.mxu0 %v5019_v23  ;;  %6221 = vmatprep.subr.bf16.mxu1 %v6505_v9 }
 0x15c   :  { %v3808_v40 = vadd.f32 %v5604_v21, %v7703_v48  ;;  %v5663_v25 = vpop.f32.mrf.mxu1  ;;  %4458 = vmatmul.mubr.bf16.gmra.mxu1 %v5021_v14  ;;  %4376 = vmatprep.mubr.bf16.mxu0 %v5052_v32  ;;  %v218_v48 = vld [vmem:[%s8675_s0 + $0x658] sm:$0xff] }
 0x15d   :  { %v5606_v43 = vpop.f32.mrf.mxu0  ;;  %4465 = vmatprep.mubr.bf16.mxu1 %v5054_v44  ;;  %v5086_v46 = vcombine.high %v218_v48, %v234_v36  ;;  %v5085_v8 = vcombine.low %v218_v48, %v234_v36 }
 0x15e   :  { %v7987_v30 = vadd.f32 %v5662_v20, %v3808_v40  ;;  %v5607_v34 = vadd.f32 %v5606_v43, %v5605_v24  ;;  %v5664_v51 = vpop.f32.mrf.mxu1  ;;  %v8023_v40 = vld [vmem:[%s8675_s0 + $0x160] sm:$0xff] }
 0x15f   :  { %v5665_v31 = vadd.f32 %v5664_v51, %v5663_v25  ;;  %v5608_v33 = vpop.f32.mrf.mxu0  ;;  %v8028_v25 = vld [vmem:[%s8675_s0 + $0x1e0] sm:$0xff] }
 0x160   :  { %v3813_v42 = vadd.f32 %v5607_v34, %v7711_v0  ;;  %v5666_v3 = vpop.f32.mrf.mxu1  ;;  %v27_v0 = vld [vmem:[%s8675_s0 + $0x60] sm:$0xff]  ;;  %v8038_v34 = vld [vmem:[%s8675_s0 + $0x1e8] sm:$0xff] }
 0x161   :  { %v5609_v39 = vpop.f32.mrf.mxu0  ;;  %v4896_v27 = vcombine.high %v27_v0, %v43_v56  ;;  %v4895_v26 = vcombine.low %v27_v0, %v43_v56  ;;  %v6511_v0 = vld [vmem:[%s8674_s1 + $0x768] sm:$0xff]   ;;  %v8077_v56 = vld [vmem:[%s8675_s0 + $0x2e0] sm:$0xff] }
 0x162   :  { %v7997_v63 = vadd.f32 %v5665_v31, %v3813_v42  ;;  %v5610_v47 = vadd.f32 %v5609_v39, %v5608_v33  ;;  %v5667_v6 = vpop.f32.mrf.mxu1  ;;  %v6504_v31 = vld [vmem:[%s8674_s1 + $0x738] sm:$0xff]   ;;  %v4928_v42 = vcombine.high %v8023_v40, %v8028_v25  ;;  %v6507_v39 = vld [vmem:[%s8674_s1 + $0x770] sm:$0xff]  }
 0x163   :  { %v5668_v50 = vadd.f32 %v5667_v6, %v5666_v3  ;;  %v5611_v13 = vpop.f32.mrf.mxu0  ;;  %4377 = vmatmul.mubr.bf16.gmra.mxu0 %v5051_v41  ;;  %v6506_v41 = vld [vmem:[%s8674_s1 + $0x7b8] sm:$0xff]   ;;  %v6509_v6 = vld [vmem:[%s8674_s1 + $0x7f0] sm:$0xff]  }
 0x164   :  { %v3816_v53 = vadd.f32 %v5610_v47, %v7723_v12  ;;  %v5669_v54 = vpop.f32.mrf.mxu1  ;;  %4466 = vmatmul.mubr.bf16.gmra.mxu1 %v5053_v37  ;;  %4384 = vmatprep.mubr.bf16.mxu0 %v5084_v62  ;;  %v28_v12 = vld [vmem:[%s8675_s0 + $0x68] sm:$0xff] }
 0x165   :  { %v5612_v55 = vpop.f32.mrf.mxu0  ;;  %4473 = vmatprep.mubr.bf16.mxu1 %v5086_v46  ;;  %v4898_v9 = vcombine.high %v28_v12, %v44_v18  ;;  %v4897_v36 = vcombine.low %v28_v12, %v44_v18  ;;  %v8084_v18 = vld [vmem:[%s8675_s0 + $0x268] sm:$0xff] }
 0x166   :  { %v8006_v57 = vadd.f32 %v5668_v50, %v3816_v53  ;;  %v5613_v59 = vadd.f32 %v5612_v55, %v5611_v13  ;;  %v5670_v60 = vpop.f32.mrf.mxu1  ;;  %v6508_v53 = vld [vmem:[%s8674_s1 + $0x730] sm:$0xff]  }
 0x167   :  { %v5671_v61 = vadd.f32 %v5670_v60, %v5669_v54  ;;  %v5614_v1 = vpop.f32.mrf.mxu0  ;;  %v6510_v54 = vld [vmem:[%s8674_s1 + $0x7b0] sm:$0xff]  }
 0x168   :  { %v3821_v4 = vadd.f32 %v5613_v59, %v7729_v28  ;;  %v5672_v5 = vpop.f32.mrf.mxu1 }
 0x169   :  { %v5615_v23 = vpop.f32.mrf.mxu0 }
 0x16a   :  { %v8015_v10 = vadd.f32 %v5671_v61, %v3821_v4  ;;  %v5616_v11 = vadd.f32 %v5615_v23, %v5614_v1  ;;  %v5673_v14 = vpop.f32.mrf.mxu1  ;;  %v8089_v61 = vld [vmem:[%s8675_s0 + $0x2e8] sm:$0xff]  ;;  %v4929_v23 = vcombine.low %v8033_v29, %v8038_v34 }
 0x16b   :  { %v5674_v32 = vadd.f32 %v5673_v14, %v5672_v5  ;;  %v5617_v38 = vpop.f32.mrf.mxu0  ;;  %4385 = vmatmul.mubr.bf16.gmra.mxu0 %v5083_v2  ;;  %v6513_v1 = vld [vmem:[%s8674_s1 + $0x7e8] sm:$0xff]   ;;  %v4927_v5 = vcombine.low %v8023_v40, %v8028_v25  ;;  %v4962_v14 = vcombine.high %v8084_v18, %v8089_v61  ;;  %v6517_v40 = vld [vmem:[%s8674_s1 + $0x7e0] sm:$0xff]  }
 0x16c   :  { %v3824_v44 = vadd.f32 %v5616_v11, %v7732_v52  ;;  %v5675_v21 = vpop.f32.mrf.mxu1  ;;  %4474 = vmatmul.mubr.bf16.gmra.mxu1 %v5085_v8  ;;  %4514 = vmatprep.mubr.bf16.mxu0 %v4896_v27 }
 0x16d   :  { %v5618_v17 = vpop.f32.mrf.mxu0  ;;  %4603 = vmatprep.mubr.bf16.mxu1 %v4898_v9 }
 0x16e   :  { %v8018_v28 = vadd.f32 %v5674_v32, %v3824_v44  ;;  %v5619_v20 = vadd.f32 %v5618_v17, %v5617_v38  ;;  %v5676_v24 = vpop.f32.mrf.mxu1  ;;  %v6512_v32 = vld [vmem:[%s8674_s1 + $0x728] sm:$0xff]   ;;  %v6515_v17 = vld [vmem:[%s8674_s1 + $0x760] sm:$0xff]  }
 0x16f   :  { %v5677_v52 = vadd.f32 %v5676_v24, %v5675_v21  ;;  %v5620_v43 = vpop.f32.mrf.mxu0  ;;  %v6514_v21 = vld [vmem:[%s8674_s1 + $0x7a8] sm:$0xff]  }
 0x170   :  { %v3829_v51 = vadd.f32 %v5619_v20, %v7764_v58  ;;  %v5678_v48 = vpop.f32.mrf.mxu1  ;;  %v4930_v58 = vcombine.high %v8033_v29, %v8038_v34  ;;  %v8124_v29 = vld [vmem:[%s8675_s0 + $0x360] sm:$0xff] }
 0x171   :  { %v5621_v33 = vpop.f32.mrf.mxu0  ;;  %v8129_v34 = vld [vmem:[%s8675_s0 + $0x3e0] sm:$0xff] }
 0x172   :  { %v8049_v3 = vadd.f32 %v5677_v52, %v3829_v51  ;;  %v5622_v37 = vadd.f32 %v5621_v33, %v5620_v43  ;;  %v5679_v62 = vpop.f32.mrf.mxu1  ;;  %v6516_v43 = vld [vmem:[%s8674_s1 + $0x720] sm:$0xff]  }
 0x173   :  { %v5680_v46 = vadd.f32 %v5679_v62, %v5678_v48  ;;  %v5623_v47 = vpop.f32.mrf.mxu0  ;;  %4515 = vmatmul.mubr.bf16.vlgmr.msra.gmra.mxu0 %v4895_v26  ;;  %v6518_v33 = vld [vmem:[%s8674_s1 + $0x7a0] sm:$0xff]  }
 0x174   :  { %v3832_v50 = vadd.f32 %v5622_v37, %v7800_v15  ;;  %v5681_v13 = vpop.f32.mrf.mxu1  ;;  %4604 = vmatmul.mubr.bf16.vlgmr.msra.gmra.mxu1 %v4897_v36  ;;  %6164 = vmatpush3.bf16.msra.mxu0 %v6504_v31  ;;  %v8072_v15 = vld [vmem:[%s8675_s0 + $0x260] sm:$0xff]  ;;  %v8141_v31 = vld [vmem:[%s8675_s0 + $0x3e8] sm:$0xff] }
 0x175   :  { %v5624_v55 = vpop.f32.mrf.mxu0  ;;  %6222 = vmatpush3.bf16.msra.mxu1 %v6506_v41  ;;  %4522 = vmatprep.mubr.bf16.mxu0 %v4928_v42  ;;  %v4960_v9 = vcombine.high %v8072_v15, %v8077_v56  ;;  %v6519_v41 = vld [vmem:[%s8674_s1 + $0x758] sm:$0xff]   ;;  %v4959_v62 = vcombine.low %v8072_v15, %v8077_v56  ;;  %v6523_v15 = vld [vmem:[%s8674_s1 + $0x750] sm:$0xff]  }
 0x176   :  { %v8079_v59 = vadd.f32 %v5680_v46, %v3832_v50  ;;  %v5625_v60 = vadd.f32 %v5624_v55, %v5623_v47  ;;  %v5682_v12 = vpop.f32.mrf.mxu1  ;;  %4611 = vmatprep.mubr.bf16.mxu1 %v4930_v58  ;;  %6165 = vmatprep.subr.bf16.mxu0 %v6507_v39  ;;  %v6521_v58 = vld [vmem:[%s8674_s1 + $0x7d8] sm:$0xff]   ;;  %v4961_v47 = vcombine.low %v8084_v18, %v8089_v61 }
 0x177   :  { %v5683_v2 = vadd.f32 %v5682_v12, %v5681_v13  ;;  %v5626_v4 = vpop.f32.mrf.mxu0  ;;  %6223 = vmatprep.subr.bf16.mxu1 %v6509_v6  ;;  %v4992_v6 = vcombine.high %v8124_v29, %v8129_v34  ;;  %v6525_v12 = vld [vmem:[%s8674_s1 + $0x7d0] sm:$0xff]  }
 0x178   :  { %v3837_v8 = vadd.f32 %v5625_v60, %v7816_v35  ;;  %v5684_v27 = vpop.f32.mrf.mxu1  ;;  %6166 = vmatpush3.bf16.msra.mxu0 %v6508_v53  ;;  %v6520_v53 = vld [vmem:[%s8674_s1 + $0x718] sm:$0xff]  }
 0x179   :  { %v5627_v11 = vpop.f32.mrf.mxu0  ;;  %6224 = vmatpush3.bf16.msra.mxu1 %v6510_v54  ;;  %6167 = vmatprep.subr.bf16.mxu0 %v6511_v0  ;;  %v6522_v0 = vld [vmem:[%s8674_s1 + $0x798] sm:$0xff]  }
 0x17a   :  { %v8106_v38 = vadd.f32 %v5683_v2, %v3837_v8  ;;  %v5628_v35 = vadd.f32 %v5627_v11, %v5626_v4  ;;  %v5685_v44 = vpop.f32.mrf.mxu1  ;;  %6225 = vmatprep.subr.bf16.mxu1 %v6513_v1  ;;  %v8179_v1 = vld [vmem:[%s8675_s0 + $0x460] sm:$0xff]  ;;  %v6526_v11 = vld [vmem:[%s8674_s1 + $0x790] sm:$0xff]  }
 0x17b   :  { %v5686_v20 = vadd.f32 %v5685_v44, %v5684_v27  ;;  %v5629_v24 = vpop.f32.mrf.mxu0  ;;  %4523 = vmatmul.mubr.bf16.gmra.mxu0 %v4927_v5  ;;  %v8184_v4 = vld [vmem:[%s8675_s0 + $0x4e0] sm:$0xff]  ;;  %v6524_v5 = vld [vmem:[%s8674_s1 + $0x710] sm:$0xff]   ;;  %v4991_v44 = vcombine.low %v8124_v29, %v8129_v34  ;;  %v6530_v34 = vld [vmem:[%s8674_s1 + $0x788] sm:$0xff]  }
 0x17c   :  { %v3840_v25 = vadd.f32 %v5628_v35, %v7846_v49  ;;  %v5687_v52 = vpop.f32.mrf.mxu1  ;;  %4612 = vmatmul.mubr.bf16.gmra.mxu1 %v4929_v23  ;;  %4530 = vmatprep.mubr.bf16.mxu0 %v4960_v9  ;;  %v8134_v49 = vld [vmem:[%s8675_s0 + $0x368] sm:$0xff] }
 0x17d   :  { %v5630_v26 = vpop.f32.mrf.mxu0  ;;  %4619 = vmatprep.mubr.bf16.mxu1 %v4962_v14  ;;  %6168 = vmatpush3.bf16.msra.mxu0 %v6512_v32  ;;  %v4994_v13 = vcombine.high %v8134_v49, %v8141_v31  ;;  %v8199_v9 = vld [vmem:[%s8675_s0 + $0x4e8] sm:$0xff] }
 0x17e   :  { %v8136_v51 = vadd.f32 %v5686_v20, %v3840_v25  ;;  %v5631_v48 = vadd.f32 %v5630_v26, %v5629_v24  ;;  %v5688_v36 = vpop.f32.mrf.mxu1  ;;  %6226 = vmatpush3.bf16.msra.mxu1 %v6514_v21  ;;  %6169 = vmatprep.subr.bf16.mxu0 %v6515_v17  ;;  %v6527_v14 = vld [vmem:[%s8674_s1 + $0x748] sm:$0xff]   ;;  %v4993_v24 = vcombine.low %v8134_v49, %v8141_v31  ;;  %v6531_v49 = vld [vmem:[%s8674_s1 + $0x740] sm:$0xff]  }
 0x17f   :  { %v5689_v42 = vadd.f32 %v5688_v36, %v5687_v52  ;;  %v5632_v37 = vpop.f32.mrf.mxu0  ;;  %6227 = vmatprep.subr.bf16.mxu1 %v6517_v40  ;;  %v6529_v21 = vld [vmem:[%s8674_s1 + $0x7c8] sm:$0xff]   ;;  %v5024_v40 = vcombine.high %v8179_v1, %v8184_v4  ;;  %v6533_v31 = vld [vmem:[%s8674_s1 + $0x7c0] sm:$0xff]  }
 0x180   :  { %v3845_v39 = vadd.f32 %v5631_v48, %v7874_v7  ;;  %v5690_v46 = vpop.f32.mrf.mxu1 }
 0x181   :  { %v5633_v50 = vpop.f32.mrf.mxu0  ;;  %6170 = vmatpush3.bf16.msra.mxu0 %v6516_v43  ;;  %v6528_v43 = vld [vmem:[%s8674_s1 + $0x708] sm:$0xff]  }
 0x182   :  { %v8164_v54 = vadd.f32 %v5689_v42, %v3845_v39  ;;  %v5634_v55 = vadd.f32 %v5633_v50, %v5632_v37  ;;  %v5691_v7 = vpop.f32.mrf.mxu1  ;;  %6228 = vmatpush3.bf16.msra.mxu1 %v6518_v33  ;;  %6171 = vmatprep.subr.bf16.mxu0 %v6519_v41  ;;  %v187_v37 = vld [vmem:[%s8675_s0 + $0x560] sm:$0xff] }
 0x183   :  { %v5692_v56 = vadd.f32 %v5691_v7, %v5690_v46  ;;  %v5635_v60 = vpop.f32.mrf.mxu0  ;;  %4531 = vmatmul.mubr.bf16.gmra.mxu0 %v4959_v62  ;;  %6229 = vmatprep.subr.bf16.mxu1 %v6521_v58  ;;  %v203_v62 = vld [vmem:[%s8675_s0 + $0x5e0] sm:$0xff] }
 0x184   :  { %v3848_v18 = vadd.f32 %v5634_v55, %v7904_v22  ;;  %v5693_v61 = vpop.f32.mrf.mxu1  ;;  %4620 = vmatmul.mubr.bf16.gmra.mxu1 %v4961_v47  ;;  %4538 = vmatprep.mubr.bf16.mxu0 %v4992_v6  ;;  %v8189_v22 = vld [vmem:[%s8675_s0 + $0x468] sm:$0xff]  ;;  %v6532_v58 = vld [vmem:[%s8674_s1 + $0x700] sm:$0xff]   ;;  %v5023_v55 = vcombine.low %v8179_v1, %v8184_v4 }
 0x185   :  { %v5636_v2 = vpop.f32.mrf.mxu0  ;;  %4627 = vmatprep.mubr.bf16.mxu1 %v4994_v13  ;;  %6172 = vmatpush3.bf16.msra.mxu0 %v6520_v53  ;;  %v5026_v52 = vcombine.high %v8189_v22, %v8199_v9  ;;  %v188_v47 = vld [vmem:[%s8675_s0 + $0x568] sm:$0xff]  ;;  %v6534_v50 = vld [vmem:[%s8674_s1 + $0x780] sm:$0xff]  }
 0x186   :  { %v8194_v8 = vadd.f32 %v5692_v56, %v3848_v18  ;;  %v5637_v27 = vadd.f32 %v5636_v2, %v5635_v60  ;;  %v5694_v23 = vpop.f32.mrf.mxu1  ;;  %6230 = vmatpush3.bf16.msra.mxu1 %v6522_v0  ;;  %6173 = vmatprep.subr.bf16.mxu0 %v6523_v15  ;;  %v204_v6 = vld [vmem:[%s8675_s0 + $0x5e8] sm:$0xff]  ;;  %v5025_v15 = vcombine.low %v8189_v22, %v8199_v9  ;;  %v219_v22 = vld [vmem:[%s8675_s0 + $0x660] sm:$0xff] }
 0x187   :  { %v5695_v32 = vadd.f32 %v5694_v23, %v5693_v61  ;;  %v5638_v35 = vpop.f32.mrf.mxu0  ;;  %6231 = vmatprep.subr.bf16.mxu1 %v6525_v12  ;;  %v5056_v56 = vcombine.high %v187_v37, %v203_v62  ;;  %v5058_v12 = vcombine.high %v188_v47, %v204_v6  ;;  %v235_v23 = vld [vmem:[%s8675_s0 + $0x6e0] sm:$0xff] }
 0x188   :  { %v3853_v17 = vadd.f32 %v5637_v27, %v7932_v45  ;;  %v5696_v20 = vpop.f32.mrf.mxu1 }
 0x189   :  { %v5639_v25 = vpop.f32.mrf.mxu0  ;;  %6174 = vmatpush3.bf16.msra.mxu0 %v6524_v5 }
 0x18a   :  { %v8222_v26 = vadd.f32 %v5695_v32, %v3853_v17  ;;  %v5640_v29 = vadd.f32 %v5639_v25, %v5638_v35  ;;  %v5697_v45 = vpop.f32.mrf.mxu1  ;;  %6232 = vmatpush3.bf16.msra.mxu1 %v6526_v11  ;;  %6175 = vmatprep.subr.bf16.mxu0 %v6527_v14  ;;  %v236_v32 = vld [vmem:[%s8675_s0 + $0x6e8] sm:$0xff] }
 0x18b   :  { %v5698_v48 = vadd.f32 %v5697_v45, %v5696_v20  ;;  %v5715_v36 = vpop.f32.mrf.mxu0  ;;  %4539 = vmatmul.mubr.bf16.gmra.mxu0 %v4991_v44  ;;  %6233 = vmatprep.subr.bf16.mxu1 %v6529_v21  ;;  %v5055_v21 = vcombine.low %v187_v37, %v203_v62  ;;  %v46_v62 = vld [vmem:[%s8675_s0 + $0xf8] sm:$0xff] }
 0x18c   :  { %v3856_v33 = vadd.f32 %v5640_v29, %v7958_v16  ;;  %v5773_v41 = vpop.f32.mrf.mxu1  ;;  %4628 = vmatmul.mubr.bf16.gmra.mxu1 %v4993_v24  ;;  %4546 = vmatprep.mubr.bf16.mxu0 %v5024_v40  ;;  %v5057_v24 = vcombine.low %v188_v47, %v204_v6  ;;  %v5088_v40 = vcombine.high %v219_v22, %v235_v23 }
 0x18d   :  { %v5716_v42 = vpop.f32.mrf.mxu0  ;;  %4635 = vmatprep.mubr.bf16.mxu1 %v5026_v52  ;;  %6176 = vmatpush3.bf16.msra.mxu0 %v6528_v43 }
 0x18e   :  { %v8243_v39 = vadd.f32 %v5698_v48, %v3856_v33  ;;  %v5717_v16 = vadd.f32 %v5716_v42, %v5715_v36  ;;  %v5774_v46 = vpop.f32.mrf.mxu1  ;;  %6234 = vmatpush3.bf16.msra.mxu1 %v6530_v34  ;;  %6177 = vmatprep.subr.bf16.mxu0 %v6531_v49  ;;  %v45_v33 = vld [vmem:[%s8675_s0 + $0xf0] sm:$0xff] }
 0x18f   :  { %v5775_v13 = vadd.f32 %v5774_v46, %v5773_v41  ;;  %v5718_v53 = vpop.f32.mrf.mxu0  ;;  %6235 = vmatprep.subr.bf16.mxu1 %v6533_v31  ;;  %v5087_v46 = vcombine.low %v219_v22, %v235_v23 }
 0x190   :  { %v3983_v7 = vadd.f32 %v5717_v16, %v7978_v19  ;;  %v5776_v0 = vpop.f32.mrf.mxu1 }
 0x191   :  { %v5719_v60 = vpop.f32.mrf.mxu0  ;;  %6178 = vmatpush3.bf16.msra.mxu0 %v6532_v58 }
 0x192   :  { %v8259_v18 = vadd.f32 %v5775_v13, %v3983_v7  ;;  %v5720_v61 = vadd.f32 %v5719_v60, %v5718_v53  ;;  %v5777_v2 = vpop.f32.mrf.mxu1  ;;  %6236 = vmatpush3.bf16.msra.mxu1 %v6534_v50 }
 0x193   :  { %v5778_v5 = vadd.f32 %v5777_v2, %v5776_v0  ;;  %v5721_v27 = vpop.f32.mrf.mxu0  ;;  %4547 = vmatmul.mubr.bf16.gmra.mxu0 %v5023_v55 }
 0x194   :  { %v3986_v1 = vadd.f32 %v5720_v61, %v7987_v30  ;;  %v5779_v4 = vpop.f32.mrf.mxu1  ;;  %4636 = vmatmul.mubr.bf16.gmra.mxu1 %v5025_v15  ;;  %4554 = vmatprep.mubr.bf16.mxu0 %v5056_v56  ;;  %v220_v30 = vld [vmem:[%s8675_s0 + $0x668] sm:$0xff] }
 0x195   :  { %v5722_v19 = vpop.f32.mrf.mxu0  ;;  %4643 = vmatprep.mubr.bf16.mxu1 %v5058_v12  ;;  %v5090_v52 = vcombine.high %v220_v30, %v236_v32  ;;  %v5089_v50 = vcombine.low %v220_v30, %v236_v32 }
 0x196   :  { %v8268_v9 = vadd.f32 %v5778_v5, %v3986_v1  ;;  %v5723_v11 = vadd.f32 %v5722_v19, %v5721_v27  ;;  %v5780_v14 = vpop.f32.mrf.mxu1  ;;  %v77_v5 = vld [vmem:[%s8675_s0 + $0x1f0] sm:$0xff]  ;;  %v78_v19 = vld [vmem:[%s8675_s0 + $0x1f8] sm:$0xff] }
 0x197   :  { %v5781_v35 = vadd.f32 %v5780_v14, %v5779_v4  ;;  %v5724_v44 = vpop.f32.mrf.mxu0 }
 0x198   :  { %v3991_v17 = vadd.f32 %v5723_v11, %v7997_v63  ;;  %v5782_v20 = vpop.f32.mrf.mxu1  ;;  %v29_v63 = vld [vmem:[%s8675_s0 + $0x70] sm:$0xff] }
 0x199   :  { %v5725_v25 = vpop.f32.mrf.mxu0  ;;  %v4900_v13 = vcombine.high %v29_v63, %v45_v33  ;;  %v4899_v11 = vcombine.low %v29_v63, %v45_v33 }
 0x19a   :  { %v8277_v43 = vadd.f32 %v5781_v35, %v3991_v17  ;;  %v5726_v29 = vadd.f32 %v5725_v25, %v5724_v44  ;;  %v5783_v45 = vpop.f32.mrf.mxu1 }
 0x19b   :  { %v5784_v34 = vadd.f32 %v5783_v45, %v5782_v20  ;;  %v5727_v49 = vpop.f32.mrf.mxu0  ;;  %4555 = vmatmul.mubr.bf16.gmra.mxu0 %v5055_v21 }
 0x19c   :  { %v3994_v48 = vadd.f32 %v5726_v29, %v8006_v57  ;;  %v5785_v36 = vpop.f32.mrf.mxu1  ;;  %4644 = vmatmul.mubr.bf16.gmra.mxu1 %v5057_v24  ;;  %4562 = vmatprep.mubr.bf16.mxu0 %v5088_v40  ;;  %v30_v57 = vld [vmem:[%s8675_s0 + $0x78] sm:$0xff] }
 0x19d   :  { %v5728_v31 = vpop.f32.mrf.mxu0  ;;  %4651 = vmatprep.mubr.bf16.mxu1 %v5090_v52  ;;  %v4902_v55 = vcombine.high %v30_v57, %v46_v62  ;;  %v4901_v32 = vcombine.low %v30_v57, %v46_v62 }
 0x19e   :  { %v8286_v41 = vadd.f32 %v5784_v34, %v3994_v48  ;;  %v5729_v42 = vadd.f32 %v5728_v31, %v5727_v49  ;;  %v5786_v37 = vpop.f32.mrf.mxu1  ;;  %v109_v34 = vld [vmem:[%s8675_s0 + $0x2f0] sm:$0xff]  ;;  %v110_v31 = vld [vmem:[%s8675_s0 + $0x2f8] sm:$0xff] }
 0x19f   :  { %v5787_v58 = vadd.f32 %v5786_v37, %v5785_v36  ;;  %v5730_v16 = vpop.f32.mrf.mxu0 }
 0x1a0   :  { %v3999_v47 = vadd.f32 %v5729_v42, %v8015_v10  ;;  %v5788_v6 = vpop.f32.mrf.mxu1  ;;  %v61_v10 = vld [vmem:[%s8675_s0 + $0x170] sm:$0xff] }
 0x1a1   :  { %v5731_v53 = vpop.f32.mrf.mxu0  ;;  %v4932_v35 = vcombine.high %v61_v10, %v77_v5  ;;  %v4931_v42 = vcombine.low %v61_v10, %v77_v5 }
 0x1a2   :  { %v8295_v7 = vadd.f32 %v5787_v58, %v3999_v47  ;;  %v5732_v0 = vadd.f32 %v5731_v53, %v5730_v16  ;;  %v5789_v15 = vpop.f32.mrf.mxu1 }
 0x1a3   :  { %v5790_v56 = vadd.f32 %v5789_v15, %v5788_v6  ;;  %v5733_v60 = vpop.f32.mrf.mxu0  ;;  %4563 = vmatmul.mubr.bf16.gmra.mxu0 %v5087_v46 }
 0x1a4   :  { %v4002_v12 = vadd.f32 %v5732_v0, %v8018_v28  ;;  %v5791_v61 = vpop.f32.mrf.mxu1  ;;  %4652 = vmatmul.mubr.bf16.gmra.mxu1 %v5089_v50  ;;  %4692 = vmatprep.mubr.bf16.mxu0 %v4900_v13  ;;  %v62_v28 = vld [vmem:[%s8675_s0 + $0x178] sm:$0xff] }
 0x1a5   :  { %v5734_v2 = vpop.f32.mrf.mxu0  ;;  %4781 = vmatprep.mubr.bf16.mxu1 %v4902_v55  ;;  %v4934_v21 = vcombine.high %v62_v28, %v78_v19  ;;  %v4933_v62 = vcombine.low %v62_v28, %v78_v19 }
 0x1a6   :  { %v8304_v27 = vadd.f32 %v5790_v56, %v4002_v12  ;;  %v5735_v1 = vadd.f32 %v5734_v2, %v5733_v60  ;;  %v5792_v4 = vpop.f32.mrf.mxu1  ;;  %v141_v56 = vld [vmem:[%s8675_s0 + $0x3f0] sm:$0xff]  ;;  %v142_v2 = vld [vmem:[%s8675_s0 + $0x3f8] sm:$0xff] }
 0x1a7   :  { %v5793_v22 = vadd.f32 %v5792_v4, %v5791_v61  ;;  %v5736_v23 = vpop.f32.mrf.mxu0 }
 0x1a8   :  { %v4007_v14 = vadd.f32 %v5735_v1, %v8049_v3  ;;  %v5794_v30 = vpop.f32.mrf.mxu1  ;;  %v93_v3 = vld [vmem:[%s8675_s0 + $0x270] sm:$0xff] }
 0x1a9   :  { %v5737_v44 = vpop.f32.mrf.mxu0  ;;  %v4964_v58 = vcombine.high %v93_v3, %v109_v34  ;;  %v4963_v1 = vcombine.low %v93_v3, %v109_v34 }
 0x1aa   :  { %v8313_v17 = vadd.f32 %v5793_v22, %v4007_v14  ;;  %v5738_v20 = vadd.f32 %v5737_v44, %v5736_v23  ;;  %v5795_v24 = vpop.f32.mrf.mxu1 }
 0x1ab   :  { %v5796_v40 = vadd.f32 %v5795_v24, %v5794_v30  ;;  %v5739_v25 = vpop.f32.mrf.mxu0  ;;  %4693 = vmatmul.mubr.bf16.vlgmr.msra.gmra.mxu0 %v4899_v11 }
 0x1ac   :  { %v4010_v52 = vadd.f32 %v5738_v20, %v8079_v59  ;;  %v5797_v29 = vpop.f32.mrf.mxu1  ;;  %4782 = vmatmul.mubr.bf16.vlgmr.msra.gmra.mxu1 %v4901_v32  ;;  %4700 = vmatprep.mubr.bf16.mxu0 %v4932_v35  ;;  %v94_v59 = vld [vmem:[%s8675_s0 + $0x278] sm:$0xff] }
 0x1ad   :  { %v5740_v45 = vpop.f32.mrf.mxu0  ;;  %4789 = vmatprep.mubr.bf16.mxu1 %v4934_v21  ;;  %v4966_v46 = vcombine.high %v94_v59, %v110_v31  ;;  %v4965_v19 = vcombine.low %v94_v59, %v110_v31 }
 0x1ae   :  { %v8322_v49 = vadd.f32 %v5796_v40, %v4010_v52  ;;  %v5741_v48 = vadd.f32 %v5740_v45, %v5739_v25  ;;  %v5798_v36 = vpop.f32.mrf.mxu1  ;;  %v173_v40 = vld [vmem:[%s8675_s0 + $0x4f0] sm:$0xff]  ;;  %v174_v45 = vld [vmem:[%s8675_s0 + $0x4f8] sm:$0xff] }
 0x1af   :  { %v5799_v63 = vadd.f32 %v5798_v36, %v5797_v29  ;;  %v5742_v33 = vpop.f32.mrf.mxu0 }
 0x1b0   :  { %v4015_v37 = vadd.f32 %v5741_v48, %v8106_v38  ;;  %v5800_v57 = vpop.f32.mrf.mxu1  ;;  %v125_v38 = vld [vmem:[%s8675_s0 + $0x370] sm:$0xff] }
 0x1b1   :  { %v5743_v16 = vpop.f32.mrf.mxu0  ;;  %v4996_v22 = vcombine.high %v125_v38, %v141_v56  ;;  %v4995_v48 = vcombine.low %v125_v38, %v141_v56 }
 0x1b2   :  { %v8331_v47 = vadd.f32 %v5799_v63, %v4015_v37  ;;  %v5744_v6 = vadd.f32 %v5743_v16, %v5742_v33  ;;  %v5801_v50 = vpop.f32.mrf.mxu1 }
 0x1b3   :  { %v5802_v13 = vadd.f32 %v5801_v50, %v5800_v57  ;;  %v5745_v53 = vpop.f32.mrf.mxu0  ;;  %4701 = vmatmul.mubr.bf16.gmra.mxu0 %v4931_v42 }
 0x1b4   :  { %v4018_v55 = vadd.f32 %v5744_v6, %v8136_v51  ;;  %v5803_v0 = vpop.f32.mrf.mxu1  ;;  %4790 = vmatmul.mubr.bf16.gmra.mxu1 %v4933_v62  ;;  %4708 = vmatprep.mubr.bf16.mxu0 %v4964_v58  ;;  %v126_v51 = vld [vmem:[%s8675_s0 + $0x378] sm:$0xff] }
 0x1b5   :  { %v5746_v15 = vpop.f32.mrf.mxu0  ;;  %4797 = vmatprep.mubr.bf16.mxu1 %v4966_v46  ;;  %v4998_v11 = vcombine.high %v126_v51, %v142_v2  ;;  %v4997_v31 = vcombine.low %v126_v51, %v142_v2 }
 0x1b6   :  { %v8340_v60 = vadd.f32 %v5802_v13, %v4018_v55  ;;  %v5747_v12 = vadd.f32 %v5746_v15, %v5745_v53  ;;  %v5804_v61 = vpop.f32.mrf.mxu1  ;;  %v205_v13 = vld [vmem:[%s8675_s0 + $0x5f0] sm:$0xff]  ;;  %v206_v15 = vld [vmem:[%s8675_s0 + $0x5f8] sm:$0xff] }
 0x1b7   :  { %v5805_v10 = vadd.f32 %v5804_v61, %v5803_v0  ;;  %v5748_v5 = vpop.f32.mrf.mxu0 }
 0x1b8   :  { %v4023_v4 = vadd.f32 %v5747_v12, %v8164_v54  ;;  %v5806_v28 = vpop.f32.mrf.mxu1  ;;  %v157_v54 = vld [vmem:[%s8675_s0 + $0x470] sm:$0xff] }
 0x1b9   :  { %v5749_v23 = vpop.f32.mrf.mxu0  ;;  %v5028_v63 = vcombine.high %v157_v54, %v173_v40  ;;  %v5027_v12 = vcombine.low %v157_v54, %v173_v40 }
 0x1ba   :  { %v8349_v14 = vadd.f32 %v5805_v10, %v4023_v4  ;;  %v5750_v30 = vadd.f32 %v5749_v23, %v5748_v5  ;;  %v5807_v32 = vpop.f32.mrf.mxu1 }
 0x1bb   :  { %v5808_v35 = vadd.f32 %v5807_v32, %v5806_v28  ;;  %v5751_v44 = vpop.f32.mrf.mxu0  ;;  %4709 = vmatmul.mubr.bf16.gmra.mxu0 %v4963_v1 }
 0x1bc   :  { %v4026_v21 = vadd.f32 %v5750_v30, %v8194_v8  ;;  %v5809_v20 = vpop.f32.mrf.mxu1  ;;  %4798 = vmatmul.mubr.bf16.gmra.mxu1 %v4965_v19  ;;  %4716 = vmatprep.mubr.bf16.mxu0 %v4996_v22  ;;  %v158_v8 = vld [vmem:[%s8675_s0 + $0x478] sm:$0xff] }
 0x1bd   :  { %v5752_v24 = vpop.f32.mrf.mxu0  ;;  %4805 = vmatprep.mubr.bf16.mxu1 %v4998_v11  ;;  %v5030_v42 = vcombine.high %v158_v8, %v174_v45  ;;  %v5029_v2 = vcombine.low %v158_v8, %v174_v45 }
 0x1be   :  { %v8358_v25 = vadd.f32 %v5808_v35, %v4026_v21  ;;  %v5753_v52 = vadd.f32 %v5752_v24, %v5751_v44  ;;  %v5810_v29 = vpop.f32.mrf.mxu1  ;;  %v237_v35 = vld [vmem:[%s8675_s0 + $0x6f0] sm:$0xff]  ;;  %v238_v24 = vld [vmem:[%s8675_s0 + $0x6f8] sm:$0xff] }
 0x1bf   :  { %v5811_v3 = vadd.f32 %v5810_v29, %v5809_v20  ;;  %v5754_v34 = vpop.f32.mrf.mxu0 }
 0x1c0   :  { %v4031_v36 = vadd.f32 %v5753_v52, %v8222_v26  ;;  %v5812_v59 = vpop.f32.mrf.mxu1  ;;  %v189_v26 = vld [vmem:[%s8675_s0 + $0x570] sm:$0xff] }
 0x1c1   :  { %v5755_v33 = vpop.f32.mrf.mxu0  ;;  %v5060_v10 = vcombine.high %v189_v26, %v205_v13  ;;  %v5059_v52 = vcombine.low %v189_v26, %v205_v13 }
 0x1c2   :  { %v8367_v37 = vadd.f32 %v5811_v3, %v4031_v36  ;;  %v5756_v57 = vadd.f32 %v5755_v33, %v5754_v34  ;;  %v5813_v62 = vpop.f32.mrf.mxu1 }
 0x1c3   :  { %v5814_v58 = vadd.f32 %v5813_v62, %v5812_v59  ;;  %v5831_v16 = vpop.f32.mrf.mxu0  ;;  %4717 = vmatmul.mubr.bf16.gmra.mxu0 %v4995_v48 }
 0x1c4   :  { %v4034_v46 = vadd.f32 %v5756_v57, %v8243_v39  ;;  %v5889_v6 = vpop.f32.mrf.mxu1  ;;  %4806 = vmatmul.mubr.bf16.gmra.mxu1 %v4997_v31  ;;  %4724 = vmatprep.mubr.bf16.mxu0 %v5028_v63  ;;  %v190_v39 = vld [vmem:[%s8675_s0 + $0x578] sm:$0xff] }
 0x1c5   :  { %v5832_v50 = vpop.f32.mrf.mxu0  ;;  %4813 = vmatprep.mubr.bf16.mxu1 %v5030_v42  ;;  %v5062_v1 = vcombine.high %v190_v39, %v206_v15  ;;  %v5061_v45 = vcombine.low %v190_v39, %v206_v15 }
 0x1c6   :  { %v8376_v53 = vadd.f32 %v5814_v58, %v4034_v46  ;;  %v5833_v55 = vadd.f32 %v5832_v50, %v5831_v16  ;;  %v5890_v0 = vpop.f32.mrf.mxu1 }
 0x1c7   :  { %v5891_v38 = vadd.f32 %v5890_v0, %v5889_v6  ;;  %v5834_v56 = vpop.f32.mrf.mxu0 }
 0x1c8   :  { %v4161_v61 = vadd.f32 %v5833_v55, %v8259_v18  ;;  %v5892_v51 = vpop.f32.mrf.mxu1  ;;  %v221_v18 = vld [vmem:[%s8675_s0 + $0x670] sm:$0xff] }
 0x1c9   :  { %v5835_v5 = vpop.f32.mrf.mxu0  ;;  %v5092_v3 = vcombine.high %v221_v18, %v237_v35  ;;  %v5091_v50 = vcombine.low %v221_v18, %v237_v35 }
 0x1ca   :  { %v8385_v4 = vadd.f32 %v5891_v38, %v4161_v61  ;;  %v5836_v28 = vadd.f32 %v5835_v5, %v5834_v56  ;;  %v5893_v19 = vpop.f32.mrf.mxu1 }
 0x1cb   :  { %v5894_v22 = vadd.f32 %v5893_v19, %v5892_v51  ;;  %v5837_v23 = vpop.f32.mrf.mxu0  ;;  %4725 = vmatmul.mubr.bf16.gmra.mxu0 %v5027_v12 }
 0x1cc   :  { %v4164_v11 = vadd.f32 %v5836_v28, %v8268_v9  ;;  %v5895_v30 = vpop.f32.mrf.mxu1  ;;  %4814 = vmatmul.mubr.bf16.gmra.mxu1 %v5029_v2  ;;  %4732 = vmatprep.mubr.bf16.mxu0 %v5060_v10  ;;  %v222_v9 = vld [vmem:[%s8675_s0 + $0x678] sm:$0xff] }
 0x1cd   :  { %v5838_v32 = vpop.f32.mrf.mxu0  ;;  %4821 = vmatprep.mubr.bf16.mxu1 %v5062_v1  ;;  %v5094_v48 = vcombine.high %v222_v9, %v238_v24  ;;  %v5093_v55 = vcombine.low %v222_v9, %v238_v24 }
 0x1ce   :  { %v8394_v44 = vadd.f32 %v5894_v22, %v4164_v11  ;;  %v5839_v21 = vadd.f32 %v5838_v32, %v5837_v23  ;;  %v5896_v20 = vpop.f32.mrf.mxu1 }
 0x1cf   :  { %v5897_v54 = vadd.f32 %v5896_v20, %v5895_v30  ;;  %v5840_v40 = vpop.f32.mrf.mxu0 }
 0x1d0   :  { %v4169_v29 = vadd.f32 %v5839_v21, %v8277_v43  ;;  %v5898_v8 = vpop.f32.mrf.mxu1 }
 0x1d1   :  { %v5841_v34 = vpop.f32.mrf.mxu0 }
 0x1d2   :  { %v8403_v36 = vadd.f32 %v5897_v54, %v4169_v29  ;;  %v5842_v59 = vadd.f32 %v5841_v34, %v5840_v40  ;;  %v5899_v31 = vpop.f32.mrf.mxu1 }
 0x1d3   :  { %v5900_v63 = vadd.f32 %v5899_v31, %v5898_v8  ;;  %v5843_v33 = vpop.f32.mrf.mxu0  ;;  %4733 = vmatmul.mubr.bf16.gmra.mxu0 %v5059_v52 }
 0x1d4   :  { %v4172_v42 = vadd.f32 %v5842_v59, %v8286_v41  ;;  %v5901_v57 = vpop.f32.mrf.mxu1  ;;  %4822 = vmatmul.mubr.bf16.gmra.mxu1 %v5061_v45  ;;  %4740 = vmatprep.mubr.bf16.mxu0 %v5092_v3 }
 0x1d5   :  { %v5844_v62 = vpop.f32.mrf.mxu0  ;;  %4829 = vmatprep.mubr.bf16.mxu1 %v5094_v48 }
 0x1d6   :  { %v8406_v43 = vadd.f32 %v5900_v63, %v4172_v42  ;;  %v5845_v58 = vadd.f32 %v5844_v62, %v5843_v33  ;;  %v5902_v16 = vpop.f32.mrf.mxu1 }
 0x1d7   :  { %v5903_v46 = vadd.f32 %v5902_v16, %v5901_v57  ;;  %v5846_v6 = vpop.f32.mrf.mxu0 }
 0x1d8   :  { %v4177_v26 = vadd.f32 %v5845_v58, %v8295_v7  ;;  %v5904_v13 = vpop.f32.mrf.mxu1 }
 0x1d9   :  { %v5847_v0 = vpop.f32.mrf.mxu0 }
 0x1da   :  { %v8409_v39 = vadd.f32 %v5903_v46, %v4177_v26  ;;  %v5848_v41 = vadd.f32 %v5847_v0, %v5846_v6  ;;  %v5905_v15 = vpop.f32.mrf.mxu1 }
 0x1db   :  { %v5906_v38 = vadd.f32 %v5905_v15, %v5904_v13  ;;  %v5849_v56 = vpop.f32.mrf.mxu0  ;;  %4741 = vmatmul.mubr.bf16.gmra.mxu0 %v5091_v50 }
 0x1dc   :  { %v4180_v12 = vadd.f32 %v5848_v41, %v8304_v27  ;;  %v5907_v61 = vpop.f32.mrf.mxu1  ;;  %4830 = vmatmul.mubr.bf16.gmra.mxu1 %v5093_v55 }
 0x1dd   :  { %v5850_v51 = vpop.f32.mrf.mxu0 }
 0x1de   :  { %v8412_v2 = vadd.f32 %v5906_v38, %v4180_v12  ;;  %v5851_v10 = vadd.f32 %v5850_v51, %v5849_v56  ;;  %v5908_v5 = vpop.f32.mrf.mxu1 }
 0x1df   :  { %v5909_v7 = vadd.f32 %v5908_v5, %v5907_v61  ;;  %v5852_v1 = vpop.f32.mrf.mxu0 }
 0x1e0   :  { %v4185_v28 = vadd.f32 %v5851_v10, %v8313_v17  ;;  %v5910_v19 = vpop.f32.mrf.mxu1 }
 0x1e1   :  { %v5853_v22 = vpop.f32.mrf.mxu0 }
 0x1e2   :  { %v8415_v23 = vadd.f32 %v5909_v7, %v4185_v28  ;;  %v5854_v11 = vadd.f32 %v5853_v22, %v5852_v1  ;;  %v5911_v30 = vpop.f32.mrf.mxu1 }
 0x1e3   :  { %v5912_v32 = vadd.f32 %v5911_v30, %v5910_v19  ;;  %v5855_v18 = vpop.f32.mrf.mxu0 }
 0x1e4   :  { %v4188_v27 = vadd.f32 %v5854_v11, %v8322_v49  ;;  %v5913_v35 = vpop.f32.mrf.mxu1 }
 0x1e5   :  { %v5856_v21 = vpop.f32.mrf.mxu0 }
 0x1e6   :  { %v8418_v20 = vadd.f32 %v5912_v32, %v4188_v27  ;;  %v5857_v9 = vadd.f32 %v5856_v21, %v5855_v18  ;;  %v5914_v24 = vpop.f32.mrf.mxu1 }
 0x1e7   :  { %v5915_v54 = vadd.f32 %v5914_v24, %v5913_v35  ;;  %v5858_v40 = vpop.f32.mrf.mxu0 }
 0x1e8   :  { %v4193_v17 = vadd.f32 %v5857_v9, %v8331_v47  ;;  %v5916_v52 = vpop.f32.mrf.mxu1 }
 0x1e9   :  { %v5859_v29 = vpop.f32.mrf.mxu0 }
 0x1ea   :  { %v8421_v8 = vadd.f32 %v5915_v54, %v4193_v17  ;;  %v5860_v45 = vadd.f32 %v5859_v29, %v5858_v40  ;;  %v5917_v3 = vpop.f32.mrf.mxu1 }
 0x1eb   :  { %v5918_v34 = vadd.f32 %v5917_v3, %v5916_v52  ;;  %v5861_v48 = vpop.f32.mrf.mxu0 }
 0x1ec   :  { %v4196_v49 = vadd.f32 %v5860_v45, %v8340_v60  ;;  %v5919_v59 = vpop.f32.mrf.mxu1 }
 0x1ed   :  { %v5862_v31 = vpop.f32.mrf.mxu0 }
 0x1ee   :  { %v8424_v63 = vadd.f32 %v5918_v34, %v4196_v49  ;;  %v5863_v33 = vadd.f32 %v5862_v31, %v5861_v48  ;;  %v5920_v42 = vpop.f32.mrf.mxu1 }
 0x1ef   :  { %v5921_v57 = vadd.f32 %v5920_v42, %v5919_v59  ;;  %v5864_v62 = vpop.f32.mrf.mxu0 }
 0x1f0   :  { %v4201_v47 = vadd.f32 %v5863_v33, %v8349_v14  ;;  %v5922_v58 = vpop.f32.mrf.mxu1 }
 0x1f1   :  { %v5865_v16 = vpop.f32.mrf.mxu0 }
 0x1f2   :  { %v8427_v46 = vadd.f32 %v5921_v57, %v4201_v47  ;;  %v5866_v6 = vadd.f32 %v5865_v16, %v5864_v62  ;;  %v5923_v50 = vpop.f32.mrf.mxu1 }
 0x1f3   :  { %v5924_v26 = vadd.f32 %v5923_v50, %v5922_v58  ;;  %v5867_v13 = vpop.f32.mrf.mxu0 }
 0x1f4   :  { %v4204_v60 = vadd.f32 %v5866_v6, %v8358_v25  ;;  %v5925_v55 = vpop.f32.mrf.mxu1 }
 0x1f5   :  { %v5868_v0 = vpop.f32.mrf.mxu0 }
 0x1f6   :  { %v8430_v41 = vadd.f32 %v5924_v26, %v4204_v60  ;;  %v5869_v15 = vadd.f32 %v5868_v0, %v5867_v13  ;;  %v5926_v38 = vpop.f32.mrf.mxu1 }
 0x1f7   :  { %v5927_v56 = vadd.f32 %v5926_v38, %v5925_v55  ;;  %v5870_v12 = vpop.f32.mrf.mxu0 }
 0x1f8   :  { %v4209_v14 = vadd.f32 %v5869_v15, %v8367_v37  ;;  %v5928_v61 = vpop.f32.mrf.mxu1 }
 0x1f9   :  { %v5871_v51 = vpop.f32.mrf.mxu0 }
 0x1fa   :  { %v8433_v10 = vadd.f32 %v5927_v56, %v4209_v14  ;;  %v5872_v5 = vadd.f32 %v5871_v51, %v5870_v12  ;;  %v5929_v7 = vpop.f32.mrf.mxu1 }
 0x1fb   :  { %v5930_v1 = vadd.f32 %v5929_v7, %v5928_v61  ;;  %v5947_v28 = vpop.f32.mrf.mxu0 }
 0x1fc   :  { %v4212_v25 = vadd.f32 %v5872_v5, %v8376_v53  ;;  %v6005_v19 = vpop.f32.mrf.mxu1 }
 0x1fd   :  { %v5948_v22 = vpop.f32.mrf.mxu0 }
 0x1fe   :  { %v8436_v11 = vadd.f32 %v5930_v1, %v4212_v25  ;;  %v5949_v30 = vadd.f32 %v5948_v22, %v5947_v28  ;;  %v6006_v32 = vpop.f32.mrf.mxu1 }
 0x1ff   :  { %v6007_v18 = vadd.f32 %v6006_v32, %v6005_v19  ;;  %v5950_v27 = vpop.f32.mrf.mxu0 }
 0x200   :  { %v4339_v37 = vadd.f32 %v5949_v30, %v8385_v4  ;;  %v6008_v35 = vpop.f32.mrf.mxu1 }
 0x201   :  { %v5951_v21 = vpop.f32.mrf.mxu0 }
 0x202   :  { %v8439_v9 = vadd.f32 %v6007_v18, %v4339_v37  ;;  %v5952_v24 = vadd.f32 %v5951_v21, %v5950_v27  ;;  %v6009_v54 = vpop.f32.mrf.mxu1 }
 0x203   :  { %v6010_v40 = vadd.f32 %v6009_v54, %v6008_v35  ;;  %v5953_v17 = vpop.f32.mrf.mxu0 }
 0x204   :  { %v4342_v53 = vadd.f32 %v5952_v24, %v8394_v44  ;;  %v6011_v52 = vpop.f32.mrf.mxu1 }
 0x205   :  { %v5954_v29 = vpop.f32.mrf.mxu0 }
 0x206   :  { %v8442_v45 = vadd.f32 %v6010_v40, %v4342_v53  ;;  %v5955_v3 = vadd.f32 %v5954_v29, %v5953_v17  ;;  %v6012_v34 = vpop.f32.mrf.mxu1 }
 0x207   :  { %v6013_v48 = vadd.f32 %v6012_v34, %v6011_v52  ;;  %v5956_v49 = vpop.f32.mrf.mxu0 }
 0x208   :  { %v4347_v4 = vadd.f32 %v5955_v3, %v8403_v36  ;;  %v6014_v59 = vpop.f32.mrf.mxu1 }
 0x209   :  { %v5957_v31 = vpop.f32.mrf.mxu0 }
 0x20a   :  { %v8445_v33 = vadd.f32 %v6013_v48, %v4347_v4  ;;  %v5958_v42 = vadd.f32 %v5957_v31, %v5956_v49  ;;  %v6015_v57 = vpop.f32.mrf.mxu1 }
 0x20b   :  { %v6016_v62 = vadd.f32 %v6015_v57, %v6014_v59  ;;  %v5959_v47 = vpop.f32.mrf.mxu0 }
 0x20c   :  { %v4350_v44 = vadd.f32 %v5958_v42, %v8406_v43  ;;  %v6017_v58 = vpop.f32.mrf.mxu1 }
 0x20d   :  { %v5960_v16 = vpop.f32.mrf.mxu0 }
 0x20e   :  { %v8448_v6 = vadd.f32 %v6016_v62, %v4350_v44  ;;  %v5961_v50 = vadd.f32 %v5960_v16, %v5959_v47  ;;  %v6018_v26 = vpop.f32.mrf.mxu1 }
 0x20f   :  { %v6019_v13 = vadd.f32 %v6018_v26, %v6017_v58  ;;  %v5962_v60 = vpop.f32.mrf.mxu0 }
 0x210   :  { %v4355_v36 = vadd.f32 %v5961_v50, %v8409_v39  ;;  %v6020_v55 = vpop.f32.mrf.mxu1 }
 0x211   :  { %v5963_v0 = vpop.f32.mrf.mxu0 }
 0x212   :  { %v8451_v15 = vadd.f32 %v6019_v13, %v4355_v36  ;;  %v5964_v38 = vadd.f32 %v5963_v0, %v5962_v60  ;;  %v6021_v56 = vpop.f32.mrf.mxu1 }
 0x213   :  { %v6022_v12 = vadd.f32 %v6021_v56, %v6020_v55  ;;  %v5965_v14 = vpop.f32.mrf.mxu0 }
 0x214   :  { %v4358_v43 = vadd.f32 %v5964_v38, %v8412_v2  ;;  %v6023_v61 = vpop.f32.mrf.mxu1 }
 0x215   :  { %v5966_v51 = vpop.f32.mrf.mxu0 }
 0x216   :  { %v8454_v5 = vadd.f32 %v6022_v12, %v4358_v43  ;;  %v5967_v7 = vadd.f32 %v5966_v51, %v5965_v14  ;;  %v6024_v1 = vpop.f32.mrf.mxu1 }
 0x217   :  { %v6025_v28 = vadd.f32 %v6024_v1, %v6023_v61  ;;  %v5968_v25 = vpop.f32.mrf.mxu0 }
 0x218   :  { %v4363_v39 = vadd.f32 %v5967_v7, %v8415_v23  ;;  %v6026_v19 = vpop.f32.mrf.mxu1 }
 0x219   :  { %v5969_v22 = vpop.f32.mrf.mxu0 }
 0x21a   :  { %v8457_v30 = vadd.f32 %v6025_v28, %v4363_v39  ;;  %v5970_v32 = vadd.f32 %v5969_v22, %v5968_v25  ;;  %v6027_v18 = vpop.f32.mrf.mxu1 }
 0x21b   :  { %v6028_v27 = vadd.f32 %v6027_v18, %v6026_v19  ;;  %v5971_v37 = vpop.f32.mrf.mxu0 }
 0x21c   :  { %v4366_v2 = vadd.f32 %v5970_v32, %v8418_v20  ;;  %v6029_v35 = vpop.f32.mrf.mxu1 }
 0x21d   :  { %v5972_v21 = vpop.f32.mrf.mxu0 }
 0x21e   :  { %v8460_v24 = vadd.f32 %v6028_v27, %v4366_v2  ;;  %v5973_v54 = vadd.f32 %v5972_v21, %v5971_v37  ;;  %v6030_v40 = vpop.f32.mrf.mxu1 }
 0x21f   :  { %v6031_v17 = vadd.f32 %v6030_v40, %v6029_v35  ;;  %v5974_v53 = vpop.f32.mrf.mxu0 }
 0x220   :  { %v4371_v23 = vadd.f32 %v5973_v54, %v8421_v8  ;;  %v6032_v52 = vpop.f32.mrf.mxu1 }
 0x221   :  { %v5975_v29 = vpop.f32.mrf.mxu0 }
 0x222   :  { %v8463_v3 = vadd.f32 %v6031_v17, %v4371_v23  ;;  %v5976_v34 = vadd.f32 %v5975_v29, %v5974_v53  ;;  %v6033_v48 = vpop.f32.mrf.mxu1 }
 0x223   :  { %v6034_v49 = vadd.f32 %v6033_v48, %v6032_v52  ;;  %v5977_v4 = vpop.f32.mrf.mxu0 }
 0x224   :  { %v4374_v20 = vadd.f32 %v5976_v34, %v8424_v63  ;;  %v6035_v59 = vpop.f32.mrf.mxu1 }
 0x225   :  { %v5978_v31 = vpop.f32.mrf.mxu0 }
 0x226   :  { %v8466_v42 = vadd.f32 %v6034_v49, %v4374_v20  ;;  %v5979_v57 = vadd.f32 %v5978_v31, %v5977_v4  ;;  %v6036_v62 = vpop.f32.mrf.mxu1 }
 0x227   :  { %v6037_v47 = vadd.f32 %v6036_v62, %v6035_v59  ;;  %v5980_v44 = vpop.f32.mrf.mxu0 }
 0x228   :  { %v4379_v8 = vadd.f32 %v5979_v57, %v8427_v46  ;;  %v6038_v58 = vpop.f32.mrf.mxu1 }
 0x229   :  { %v5981_v16 = vpop.f32.mrf.mxu0 }
 0x22a   :  { %v8469_v50 = vadd.f32 %v6037_v47, %v4379_v8  ;;  %v5982_v26 = vadd.f32 %v5981_v16, %v5980_v44  ;;  %v6039_v13 = vpop.f32.mrf.mxu1 }
 0x22b   :  { %v6040_v60 = vadd.f32 %v6039_v13, %v6038_v58  ;;  %v5983_v36 = vpop.f32.mrf.mxu0 }
 0x22c   :  { %8678 = vst [vmem:[#allocation2_spill] sm:$0xff] %v8469_v50  ;;  %v4382_v63 = vadd.f32 %v5982_v26, %v8430_v41  ;;  %v6041_v55 = vpop.f32.mrf.mxu1 }
 0x22d   :  { %v5984_v0 = vpop.f32.mrf.mxu0 }
 0x22e   :  { %v8472_v38 = vadd.f32 %v6040_v60, %v4382_v63  ;;  %v5985_v56 = vadd.f32 %v5984_v0, %v5983_v36  ;;  %v6042_v12 = vpop.f32.mrf.mxu1 }
 0x22f   :  { %v6043_v14 = vadd.f32 %v6042_v12, %v6041_v55  ;;  %v5986_v43 = vpop.f32.mrf.mxu0 }
 0x230   :  { %8679 = vst [vmem:[#allocation3_spill] sm:$0xff] %v8472_v38  ;;  %v4387_v46 = vadd.f32 %v5985_v56, %v8433_v10  ;;  %v6044_v61 = vpop.f32.mrf.mxu1 }
 0x231   :  { %v5987_v51 = vpop.f32.mrf.mxu0 }
 0x232   :  { %v8475_v7 = vadd.f32 %v6043_v14, %v4387_v46  ;;  %v5988_v1 = vadd.f32 %v5987_v51, %v5986_v43  ;;  %v6045_v28 = vpop.f32.mrf.mxu1 }
 0x233   :  { %v6046_v25 = vadd.f32 %v6045_v28, %v6044_v61  ;;  %v6063_v39 = vpop.f32.mrf.mxu0 }
 0x234   :  { %8680 = vst [vmem:[#allocation4_spill] sm:$0xff] %v8475_v7  ;;  %v4390_v41 = vadd.f32 %v5988_v1, %v8436_v11  ;;  %v6121_v19 = vpop.f32.mrf.mxu1 }
 0x235   :  { %v6064_v22 = vpop.f32.mrf.mxu0 }
 0x236   :  { %v8478_v32 = vadd.f32 %v6046_v25, %v4390_v41  ;;  %v6122_v18 = vpop.f32.mrf.mxu1  ;;  %v6065_v7 = vadd.f32 %v6064_v22, %v6063_v39 }
 0x237   :  { %v6066_v27 = vpop.f32.mrf.mxu0 }
 0x238   :  { %8681 = vst [vmem:[#allocation5_spill] sm:$0xff] %v8478_v32  ;;  %v8480_v37 = vpop.f32.mrf.mxu1 }
 0x239   :  { %v6067_v2 = vpop.f32.mrf.mxu0 }
 0x23a   :  { %v6125_v10 = vpop.f32.mrf.mxu1 }
 0x23b   :  { %v6069_v35 = vpop.f32.mrf.mxu0 }
 0x23c   :  { %v8482_v21 = vpop.f32.mrf.mxu1 }
 0x23d   :  { %v6070_v54 = vpop.f32.mrf.mxu0 }
 0x23e   :  { %v8484_v40 = vpop.f32.mrf.mxu1 }
 0x23f   :  { %v8486_v17 = vpop.f32.mrf.mxu0 }
 0x240   :  { %v8488_v53 = vpop.f32.mrf.mxu1 }
 0x241   :  { %v6073_v11 = vpop.f32.mrf.mxu0 }
 0x242   :  { %v8490_v23 = vpop.f32.mrf.mxu1 }
 0x243   :  { %v8492_v52 = vpop.f32.mrf.mxu0 }
 0x244   :  { %v8494_v29 = vpop.f32.mrf.mxu1 }
 0x245   :  { %v8496_v34 = vpop.f32.mrf.mxu0 }
 0x246   :  { %v8498_v48 = vpop.f32.mrf.mxu1 }
 0x247   :  { %v8500_v49 = vpop.f32.mrf.mxu0 }
 0x248   :  { %v8502_v4 = vpop.f32.mrf.mxu1 }
 0x249   :  { %v8504_v20 = vpop.f32.mrf.mxu0 }
 0x24a   :  { %v8506_v59 = vpop.f32.mrf.mxu1 }
 0x24b   :  { %v8508_v31 = vpop.f32.mrf.mxu0 }
 0x24c   :  { %v8510_v57 = vpop.f32.mrf.mxu1 }
 0x24d   :  { %v8512_v62 = vpop.f32.mrf.mxu0 }
 0x24e   :  { %v8514_v47 = vpop.f32.mrf.mxu1 }
 0x24f   :  { %v8516_v44 = vpop.f32.mrf.mxu0 }
 0x250   :  { %v8518_v8 = vpop.f32.mrf.mxu1 }
 0x251   :  { %v8520_v58 = vpop.f32.mrf.mxu0 }
 0x252   :  { %v8522_v16 = vpop.f32.mrf.mxu1 }
 0x253   :  { %v8524_v26 = vpop.f32.mrf.mxu0 }
 0x254   :  { %v8526_v13 = vpop.f32.mrf.mxu1 }
 0x255   :  { %v8528_v60 = vpop.f32.mrf.mxu0 }
 0x256   :  { %v8530_v36 = vpop.f32.mrf.mxu1 }
 0x257   :  { %v8532_v63 = vpop.f32.mrf.mxu0 }
 0x258   :  { %v8534_v55 = vpop.f32.mrf.mxu1 }
 0x259   :  { %8682 = vst [vmem:[#allocation6_spill] sm:$0xff] %v8534_v55  ;;  %v8536_v0 = vpop.f32.mrf.mxu0 }
 0x25a   :  { %v8538_v56 = vpop.f32.mrf.mxu1 }
 0x25b   :  { %8683 = vst [vmem:[#allocation7_spill] sm:$0xff] %v8538_v56  ;;  %v8540_v12 = vpop.f32.mrf.mxu0 }
 0x25c   :  { %8684 = vst [vmem:[#allocation8_spill] sm:$0xff] %v8540_v12  ;;  %v8542_v14 = vpop.f32.mrf.mxu1 }
 0x25d   :  { %8685 = vst [vmem:[#allocation9_spill] sm:$0xff] %v8542_v14  ;;  %v8544_v43 = vpop.f32.mrf.mxu0 }
 0x25e   :  { %8686 = vst [vmem:[#allocation10_spill] sm:$0xff] %v8544_v43  ;;  %v8546_v46 = vpop.f32.mrf.mxu1 }
 0x25f   :  { %8687 = vst [vmem:[#allocation11_spill] sm:$0xff] %v8546_v46  ;;  %v8548_v61 = vpop.f32.mrf.mxu0 }
 0x260   :  { %8688 = vst [vmem:[#allocation12_spill] sm:$0xff] %v8548_v61  ;;  %v8550_v51 = vpop.f32.mrf.mxu1 }
 0x261   :  { %8689 = vst [vmem:[#allocation13_spill] sm:$0xff] %v8550_v51  ;;  %v8552_v1 = vpop.f32.mrf.mxu0  ;;  %v4517_v51 = vadd.f32 %v6065_v7, %v8439_v9 }
 0x262   :  { %8690 = vst [vmem:[#allocation14_spill] sm:$0xff] %v8552_v1  ;;  %v8554_v28 = vpop.f32.mrf.mxu1  ;;  %v6068_v1 = vadd.f32 %v6067_v2, %v6066_v27 }
 0x263   :  { %8691 = vst [vmem:[#allocation15_spill] sm:$0xff] %v8554_v28  ;;  %v8556_v25 = vpop.f32.mrf.mxu0 }
 0x264   :  { %8692 = vst [vmem:[#allocation16_spill] sm:$0xff] %v8556_v25  ;;  %v8558_v41 = vpop.f32.mrf.mxu1  ;;  %v6123_v25 = vadd.f32 %v6122_v18, %v6121_v19  ;;  %v4520_v39 = vadd.f32 %v6068_v1, %v8442_v45  ;;  %v6074_v19 = vadd.f32 %v6073_v11, %v8486_v17  ;;  %v6129_v45 = vadd.f32 %v8484_v40, %v8482_v21 }
 0x265   :  { %8693 = vst [vmem:[#allocation17_spill] sm:$0xff] %v8558_v41  ;;  %v8560_v32 = vpop.f32.mrf.mxu0  ;;  %v6071_v41 = vadd.f32 %v6070_v54, %v6069_v35  ;;  %v6132_v40 = vadd.f32 %v8490_v23, %v8488_v53  ;;  %v6135_v53 = vadd.f32 %v8498_v48, %v8494_v29  ;;  %v6138_v29 = vadd.f32 %v8506_v59, %v8502_v4 }
 0x266   :  { %8694 = vst [vmem:[#allocation18_spill] sm:$0xff] %v8560_v32  ;;  %v8562_v38 = vpop.f32.mrf.mxu1  ;;  %v4606_v32 = vadd.f32 %v6123_v25, %v4517_v51  ;;  %v6141_v59 = vadd.f32 %v8514_v47, %v8510_v57  ;;  %v6144_v57 = vadd.f32 %v8522_v16, %v8518_v8  ;;  %v6147_v8 = vadd.f32 %v8530_v36, %v8526_v13  ;;  %v8701_v36 = vld [vmem:[#allocation6_spill] sm:$0xff] }
 0x267   :  { %8695 = vst [vmem:[#allocation19_spill] sm:$0xff] %v8562_v38  ;;  %v8564_v14 = vpop.f32.mrf.mxu0  ;;  %v4525_v9 = vadd.f32 %v6071_v41, %v8445_v33  ;;  %v6077_v33 = vadd.f32 %v8496_v34, %v8492_v52 }
 0x268   :  { %8696 = vst [vmem:[#allocation20_spill] sm:$0xff] %v8564_v14  ;;  %v8566_v46 = vpop.f32.mrf.mxu1 }
 0x269   :  { %8697 = vst [vmem:[#allocation21_spill] sm:$0xff] %v8566_v46  ;;  %v8568_v50 = vpop.f32.mrf.mxu0  ;;  %v6126_v46 = vadd.f32 %v6125_v10, %v8480_v37  ;;  %v4528_v10 = vadd.f32 %v6074_v19, %v8448_v6  ;;  %v6080_v6 = vadd.f32 %v8504_v20, %v8500_v49  ;;  %v4533_v34 = vadd.f32 %v6077_v33, %v8451_v15 }
 0x26a   :  { %8698 = vst [vmem:[#allocation22_spill] sm:$0xff] %v8568_v50  ;;  %v8571_v61 = vpop.f32.mrf.mxu1  ;;  %v6083_v15 = vadd.f32 %v8512_v62, %v8508_v31  ;;  %v6086_v31 = vadd.f32 %v8520_v58, %v8516_v44 }
 0x26b   :  { %v6179_v28 = vpop.f32.mrf.mxu0  ;;  %v4609_v27 = vadd.f32 %v6126_v46, %v4520_v39  ;;  %v4617_v52 = vadd.f32 %v6132_v40, %v4528_v10  ;;  %v4536_v49 = vadd.f32 %v6080_v6, %v8454_v5 }
 0x26c   :  { %v6237_v56 = vpop.f32.mrf.mxu1  ;;  %v4544_v58 = vadd.f32 %v6086_v31, %v8460_v24  ;;  %v6092_v24 = vadd.f32 %v8536_v0, %v8532_v63  ;;  %v8699_v63 = vld [vmem:[#allocation8_spill] sm:$0xff]  ;;  %v8700_v0 = vld [vmem:[#allocation10_spill] sm:$0xff] }
 0x26d   :  { %v6180_v55 = vpop.f32.mrf.mxu0 }
 0x26e   :  { %v6181_v22 = vadd.f32 %v6180_v55, %v6179_v28  ;;  %v6238_v38 = vpop.f32.mrf.mxu1  ;;  %v4633_v6 = vadd.f32 %v6144_v57, %v4544_v58  ;;  %v8710_v58 = vld [vmem:[#allocation18_spill] sm:$0xff]  ;;  %v8711_v57 = vld [vmem:[#allocation13_spill] sm:$0xff] }
 0x26f   :  { %v6182_v14 = vpop.f32.mrf.mxu0  ;;  %v6239_v50 = vadd.f32 %v6238_v38, %v6237_v56 }
 0x270   :  { %v4695_v43 = vadd.f32 %v6181_v22, %v4606_v32  ;;  %v6240_v12 = vpop.f32.mrf.mxu1  ;;  %v4614_v32 = vadd.f32 %v6129_v45, %v4525_v9 }
 0x271   :  { %v6183_v7 = vpop.f32.mrf.mxu0 }
 0x272   :  { %v4784_v18 = vadd.f32 %v6239_v50, %v4695_v43  ;;  %v6184_v2 = vadd.f32 %v6183_v7, %v6182_v14  ;;  %v6241_v35 = vpop.f32.mrf.mxu1 }
 0x273   :  { %v6185_v54 = vpop.f32.mrf.mxu0  ;;  %v6242_v1 = vadd.f32 %v6241_v35, %v6240_v12 }
 0x274   :  { %v4838_v55 = vmax.f32 %v4784_v18, 0.0  ;;  %v4698_v51 = vadd.f32 %v6184_v2, %v4609_v27  ;;  %v6243_v37 = vpop.f32.mrf.mxu1  ;;  %v4622_v27 = vadd.f32 %v6135_v53, %v4533_v34 }
 0x275   :  { %v6186_v38 = vpop.f32.mrf.mxu0 }
 0x276   :  { %4852 = vst [vmem:[%s8677_s3] sm:$0xff] %v4838_v55  ;;  %v4787_v50 = vadd.f32 %v6242_v1, %v4698_v51  ;;  %v6187_v17 = vadd.f32 %v6186_v38, %v6185_v54  ;;  %v6244_v11 = vpop.f32.mrf.mxu1  ;;  %v4625_v55 = vadd.f32 %v6138_v29, %v4536_v49  ;;  %v4541_v1 = vadd.f32 %v6083_v15, %v8457_v30  ;;  %v8703_v29 = vld [vmem:[#allocation12_spill] sm:$0xff] }
 0x277   :  { %v6188_v21 = vpop.f32.mrf.mxu0  ;;  %v6245_v14 = vadd.f32 %v6244_v11, %v6243_v37  ;;  %v6089_v30 = vadd.f32 %v8528_v60, %v8524_v26 }
 0x278   :  { %v4839_v56 = vmax.f32 %v4787_v50, 0.0  ;;  %v4703_v12 = vadd.f32 %v6187_v17, %v4614_v32  ;;  %v6246_v43 = vpop.f32.mrf.mxu1  ;;  %v4630_v44 = vadd.f32 %v6141_v59, %v4541_v1 }
 0x279   :  { %v6189_v46 = vpop.f32.mrf.mxu0  ;;  %v4549_v26 = vadd.f32 %v6089_v30, %v8463_v3 }
 0x27a   :  { %4853 = vst [vmem:[%s8677_s3 + $0x8] sm:$0xff] %v4839_v56  ;;  %v4792_v28 = vadd.f32 %v6245_v14, %v4703_v12  ;;  %v6190_v25 = vadd.f32 %v6189_v46, %v6188_v21  ;;  %v6247_v41 = vpop.f32.mrf.mxu1 }
 0x27b   :  { %v6191_v39 = vpop.f32.mrf.mxu0  ;;  %v6248_v9 = vadd.f32 %v6247_v41, %v6246_v43 }
 0x27c   :  { %v4840_v23 = vmax.f32 %v4792_v28, 0.0  ;;  %v4706_v22 = vadd.f32 %v6190_v25, %v4617_v52  ;;  %v6249_v7 = vpop.f32.mrf.mxu1 }
 0x27d   :  { %v6192_v20 = vpop.f32.mrf.mxu0 }
 0x27e   :  { %4854 = vst [vmem:[%s8677_s3 + $0x10] sm:$0xff] %v4840_v23  ;;  %v4795_v19 = vadd.f32 %v6248_v9, %v4706_v22  ;;  %v6193_v18 = vadd.f32 %v6192_v20, %v6191_v39  ;;  %v6250_v2 = vpop.f32.mrf.mxu1  ;;  %v4638_v39 = vadd.f32 %v6147_v8, %v4549_v26  ;;  %v4552_v23 = vadd.f32 %v6092_v24, %v8466_v42  ;;  %v8702_v20 = vld [vmem:[#allocation7_spill] sm:$0xff]  ;;  %v8704_v42 = vld [vmem:[#allocation14_spill] sm:$0xff]  ;;  %v8714_v8 = vld [vmem:[#allocation20_spill] sm:$0xff] }
 0x27f   :  { %v6194_v48 = vpop.f32.mrf.mxu0  ;;  %v6251_v54 = vadd.f32 %v6250_v2, %v6249_v7  ;;  %v6095_v22 = vadd.f32 %v8700_v0, %v8699_v63 }
 0x280   :  { %v4841_v35 = vmax.f32 %v4795_v19, 0.0  ;;  %v4711_v45 = vadd.f32 %v6193_v18, %v4622_v27  ;;  %v6252_v5 = vpop.f32.mrf.mxu1  ;;  %v6150_v27 = vadd.f32 %v8702_v20, %v8701_v36  ;;  %v8718_v36 = vld [vmem:[#allocation5_spill] sm:$0xff] }
 0x281   :  { %v6195_v51 = vpop.f32.mrf.mxu0 }
 0x282   :  { %4855 = vst [vmem:[%s8677_s3 + $0x18] sm:$0xff] %v4841_v35  ;;  %v4800_v62 = vadd.f32 %v6251_v54, %v4711_v45  ;;  %v6196_v37 = vadd.f32 %v6195_v51, %v6194_v48  ;;  %v6253_v32 = vpop.f32.mrf.mxu1  ;;  %v6098_v48 = vadd.f32 %v8704_v42, %v8703_v29  ;;  %v4641_v45 = vadd.f32 %v6150_v27, %v4552_v23  ;;  %v8705_v54 = vld [vmem:[#allocation2_spill] sm:$0xff]  ;;  %v8717_v23 = vld [vmem:[#allocation19_spill] sm:$0xff] }
 0x283   :  { %v6197_v4 = vpop.f32.mrf.mxu0  ;;  %v6254_v33 = vadd.f32 %v6253_v32, %v6252_v5  ;;  %v4557_v5 = vadd.f32 %v6095_v22, %v8705_v54 }
 0x284   :  { %v4842_v38 = vmax.f32 %v4800_v62, 0.0  ;;  %v4714_v10 = vadd.f32 %v6196_v37, %v4625_v55  ;;  %v6255_v50 = vpop.f32.mrf.mxu1  ;;  %v8706_v62 = vld [vmem:[#allocation9_spill] sm:$0xff]  ;;  %v8707_v37 = vld [vmem:[#allocation11_spill] sm:$0xff] }
 0x285   :  { %v6198_v17 = vpop.f32.mrf.mxu0  ;;  %v6153_v32 = vadd.f32 %v8707_v37, %v8706_v62 }
 0x286   :  { %4856 = vst [vmem:[%s8677_s3 + $0x20] sm:$0xff] %v4842_v38  ;;  %v4803_v11 = vadd.f32 %v6254_v33, %v4714_v10  ;;  %v6199_v21 = vadd.f32 %v6198_v17, %v6197_v4  ;;  %v6256_v40 = vpop.f32.mrf.mxu1  ;;  %v8708_v33 = vld [vmem:[#allocation3_spill] sm:$0xff] }
 0x287   :  { %v6200_v56 = vpop.f32.mrf.mxu0  ;;  %v6257_v14 = vadd.f32 %v6256_v40, %v6255_v50  ;;  %v4560_v50 = vadd.f32 %v6098_v48, %v8708_v33  ;;  %v4646_v17 = vadd.f32 %v6153_v32, %v4557_v5 }
 0x288   :  { %v4843_v47 = vmax.f32 %v4803_v11, 0.0  ;;  %v4719_v12 = vadd.f32 %v6199_v21, %v4630_v44  ;;  %v6258_v43 = vpop.f32.mrf.mxu1  ;;  %v8709_v44 = vld [vmem:[#allocation16_spill] sm:$0xff] }
 0x289   :  { %v6201_v60 = vpop.f32.mrf.mxu0  ;;  %v6101_v11 = vadd.f32 %v8710_v58, %v8709_v44 }
 0x28a   :  { %4857 = vst [vmem:[%s8677_s3 + $0x28] sm:$0xff] %v4843_v47  ;;  %v4808_v46 = vadd.f32 %v6257_v14, %v4719_v12  ;;  %v6202_v52 = vadd.f32 %v6201_v60, %v6200_v56  ;;  %v6259_v34 = vpop.f32.mrf.mxu1  ;;  %v8712_v47 = vld [vmem:[#allocation15_spill] sm:$0xff] }
 0x28b   :  { %v6203_v16 = vpop.f32.mrf.mxu0  ;;  %v6260_v41 = vadd.f32 %v6259_v34, %v6258_v43  ;;  %v6156_v12 = vadd.f32 %v8712_v47, %v8711_v57 }
 0x28c   :  { %v4844_v28 = vmax.f32 %v4808_v46, 0.0  ;;  %v4722_v25 = vadd.f32 %v6202_v52, %v4633_v6  ;;  %v6261_v3 = vpop.f32.mrf.mxu1  ;;  %v8713_v52 = vld [vmem:[#allocation4_spill] sm:$0xff] }
 0x28d   :  { %v6204_v53 = vpop.f32.mrf.mxu0  ;;  %v4649_v24 = vadd.f32 %v6156_v12, %v4560_v50  ;;  %v4565_v34 = vadd.f32 %v6101_v11, %v8713_v52 }
 0x28e   :  { %4858 = vst [vmem:[%s8677_s3 + $0x30] sm:$0xff] %v4844_v28  ;;  %v4811_v9 = vadd.f32 %v6260_v41, %v4722_v25  ;;  %v6205_v7 = vadd.f32 %v6204_v53, %v6203_v16  ;;  %v6262_v49 = vpop.f32.mrf.mxu1  ;;  %v8715_v16 = vld [vmem:[#allocation22_spill] sm:$0xff]  ;;  %v8716_v53 = vld [vmem:[#allocation17_spill] sm:$0xff] }
 0x28f   :  { %v6206_v13 = vpop.f32.mrf.mxu0  ;;  %v6263_v18 = vadd.f32 %v6262_v49, %v6261_v3  ;;  %v6104_v28 = vadd.f32 %v8715_v16, %v8714_v8  ;;  %v6159_v63 = vadd.f32 %v8717_v23, %v8716_v53 }
 0x290   :  { %v4845_v15 = vmax.f32 %v4811_v9, 0.0  ;;  %v4727_v19 = vadd.f32 %v6205_v7, %v4638_v39  ;;  %v6264_v2 = vpop.f32.mrf.mxu1 }
 0x291   :  { %v6207_v35 = vpop.f32.mrf.mxu0  ;;  %v4568_v20 = vadd.f32 %v6104_v28, %v8718_v36 }
 0x292   :  { %4859 = vst [vmem:[%s8677_s3 + $0x38] sm:$0xff] %v4845_v15  ;;  %v4816_v55 = vadd.f32 %v6263_v18, %v4727_v19  ;;  %v6208_v51 = vadd.f32 %v6207_v35, %v6206_v13  ;;  %v6265_v1 = vpop.f32.mrf.mxu1  ;;  %v4654_v13 = vadd.f32 %v6159_v63, %v4565_v34 }
 0x293   :  { %v6209_v31 = vpop.f32.mrf.mxu0  ;;  %v6266_v38 = vadd.f32 %v6265_v1, %v6264_v2  ;;  %v8719_v2 = vld [vmem:[#allocation21_spill] sm:$0xff] }
 0x294   :  { %v4846_v4 = vmax.f32 %v4816_v55, 0.0  ;;  %v4730_v59 = vadd.f32 %v6208_v51, %v4641_v45  ;;  %v6267_v10 = vpop.f32.mrf.mxu1  ;;  %v6162_v29 = vadd.f32 %v8571_v61, %v8719_v2 }
 0x295   :  { %v6210_v30 = vpop.f32.mrf.mxu0 }
 0x296   :  { %4860 = vst [vmem:[%s8677_s3 + $0x40] sm:$0xff] %v4846_v4  ;;  %v4819_v21 = vadd.f32 %v6266_v38, %v4730_v59  ;;  %v6211_v40 = vadd.f32 %v6210_v30, %v6209_v31  ;;  %v6268_v56 = vpop.f32.mrf.mxu1  ;;  %v4657_v5 = vadd.f32 %v6162_v29, %v4568_v20 }
 0x297   :  { %v6212_v14 = vpop.f32.mrf.mxu0  ;;  %v6269_v60 = vadd.f32 %v6268_v56, %v6267_v10 }
 0x298   :  { %v4847_v43 = vmax.f32 %v4819_v21, 0.0  ;;  %v4735_v26 = vadd.f32 %v6211_v40, %v4646_v17  ;;  %v6270_v6 = vpop.f32.mrf.mxu1 }
 0x299   :  { %v6213_v46 = vpop.f32.mrf.mxu0 }
 0x29a   :  { %4861 = vst [vmem:[%s8677_s3 + $0x48] sm:$0xff] %v4847_v43  ;;  %v4824_v25 = vadd.f32 %v6269_v60, %v4735_v26  ;;  %v6214_v41 = vadd.f32 %v6213_v46, %v6212_v14  ;;  %v6271_v3 = vpop.f32.mrf.mxu1 }
 0x29b   :  { %v6215_v39 = vpop.f32.mrf.mxu0  ;;  %v6272_v9 = vadd.f32 %v6271_v3, %v6270_v6 }
 0x29c   :  { %v4848_v0 = vmax.f32 %v4824_v25, 0.0  ;;  %v4738_v22 = vadd.f32 %v6214_v41, %v4649_v24  ;;  %v6273_v7 = vpop.f32.mrf.mxu1 }
 0x29d   :  { %v6216_v49 = vpop.f32.mrf.mxu0 }
 0x29e   :  { %4862 = vst [vmem:[%s8677_s3 + $0x50] sm:$0xff] %v4848_v0  ;;  %v4827_v27 = vadd.f32 %v6272_v9, %v4738_v22  ;;  %v6217_v15 = vadd.f32 %v6216_v49, %v6215_v39  ;;  %v6274_v19 = vpop.f32.mrf.mxu1 }
 0x29f   :  { %v6218_v18 = vpop.f32.mrf.mxu0  ;;  %v6275_v35 = vadd.f32 %v6274_v19, %v6273_v7 }
 0x2a0   :  { %v4849_v42 = vmax.f32 %v4827_v27, 0.0  ;;  %v4743_v48 = vadd.f32 %v6217_v15, %v4654_v13  ;;  %v6276_v45 = vpop.f32.mrf.mxu1 }
 0x2a1   :  { %v6219_v54 = vpop.f32.mrf.mxu0 }
 0x2a2   :  { %4863 = vst [vmem:[%s8677_s3 + $0x58] sm:$0xff] %v4849_v42  ;;  %v4832_v55 = vadd.f32 %v6275_v35, %v4743_v48  ;;  %v6220_v51 = vadd.f32 %v6219_v54, %v6218_v18  ;;  %v6277_v1 = vpop.f32.mrf.mxu1 }
 0x2a3   :  { %v6278_v37 = vadd.f32 %v6277_v1, %v6276_v45 }
 0x2a4   :  { %v4850_v31 = vmax.f32 %v4832_v55, 0.0  ;;  %v4746_v62 = vadd.f32 %v6220_v51, %v4657_v5 }
 0x2a6   :  { %4864 = vst [vmem:[%s8677_s3 + $0x60] sm:$0xff] %v4850_v31  ;;  %v4835_v61 = vadd.f32 %v6278_v37, %v4746_v62 }
 0x2a8   :  { %v4851_v32 = vmax.f32 %v4835_v61, 0.0 }
 0x2aa   :  { %4865 = vst [vmem:[%s8677_s3 + $0x68] sm:$0xff] %v4851_v32 }

// kernel: generator_forward.12
= control target key start
LH: loop header
LB: loop body
LE: loop exit
PB: predicated region body
PF: predicated region fallthrough
CT: control target
= control target key end

     0   :  { %s1039_s12 = smov 0   ;;  %s1210_s0 = inlined_call_operand.vmem [shape: bf16[480,256], index: 0, kind: input, shape index: {}]   ;;  %s1211_s1 = inlined_call_operand.vmem [shape: bf16[256,128], index: 1, kind: input, shape index: {}]   ;;  %s1212_s2 = inlined_call_operand.vmem [shape: f32[1,128], index: 2, kind: input, shape index: {}]   ;;  %s1213_s3 = inlined_call_operand.vmem [shape: f32[480,128], index: 3, kind: output, shape index: {}]  }
   0x1 LB: > { %s762_s13 = sadd.s32 4294967295, %s1017_s12   ;;  %p766_p0 = scmp.ge.s32.totalorder %s1017_s12, 1  ;;  %s1017_s12 = sphi %s1039_s12, %s13_s12  }
   0x2   : > { %p139_p1 = scmp.lt.s32.totalorder %s1017_s12, 3 }
   0x4   : > { %p140_p2 = pnand %p766_p0, %p139_p1 }
   0x5   : > { %s164_s16 = smul.u32 (!%p140_p2), 30, %s762_s13 }
   0x6   : > { %143 = sbr.rel (%p140_p2) target bundleno = 306 (0x132), region = 32 }
   0x7   : > { %p165_p3 = scmp.lt.s32.totalorder (!%p140_p2), %s164_s16, 59 }
   0xb   : > { %v950_v0 = vld [vmem:[%s1211_s1 + $0x78] sm:$0xff]   ;;  %v952_v2 = vld [vmem:[%s1211_s1 + $0x70] sm:$0xff]   ;;  %v954_v4 = vld [vmem:[%s1211_s1 + $0x68] sm:$0xff]   ;;  %s1215_s16 = smov (!%p165_p3, %s164_s16), 59 }
   0xc   : > { %v951_v1 = vld [vmem:[%s1211_s1 + $0x38] sm:$0xff]   ;;  %820 = vmatprep.subr.bf16.mxu0 %v950_v0  ;;  %926 = vmatprep.subr.bf16.mxu1 %v950_v0  ;;  %v953_v3 = vld [vmem:[%s1211_s1 + $0x30] sm:$0xff]   ;;  %v955_v5 = vld [vmem:[%s1211_s1 + $0x28] sm:$0xff]   ;;  %s819_s4 = sshll.u32 %s1215_s16, 3 }
   0xd   : > { %821 = vmatpush3.bf16.msra.mxu0 %v951_v1  ;;  %934 = vmatpush3.bf16.msra.mxu1 %v951_v1  ;;  %v956_v6 = vld [vmem:[%s1211_s1 + $0x60] sm:$0xff]   ;;  %v958_v8 = vld [vmem:[%s1211_s1 + $0x58] sm:$0xff]   ;;  %s1082_s9 = scalar_lea.vmem %s1210_s0, %s819_s4  ;;  %v960_v10 = vld [vmem:[%s1211_s1 + $0x50] sm:$0xff]   ;;  %s1147_s30 = scalar_lea.vmem %s1213_s3, %s819_s4 }
   0xe   : > { %822 = vmatprep.subr.bf16.mxu0 %v952_v2  ;;  %927 = vmatprep.subr.bf16.mxu1 %v952_v2  ;;  %v957_v7 = vld [vmem:[%s1211_s1 + $0x20] sm:$0xff]   ;;  %v959_v9 = vld [vmem:[%s1211_s1 + $0x18] sm:$0xff]   ;;  %v961_v13 = vld [vmem:[%s1211_s1 + $0x10] sm:$0xff]  }
   0xf   : > { %v968_v11 = vld [vmem:[%s1082_s9 + $0x4] ss:$8 sps:$4 sm:$0xff]   ;;  %v966_v18 = vld [vmem:[%s1082_s9] ss:$8 sps:$4 sm:$0xff]   ;;  %v972_v20 = vld [vmem:[%s1082_s9 + $0x14] ss:$8 sps:$4 sm:$0xff]  }
  0x10   : > { %v971_v12 = vld [vmem:[%s1082_s9 + $0x84] ss:$8 sps:$4 sm:$0xff]   ;;  %525 = vmatprep.mubr.bf16.mxu0 %v968_v11  ;;  %v969_v19 = vld [vmem:[%s1082_s9 + $0x80] ss:$8 sps:$4 sm:$0xff]   ;;  %v975_v21 = vld [vmem:[%s1082_s9 + $0x94] ss:$8 sps:$4 sm:$0xff]  }
  0x11   : > { %823 = vmatpush3.bf16.msra.mxu0 %v953_v3  ;;  %935 = vmatpush3.bf16.msra.mxu1 %v953_v3  ;;  %v962_v14 = vld [vmem:[%s1211_s1 + $0x48] sm:$0xff]   ;;  %v964_v16 = vld [vmem:[%s1211_s1 + $0x40] sm:$0xff]   ;;  %v974_v22 = vld [vmem:[%s1082_s9 + $0x10] ss:$8 sps:$4 sm:$0xff]  }
  0x12   : > { %824 = vmatprep.subr.bf16.mxu0 %v954_v4  ;;  %928 = vmatprep.subr.bf16.mxu1 %v954_v4  ;;  %v963_v15 = vld [vmem:[%s1211_s1 + $0x8] sm:$0xff]   ;;  %v965_v17 = vld [vmem:[%s1211_s1] sm:$0xff]   ;;  %v977_v23 = vld [vmem:[%s1082_s9 + $0x90] ss:$8 sps:$4 sm:$0xff]  }
  0x13   : > { %589 = vmatprep.mubr.bf16.mxu1 %v971_v12  ;;  %v978_v24 = vld [vmem:[%s1082_s9 + $0x24] ss:$8 sps:$4 sm:$0xff]   ;;  %v980_v26 = vld [vmem:[%s1082_s9 + $0x20] ss:$8 sps:$4 sm:$0xff]   ;;  %v984_v28 = vld [vmem:[%s1082_s9 + $0x34] ss:$8 sps:$4 sm:$0xff]  }
  0x14   : > { %v981_v25 = vld [vmem:[%s1082_s9 + $0xa4] ss:$8 sps:$4 sm:$0xff]   ;;  %v983_v27 = vld [vmem:[%s1082_s9 + $0xa0] ss:$8 sps:$4 sm:$0xff]   ;;  %v987_v29 = vld [vmem:[%s1082_s9 + $0xb4] ss:$8 sps:$4 sm:$0xff]  }
  0x15   : > { %825 = vmatpush3.bf16.msra.mxu0 %v955_v5  ;;  %936 = vmatpush3.bf16.msra.mxu1 %v955_v5  ;;  %v986_v30 = vld [vmem:[%s1082_s9 + $0x30] ss:$8 sps:$4 sm:$0xff]   ;;  %v990_v32 = vld [vmem:[%s1082_s9 + $0x44] ss:$8 sps:$4 sm:$0xff]   ;;  %v992_v34 = vld [vmem:[%s1082_s9 + $0x40] ss:$8 sps:$4 sm:$0xff]  }
  0x16   : > { %826 = vmatprep.subr.bf16.mxu0 %v956_v6  ;;  %929 = vmatprep.subr.bf16.mxu1 %v956_v6  ;;  %v989_v31 = vld [vmem:[%s1082_s9 + $0xb0] ss:$8 sps:$4 sm:$0xff]   ;;  %v993_v33 = vld [vmem:[%s1082_s9 + $0xc4] ss:$8 sps:$4 sm:$0xff]   ;;  %v995_v35 = vld [vmem:[%s1082_s9 + $0xc0] ss:$8 sps:$4 sm:$0xff]  }
  0x17   : > { %v996_v36 = vld [vmem:[%s1082_s9 + $0x54] ss:$8 sps:$4 sm:$0xff]   ;;  %v998_v38 = vld [vmem:[%s1082_s9 + $0x50] ss:$8 sps:$4 sm:$0xff]   ;;  %v1002_v40 = vld [vmem:[%s1082_s9 + $0x64] ss:$8 sps:$4 sm:$0xff]  }
  0x18   : > { %v999_v37 = vld [vmem:[%s1082_s9 + $0xd4] ss:$8 sps:$4 sm:$0xff]   ;;  %v1001_v39 = vld [vmem:[%s1082_s9 + $0xd0] ss:$8 sps:$4 sm:$0xff]   ;;  %v1005_v41 = vld [vmem:[%s1082_s9 + $0xe4] ss:$8 sps:$4 sm:$0xff]  }
  0x19   : > { %827 = vmatpush3.bf16.msra.mxu0 %v957_v7  ;;  %937 = vmatpush3.bf16.msra.mxu1 %v957_v7  ;;  %v1004_v42 = vld [vmem:[%s1082_s9 + $0x60] ss:$8 sps:$4 sm:$0xff]   ;;  %v1008_v44 = vld [vmem:[%s1082_s9 + $0x74] ss:$8 sps:$4 sm:$0xff]   ;;  %v1010_v45 = vld [vmem:[%s1082_s9 + $0x70] ss:$8 sps:$4 sm:$0xff]  }
  0x1a   : > { %828 = vmatprep.subr.bf16.mxu0 %v958_v8  ;;  %930 = vmatprep.subr.bf16.mxu1 %v958_v8  ;;  %v1007_v43 = vld [vmem:[%s1082_s9 + $0xe0] ss:$8 sps:$4 sm:$0xff]  }
  0x1b   : > { %v1138_v48 = vld [vmem:[%s1212_s2] ss:$0 sm:$0xff] }
  0x1d   : > { %829 = vmatpush3.bf16.msra.mxu0 %v959_v9  ;;  %938 = vmatpush3.bf16.msra.mxu1 %v959_v9 }
  0x1e   : > { %830 = vmatprep.subr.bf16.mxu0 %v960_v10  ;;  %931 = vmatprep.subr.bf16.mxu1 %v960_v10 }
  0x21   : > { %831 = vmatpush3.bf16.msra.mxu0 %v961_v13  ;;  %939 = vmatpush3.bf16.msra.mxu1 %v961_v13 }
  0x22   : > { %832 = vmatprep.subr.bf16.mxu0 %v962_v14  ;;  %932 = vmatprep.subr.bf16.mxu1 %v962_v14 }
  0x25   : > { %833 = vmatpush3.bf16.msra.mxu0 %v963_v15  ;;  %940 = vmatpush3.bf16.msra.mxu1 %v963_v15 }
  0x26   : > { %834 = vmatprep.subr.bf16.mxu0 %v964_v16  ;;  %933 = vmatprep.subr.bf16.mxu1 %v964_v16 }
  0x29   : > { %835 = vmatpush3.bf16.msra.mxu0 %v965_v17  ;;  %941 = vmatpush3.bf16.msra.mxu1 %v965_v17 }
  0x2c   : > { %526 = vmatmul.mubr.bf16.vlgmr.msra.gmra.mxu0 %v966_v18  ;;  %590 = vmatmul.mubr.bf16.vlgmr.msra.gmra.mxu1 %v969_v19 }
  0x2d   : > { %533 = vmatprep.mubr.bf16.mxu0 %v972_v20  ;;  %597 = vmatprep.mubr.bf16.mxu1 %v975_v21 }
  0x34   : > { %534 = vmatmul.mubr.bf16.gmra.mxu0 %v974_v22  ;;  %598 = vmatmul.mubr.bf16.gmra.mxu1 %v977_v23 }
  0x35   : > { %541 = vmatprep.mubr.bf16.mxu0 %v978_v24  ;;  %605 = vmatprep.mubr.bf16.mxu1 %v981_v25 }
  0x3c   : > { %542 = vmatmul.mubr.bf16.gmra.mxu0 %v980_v26  ;;  %606 = vmatmul.mubr.bf16.gmra.mxu1 %v983_v27 }
  0x3d   : > { %549 = vmatprep.mubr.bf16.mxu0 %v984_v28  ;;  %613 = vmatprep.mubr.bf16.mxu1 %v987_v29 }
  0x44   : > { %550 = vmatmul.mubr.bf16.gmra.mxu0 %v986_v30  ;;  %614 = vmatmul.mubr.bf16.gmra.mxu1 %v989_v31 }
  0x45   : > { %557 = vmatprep.mubr.bf16.mxu0 %v990_v32  ;;  %621 = vmatprep.mubr.bf16.mxu1 %v993_v33 }
  0x4c   : > { %558 = vmatmul.mubr.bf16.gmra.mxu0 %v992_v34  ;;  %622 = vmatmul.mubr.bf16.gmra.mxu1 %v995_v35 }
  0x4d   : > { %565 = vmatprep.mubr.bf16.mxu0 %v996_v36  ;;  %629 = vmatprep.mubr.bf16.mxu1 %v999_v37 }
  0x54   : > { %566 = vmatmul.mubr.bf16.gmra.mxu0 %v998_v38  ;;  %630 = vmatmul.mubr.bf16.gmra.mxu1 %v1001_v39 }
  0x55   : > { %573 = vmatprep.mubr.bf16.mxu0 %v1002_v40  ;;  %637 = vmatprep.mubr.bf16.mxu1 %v1005_v41 }
  0x5c   : > { %574 = vmatmul.mubr.bf16.gmra.mxu0 %v1004_v42  ;;  %638 = vmatmul.mubr.bf16.gmra.mxu1 %v1007_v43 }
  0x5d   : > { %581 = vmatprep.mubr.bf16.mxu0 %v1008_v44 }
  0x64   : > { %582 = vmatmul.mubr.bf16.gmra.mxu0 %v1010_v45 }
  0xec   : > { %v836_v46 = vpop.f32.mrf.mxu0  ;;  %v884_v47 = vpop.f32.mrf.mxu1 }
  0xee   : > { %v837_v49 = vpop.f32.mrf.mxu0  ;;  %v885_v50 = vpop.f32.mrf.mxu1 }
  0xef   : > { %v838_v51 = vadd.f32 %v837_v49, %v836_v46  ;;  %v886_v52 = vadd.f32 %v885_v50, %v884_v47 }
  0xf0   : > { %v839_v53 = vpop.f32.mrf.mxu0  ;;  %v887_v54 = vpop.f32.mrf.mxu1 }
  0xf1   : > { %v528_v55 = vadd.f32 %v838_v51, %v1138_v48  ;;  %v592_v56 = vadd.f32 %v886_v52, %v1138_v48 }
  0xf2   : > { %v840_v57 = vpop.f32.mrf.mxu0  ;;  %v888_v58 = vpop.f32.mrf.mxu1 }
  0xf3   : > { %v646_v59 = vmax.f32 %v528_v55, 0.0  ;;  %v662_v60 = vmax.f32 %v592_v56, 0.0  ;;  %v841_v61 = vadd.f32 %v840_v57, %v839_v53  ;;  %v889_v62 = vadd.f32 %v888_v58, %v887_v54 }
  0xf4   : > { %v842_v63 = vpop.f32.mrf.mxu0  ;;  %v890_v0 = vpop.f32.mrf.mxu1 }
  0xf5   : > { %676 = vst [vmem:[%s1147_s30] sm:$0xff] %v646_v59  ;;  %692 = vst [vmem:[%s1147_s30 + $0x80] sm:$0xff] %v662_v60  ;;  %v531_v1 = vadd.f32 %v841_v61, %v1138_v48  ;;  %v595_v2 = vadd.f32 %v889_v62, %v1138_v48 }
  0xf6   : > { %v843_v3 = vpop.f32.mrf.mxu0  ;;  %v891_v4 = vpop.f32.mrf.mxu1 }
  0xf7   : > { %v647_v5 = vmax.f32 %v531_v1, 0.0  ;;  %v663_v6 = vmax.f32 %v595_v2, 0.0  ;;  %v844_v7 = vadd.f32 %v843_v3, %v842_v63  ;;  %v892_v8 = vadd.f32 %v891_v4, %v890_v0 }
  0xf8   : > { %v845_v9 = vpop.f32.mrf.mxu0  ;;  %v893_v10 = vpop.f32.mrf.mxu1 }
  0xf9   : > { %677 = vst [vmem:[%s1147_s30 + $0x8] sm:$0xff] %v647_v5  ;;  %693 = vst [vmem:[%s1147_s30 + $0x88] sm:$0xff] %v663_v6  ;;  %v536_v11 = vadd.f32 %v844_v7, %v1138_v48  ;;  %v600_v12 = vadd.f32 %v892_v8, %v1138_v48 }
  0xfa   : > { %v846_v13 = vpop.f32.mrf.mxu0  ;;  %v894_v14 = vpop.f32.mrf.mxu1 }
  0xfb   : > { %v648_v15 = vmax.f32 %v536_v11, 0.0  ;;  %v664_v16 = vmax.f32 %v600_v12, 0.0  ;;  %v847_v17 = vadd.f32 %v846_v13, %v845_v9  ;;  %v895_v18 = vadd.f32 %v894_v14, %v893_v10 }
  0xfc   : > { %v848_v19 = vpop.f32.mrf.mxu0  ;;  %v896_v20 = vpop.f32.mrf.mxu1 }
  0xfd   : > { %678 = vst [vmem:[%s1147_s30 + $0x10] sm:$0xff] %v648_v15  ;;  %694 = vst [vmem:[%s1147_s30 + $0x90] sm:$0xff] %v664_v16  ;;  %v539_v21 = vadd.f32 %v847_v17, %v1138_v48  ;;  %v603_v22 = vadd.f32 %v895_v18, %v1138_v48 }
  0xfe   : > { %v849_v23 = vpop.f32.mrf.mxu0  ;;  %v897_v24 = vpop.f32.mrf.mxu1 }
  0xff   : > { %v649_v25 = vmax.f32 %v539_v21, 0.0  ;;  %v665_v26 = vmax.f32 %v603_v22, 0.0  ;;  %v850_v27 = vadd.f32 %v849_v23, %v848_v19  ;;  %v898_v28 = vadd.f32 %v897_v24, %v896_v20 }
 0x100   : > { %v851_v29 = vpop.f32.mrf.mxu0  ;;  %v899_v30 = vpop.f32.mrf.mxu1 }
 0x101   : > { %679 = vst [vmem:[%s1147_s30 + $0x18] sm:$0xff] %v649_v25  ;;  %695 = vst [vmem:[%s1147_s30 + $0x98] sm:$0xff] %v665_v26  ;;  %v544_v31 = vadd.f32 %v850_v27, %v1138_v48  ;;  %v608_v32 = vadd.f32 %v898_v28, %v1138_v48 }
 0x102   : > { %v852_v33 = vpop.f32.mrf.mxu0  ;;  %v900_v34 = vpop.f32.mrf.mxu1 }
 0x103   : > { %v650_v35 = vmax.f32 %v544_v31, 0.0  ;;  %v666_v36 = vmax.f32 %v608_v32, 0.0  ;;  %v853_v37 = vadd.f32 %v852_v33, %v851_v29  ;;  %v901_v38 = vadd.f32 %v900_v34, %v899_v30 }
 0x104   : > { %v854_v39 = vpop.f32.mrf.mxu0  ;;  %v902_v40 = vpop.f32.mrf.mxu1 }
 0x105   : > { %680 = vst [vmem:[%s1147_s30 + $0x20] sm:$0xff] %v650_v35  ;;  %696 = vst [vmem:[%s1147_s30 + $0xa0] sm:$0xff] %v666_v36  ;;  %v547_v41 = vadd.f32 %v853_v37, %v1138_v48  ;;  %v611_v42 = vadd.f32 %v901_v38, %v1138_v48 }
 0x106   : > { %v855_v43 = vpop.f32.mrf.mxu0  ;;  %v903_v44 = vpop.f32.mrf.mxu1 }
 0x107   : > { %v651_v45 = vmax.f32 %v547_v41, 0.0  ;;  %v667_v46 = vmax.f32 %v611_v42, 0.0  ;;  %v856_v47 = vadd.f32 %v855_v43, %v854_v39  ;;  %v904_v49 = vadd.f32 %v903_v44, %v902_v40 }
 0x108   : > { %v857_v50 = vpop.f32.mrf.mxu0  ;;  %v905_v51 = vpop.f32.mrf.mxu1 }
 0x109   : > { %681 = vst [vmem:[%s1147_s30 + $0x28] sm:$0xff] %v651_v45  ;;  %697 = vst [vmem:[%s1147_s30 + $0xa8] sm:$0xff] %v667_v46  ;;  %v552_v52 = vadd.f32 %v856_v47, %v1138_v48  ;;  %v616_v53 = vadd.f32 %v904_v49, %v1138_v48 }
 0x10a   : > { %v858_v54 = vpop.f32.mrf.mxu0  ;;  %v906_v55 = vpop.f32.mrf.mxu1 }
 0x10b   : > { %v652_v56 = vmax.f32 %v552_v52, 0.0  ;;  %v668_v57 = vmax.f32 %v616_v53, 0.0  ;;  %v859_v58 = vadd.f32 %v858_v54, %v857_v50  ;;  %v907_v59 = vadd.f32 %v906_v55, %v905_v51 }
 0x10c   : > { %v860_v60 = vpop.f32.mrf.mxu0  ;;  %v908_v61 = vpop.f32.mrf.mxu1 }
 0x10d   : > { %682 = vst [vmem:[%s1147_s30 + $0x30] sm:$0xff] %v652_v56  ;;  %698 = vst [vmem:[%s1147_s30 + $0xb0] sm:$0xff] %v668_v57  ;;  %v555_v62 = vadd.f32 %v859_v58, %v1138_v48  ;;  %v619_v63 = vadd.f32 %v907_v59, %v1138_v48 }
 0x10e   : > { %v861_v0 = vpop.f32.mrf.mxu0  ;;  %v909_v1 = vpop.f32.mrf.mxu1 }
 0x10f   : > { %v653_v2 = vmax.f32 %v555_v62, 0.0  ;;  %v669_v3 = vmax.f32 %v619_v63, 0.0  ;;  %v862_v4 = vadd.f32 %v861_v0, %v860_v60  ;;  %v910_v5 = vadd.f32 %v909_v1, %v908_v61 }
 0x110   : > { %v863_v6 = vpop.f32.mrf.mxu0  ;;  %v911_v7 = vpop.f32.mrf.mxu1 }
 0x111   : > { %683 = vst [vmem:[%s1147_s30 + $0x38] sm:$0xff] %v653_v2  ;;  %699 = vst [vmem:[%s1147_s30 + $0xb8] sm:$0xff] %v669_v3  ;;  %v560_v8 = vadd.f32 %v862_v4, %v1138_v48  ;;  %v624_v9 = vadd.f32 %v910_v5, %v1138_v48 }
 0x112   : > { %v864_v10 = vpop.f32.mrf.mxu0  ;;  %v912_v11 = vpop.f32.mrf.mxu1 }
 0x113   : > { %v654_v12 = vmax.f32 %v560_v8, 0.0  ;;  %v670_v13 = vmax.f32 %v624_v9, 0.0  ;;  %v865_v14 = vadd.f32 %v864_v10, %v863_v6  ;;  %v913_v15 = vadd.f32 %v912_v11, %v911_v7 }
 0x114   : > { %v866_v16 = vpop.f32.mrf.mxu0  ;;  %v914_v17 = vpop.f32.mrf.mxu1 }
 0x115   : > { %684 = vst [vmem:[%s1147_s30 + $0x40] sm:$0xff] %v654_v12  ;;  %700 = vst [vmem:[%s1147_s30 + $0xc0] sm:$0xff] %v670_v13  ;;  %v563_v18 = vadd.f32 %v865_v14, %v1138_v48  ;;  %v627_v19 = vadd.f32 %v913_v15, %v1138_v48 }
 0x116   : > { %v867_v20 = vpop.f32.mrf.mxu0  ;;  %v915_v21 = vpop.f32.mrf.mxu1 }
 0x117   : > { %v655_v22 = vmax.f32 %v563_v18, 0.0  ;;  %v671_v23 = vmax.f32 %v627_v19, 0.0  ;;  %v868_v24 = vadd.f32 %v867_v20, %v866_v16  ;;  %v916_v25 = vadd.f32 %v915_v21, %v914_v17 }
 0x118   : > { %v869_v26 = vpop.f32.mrf.mxu0  ;;  %v917_v27 = vpop.f32.mrf.mxu1 }
 0x119   : > { %685 = vst [vmem:[%s1147_s30 + $0x48] sm:$0xff] %v655_v22  ;;  %701 = vst [vmem:[%s1147_s30 + $0xc8] sm:$0xff] %v671_v23  ;;  %v568_v28 = vadd.f32 %v868_v24, %v1138_v48  ;;  %v632_v29 = vadd.f32 %v916_v25, %v1138_v48 }
 0x11a   : > { %v870_v30 = vpop.f32.mrf.mxu0  ;;  %v918_v31 = vpop.f32.mrf.mxu1 }
 0x11b   : > { %v656_v32 = vmax.f32 %v568_v28, 0.0  ;;  %v672_v33 = vmax.f32 %v632_v29, 0.0  ;;  %v871_v34 = vadd.f32 %v870_v30, %v869_v26  ;;  %v919_v35 = vadd.f32 %v918_v31, %v917_v27 }
 0x11c   : > { %v872_v36 = vpop.f32.mrf.mxu0  ;;  %v920_v37 = vpop.f32.mrf.mxu1 }
 0x11d   : > { %686 = vst [vmem:[%s1147_s30 + $0x50] sm:$0xff] %v656_v32  ;;  %702 = vst [vmem:[%s1147_s30 + $0xd0] sm:$0xff] %v672_v33  ;;  %v571_v38 = vadd.f32 %v871_v34, %v1138_v48  ;;  %v635_v39 = vadd.f32 %v919_v35, %v1138_v48 }
 0x11e   : > { %v873_v40 = vpop.f32.mrf.mxu0  ;;  %v921_v41 = vpop.f32.mrf.mxu1 }
 0x11f   : > { %v657_v42 = vmax.f32 %v571_v38, 0.0  ;;  %v673_v43 = vmax.f32 %v635_v39, 0.0  ;;  %v874_v44 = vadd.f32 %v873_v40, %v872_v36  ;;  %v922_v45 = vadd.f32 %v921_v41, %v920_v37 }
 0x120   : > { %v875_v46 = vpop.f32.mrf.mxu0  ;;  %v923_v47 = vpop.f32.mrf.mxu1 }
 0x121   : > { %687 = vst [vmem:[%s1147_s30 + $0x58] sm:$0xff] %v657_v42  ;;  %703 = vst [vmem:[%s1147_s30 + $0xd8] sm:$0xff] %v673_v43  ;;  %v576_v49 = vadd.f32 %v874_v44, %v1138_v48  ;;  %v640_v50 = vadd.f32 %v922_v45, %v1138_v48 }
 0x122   : > { %v876_v51 = vpop.f32.mrf.mxu0  ;;  %v924_v52 = vpop.f32.mrf.mxu1 }
 0x123   : > { %v658_v53 = vmax.f32 %v576_v49, 0.0  ;;  %v674_v54 = vmax.f32 %v640_v50, 0.0  ;;  %v877_v55 = vadd.f32 %v876_v51, %v875_v46  ;;  %v925_v56 = vadd.f32 %v924_v52, %v923_v47 }
 0x124   : > { %v878_v57 = vpop.f32.mrf.mxu0 }
 0x125   : > { %688 = vst [vmem:[%s1147_s30 + $0x60] sm:$0xff] %v658_v53  ;;  %704 = vst [vmem:[%s1147_s30 + $0xe0] sm:$0xff] %v674_v54  ;;  %v579_v58 = vadd.f32 %v877_v55, %v1138_v48  ;;  %v643_v59 = vadd.f32 %v925_v56, %v1138_v48 }
 0x126   : > { %v879_v60 = vpop.f32.mrf.mxu0 }
 0x127   : > { %v659_v61 = vmax.f32 %v579_v58, 0.0  ;;  %v675_v62 = vmax.f32 %v643_v59, 0.0  ;;  %v880_v63 = vadd.f32 %v879_v60, %v878_v57 }
 0x128   : > { %v881_v0 = vpop.f32.mrf.mxu0 }
 0x129   : > { %689 = vst [vmem:[%s1147_s30 + $0x68] sm:$0xff] %v659_v61  ;;  %705 = vst [vmem:[%s1147_s30 + $0xe8] sm:$0xff] %v675_v62  ;;  %v584_v1 = vadd.f32 %v880_v63, %v1138_v48 }
 0x12a   : > { %v882_v2 = vpop.f32.mrf.mxu0 }
 0x12b   : > { %v660_v3 = vmax.f32 %v584_v1, 0.0  ;;  %v883_v4 = vadd.f32 %v882_v2, %v881_v0 }
 0x12d   : > { %690 = vst [vmem:[%s1147_s30 + $0x70] sm:$0xff] %v660_v3  ;;  %v587_v5 = vadd.f32 %v883_v4, %v1138_v48 }
 0x12f   : > { %v661_v6 = vmax.f32 %v587_v5, 0.0 }
 0x131   : > { %691 = vst [vmem:[%s1147_s30 + $0x78] sm:$0xff] %v661_v6 }
 0x132 PF: > { %s13_s12 = sadd.s32 1, %s1017_s12  }
 0x133   : > { %p10_p4 = scmp.ge.s32.totalorder %s13_s12, 4  }
 0x135   :  { %12 = sbr.rel (!%p10_p4) target bundleno = 1 (0x1), region = 62 }

// kernel: generator_forward.13
= control target key start
LH: loop header
LB: loop body
LE: loop exit
PB: predicated region body
PF: predicated region fallthrough
CT: control target
= control target key end

     0   :  { %s1455_s12 = smov 0   ;;  %s1699_s0 = inlined_call_operand.vmem [shape: bf16[1568,288], index: 0, kind: input, shape index: {}]   ;;  %s1700_s1 = inlined_call_operand.vmem [shape: bf16[288,128], index: 1, kind: input, shape index: {}]   ;;  %s1701_s2 = inlined_call_operand.vmem [shape: f32[1,128], index: 2, kind: input, shape index: {}]   ;;  %s1702_s3 = inlined_call_operand.vmem [shape: f32[1568,128], index: 3, kind: output, shape index: {}]  }
   0x1 LB: > { %s1040_s13 = sadd.s32 4294967295, %s1433_s12   ;;  %p1044_p0 = scmp.ge.s32.totalorder %s1433_s12, 1  ;;  %s1433_s12 = sphi %s1455_s12, %s13_s12  }
   0x2   : > { %p139_p1 = scmp.lt.s32.totalorder %s1433_s12, 8 }
   0x4   : > { %p140_p2 = pnand %p1044_p0, %p139_p1 }
   0x5   : > { %s164_s16 = smul.u32 (!%p140_p2), 28, %s1040_s13 }
   0x6   : > { %143 = sbr.rel (%p140_p2) target bundleno = 344 (0x158), region = 32 }
   0x7   : > { %p165_p3 = scmp.lt.s32.totalorder (!%p140_p2), %s164_s16, 195 }
   0xb   : > { %v1297_v0 = vld [vmem:[%s1700_s1 + $0x78] sm:$0xff]   ;;  %v1299_v2 = vld [vmem:[%s1700_s1 + $0x70] sm:$0xff]   ;;  %v1301_v4 = vld [vmem:[%s1700_s1 + $0x68] sm:$0xff]   ;;  %s1704_s16 = smov (!%p165_p3, %s164_s16), 195  ;;  %vm595_vm0 = vcmask 261120  }
   0xc   : > { %v1298_v1 = vld [vmem:[%s1700_s1 + $0x38] sm:$0xff]   ;;  %1124 = vmatprep.subr.bf16.mxu0 %v1297_v0  ;;  %1272 = vmatprep.subr.bf16.mxu1 %v1297_v0  ;;  %v1300_v3 = vld [vmem:[%s1700_s1 + $0x30] sm:$0xff]   ;;  %v1302_v5 = vld [vmem:[%s1700_s1 + $0x28] sm:$0xff]   ;;  %s1288_s29 = smul.u32 12, %s1704_s16  ;;  %s1046_s5 = sshll.u32 %s1704_s16, 3 }
   0xd   : > { %1125 = vmatpush3.bf16.msra.mxu0 %v1298_v1  ;;  %1280 = vmatpush3.bf16.msra.mxu1 %v1298_v1  ;;  %v1303_v6 = vld [vmem:[%s1700_s1 + $0x60] sm:$0xff]   ;;  %v1305_v8 = vld [vmem:[%s1700_s1 + $0x58] sm:$0xff]   ;;  %v1307_v10 = vld [vmem:[%s1700_s1 + $0x50] sm:$0xff]   ;;  %s1622_s8 = scalar_lea.vmem %s1702_s3, %s1046_s5 }
   0xe   : > { %1126 = vmatprep.subr.bf16.mxu0 %v1299_v2  ;;  %1273 = vmatprep.subr.bf16.mxu1 %v1299_v2  ;;  %v1304_v7 = vld [vmem:[%s1700_s1 + $0x20] sm:$0xff]   ;;  %s1496_s9 = scalar_lea.vmem %s1699_s0, %s1288_s29  ;;  %v1306_v9 = vld [vmem:[%s1700_s1 + $0x18] sm:$0xff]   ;;  %v1308_v13 = vld [vmem:[%s1700_s1 + $0x10] sm:$0xff]  }
   0xf   : > { %v1315_v11 = vld [vmem:[%s1496_s9 + $0x4] ss:$12 sps:$4 sm:$0xff]   ;;  %v1318_v12 = vld [vmem:[%s1496_s9 + $0x10c] ss:$12 sps:$4 sm:$0xff]   ;;  %v1316_v20 = vld [vmem:[%s1496_s9 + $0x108] ss:$12 sps:$4 sm:$0xff]  }
  0x10   : > { %v1309_v14 = vld [vmem:[%s1700_s1 + $0x48] sm:$0xff]   ;;  %670 = vmatprep.mubr.bf16.mxu0 %v1315_v11  ;;  %758 = vmatprep.mubr.bf16.mxu1 %v1318_v12  ;;  %v1311_v16 = vld [vmem:[%s1700_s1 + $0x40] sm:$0xff]   ;;  %v1330_v28 = vld [vmem:[%s1496_s9 + $0x30] ss:$12 sps:$4 sm:$0xff]  }
  0x11   : > { %1127 = vmatpush3.bf16.msra.mxu0 %v1300_v3  ;;  %1281 = vmatpush3.bf16.msra.mxu1 %v1300_v3  ;;  %v1310_v15 = vld [vmem:[%s1700_s1 + $0x8] sm:$0xff]   ;;  %v1312_v17 = vld [vmem:[%s1700_s1] sm:$0xff]   ;;  %v1342_v37 = vld [vmem:[%s1496_s9 + $0x50] ss:$12 sps:$4 sm:$0xff]  }
  0x12   : > { %1128 = vmatprep.subr.bf16.mxu0 %v1301_v4  ;;  %1274 = vmatprep.subr.bf16.mxu1 %v1301_v4  ;;  %v1325_v18 = vld [vmem:[%s1700_s1 + $0x88] sm:$0xff]   ;;  %v1321_v22 = vld [vmem:[%s1496_s9 + $0x124] ss:$12 sps:$4 sm:$0xff]   ;;  %v1326_v26 = vld [vmem:[%s1496_s9 + $0x34] ss:$12 sps:$4 sm:$0xff]  }
  0x13   : > { %v1313_v19 = vld [vmem:[%s1496_s9] ss:$12 sps:$4 sm:$0xff]   ;;  %v1319_v21 = vld [vmem:[%s1496_s9 + $0x1c] ss:$12 sps:$4 sm:$0xff]   ;;  %v1323_v24 = vld [vmem:[%s1496_s9 + $0x18] ss:$12 sps:$4 sm:$0xff]  }
  0x14   : > { %v1332_v23 = vld [vmem:[%s1700_s1 + $0x80] sm:$0xff]   ;;  %v1328_v27 = vld [vmem:[%s1496_s9 + $0x13c] ss:$12 sps:$4 sm:$0xff]   ;;  %v1333_v30 = vld [vmem:[%s1496_s9 + $0x4c] ss:$12 sps:$4 sm:$0xff]  }
  0x15   : > { %1129 = vmatpush3.bf16.msra.mxu0 %v1302_v5  ;;  %1282 = vmatpush3.bf16.msra.mxu1 %v1302_v5  ;;  %v1324_v25 = vld [vmem:[%s1496_s9 + $0x120] ss:$12 sps:$4 sm:$0xff]   ;;  %v1331_v29 = vld [vmem:[%s1496_s9 + $0x138] ss:$12 sps:$4 sm:$0xff]   ;;  %v1335_v31 = vld [vmem:[%s1496_s9 + $0x8] ss:$12 sps:$4 sm:$0xff]  }
  0x16   : > { %1130 = vmatprep.subr.bf16.mxu0 %v1303_v6  ;;  %1275 = vmatprep.subr.bf16.mxu1 %v1303_v6  ;;  %v1336_v32 = vld [vmem:[%s1496_s9 + $0x48] ss:$12 sps:$4 sm:$0xff]   ;;  %v1337_v33 = vld [vmem:[%s1496_s9 + $0x20] ss:$12 sps:$4 sm:$0xff]   ;;  %v1338_v34 = vld [vmem:[%s1496_s9 + $0x64] ss:$12 sps:$4 sm:$0xff]  }
  0x17   : > { %v1340_v35 = vld [vmem:[%s1496_s9 + $0x38] ss:$12 sps:$4 sm:$0xff]   ;;  %v1341_v36 = vld [vmem:[%s1496_s9 + $0x60] ss:$12 sps:$4 sm:$0xff]   ;;  %v1343_v38 = vld [vmem:[%s1496_s9 + $0x7c] ss:$12 sps:$4 sm:$0xff]  }
  0x18   : > { %v1345_v39 = vld [vmem:[%s1496_s9 + $0x68] ss:$12 sps:$4 sm:$0xff]   ;;  %v1346_v40 = vld [vmem:[%s1496_s9 + $0x78] ss:$12 sps:$4 sm:$0xff]   ;;  %v1347_v41 = vld [vmem:[%s1496_s9 + $0x80] ss:$12 sps:$4 sm:$0xff]  }
  0x19   : > { %1131 = vmatpush3.bf16.msra.mxu0 %v1304_v7  ;;  %1283 = vmatpush3.bf16.msra.mxu1 %v1304_v7  ;;  %v1348_v42 = vld [vmem:[%s1496_s9 + $0x94] ss:$12 sps:$4 sm:$0xff]   ;;  %v1350_v43 = vld [vmem:[%s1496_s9 + $0x98] ss:$12 sps:$4 sm:$0xff]   ;;  %v1351_v44 = vld [vmem:[%s1496_s9 + $0x90] ss:$12 sps:$4 sm:$0xff]  }
  0x1a   : > { %1132 = vmatprep.subr.bf16.mxu0 %v1305_v8  ;;  %1276 = vmatprep.subr.bf16.mxu1 %v1305_v8  ;;  %v1352_v45 = vld [vmem:[%s1496_s9 + $0xb0] ss:$12 sps:$4 sm:$0xff]   ;;  %v1353_v46 = vld [vmem:[%s1496_s9 + $0xac] ss:$12 sps:$4 sm:$0xff]   ;;  %v1355_v47 = vld [vmem:[%s1496_s9 + $0xc8] ss:$12 sps:$4 sm:$0xff]  }
  0x1b   : > { %v1356_v48 = vld [vmem:[%s1496_s9 + $0xa8] ss:$12 sps:$4 sm:$0xff]   ;;  %v1357_v49 = vld [vmem:[%s1496_s9 + $0xe0] ss:$12 sps:$4 sm:$0xff]   ;;  %v1358_v50 = vld [vmem:[%s1496_s9 + $0xc4] ss:$12 sps:$4 sm:$0xff]  }
  0x1c   : > { %v1360_v51 = vld [vmem:[%s1496_s9 + $0xf8] ss:$12 sps:$4 sm:$0xff]   ;;  %v1361_v52 = vld [vmem:[%s1496_s9 + $0xc0] ss:$12 sps:$4 sm:$0xff]   ;;  %v1362_v53 = vld [vmem:[%s1496_s9 + $0x110] ss:$12 sps:$4 sm:$0xff]  }
  0x1d   : > { %1133 = vmatpush3.bf16.msra.mxu0 %v1306_v9  ;;  %1284 = vmatpush3.bf16.msra.mxu1 %v1306_v9  ;;  %v1363_v54 = vld [vmem:[%s1496_s9 + $0xdc] ss:$12 sps:$4 sm:$0xff]   ;;  %v1366_v56 = vld [vmem:[%s1496_s9 + $0xd8] ss:$12 sps:$4 sm:$0xff]   ;;  %v1367_v57 = vld [vmem:[%s1496_s9 + $0x140] ss:$12 sps:$4 sm:$0xff]  }
  0x1e   : > { %1134 = vmatprep.subr.bf16.mxu0 %v1307_v10  ;;  %1277 = vmatprep.subr.bf16.mxu1 %v1307_v10  ;;  %v1365_v55 = vld [vmem:[%s1496_s9 + $0x128] ss:$12 sps:$4 sm:$0xff]   ;;  %v1370_v59 = vld [vmem:[%s1496_s9 + $0xf0] ss:$12 sps:$4 sm:$0xff]  }
  0x1f   : > { %v1368_v58 = vld [vmem:[%s1496_s9 + $0xf4] ss:$12 sps:$4 sm:$0xff]  }
  0x21   : > { %1135 = vmatpush3.bf16.msra.mxu0 %v1308_v13  ;;  %1285 = vmatpush3.bf16.msra.mxu1 %v1308_v13 }
  0x22   : > { %1136 = vmatprep.subr.bf16.mxu0 %v1309_v14  ;;  %1278 = vmatprep.subr.bf16.mxu1 %v1309_v14 }
  0x25   : > { %1137 = vmatpush3.bf16.msra.mxu0 %v1310_v15  ;;  %1286 = vmatpush3.bf16.msra.mxu1 %v1310_v15 }
  0x26   : > { %1138 = vmatprep.subr.bf16.mxu0 %v1311_v16  ;;  %1279 = vmatprep.subr.bf16.mxu1 %v1311_v16 }
  0x29   : > { %1139 = vmatpush3.bf16.msra.mxu0 %v1312_v17  ;;  %1287 = vmatpush3.bf16.msra.mxu1 %v1312_v17 }
  0x2a   : > { %1240 = vmatprep.subr.bf16.mxu1 %v1325_v18 }
  0x2c   : > { %671 = vmatmul.mubr.bf16.vlgmr.msra.gmra.mxu0 %v1313_v19  ;;  %759 = vmatmul.mubr.bf16.vlgmr.msra.gmra.mxu1 %v1316_v20 }
  0x2d   : > { %678 = vmatprep.mubr.bf16.mxu0 %v1319_v21  ;;  %766 = vmatprep.mubr.bf16.mxu1 %v1321_v22  ;;  %v1608_v22 = vld [vmem:[%s1701_s2] ss:$0 sm:$0xff] }
  0x2e   : > { %1241 = vmatpush3.bf16.msra.mxu1 %v1325_v18 }
  0x2f   : > { %1242 = vmatprep.subr.bf16.mxu1 %v1332_v23 }
  0x32   : > { %1243 = vmatpush3.bf16.msra.mxu1 %v1332_v23 }
  0x34   : > { %679 = vmatmul.mubr.bf16.gmra.mxu0 %v1323_v24  ;;  %767 = vmatmul.mubr.bf16.gmra.mxu1 %v1324_v25 }
  0x35   : > { %686 = vmatprep.mubr.bf16.mxu0 %v1326_v26  ;;  %774 = vmatprep.mubr.bf16.mxu1 %v1328_v27 }
  0x3c   : > { %687 = vmatmul.mubr.bf16.gmra.mxu0 %v1330_v28  ;;  %775 = vmatmul.mubr.bf16.gmra.mxu1 %v1331_v29 }
  0x3d   : > { %694 = vmatprep.mubr.bf16.mxu0 %v1333_v30  ;;  %1244 = vmatprep.mubr.msk.bf16.mxu1 %vm595_vm0, %v1335_v31 }
  0x44   : > { %695 = vmatmul.mubr.bf16.gmra.mxu0 %v1336_v32  ;;  %1245 = vmatmul.mubr.msk.bf16.vlgmr.msra.gmra.mxu1 %vm595_vm0, %v1337_v33 }
  0x45   : > { %702 = vmatprep.mubr.bf16.mxu0 %v1338_v34  ;;  %1248 = vmatprep.mubr.msk.bf16.mxu1 %vm595_vm0, %v1340_v35 }
  0x4c   : > { %703 = vmatmul.mubr.bf16.gmra.mxu0 %v1341_v36  ;;  %1249 = vmatmul.mubr.msk.bf16.gmra.mxu1 %vm595_vm0, %v1342_v37 }
  0x4d   : > { %710 = vmatprep.mubr.bf16.mxu0 %v1343_v38  ;;  %1252 = vmatprep.mubr.msk.bf16.mxu1 %vm595_vm0, %v1345_v39 }
  0x54   : > { %711 = vmatmul.mubr.bf16.gmra.mxu0 %v1346_v40  ;;  %1253 = vmatmul.mubr.msk.bf16.gmra.mxu1 %vm595_vm0, %v1347_v41 }
  0x55   : > { %718 = vmatprep.mubr.bf16.mxu0 %v1348_v42  ;;  %1256 = vmatprep.mubr.msk.bf16.mxu1 %vm595_vm0, %v1350_v43 }
  0x5c   : > { %719 = vmatmul.mubr.bf16.gmra.mxu0 %v1351_v44  ;;  %1257 = vmatmul.mubr.msk.bf16.gmra.mxu1 %vm595_vm0, %v1352_v45 }
  0x5d   : > { %726 = vmatprep.mubr.bf16.mxu0 %v1353_v46  ;;  %1260 = vmatprep.mubr.msk.bf16.mxu1 %vm595_vm0, %v1355_v47 }
  0x64   : > { %727 = vmatmul.mubr.bf16.gmra.mxu0 %v1356_v48  ;;  %1261 = vmatmul.mubr.msk.bf16.gmra.mxu1 %vm595_vm0, %v1357_v49 }
  0x65   : > { %734 = vmatprep.mubr.bf16.mxu0 %v1358_v50  ;;  %1264 = vmatprep.mubr.msk.bf16.mxu1 %vm595_vm0, %v1360_v51 }
  0x6c   : > { %735 = vmatmul.mubr.bf16.gmra.mxu0 %v1361_v52  ;;  %1265 = vmatmul.mubr.msk.bf16.gmra.mxu1 %vm595_vm0, %v1362_v53 }
  0x6d   : > { %742 = vmatprep.mubr.bf16.mxu0 %v1363_v54  ;;  %1268 = vmatprep.mubr.msk.bf16.mxu1 %vm595_vm0, %v1365_v55 }
  0x74   : > { %743 = vmatmul.mubr.bf16.gmra.mxu0 %v1366_v56  ;;  %1269 = vmatmul.mubr.msk.bf16.gmra.mxu1 %vm595_vm0, %v1367_v57 }
  0x75   : > { %750 = vmatprep.mubr.bf16.mxu0 %v1368_v58 }
  0x7c   : > { %751 = vmatmul.mubr.bf16.gmra.mxu0 %v1370_v59 }
  0xec   : > { %v1140_v60 = vpop.f32.mrf.mxu0  ;;  %v1581_v61 = vpop.f32.mrf.mxu1 }
  0xee   : > { %v1141_v62 = vpop.f32.mrf.mxu0  ;;  %v1583_v63 = vpop.f32.mrf.mxu1 }
  0xef   : > { %v1142_v19 = vadd.f32 %v1141_v62, %v1140_v60 }
  0xf0   : > { %v1143_v0 = vpop.f32.mrf.mxu0  ;;  %v1585_v1 = vpop.f32.mrf.mxu1 }
  0xf1   : > { %v673_v29 = vadd.f32 %v1142_v19, %v1608_v22 }
  0xf2   : > { %v1144_v2 = vpop.f32.mrf.mxu0  ;;  %v1587_v3 = vpop.f32.mrf.mxu1 }
  0xf3   : > { %v1145_v27 = vadd.f32 %v1144_v2, %v1143_v0 }
  0xf4   : > { %v1146_v4 = vpop.f32.mrf.mxu0  ;;  %v1589_v5 = vpop.f32.mrf.mxu1 }
  0xf5   : > { %v676_v39 = vadd.f32 %v1145_v27, %v1608_v22 }
  0xf6   : > { %v1147_v6 = vpop.f32.mrf.mxu0  ;;  %v1591_v7 = vpop.f32.mrf.mxu1 }
  0xf7   : > { %v1148_v16 = vadd.f32 %v1147_v6, %v1146_v4 }
  0xf8   : > { %v1149_v8 = vpop.f32.mrf.mxu0  ;;  %v1593_v9 = vpop.f32.mrf.mxu1 }
  0xf9   : > { %v681_v24 = vadd.f32 %v1148_v16, %v1608_v22 }
  0xfa   : > { %v1150_v10 = vpop.f32.mrf.mxu0  ;;  %v1595_v11 = vpop.f32.mrf.mxu1 }
  0xfb   : > { %v1151_v23 = vadd.f32 %v1150_v10, %v1149_v8 }
  0xfc   : > { %v1152_v12 = vpop.f32.mrf.mxu0  ;;  %v1597_v13 = vpop.f32.mrf.mxu1 }
  0xfd   : > { %v684_v34 = vadd.f32 %v1151_v23, %v1608_v22 }
  0xfe   : > { %v1153_v14 = vpop.f32.mrf.mxu0  ;;  %v1599_v15 = vpop.f32.mrf.mxu1 }
  0xff   : > { %v1154_v37 = vadd.f32 %v1153_v14, %v1152_v12 }
 0x100   : > { %v1155_v17 = vpop.f32.mrf.mxu0  ;;  %v1601_v18 = vpop.f32.mrf.mxu1 }
 0x101   : > { %v689_v49 = vadd.f32 %v1154_v37, %v1608_v22 }
 0x102   : > { %v1156_v20 = vpop.f32.mrf.mxu0  ;;  %v1603_v21 = vpop.f32.mrf.mxu1 }
 0x103   : > { %v1157_v47 = vadd.f32 %v1156_v20, %v1155_v17 }
 0x104   : > { %v1158_v25 = vpop.f32.mrf.mxu0  ;;  %v1246_v26 = vpop.f32.mrf.mxu1 }
 0x105   : > { %v826_v28 = vadd.f32 %v1246_v26, %v681_v24  ;;  %v692_v58 = vadd.f32 %v1157_v47, %v1608_v22 }
 0x106   : > { %v1159_v30 = vpop.f32.mrf.mxu0  ;;  %v817_v31 = vpop.f32.mrf.mxu1 }
 0x107   : > { %1371 = vtanh.f32 %v826_v28  ;;  %v1160_v32 = vadd.f32 %v1159_v30, %v1158_v25  ;;  %v818_v33 = vadd.f32 %v817_v31, %v673_v29 }
 0x108   : > { %v1161_v35 = vpop.f32.mrf.mxu0  ;;  %v1247_v36 = vpop.f32.mrf.mxu1 }
 0x109   : > { %1373 = vtanh.f32 %v818_v33  ;;  %v829_v38 = vadd.f32 %v1247_v36, %v684_v34  ;;  %v697_v44 = vadd.f32 %v1160_v32, %v1608_v22 }
 0x10a   : > { %v1162_v40 = vpop.f32.mrf.mxu0  ;;  %v820_v41 = vpop.f32.mrf.mxu1 }
 0x10b   : > { %1375 = vtanh.f32 %v829_v38  ;;  %v1163_v42 = vadd.f32 %v1162_v40, %v1161_v35  ;;  %v821_v43 = vadd.f32 %v820_v41, %v676_v39 }
 0x10c   : > { %v1164_v45 = vpop.f32.mrf.mxu0  ;;  %v1250_v46 = vpop.f32.mrf.mxu1 }
 0x10d   : > { %1377 = vtanh.f32 %v821_v43  ;;  %v842_v48 = vadd.f32 %v1250_v46, %v697_v44  ;;  %v700_v53 = vadd.f32 %v1163_v42, %v1608_v22 }
 0x10e   : > { %v1165_v50 = vpop.f32.mrf.mxu0  ;;  %v833_v51 = vpop.f32.mrf.mxu1 }
 0x10f   : > { %1379 = vtanh.f32 %v842_v48  ;;  %v834_v52 = vadd.f32 %v833_v51, %v689_v49  ;;  %v1166_v56 = vadd.f32 %v1165_v50, %v1164_v45 }
 0x110   : > { %v1167_v54 = vpop.f32.mrf.mxu0  ;;  %v1251_v55 = vpop.f32.mrf.mxu1 }
 0x111   : > { %1381 = vtanh.f32 %v834_v52  ;;  %v845_v57 = vadd.f32 %v1251_v55, %v700_v53  ;;  %v705_v8 = vadd.f32 %v1166_v56, %v1608_v22  ;;  %v1208_v56 = vadd.f32 %v1583_v63, %v1581_v61 }
 0x112   : > { %v1168_v59 = vpop.f32.mrf.mxu0  ;;  %v836_v60 = vpop.f32.mrf.mxu1 }
 0x113   : > { %1383 = vtanh.f32 %v845_v57  ;;  %v837_v62 = vadd.f32 %v836_v60, %v692_v58  ;;  %v1169_v6 = vadd.f32 %v1168_v59, %v1167_v54 }
 0x114   : > { %v1372_v0 = vpop.eup %1371  ;;  %v1170_v2 = vpop.f32.mrf.mxu0 }
 0x115   : > { %v1254_v4 = vpop.f32.mrf.mxu1  ;;  %958 = vst [vmem:[%s1622_s8 + $0x10] sm:$0xff] %v1372_v0  ;;  %1385 = vtanh.f32 %v837_v62  ;;  %v708_v25 = vadd.f32 %v1169_v6, %v1608_v22 }
 0x116   : > { %v1374_v10 = vpop.eup %1373  ;;  %v1171_v12 = vpop.f32.mrf.mxu0 }
 0x117   : > { %v849_v14 = vpop.f32.mrf.mxu1  ;;  %956 = vst [vmem:[%s1622_s8] sm:$0xff] %v1374_v10  ;;  %v1172_v16 = vadd.f32 %v1171_v12, %v1170_v2  ;;  %v1211_v2 = vadd.f32 %v1587_v3, %v1585_v1  ;;  %v761_v10 = vadd.f32 %v1208_v56, %v1608_v22  ;;  %v1220_v3 = vadd.f32 %v1599_v15, %v1597_v13 }
 0x118   : > { %v850_v17 = vadd.f32 %v849_v14, %v705_v8  ;;  %v1376_v19 = vpop.eup %1375  ;;  %v1173_v20 = vpop.f32.mrf.mxu0 }
 0x119   : > { %v1255_v23 = vpop.f32.mrf.mxu1  ;;  %959 = vst [vmem:[%s1622_s8 + $0x18] sm:$0xff] %v1376_v19  ;;  %v713_v24 = vadd.f32 %v1172_v16, %v1608_v22  ;;  %v764_v1 = vadd.f32 %v1211_v2, %v1608_v22 }
 0x11a   : > { %1387 = vtanh.f32 %v850_v17  ;;  %v1378_v26 = vpop.eup %1377  ;;  %v1174_v27 = vpop.f32.mrf.mxu0 }
 0x11b   : > { %v852_v28 = vpop.f32.mrf.mxu1  ;;  %957 = vst [vmem:[%s1622_s8 + $0x8] sm:$0xff] %v1378_v26  ;;  %v858_v29 = vadd.f32 %v1254_v4, %v713_v24  ;;  %v1175_v30 = vadd.f32 %v1174_v27, %v1173_v20  ;;  %v1214_v26 = vadd.f32 %v1591_v7, %v1589_v5  ;;  %v777_v5 = vadd.f32 %v1220_v3, %v1608_v22 }
 0x11c   : > { %v853_v31 = vadd.f32 %v852_v28, %v708_v25  ;;  %v1380_v32 = vpop.eup %1379  ;;  %v1176_v33 = vpop.f32.mrf.mxu0 }
 0x11d   : > { %v1258_v34 = vpop.f32.mrf.mxu1  ;;  %962 = vst [vmem:[%s1622_s8 + $0x30] sm:$0xff] %v1380_v32  ;;  %1389 = vtanh.f32 %v858_v29  ;;  %v716_v35 = vadd.f32 %v1175_v30, %v1608_v22  ;;  %v1223_v32 = vadd.f32 %v1603_v21, %v1601_v18 }
 0x11e   : > { %v1382_v36 = vpop.eup %1381  ;;  %1391 = vtanh.f32 %v853_v31  ;;  %v1177_v37 = vpop.f32.mrf.mxu0 }
 0x11f   : > { %v865_v38 = vpop.f32.mrf.mxu1  ;;  %960 = vst [vmem:[%s1622_s8 + $0x20] sm:$0xff] %v1382_v36  ;;  %v861_v39 = vadd.f32 %v1255_v23, %v716_v35  ;;  %v1178_v40 = vadd.f32 %v1177_v37, %v1176_v33  ;;  %v769_v36 = vadd.f32 %v1214_v26, %v1608_v22  ;;  %v1217_v37 = vadd.f32 %v1595_v11, %v1593_v9 }
 0x120   : > { %v1384_v41 = vpop.eup %1383  ;;  %v1179_v42 = vpop.f32.mrf.mxu0 }
 0x121   : > { %v1259_v43 = vpop.f32.mrf.mxu1  ;;  %963 = vst [vmem:[%s1622_s8 + $0x38] sm:$0xff] %v1384_v41  ;;  %1393 = vtanh.f32 %v861_v39  ;;  %v721_v44 = vadd.f32 %v1178_v40, %v1608_v22  ;;  %v780_v41 = vadd.f32 %v1223_v32, %v1608_v22 }
 0x122   : > { %v1386_v45 = vpop.eup %1385  ;;  %v1180_v46 = vpop.f32.mrf.mxu0 }
 0x123   : > { %v868_v47 = vpop.f32.mrf.mxu1  ;;  %961 = vst [vmem:[%s1622_s8 + $0x28] sm:$0xff] %v1386_v45  ;;  %v866_v48 = vadd.f32 %v865_v38, %v721_v44  ;;  %v1181_v49 = vadd.f32 %v1180_v46, %v1179_v42 }
 0x124   : > { %v1182_v50 = vpop.f32.mrf.mxu0 }
 0x125   : > { %v1637_v51 = vpop.f32.mrf.mxu1  ;;  %1395 = vtanh.f32 %v866_v48  ;;  %v724_v52 = vadd.f32 %v1181_v49, %v1608_v22 }
 0x126   : > { %v1183_v54 = vpop.f32.mrf.mxu0 }
 0x127   : > { %v1388_v53 = vpop.eup %1387  ;;  %v881_v55 = vpop.f32.mrf.mxu1  ;;  %v869_v57 = vadd.f32 %v868_v47, %v724_v52  ;;  %v1184_v58 = vadd.f32 %v1183_v54, %v1182_v50  ;;  %v772_v47 = vadd.f32 %v1217_v37, %v1608_v22 }
 0x128   : > { %964 = vst [vmem:[%s1622_s8 + $0x40] sm:$0xff] %v1388_v53  ;;  %v1185_v59 = vpop.f32.mrf.mxu0 }
 0x129   : > { %v1643_v60 = vpop.f32.mrf.mxu1  ;;  %1397 = vtanh.f32 %v869_v57  ;;  %v729_v62 = vadd.f32 %v1184_v58, %v1608_v22 }
 0x12a   : > { %v1390_v0 = vpop.eup %1389  ;;  %v1186_v4 = vpop.f32.mrf.mxu0 }
 0x12b   : > { %v884_v6 = vpop.f32.mrf.mxu1  ;;  %v1392_v8 = vpop.eup %1391  ;;  %966 = vst [vmem:[%s1622_s8 + $0x50] sm:$0xff] %v1390_v0  ;;  %v874_v61 = vadd.f32 %v1258_v34, %v729_v62  ;;  %v1187_v63 = vadd.f32 %v1186_v4, %v1185_v59 }
 0x12c   : > { %965 = vst [vmem:[%s1622_s8 + $0x48] sm:$0xff] %v1392_v8  ;;  %v1188_v12 = vpop.f32.mrf.mxu0 }
 0x12d   : > { %v1266_v14 = vpop.f32.mrf.mxu1  ;;  %1399 = vtanh.f32 %v874_v61  ;;  %v732_v16 = vadd.f32 %v1187_v63, %v1608_v22 }
 0x12e   : > { %v906_v17 = vadd.f32 %v1266_v14, %v761_v10  ;;  %v1394_v19 = vpop.eup %1393  ;;  %v1189_v20 = vpop.f32.mrf.mxu0 }
 0x12f   : > { %v1652_v23 = vpop.f32.mrf.mxu1  ;;  %967 = vst [vmem:[%s1622_s8 + $0x58] sm:$0xff] %v1394_v19  ;;  %v877_v24 = vadd.f32 %v1259_v43, %v732_v16  ;;  %v1190_v25 = vadd.f32 %v1189_v20, %v1188_v12 }
 0x130   : > { %1401 = vtanh.f32 %v906_v17  ;;  %v1191_v27 = vpop.f32.mrf.mxu0 }
 0x131   : > { %v1267_v28 = vpop.f32.mrf.mxu1  ;;  %1403 = vtanh.f32 %v877_v24  ;;  %v737_v29 = vadd.f32 %v1190_v25, %v1608_v22 }
 0x132   : > { %v909_v30 = vadd.f32 %v1267_v28, %v764_v1  ;;  %v1396_v31 = vpop.eup %1395  ;;  %v1192_v33 = vpop.f32.mrf.mxu0 }
 0x133   : > { %v1663_v34 = vpop.f32.mrf.mxu1  ;;  %968 = vst [vmem:[%s1622_s8 + $0x60] sm:$0xff] %v1396_v31  ;;  %v882_v13 = vadd.f32 %v881_v55, %v737_v29  ;;  %v1193_v15 = vadd.f32 %v1192_v33, %v1191_v27 }
 0x134   : > { %1405 = vtanh.f32 %v909_v30  ;;  %v1194_v7 = vpop.f32.mrf.mxu0 }
 0x135   : > { %v1270_v35 = vpop.f32.mrf.mxu1  ;;  %1407 = vtanh.f32 %v882_v13  ;;  %v740_v18 = vadd.f32 %v1193_v15, %v1608_v22 }
 0x136   : > { %v922_v21 = vadd.f32 %v1270_v35, %v777_v5  ;;  %v1398_v38 = vpop.eup %1397  ;;  %v1195_v39 = vpop.f32.mrf.mxu0 }
 0x137   : > { %v913_v40 = vpop.f32.mrf.mxu1  ;;  %969 = vst [vmem:[%s1622_s8 + $0x68] sm:$0xff] %v1398_v38  ;;  %v885_v42 = vadd.f32 %v884_v6, %v740_v18  ;;  %v1196_v43 = vadd.f32 %v1195_v39, %v1194_v7 }
 0x138   : > { %1409 = vtanh.f32 %v922_v21  ;;  %v914_v44 = vadd.f32 %v913_v40, %v769_v36  ;;  %v1197_v45 = vpop.f32.mrf.mxu0 }
 0x139   : > { %v1271_v46 = vpop.f32.mrf.mxu1  ;;  %1411 = vtanh.f32 %v885_v42  ;;  %v745_v9 = vadd.f32 %v1196_v43, %v1608_v22 }
 0x13a   : > { %v925_v11 = vadd.f32 %v1271_v46, %v780_v41  ;;  %v1400_v48 = vpop.eup %1399  ;;  %1413 = vtanh.f32 %v914_v44  ;;  %v1198_v49 = vpop.f32.mrf.mxu0 }
 0x13b   : > { %v916_v50 = vpop.f32.mrf.mxu1  ;;  %970 = vst [vmem:[%s1622_s8 + $0x70] sm:$0xff] %v1400_v48  ;;  %v890_v52 = vadd.f32 %v1637_v51, %v745_v9  ;;  %v1199_v53 = vadd.f32 %v1198_v49, %v1197_v45 }
 0x13c   : > { %1415 = vtanh.f32 %v925_v11  ;;  %v917_v54 = vadd.f32 %v916_v50, %v772_v47  ;;  %v1200_v56 = vpop.f32.mrf.mxu0 }
 0x13d   : > { %v1402_v55 = vpop.eup %1401  ;;  %1417 = vtanh.f32 %v890_v52  ;;  %v748_v57 = vadd.f32 %v1199_v53, %v1608_v22 }
 0x13e   : > { %978 = vst [vmem:[%s1622_s8 + $0xb0] sm:$0xff] %v1402_v55  ;;  %v1404_v58 = vpop.eup %1403  ;;  %1419 = vtanh.f32 %v917_v54  ;;  %v1201_v59 = vpop.f32.mrf.mxu0 }
 0x13f   : > { %971 = vst [vmem:[%s1622_s8 + $0x78] sm:$0xff] %v1404_v58  ;;  %v893_v62 = vadd.f32 %v1643_v60, %v748_v57  ;;  %v1202_v0 = vadd.f32 %v1201_v59, %v1200_v56 }
 0x140   : > { %v1203_v2 = vpop.f32.mrf.mxu0 }
 0x141   : > { %v1406_v51 = vpop.eup %1405  ;;  %1421 = vtanh.f32 %v893_v62  ;;  %v753_v4 = vadd.f32 %v1202_v0, %v1608_v22 }
 0x142   : > { %979 = vst [vmem:[%s1622_s8 + $0xb8] sm:$0xff] %v1406_v51  ;;  %v1408_v6 = vpop.eup %1407  ;;  %v1204_v8 = vpop.f32.mrf.mxu0 }
 0x143   : > { %972 = vst [vmem:[%s1622_s8 + $0x80] sm:$0xff] %v1408_v6  ;;  %v898_v61 = vadd.f32 %v1652_v23, %v753_v4  ;;  %v1205_v63 = vadd.f32 %v1204_v8, %v1203_v2 }
 0x145   : > { %v1410_v10 = vpop.eup %1409  ;;  %1423 = vtanh.f32 %v898_v61  ;;  %v756_v60 = vadd.f32 %v1205_v63, %v1608_v22 }
 0x146   : > { %982 = vst [vmem:[%s1622_s8 + $0xd0] sm:$0xff] %v1410_v10  ;;  %v1412_v12 = vpop.eup %1411 }
 0x147   : > { %v1414_v14 = vpop.eup %1413  ;;  %973 = vst [vmem:[%s1622_s8 + $0x88] sm:$0xff] %v1412_v12  ;;  %v901_v16 = vadd.f32 %v1663_v34, %v756_v60 }
 0x148   : > { %980 = vst [vmem:[%s1622_s8 + $0xc0] sm:$0xff] %v1414_v14 }
 0x149   : > { %v1416_v17 = vpop.eup %1415  ;;  %1425 = vtanh.f32 %v901_v16 }
 0x14a   : > { %983 = vst [vmem:[%s1622_s8 + $0xd8] sm:$0xff] %v1416_v17  ;;  %v1418_v19 = vpop.eup %1417 }
 0x14b   : > { %v1420_v20 = vpop.eup %1419  ;;  %974 = vst [vmem:[%s1622_s8 + $0x90] sm:$0xff] %v1418_v19 }
 0x14c   : > { %981 = vst [vmem:[%s1622_s8 + $0xc8] sm:$0xff] %v1420_v20 }
 0x14e   : > { %v1422_v23 = vpop.eup %1421 }
 0x14f   : > { %975 = vst [vmem:[%s1622_s8 + $0x98] sm:$0xff] %v1422_v23 }
 0x152   : > { %v1424_v1 = vpop.eup %1423 }
 0x153   : > { %976 = vst [vmem:[%s1622_s8 + $0xa0] sm:$0xff] %v1424_v1 }
 0x156   : > { %v1426_v22 = vpop.eup %1425 }
 0x157   : > { %977 = vst [vmem:[%s1622_s8 + $0xa8] sm:$0xff] %v1426_v22 }
 0x158 PF: > { %s13_s12 = sadd.s32 1, %s1433_s12  }
 0x159   : > { %p10_p4 = scmp.ge.s32.totalorder %s13_s12, 9  }
 0x15b   :  { %12 = sbr.rel (!%p10_p4) target bundleno = 1 (0x1), region = 62 }

</bundles_post_ra>
